<compile_context>
chip_gen: v6e
topology: v6e:2x2x1
jax: 0.10.0
libtpu: 0.0.40
codegen_flags: <defaults>
</compile_context>

<pallas_src>
from functools import partial

import jax
import jax.numpy as jnp
from jax.experimental import pallas as pl
from jax.experimental.pallas import tpu as pltpu

CPAD = 128  # pad all channel dims to one full lane width


# ----------------------------- fused Pallas kernel ---------------------------

def state_encoder_kernel(x_ref, w1_ref, b1_ref, w2_ref, b2_ref, w3_ref, b3_ref,
                         wf_ref, bf_ref, o_ref, pad_ref, patch_ref):
    """All operands are full-array VMEM blocks.
       x_ref  : (B, H, W, CPAD)      NHWC input, channels 2..127 are zero
       wN_ref : (9*CPAD, CPAD)       zero-padded im2col conv weights
       bN_ref : (1, CPAD)            zero-padded biases
       wf_ref : (H*W*CPAD, d_state)  fc weight, rows in NHWC flatten order
       bf_ref : (1, d_state)
       o_ref  : (B, d_state)
       pad_ref  : VMEM (B, H+2, W+2, CPAD)  zero-bordered activation scratch
       patch_ref: VMEM (B*H*W, 9*CPAD)      im2col patch matrix scratch"""
    B, Hh, Ww, _ = x_ref.shape
    BHW = B * Hh * Ww

    # Zero the padded-activation scratch once; the 1-pixel border stays zero for
    # all three conv layers (only the interior is rewritten per layer).
    pad_ref[...] = jnp.zeros_like(pad_ref)

    def conv3x3_lrelu(x, w_ref, b_ref):
        # In-kernel zero padding: scatter the interior into the zero-bordered scratch.
        pad_ref[:, 1:Hh + 1, 1:Ww + 1, :] = x
        # im2col: 9 lane-aligned (128-wide) writes build the (BHW, 9*CPAD) patch matrix.
        for t in range(9):
            dy, dx = t // 3, t % 3
            win = pad_ref[:, dy:dy + Hh, dx:dx + Ww, :]            # (B, H, W, CPAD)
            patch_ref[:, t * CPAD:(t + 1) * CPAD] = win.reshape(BHW, CPAD)
        # One MXU matmul per conv layer, fused bias + LeakyReLU(0.01).
        y = jnp.dot(patch_ref[...], w_ref[...],
                    preferred_element_type=jnp.float32) + b_ref[...]
        y = jnp.where(y > 0, y, 0.01 * y)
        return y.reshape(B, Hh, Ww, CPAD)

    x = x_ref[...]                              # (B, H, W, CPAD)
    x = conv3x3_lrelu(x, w1_ref, b1_ref)        # valid channels 0..31
    x = conv3x3_lrelu(x, w2_ref, b2_ref)        # valid channels 0..63
    x = conv3x3_lrelu(x, w3_ref, b3_ref)        # all 128 channels valid
    # NHWC flatten; fc weight rows were pre-permuted at init to match this order.
    x_flat = x.reshape(B, Hh * Ww * CPAD)
    o_ref[...] = (jnp.dot(x_flat, wf_ref[...],
                          preferred_element_type=jnp.float32) + bf_ref[...])


# --------------------------------- wrapper -----------------------------------

def _full_spec(shape):
    # whole array = one block (full-extent blocks satisfy the (8,128) rule)
    return pl.BlockSpec(shape, lambda i: (0,) * len(shape))


@jax.jit
def state_encoder_forward(params, H_nchw):
    B, Cin, Hh, Ww = H_nchw.shape
    d_state = params["fc_b"].shape[-1]
    # Only XLA glue: NCHW -> NHWC and channel-pad the raw input to 128 lanes (tiny).
    x = jnp.transpose(H_nchw, (0, 2, 3, 1)).astype(jnp.float32)
    x = jnp.pad(x, ((0, 0), (0, 0), (0, 0), (0, CPAD - Cin)))
    args = (x,
            params["c1_w"], params["c1_b"],
            params["c2_w"], params["c2_b"],
            params["c3_w"], params["c3_b"],
            params["fc_w"], params["fc_b"])
    return pl.pallas_call(
        state_encoder_kernel,
        out_shape=jax.ShapeDtypeStruct((B, d_state), jnp.float32),
        grid=(1,),
        in_specs=[_full_spec(a.shape) for a in args],
        out_specs=_full_spec((B, d_state)),
        scratch_shapes=[
            pltpu.VMEM((B, Hh + 2, Ww + 2, CPAD), jnp.float32),  # zero-bordered activations
            pltpu.VMEM((B * Hh * Ww, 9 * CPAD), jnp.float32),    # im2col patch matrix
        ],
        compiler_params=pltpu.CompilerParams(
            dimension_semantics=("arbitrary",)),
    )(*args)


# ------------------------------ parameter prep --------------------------------

def init_params(key, num_users, num_tx, d_state):
    """Deterministic synthetic parameters in PyTorch shapes, converted to the
    fused-kernel layouts (zero-padded im2col conv weights, NHWC-permuted fc)."""
    Hs, Ws = num_users, num_tx
    ks = jax.random.split(key, 8)
    shapes_torch = {
        "c1_w": (32, 2, 3, 3),   "c1_b": (32,),
        "c2_w": (64, 32, 3, 3),  "c2_b": (64,),
        "c3_w": (128, 64, 3, 3), "c3_b": (128,),
        "fc_w": (d_state, 128 * Hs * Ws), "fc_b": (d_state,),
    }
    raw = {name: 0.05 * jax.random.normal(ks[i], shp, jnp.float32)
           for i, (name, shp) in enumerate(shapes_torch.items())}

    def conv_to_im2col(w_oihw):
        # (Cout, Cin, 3, 3) -> (9*CPAD, CPAD); row = tap*CPAD + cin (tap = dy*3+dx),
        # zero-padded so padded in/out channels contribute exactly 0.
        Cout, Cin, _, _ = w_oihw.shape
        w = jnp.transpose(w_oihw, (2, 3, 1, 0))                         # (3,3,Cin,Cout)
        w = jnp.pad(w, ((0, 0), (0, 0), (0, CPAD - Cin), (0, CPAD - Cout)))
        return w.reshape(9 * CPAD, CPAD)

    def pad_bias(b):
        return jnp.pad(b, (0, CPAD - b.shape[0])).reshape(1, CPAD)

    # Pre-permute fc rows from torch's NCHW flatten order (x.view(B,-1)) to NHWC order.
    fc_w_nhwc = (raw["fc_w"].reshape(d_state, 128, Hs, Ws)
                            .transpose(0, 2, 3, 1)
                            .reshape(d_state, Hs * Ws * 128)
                            .T)                                          # (H*W*128, d_state)

    params = {
        "c1_w": conv_to_im2col(raw["c1_w"]), "c1_b": pad_bias(raw["c1_b"]),
        "c2_w": conv_to_im2col(raw["c2_w"]), "c2_b": pad_bias(raw["c2_b"]),
        "c3_w": conv_to_im2col(raw["c3_w"]), "c3_b": pad_bias(raw["c3_b"]),
        "fc_w": fc_w_nhwc,
        "fc_b": raw["fc_b"].reshape(1, -1),
    }
    return params, raw


# --------------------------- pure-JAX reference -------------------------------

def reference_forward(raw, H_nchw):
    x = H_nchw
    for wname, bname in (("c1_w", "c1_b"), ("c2_w", "c2_b"), ("c3_w", "c3_b")):
        x = jax.lax.conv_general_dilated(
            x, raw[wname], window_strides=(1, 1), padding=((1, 1), (1, 1)),
            dimension_numbers=("NCHW", "OIHW", "NCHW"))
        x = x + raw[bname].reshape(1, -1, 1, 1)
        x = jnp.where(x > 0, x, 0.01 * x)
    x = x.reshape(x.shape[0], -1)
    return x @ raw["fc_w"].T + raw["fc_b"]


# ----------------------------------- main --------------------------------------

if __name__ == "__main__":
    num_users, num_tx = 8, 8     # spatial dims implied by Conv2d(2, ...) input
    d_state = 32
    B = 2

    key = jax.random.PRNGKey(0)
    k_param, k_input = jax.random.split(key)
    params, raw = init_params(k_param, num_users, num_tx, d_state)

    H = jax.random.normal(k_input, (B, 2, num_users, num_tx), jnp.float32)

    out = state_encoder_forward(params, H)
    out = jax.block_until_ready(out)
    assert out.shape == (B, d_state), out.shape

    # Correctness check vs. a pure-JAX reference (loose tolerance: MXU default precision).
    ref = reference_forward(raw, H)
    rel_err = float(jnp.max(jnp.abs(out - ref)) / (jnp.max(jnp.abs(ref)) + 1e-6))
    assert rel_err < 5e-2, f"mismatch vs reference, rel_err={rel_err}"

    print("KERNEL_OK")
</pallas_src>

<mosaic_0001>
module attributes {stable_mosaic.version = 11 : i64} {
  func.func @state_encoder_kernel(%arg0: i32, %arg1: memref<2x8x8x128xf32, #tpu.memory_space<vmem>>, %arg2: memref<1152x128xf32, #tpu.memory_space<vmem>>, %arg3: memref<1x128xf32, #tpu.memory_space<vmem>>, %arg4: memref<1152x128xf32, #tpu.memory_space<vmem>>, %arg5: memref<1x128xf32, #tpu.memory_space<vmem>>, %arg6: memref<1152x128xf32, #tpu.memory_space<vmem>>, %arg7: memref<1x128xf32, #tpu.memory_space<vmem>>, %arg8: memref<8192x32xf32, #tpu.memory_space<vmem>>, %arg9: memref<1x32xf32, #tpu.memory_space<vmem>>, %arg10: memref<2x32xf32, #tpu.memory_space<vmem>>, %arg11: memref<2x10x10x128xf32, #tpu.memory_space<vmem>>, %arg12: memref<128x1152xf32, #tpu.memory_space<vmem>>) attributes {dimension_semantics = [#tpu.dimension_semantics<arbitrary>], iteration_bounds = array<i64: 1>, scalar_prefetch = 0 : i64, scratch_operands = 2 : i64, tpu.core_type = #tpu.core_type<tc>, window_params = [{pipeline_mode = #tpu.pipeline_mode<synchronous>, transform_indices = @transform_0, window_bounds = array<i64: 2, 8, 8, 128>}, {pipeline_mode = #tpu.pipeline_mode<synchronous>, transform_indices = @transform_1, window_bounds = array<i64: 1152, 128>}, {pipeline_mode = #tpu.pipeline_mode<synchronous>, transform_indices = @transform_2, window_bounds = array<i64: 1, 128>}, {pipeline_mode = #tpu.pipeline_mode<synchronous>, transform_indices = @transform_3, window_bounds = array<i64: 1152, 128>}, {pipeline_mode = #tpu.pipeline_mode<synchronous>, transform_indices = @transform_4, window_bounds = array<i64: 1, 128>}, {pipeline_mode = #tpu.pipeline_mode<synchronous>, transform_indices = @transform_5, window_bounds = array<i64: 1152, 128>}, {pipeline_mode = #tpu.pipeline_mode<synchronous>, transform_indices = @transform_6, window_bounds = array<i64: 1, 128>}, {pipeline_mode = #tpu.pipeline_mode<synchronous>, transform_indices = @transform_7, window_bounds = array<i64: 8192, 32>}, {pipeline_mode = #tpu.pipeline_mode<synchronous>, transform_indices = @transform_8, window_bounds = array<i64: 1, 32>}, {pipeline_mode = #tpu.pipeline_mode<synchronous>, transform_indices = @transform_9, window_bounds = array<i64: 2, 32>}]} {
    %cst = arith.constant 0.000000e+00 : f32
    %0 = vector.broadcast %cst : f32 to vector<2x10x10x128xf32>
    %c0 = arith.constant 0 : index
    %c0_0 = arith.constant 0 : index
    %c0_1 = arith.constant 0 : index
    %c0_2 = arith.constant 0 : index
    %1 = vector.load %arg11[%c0, %c0_0, %c0_1, %c0_2] : memref<2x10x10x128xf32, #tpu.memory_space<vmem>>, vector<2x10x10x128xf32>
    tpu.vector_store %arg11[%c0, %c0_0, %c0_1, %c0_2], %0 {strides = array<i32>} : memref<2x10x10x128xf32, #tpu.memory_space<vmem>>, vector<2x10x10x128xf32>,
    %c0_3 = arith.constant 0 : index
    %c0_4 = arith.constant 0 : index
    %c0_5 = arith.constant 0 : index
    %c0_6 = arith.constant 0 : index
    %2 = vector.load %arg1[%c0_3, %c0_4, %c0_5, %c0_6] : memref<2x8x8x128xf32, #tpu.memory_space<vmem>>, vector<2x8x8x128xf32>
    %c0_7 = arith.constant 0 : index
    %c1 = arith.constant 1 : index
    %c1_8 = arith.constant 1 : index
    %c0_9 = arith.constant 0 : index
    %3 = vector.load %arg11[%c0_7, %c1, %c1_8, %c0_9] : memref<2x10x10x128xf32, #tpu.memory_space<vmem>>, vector<2x8x8x128xf32>
    tpu.vector_store %arg11[%c0_7, %c1, %c1_8, %c0_9], %2 {strides = array<i32>} : memref<2x10x10x128xf32, #tpu.memory_space<vmem>>, vector<2x8x8x128xf32>,
    %c0_10 = arith.constant 0 : index
    %c0_11 = arith.constant 0 : index
    %c0_12 = arith.constant 0 : index
    %c0_13 = arith.constant 0 : index
    %4 = vector.load %arg11[%c0_10, %c0_11, %c0_12, %c0_13] : memref<2x10x10x128xf32, #tpu.memory_space<vmem>>, vector<2x8x8x128xf32>
    %5 = vector.shape_cast %4 : vector<2x8x8x128xf32> to vector<128x128xf32>
    %c0_14 = arith.constant 0 : index
    %c0_15 = arith.constant 0 : index
    %6 = vector.load %arg12[%c0_14, %c0_15] : memref<128x1152xf32, #tpu.memory_space<vmem>>, vector<128x128xf32>
    tpu.vector_store %arg12[%c0_14, %c0_15], %5 {strides = array<i32>} : memref<128x1152xf32, #tpu.memory_space<vmem>>, vector<128x128xf32>,
    %c0_16 = arith.constant 0 : index
    %c0_17 = arith.constant 0 : index
    %c1_18 = arith.constant 1 : index
    %c0_19 = arith.constant 0 : index
    %7 = vector.load %arg11[%c0_16, %c0_17, %c1_18, %c0_19] : memref<2x10x10x128xf32, #tpu.memory_space<vmem>>, vector<2x8x8x128xf32>
    %8 = vector.shape_cast %7 : vector<2x8x8x128xf32> to vector<128x128xf32>
    %c0_20 = arith.constant 0 : index
    %c128 = arith.constant 128 : index
    %9 = vector.load %arg12[%c0_20, %c128] : memref<128x1152xf32, #tpu.memory_space<vmem>>, vector<128x128xf32>
    tpu.vector_store %arg12[%c0_20, %c128], %8 {strides = array<i32>} : memref<128x1152xf32, #tpu.memory_space<vmem>>, vector<128x128xf32>,
    %c0_21 = arith.constant 0 : index
    %c0_22 = arith.constant 0 : index
    %c2 = arith.constant 2 : index
    %c0_23 = arith.constant 0 : index
    %10 = vector.load %arg11[%c0_21, %c0_22, %c2, %c0_23] : memref<2x10x10x128xf32, #tpu.memory_space<vmem>>, vector<2x8x8x128xf32>
    %11 = vector.shape_cast %10 : vector<2x8x8x128xf32> to vector<128x128xf32>
    %c0_24 = arith.constant 0 : index
    %c256 = arith.constant 256 : index
    %12 = vector.load %arg12[%c0_24, %c256] : memref<128x1152xf32, #tpu.memory_space<vmem>>, vector<128x128xf32>
    tpu.vector_store %arg12[%c0_24, %c256], %11 {strides = array<i32>} : memref<128x1152xf32, #tpu.memory_space<vmem>>, vector<128x128xf32>,
    %c0_25 = arith.constant 0 : index
    %c1_26 = arith.constant 1 : index
    %c0_27 = arith.constant 0 : index
    %c0_28 = arith.constant 0 : index
    %13 = vector.load %arg11[%c0_25, %c1_26, %c0_27, %c0_28] : memref<2x10x10x128xf32, #tpu.memory_space<vmem>>, vector<2x8x8x128xf32>
    %14 = vector.shape_cast %13 : vector<2x8x8x128xf32> to vector<128x128xf32>
    %c0_29 = arith.constant 0 : index
    %c384 = arith.constant 384 : index
    %15 = vector.load %arg12[%c0_29, %c384] : memref<128x1152xf32, #tpu.memory_space<vmem>>, vector<128x128xf32>
    tpu.vector_store %arg12[%c0_29, %c384], %14 {strides = array<i32>} : memref<128x1152xf32, #tpu.memory_space<vmem>>, vector<128x128xf32>,
    %c0_30 = arith.constant 0 : index
    %c1_31 = arith.constant 1 : index
    %c1_32 = arith.constant 1 : index
    %c0_33 = arith.constant 0 : index
    %16 = vector.load %arg11[%c0_30, %c1_31, %c1_32, %c0_33] : memref<2x10x10x128xf32, #tpu.memory_space<vmem>>, vector<2x8x8x128xf32>
    %17 = vector.shape_cast %16 : vector<2x8x8x128xf32> to vector<128x128xf32>
    %c0_34 = arith.constant 0 : index
    %c512 = arith.constant 512 : index
    %18 = vector.load %arg12[%c0_34, %c512] : memref<128x1152xf32, #tpu.memory_space<vmem>>, vector<128x128xf32>
    tpu.vector_store %arg12[%c0_34, %c512], %17 {strides = array<i32>} : memref<128x1152xf32, #tpu.memory_space<vmem>>, vector<128x128xf32>,
    %c0_35 = arith.constant 0 : index
    %c1_36 = arith.constant 1 : index
    %c2_37 = arith.constant 2 : index
    %c0_38 = arith.constant 0 : index
    %19 = vector.load %arg11[%c0_35, %c1_36, %c2_37, %c0_38] : memref<2x10x10x128xf32, #tpu.memory_space<vmem>>, vector<2x8x8x128xf32>
    %20 = vector.shape_cast %19 : vector<2x8x8x128xf32> to vector<128x128xf32>
    %c0_39 = arith.constant 0 : index
    %c640 = arith.constant 640 : index
    %21 = vector.load %arg12[%c0_39, %c640] : memref<128x1152xf32, #tpu.memory_space<vmem>>, vector<128x128xf32>
    tpu.vector_store %arg12[%c0_39, %c640], %20 {strides = array<i32>} : memref<128x1152xf32, #tpu.memory_space<vmem>>, vector<128x128xf32>,
    %c0_40 = arith.constant 0 : index
    %c2_41 = arith.constant 2 : index
    %c0_42 = arith.constant 0 : index
    %c0_43 = arith.constant 0 : index
    %22 = vector.load %arg11[%c0_40, %c2_41, %c0_42, %c0_43] : memref<2x10x10x128xf32, #tpu.memory_space<vmem>>, vector<2x8x8x128xf32>
    %23 = vector.shape_cast %22 : vector<2x8x8x128xf32> to vector<128x128xf32>
    %c0_44 = arith.constant 0 : index
    %c768 = arith.constant 768 : index
    %24 = vector.load %arg12[%c0_44, %c768] : memref<128x1152xf32, #tpu.memory_space<vmem>>, vector<128x128xf32>
    tpu.vector_store %arg12[%c0_44, %c768], %23 {strides = array<i32>} : memref<128x1152xf32, #tpu.memory_space<vmem>>, vector<128x128xf32>,
    %c0_45 = arith.constant 0 : index
    %c2_46 = arith.constant 2 : index
    %c1_47 = arith.constant 1 : index
    %c0_48 = arith.constant 0 : index
    %25 = vector.load %arg11[%c0_45, %c2_46, %c1_47, %c0_48] : memref<2x10x10x128xf32, #tpu.memory_space<vmem>>, vector<2x8x8x128xf32>
    %26 = vector.shape_cast %25 : vector<2x8x8x128xf32> to vector<128x128xf32>
    %c0_49 = arith.constant 0 : index
    %c896 = arith.constant 896 : index
    %27 = vector.load %arg12[%c0_49, %c896] : memref<128x1152xf32, #tpu.memory_space<vmem>>, vector<128x128xf32>
    tpu.vector_store %arg12[%c0_49, %c896], %26 {strides = array<i32>} : memref<128x1152xf32, #tpu.memory_space<vmem>>, vector<128x128xf32>,
    %c0_50 = arith.constant 0 : index
    %c2_51 = arith.constant 2 : index
    %c2_52 = arith.constant 2 : index
    %c0_53 = arith.constant 0 : index
    %28 = vector.load %arg11[%c0_50, %c2_51, %c2_52, %c0_53] : memref<2x10x10x128xf32, #tpu.memory_space<vmem>>, vector<2x8x8x128xf32>
    %29 = vector.shape_cast %28 : vector<2x8x8x128xf32> to vector<128x128xf32>
    %c0_54 = arith.constant 0 : index
    %c1024 = arith.constant 1024 : index
    %30 = vector.load %arg12[%c0_54, %c1024] : memref<128x1152xf32, #tpu.memory_space<vmem>>, vector<128x128xf32>
    tpu.vector_store %arg12[%c0_54, %c1024], %29 {strides = array<i32>} : memref<128x1152xf32, #tpu.memory_space<vmem>>, vector<128x128xf32>,
    %c0_55 = arith.constant 0 : index
    %c0_56 = arith.constant 0 : index
    %31 = vector.load %arg12[%c0_55, %c0_56] : memref<128x1152xf32, #tpu.memory_space<vmem>>, vector<128x1152xf32>
    %c0_57 = arith.constant 0 : index
    %c0_58 = arith.constant 0 : index
    %32 = vector.load %arg2[%c0_57, %c0_58] : memref<1152x128xf32, #tpu.memory_space<vmem>>, vector<1152x128xf32>
    %cst_59 = arith.constant dense<0.000000e+00> : vector<128x128xf32>
    %33 = tpu.matmul %31, %32, %cst_59 {dimension_numbers = #tpu.dot_dimension_numbers<[1], [0], [0], [1], [0, 0, 1, 1], [], []>} : vector<128x1152xf32>, vector<1152x128xf32>, vector<128x128xf32> -> vector<128x128xf32>
    %c0_60 = arith.constant 0 : index
    %c0_61 = arith.constant 0 : index
    %34 = vector.load %arg3[%c0_60, %c0_61] : memref<1x128xf32, #tpu.memory_space<vmem>>, vector<1x128xf32>
    %35 = vector.broadcast %34 : vector<1x128xf32> to vector<128x128xf32>
    %36 = arith.addf %33, %35 : vector<128x128xf32>
    %cst_62 = arith.constant 0.000000e+00 : f32
    %37 = vector.broadcast %cst_62 : f32 to vector<128x128xf32>
    %38 = arith.cmpf ogt, %36, %37 : vector<128x128xf32>
    %cst_63 = arith.constant 0.00999999977 : f32
    %39 = vector.broadcast %cst_63 : f32 to vector<128x128xf32>
    %40 = arith.mulf %39, %36 : vector<128x128xf32>
    %41 = arith.select %38, %36, %40 : vector<128x128xi1>, vector<128x128xf32>
    %42 = vector.shape_cast %41 : vector<128x128xf32> to vector<2x8x8x128xf32>
    %c0_64 = arith.constant 0 : index
    %c1_65 = arith.constant 1 : index
    %c1_66 = arith.constant 1 : index
    %c0_67 = arith.constant 0 : index
    %43 = vector.load %arg11[%c0_64, %c1_65, %c1_66, %c0_67] : memref<2x10x10x128xf32, #tpu.memory_space<vmem>>, vector<2x8x8x128xf32>
    tpu.vector_store %arg11[%c0_64, %c1_65, %c1_66, %c0_67], %42 {strides = array<i32>} : memref<2x10x10x128xf32, #tpu.memory_space<vmem>>, vector<2x8x8x128xf32>,
    %c0_68 = arith.constant 0 : index
    %c0_69 = arith.constant 0 : index
    %c0_70 = arith.constant 0 : index
    %c0_71 = arith.constant 0 : index
    %44 = vector.load %arg11[%c0_68, %c0_69, %c0_70, %c0_71] : memref<2x10x10x128xf32, #tpu.memory_space<vmem>>, vector<2x8x8x128xf32>
    %45 = vector.shape_cast %44 : vector<2x8x8x128xf32> to vector<128x128xf32>
    %c0_72 = arith.constant 0 : index
    %c0_73 = arith.constant 0 : index
    %46 = vector.load %arg12[%c0_72, %c0_73] : memref<128x1152xf32, #tpu.memory_space<vmem>>, vector<128x128xf32>
    tpu.vector_store %arg12[%c0_72, %c0_73], %45 {strides = array<i32>} : memref<128x1152xf32, #tpu.memory_space<vmem>>, vector<128x128xf32>,
    %c0_74 = arith.constant 0 : index
    %c0_75 = arith.constant 0 : index
    %c1_76 = arith.constant 1 : index
    %c0_77 = arith.constant 0 : index
    %47 = vector.load %arg11[%c0_74, %c0_75, %c1_76, %c0_77] : memref<2x10x10x128xf32, #tpu.memory_space<vmem>>, vector<2x8x8x128xf32>
    %48 = vector.shape_cast %47 : vector<2x8x8x128xf32> to vector<128x128xf32>
    %c0_78 = arith.constant 0 : index
    %c128_79 = arith.constant 128 : index
    %49 = vector.load %arg12[%c0_78, %c128_79] : memref<128x1152xf32, #tpu.memory_space<vmem>>, vector<128x128xf32>
    tpu.vector_store %arg12[%c0_78, %c128_79], %48 {strides = array<i32>} : memref<128x1152xf32, #tpu.memory_space<vmem>>, vector<128x128xf32>,
    %c0_80 = arith.constant 0 : index
    %c0_81 = arith.constant 0 : index
    %c2_82 = arith.constant 2 : index
    %c0_83 = arith.constant 0 : index
    %50 = vector.load %arg11[%c0_80, %c0_81, %c2_82, %c0_83] : memref<2x10x10x128xf32, #tpu.memory_space<vmem>>, vector<2x8x8x128xf32>
    %51 = vector.shape_cast %50 : vector<2x8x8x128xf32> to vector<128x128xf32>
    %c0_84 = arith.constant 0 : index
    %c256_85 = arith.constant 256 : index
    %52 = vector.load %arg12[%c0_84, %c256_85] : memref<128x1152xf32, #tpu.memory_space<vmem>>, vector<128x128xf32>
    tpu.vector_store %arg12[%c0_84, %c256_85], %51 {strides = array<i32>} : memref<128x1152xf32, #tpu.memory_space<vmem>>, vector<128x128xf32>,
    %c0_86 = arith.constant 0 : index
    %c1_87 = arith.constant 1 : index
    %c0_88 = arith.constant 0 : index
    %c0_89 = arith.constant 0 : index
    %53 = vector.load %arg11[%c0_86, %c1_87, %c0_88, %c0_89] : memref<2x10x10x128xf32, #tpu.memory_space<vmem>>, vector<2x8x8x128xf32>
    %54 = vector.shape_cast %53 : vector<2x8x8x128xf32> to vector<128x128xf32>
    %c0_90 = arith.constant 0 : index
    %c384_91 = arith.constant 384 : index
    %55 = vector.load %arg12[%c0_90, %c384_91] : memref<128x1152xf32, #tpu.memory_space<vmem>>, vector<128x128xf32>
    tpu.vector_store %arg12[%c0_90, %c384_91], %54 {strides = array<i32>} : memref<128x1152xf32, #tpu.memory_space<vmem>>, vector<128x128xf32>,
    %c0_92 = arith.constant 0 : index
    %c1_93 = arith.constant 1 : index
    %c1_94 = arith.constant 1 : index
    %c0_95 = arith.constant 0 : index
    %56 = vector.load %arg11[%c0_92, %c1_93, %c1_94, %c0_95] : memref<2x10x10x128xf32, #tpu.memory_space<vmem>>, vector<2x8x8x128xf32>
    %57 = vector.shape_cast %56 : vector<2x8x8x128xf32> to vector<128x128xf32>
    %c0_96 = arith.constant 0 : index
    %c512_97 = arith.constant 512 : index
    %58 = vector.load %arg12[%c0_96, %c512_97] : memref<128x1152xf32, #tpu.memory_space<vmem>>, vector<128x128xf32>
    tpu.vector_store %arg12[%c0_96, %c512_97], %57 {strides = array<i32>} : memref<128x1152xf32, #tpu.memory_space<vmem>>, vector<128x128xf32>,
    %c0_98 = arith.constant 0 : index
    %c1_99 = arith.constant 1 : index
    %c2_100 = arith.constant 2 : index
    %c0_101 = arith.constant 0 : index
    %59 = vector.load %arg11[%c0_98, %c1_99, %c2_100, %c0_101] : memref<2x10x10x128xf32, #tpu.memory_space<vmem>>, vector<2x8x8x128xf32>
    %60 = vector.shape_cast %59 : vector<2x8x8x128xf32> to vector<128x128xf32>
    %c0_102 = arith.constant 0 : index
    %c640_103 = arith.constant 640 : index
    %61 = vector.load %arg12[%c0_102, %c640_103] : memref<128x1152xf32, #tpu.memory_space<vmem>>, vector<128x128xf32>
    tpu.vector_store %arg12[%c0_102, %c640_103], %60 {strides = array<i32>} : memref<128x1152xf32, #tpu.memory_space<vmem>>, vector<128x128xf32>,
    %c0_104 = arith.constant 0 : index
    %c2_105 = arith.constant 2 : index
    %c0_106 = arith.constant 0 : index
    %c0_107 = arith.constant 0 : index
    %62 = vector.load %arg11[%c0_104, %c2_105, %c0_106, %c0_107] : memref<2x10x10x128xf32, #tpu.memory_space<vmem>>, vector<2x8x8x128xf32>
    %63 = vector.shape_cast %62 : vector<2x8x8x128xf32> to vector<128x128xf32>
    %c0_108 = arith.constant 0 : index
    %c768_109 = arith.constant 768 : index
    %64 = vector.load %arg12[%c0_108, %c768_109] : memref<128x1152xf32, #tpu.memory_space<vmem>>, vector<128x128xf32>
    tpu.vector_store %arg12[%c0_108, %c768_109], %63 {strides = array<i32>} : memref<128x1152xf32, #tpu.memory_space<vmem>>, vector<128x128xf32>,
    %c0_110 = arith.constant 0 : index
    %c2_111 = arith.constant 2 : index
    %c1_112 = arith.constant 1 : index
    %c0_113 = arith.constant 0 : index
    %65 = vector.load %arg11[%c0_110, %c2_111, %c1_112, %c0_113] : memref<2x10x10x128xf32, #tpu.memory_space<vmem>>, vector<2x8x8x128xf32>
    %66 = vector.shape_cast %65 : vector<2x8x8x128xf32> to vector<128x128xf32>
    %c0_114 = arith.constant 0 : index
    %c896_115 = arith.constant 896 : index
    %67 = vector.load %arg12[%c0_114, %c896_115] : memref<128x1152xf32, #tpu.memory_space<vmem>>, vector<128x128xf32>
    tpu.vector_store %arg12[%c0_114, %c896_115], %66 {strides = array<i32>} : memref<128x1152xf32, #tpu.memory_space<vmem>>, vector<128x128xf32>,
    %c0_116 = arith.constant 0 : index
    %c2_117 = arith.constant 2 : index
    %c2_118 = arith.constant 2 : index
    %c0_119 = arith.constant 0 : index
    %68 = vector.load %arg11[%c0_116, %c2_117, %c2_118, %c0_119] : memref<2x10x10x128xf32, #tpu.memory_space<vmem>>, vector<2x8x8x128xf32>
    %69 = vector.shape_cast %68 : vector<2x8x8x128xf32> to vector<128x128xf32>
    %c0_120 = arith.constant 0 : index
    %c1024_121 = arith.constant 1024 : index
    %70 = vector.load %arg12[%c0_120, %c1024_121] : memref<128x1152xf32, #tpu.memory_space<vmem>>, vector<128x128xf32>
    tpu.vector_store %arg12[%c0_120, %c1024_121], %69 {strides = array<i32>} : memref<128x1152xf32, #tpu.memory_space<vmem>>, vector<128x128xf32>,
    %c0_122 = arith.constant 0 : index
    %c0_123 = arith.constant 0 : index
    %71 = vector.load %arg12[%c0_122, %c0_123] : memref<128x1152xf32, #tpu.memory_space<vmem>>, vector<128x1152xf32>
    %c0_124 = arith.constant 0 : index
    %c0_125 = arith.constant 0 : index
    %72 = vector.load %arg4[%c0_124, %c0_125] : memref<1152x128xf32, #tpu.memory_space<vmem>>, vector<1152x128xf32>
    %cst_126 = arith.constant dense<0.000000e+00> : vector<128x128xf32>
    %73 = tpu.matmul %71, %72, %cst_126 {dimension_numbers = #tpu.dot_dimension_numbers<[1], [0], [0], [1], [0, 0, 1, 1], [], []>} : vector<128x1152xf32>, vector<1152x128xf32>, vector<128x128xf32> -> vector<128x128xf32>
    %c0_127 = arith.constant 0 : index
    %c0_128 = arith.constant 0 : index
    %74 = vector.load %arg5[%c0_127, %c0_128] : memref<1x128xf32, #tpu.memory_space<vmem>>, vector<1x128xf32>
    %75 = vector.broadcast %74 : vector<1x128xf32> to vector<128x128xf32>
    %76 = arith.addf %73, %75 : vector<128x128xf32>
    %cst_129 = arith.constant 0.000000e+00 : f32
    %77 = vector.broadcast %cst_129 : f32 to vector<128x128xf32>
    %78 = arith.cmpf ogt, %76, %77 : vector<128x128xf32>
    %cst_130 = arith.constant 0.00999999977 : f32
    %79 = vector.broadcast %cst_130 : f32 to vector<128x128xf32>
    %80 = arith.mulf %79, %76 : vector<128x128xf32>
    %81 = arith.select %78, %76, %80 : vector<128x128xi1>, vector<128x128xf32>
    %82 = vector.shape_cast %81 : vector<128x128xf32> to vector<2x8x8x128xf32>
    %c0_131 = arith.constant 0 : index
    %c1_132 = arith.constant 1 : index
    %c1_133 = arith.constant 1 : index
    %c0_134 = arith.constant 0 : index
    %83 = vector.load %arg11[%c0_131, %c1_132, %c1_133, %c0_134] : memref<2x10x10x128xf32, #tpu.memory_space<vmem>>, vector<2x8x8x128xf32>
    tpu.vector_store %arg11[%c0_131, %c1_132, %c1_133, %c0_134], %82 {strides = array<i32>} : memref<2x10x10x128xf32, #tpu.memory_space<vmem>>, vector<2x8x8x128xf32>,
    %c0_135 = arith.constant 0 : index
    %c0_136 = arith.constant 0 : index
    %c0_137 = arith.constant 0 : index
    %c0_138 = arith.constant 0 : index
    %84 = vector.load %arg11[%c0_135, %c0_136, %c0_137, %c0_138] : memref<2x10x10x128xf32, #tpu.memory_space<vmem>>, vector<2x8x8x128xf32>
    %85 = vector.shape_cast %84 : vector<2x8x8x128xf32> to vector<128x128xf32>
    %c0_139 = arith.constant 0 : index
    %c0_140 = arith.constant 0 : index
    %86 = vector.load %arg12[%c0_139, %c0_140] : memref<128x1152xf32, #tpu.memory_space<vmem>>, vector<128x128xf32>
    tpu.vector_store %arg12[%c0_139, %c0_140], %85 {strides = array<i32>} : memref<128x1152xf32, #tpu.memory_space<vmem>>, vector<128x128xf32>,
    %c0_141 = arith.constant 0 : index
    %c0_142 = arith.constant 0 : index
    %c1_143 = arith.constant 1 : index
    %c0_144 = arith.constant 0 : index
    %87 = vector.load %arg11[%c0_141, %c0_142, %c1_143, %c0_144] : memref<2x10x10x128xf32, #tpu.memory_space<vmem>>, vector<2x8x8x128xf32>
    %88 = vector.shape_cast %87 : vector<2x8x8x128xf32> to vector<128x128xf32>
    %c0_145 = arith.constant 0 : index
    %c128_146 = arith.constant 128 : index
    %89 = vector.load %arg12[%c0_145, %c128_146] : memref<128x1152xf32, #tpu.memory_space<vmem>>, vector<128x128xf32>
    tpu.vector_store %arg12[%c0_145, %c128_146], %88 {strides = array<i32>} : memref<128x1152xf32, #tpu.memory_space<vmem>>, vector<128x128xf32>,
    %c0_147 = arith.constant 0 : index
    %c0_148 = arith.constant 0 : index
    %c2_149 = arith.constant 2 : index
    %c0_150 = arith.constant 0 : index
    %90 = vector.load %arg11[%c0_147, %c0_148, %c2_149, %c0_150] : memref<2x10x10x128xf32, #tpu.memory_space<vmem>>, vector<2x8x8x128xf32>
    %91 = vector.shape_cast %90 : vector<2x8x8x128xf32> to vector<128x128xf32>
    %c0_151 = arith.constant 0 : index
    %c256_152 = arith.constant 256 : index
    %92 = vector.load %arg12[%c0_151, %c256_152] : memref<128x1152xf32, #tpu.memory_space<vmem>>, vector<128x128xf32>
    tpu.vector_store %arg12[%c0_151, %c256_152], %91 {strides = array<i32>} : memref<128x1152xf32, #tpu.memory_space<vmem>>, vector<128x128xf32>,
    %c0_153 = arith.constant 0 : index
    %c1_154 = arith.constant 1 : index
    %c0_155 = arith.constant 0 : index
    %c0_156 = arith.constant 0 : index
    %93 = vector.load %arg11[%c0_153, %c1_154, %c0_155, %c0_156] : memref<2x10x10x128xf32, #tpu.memory_space<vmem>>, vector<2x8x8x128xf32>
    %94 = vector.shape_cast %93 : vector<2x8x8x128xf32> to vector<128x128xf32>
    %c0_157 = arith.constant 0 : index
    %c384_158 = arith.constant 384 : index
    %95 = vector.load %arg12[%c0_157, %c384_158] : memref<128x1152xf32, #tpu.memory_space<vmem>>, vector<128x128xf32>
    tpu.vector_store %arg12[%c0_157, %c384_158], %94 {strides = array<i32>} : memref<128x1152xf32, #tpu.memory_space<vmem>>, vector<128x128xf32>,
    %c0_159 = arith.constant 0 : index
    %c1_160 = arith.constant 1 : index
    %c1_161 = arith.constant 1 : index
    %c0_162 = arith.constant 0 : index
    %96 = vector.load %arg11[%c0_159, %c1_160, %c1_161, %c0_162] : memref<2x10x10x128xf32, #tpu.memory_space<vmem>>, vector<2x8x8x128xf32>
    %97 = vector.shape_cast %96 : vector<2x8x8x128xf32> to vector<128x128xf32>
    %c0_163 = arith.constant 0 : index
    %c512_164 = arith.constant 512 : index
    %98 = vector.load %arg12[%c0_163, %c512_164] : memref<128x1152xf32, #tpu.memory_space<vmem>>, vector<128x128xf32>
    tpu.vector_store %arg12[%c0_163, %c512_164], %97 {strides = array<i32>} : memref<128x1152xf32, #tpu.memory_space<vmem>>, vector<128x128xf32>,
    %c0_165 = arith.constant 0 : index
    %c1_166 = arith.constant 1 : index
    %c2_167 = arith.constant 2 : index
    %c0_168 = arith.constant 0 : index
    %99 = vector.load %arg11[%c0_165, %c1_166, %c2_167, %c0_168] : memref<2x10x10x128xf32, #tpu.memory_space<vmem>>, vector<2x8x8x128xf32>
    %100 = vector.shape_cast %99 : vector<2x8x8x128xf32> to vector<128x128xf32>
    %c0_169 = arith.constant 0 : index
    %c640_170 = arith.constant 640 : index
    %101 = vector.load %arg12[%c0_169, %c640_170] : memref<128x1152xf32, #tpu.memory_space<vmem>>, vector<128x128xf32>
    tpu.vector_store %arg12[%c0_169, %c640_170], %100 {strides = array<i32>} : memref<128x1152xf32, #tpu.memory_space<vmem>>, vector<128x128xf32>,
    %c0_171 = arith.constant 0 : index
    %c2_172 = arith.constant 2 : index
    %c0_173 = arith.constant 0 : index
    %c0_174 = arith.constant 0 : index
    %102 = vector.load %arg11[%c0_171, %c2_172, %c0_173, %c0_174] : memref<2x10x10x128xf32, #tpu.memory_space<vmem>>, vector<2x8x8x128xf32>
    %103 = vector.shape_cast %102 : vector<2x8x8x128xf32> to vector<128x128xf32>
    %c0_175 = arith.constant 0 : index
    %c768_176 = arith.constant 768 : index
    %104 = vector.load %arg12[%c0_175, %c768_176] : memref<128x1152xf32, #tpu.memory_space<vmem>>, vector<128x128xf32>
    tpu.vector_store %arg12[%c0_175, %c768_176], %103 {strides = array<i32>} : memref<128x1152xf32, #tpu.memory_space<vmem>>, vector<128x128xf32>,
    %c0_177 = arith.constant 0 : index
    %c2_178 = arith.constant 2 : index
    %c1_179 = arith.constant 1 : index
    %c0_180 = arith.constant 0 : index
    %105 = vector.load %arg11[%c0_177, %c2_178, %c1_179, %c0_180] : memref<2x10x10x128xf32, #tpu.memory_space<vmem>>, vector<2x8x8x128xf32>
    %106 = vector.shape_cast %105 : vector<2x8x8x128xf32> to vector<128x128xf32>
    %c0_181 = arith.constant 0 : index
    %c896_182 = arith.constant 896 : index
    %107 = vector.load %arg12[%c0_181, %c896_182] : memref<128x1152xf32, #tpu.memory_space<vmem>>, vector<128x128xf32>
    tpu.vector_store %arg12[%c0_181, %c896_182], %106 {strides = array<i32>} : memref<128x1152xf32, #tpu.memory_space<vmem>>, vector<128x128xf32>,
    %c0_183 = arith.constant 0 : index
    %c2_184 = arith.constant 2 : index
    %c2_185 = arith.constant 2 : index
    %c0_186 = arith.constant 0 : index
    %108 = vector.load %arg11[%c0_183, %c2_184, %c2_185, %c0_186] : memref<2x10x10x128xf32, #tpu.memory_space<vmem>>, vector<2x8x8x128xf32>
    %109 = vector.shape_cast %108 : vector<2x8x8x128xf32> to vector<128x128xf32>
    %c0_187 = arith.constant 0 : index
    %c1024_188 = arith.constant 1024 : index
    %110 = vector.load %arg12[%c0_187, %c1024_188] : memref<128x1152xf32, #tpu.memory_space<vmem>>, vector<128x128xf32>
    tpu.vector_store %arg12[%c0_187, %c1024_188], %109 {strides = array<i32>} : memref<128x1152xf32, #tpu.memory_space<vmem>>, vector<128x128xf32>,
    %c0_189 = arith.constant 0 : index
    %c0_190 = arith.constant 0 : index
    %111 = vector.load %arg12[%c0_189, %c0_190] : memref<128x1152xf32, #tpu.memory_space<vmem>>, vector<128x1152xf32>
    %c0_191 = arith.constant 0 : index
    %c0_192 = arith.constant 0 : index
    %112 = vector.load %arg6[%c0_191, %c0_192] : memref<1152x128xf32, #tpu.memory_space<vmem>>, vector<1152x128xf32>
    %cst_193 = arith.constant dense<0.000000e+00> : vector<128x128xf32>
    %113 = tpu.matmul %111, %112, %cst_193 {dimension_numbers = #tpu.dot_dimension_numbers<[1], [0], [0], [1], [0, 0, 1, 1], [], []>} : vector<128x1152xf32>, vector<1152x128xf32>, vector<128x128xf32> -> vector<128x128xf32>
    %c0_194 = arith.constant 0 : index
    %c0_195 = arith.constant 0 : index
    %114 = vector.load %arg7[%c0_194, %c0_195] : memref<1x128xf32, #tpu.memory_space<vmem>>, vector<1x128xf32>
    %115 = vector.broadcast %114 : vector<1x128xf32> to vector<128x128xf32>
    %116 = arith.addf %113, %115 : vector<128x128xf32>
    %cst_196 = arith.constant 0.000000e+00 : f32
    %117 = vector.broadcast %cst_196 : f32 to vector<128x128xf32>
    %118 = arith.cmpf ogt, %116, %117 : vector<128x128xf32>
    %cst_197 = arith.constant 0.00999999977 : f32
    %119 = vector.broadcast %cst_197 : f32 to vector<128x128xf32>
    %120 = arith.mulf %119, %116 : vector<128x128xf32>
    %121 = arith.select %118, %116, %120 : vector<128x128xi1>, vector<128x128xf32>
    %122 = vector.shape_cast %121 : vector<128x128xf32> to vector<2x8x8x128xf32>
    %123 = vector.shape_cast %122 : vector<2x8x8x128xf32> to vector<2x8192xf32>
    %c0_198 = arith.constant 0 : index
    %c0_199 = arith.constant 0 : index
    %124 = vector.load %arg8[%c0_198, %c0_199] : memref<8192x32xf32, #tpu.memory_space<vmem>>, vector<8192x32xf32>
    %cst_200 = arith.constant dense<0.000000e+00> : vector<2x32xf32>
    %125 = tpu.matmul %123, %124, %cst_200 {dimension_numbers = #tpu.dot_dimension_numbers<[1], [0], [0], [1], [0, 0, 1, 1], [], []>} : vector<2x8192xf32>, vector<8192x32xf32>, vector<2x32xf32> -> vector<2x32xf32>
    %c0_201 = arith.constant 0 : index
    %c0_202 = arith.constant 0 : index
    %126 = vector.load %arg9[%c0_201, %c0_202] : memref<1x32xf32, #tpu.memory_space<vmem>>, vector<1x32xf32>
    %127 = vector.broadcast %126 : vector<1x32xf32> to vector<2x32xf32>
    %128 = arith.addf %125, %127 : vector<2x32xf32>
    %c0_203 = arith.constant 0 : index
    %c0_204 = arith.constant 0 : index
    %129 = vector.load %arg10[%c0_203, %c0_204] : memref<2x32xf32, #tpu.memory_space<vmem>>, vector<2x32xf32>
    tpu.vector_store %arg10[%c0_203, %c0_204], %128 {strides = array<i32>} : memref<2x32xf32, #tpu.memory_space<vmem>>, vector<2x32xf32>,
    return
  }
  func.func @transform_0(%arg0: i32) -> (i32, i32, i32, i32) {
    %c0_i32 = arith.constant 0 : i32
    %c0_i32_0 = arith.constant 0 : i32
    %c0_i32_1 = arith.constant 0 : i32
    %c0_i32_2 = arith.constant 0 : i32
    %c0_i32_3 = arith.constant 0 : i32
    return %c0_i32, %c0_i32_0, %c0_i32_1, %c0_i32_2 : i32, i32, i32, i32
  }
  func.func @transform_1(%arg0: i32) -> (i32, i32) {
    %c0_i32 = arith.constant 0 : i32
    %c0_i32_0 = arith.constant 0 : i32
    %c0_i32_1 = arith.constant 0 : i32
    return %c0_i32, %c0_i32_0 : i32, i32
  }
  func.func @transform_2(%arg0: i32) -> (i32, i32) {
    %c0_i32 = arith.constant 0 : i32
    %c0_i32_0 = arith.constant 0 : i32
    %c0_i32_1 = arith.constant 0 : i32
    return %c0_i32, %c0_i32_0 : i32, i32
  }
  func.func @transform_3(%arg0: i32) -> (i32, i32) {
    %c0_i32 = arith.constant 0 : i32
    %c0_i32_0 = arith.constant 0 : i32
    %c0_i32_1 = arith.constant 0 : i32
    return %c0_i32, %c0_i32_0 : i32, i32
  }
  func.func @transform_4(%arg0: i32) -> (i32, i32) {
    %c0_i32 = arith.constant 0 : i32
    %c0_i32_0 = arith.constant 0 : i32
    %c0_i32_1 = arith.constant 0 : i32
    return %c0_i32, %c0_i32_0 : i32, i32
  }
  func.func @transform_5(%arg0: i32) -> (i32, i32) {
    %c0_i32 = arith.constant 0 : i32
    %c0_i32_0 = arith.constant 0 : i32
    %c0_i32_1 = arith.constant 0 : i32
    return %c0_i32, %c0_i32_0 : i32, i32
  }
  func.func @transform_6(%arg0: i32) -> (i32, i32) {
    %c0_i32 = arith.constant 0 : i32
    %c0_i32_0 = arith.constant 0 : i32
    %c0_i32_1 = arith.constant 0 : i32
    return %c0_i32, %c0_i32_0 : i32, i32
  }
  func.func @transform_7(%arg0: i32) -> (i32, i32) {
    %c0_i32 = arith.constant 0 : i32
    %c0_i32_0 = arith.constant 0 : i32
    %c0_i32_1 = arith.constant 0 : i32
    return %c0_i32, %c0_i32_0 : i32, i32
  }
  func.func @transform_8(%arg0: i32) -> (i32, i32) {
    %c0_i32 = arith.constant 0 : i32
    %c0_i32_0 = arith.constant 0 : i32
    %c0_i32_1 = arith.constant 0 : i32
    return %c0_i32, %c0_i32_0 : i32, i32
  }
  func.func @transform_9(%arg0: i32) -> (i32, i32) {
    %c0_i32 = arith.constant 0 : i32
    %c0_i32_0 = arith.constant 0 : i32
    %c0_i32_1 = arith.constant 0 : i32
    return %c0_i32, %c0_i32_0 : i32, i32
  }
}

</mosaic_0001>

<bundles_post_ra>
// kernel: state_encoder_forward.1
= control target key start
LH: loop header
LB: loop body
LE: loop exit
PB: predicated region body
PF: predicated region fallthrough
CT: control target
= control target key end

     0   :  { %v10350_v6 = vmov 0.0   ;;  %s16412_s0 = inlined_call_operand.vmem [shape: f32[2,8,8,128], index: 0, kind: input, shape index: {}]   ;;  %s16413_s1 = inlined_call_operand.vmem [shape: f32[1152,128], index: 1, kind: input, shape index: {}]   ;;  %s16414_s2 = inlined_call_operand.vmem [shape: f32[1,128], index: 2, kind: input, shape index: {}]   ;;  %s16415_s3 = inlined_call_operand.vmem [shape: f32[1152,128], index: 3, kind: input, shape index: {}]   ;;  %s16416_s4 = inlined_call_operand.vmem [shape: f32[1,128], index: 4, kind: input, shape index: {}]   ;;  %s16417_s5 = inlined_call_operand.vmem [shape: f32[1152,128], index: 5, kind: input, shape index: {}]   ;;  %s16418_s6 = inlined_call_operand.vmem [shape: f32[1,128], index: 6, kind: input, shape index: {}]   ;;  %s16419_s7 = inlined_call_operand.vmem [shape: f32[8192,32], index: 7, kind: input, shape index: {}]   ;;  %s16420_s8 = inlined_call_operand.vmem [shape: f32[1,32], index: 8, kind: input, shape index: {}]   ;;  %s16421_s9 = inlined_call_operand.hbm [shape: f32[2,32], index: 9, kind: output, shape index: {}]  }
   0x1   :  { %v570_v0 = vld [vmem:[%s16413_s1 + $0xf8] sm:$0xff]  ;;  %v569_v2 = vld [vmem:[%s16413_s1 + $0xf0] sm:$0xff]  ;;  %33 = vst [vmem:[#allocation2] sm:$0xff] %v10350_v6  ;;  %34 = vst [vmem:[#allocation2 + $0x8] sm:$0x3] %v10350_v6 }
   0x2   :  { %v554_v1 = vld [vmem:[%s16413_s1 + $0x78] sm:$0xff]  ;;  %7978 = vmatprep.subr.mxu0 %v570_v0  ;;  %v553_v4 = vld [vmem:[%s16413_s1 + $0x70] sm:$0xff]  ;;  %35 = vst [vmem:[#allocation2 + $0x10] sm:$0xff] %v10350_v6  ;;  %36 = vst [vmem:[#allocation2 + $0x18] sm:$0x3] %v10350_v6 }
   0x3   :  { %v602_v3 = vld [vmem:[%s16413_s1 + $0x1f8] sm:$0xff]  ;;  %37 = vst [vmem:[#allocation2 + $0x20] sm:$0xff] %v10350_v6  ;;  %38 = vst [vmem:[#allocation2 + $0x28] sm:$0x3] %v10350_v6  ;;  %7979 = vmatpush3.msra.mxu0 %v554_v1  ;;  %v568_v7 = vld [vmem:[%s16413_s1 + $0xe8] sm:$0xff] }
   0x4   :  { %v586_v5 = vld [vmem:[%s16413_s1 + $0x178] sm:$0xff]  ;;  %39 = vst [vmem:[#allocation2 + $0x30] sm:$0xff] %v10350_v6  ;;  %40 = vst [vmem:[#allocation2 + $0x38] sm:$0x3] %v10350_v6  ;;  %8058 = vmatprep.subr.mxu1 %v602_v3  ;;  %v601_v8 = vld [vmem:[%s16413_s1 + $0x1f0] sm:$0xff]  ;;  %7980 = vmatprep.subr.mxu0 %v569_v2 }
   0x5   :  { %41 = vst [vmem:[#allocation2 + $0x40] sm:$0xff] %v10350_v6  ;;  %42 = vst [vmem:[#allocation2 + $0x48] sm:$0x3] %v10350_v6  ;;  %8059 = vmatpush3.msra.mxu1 %v586_v5  ;;  %v552_v9 = vld [vmem:[%s16413_s1 + $0x68] sm:$0xff]  ;;  %v585_v10 = vld [vmem:[%s16413_s1 + $0x170] sm:$0xff]  ;;  %7981 = vmatpush3.msra.mxu0 %v553_v4 }
   0x6   :  { %43 = vst [vmem:[#allocation2 + $0x50] sm:$0xff] %v10350_v6  ;;  %44 = vst [vmem:[#allocation2 + $0x58] sm:$0x3] %v10350_v6  ;;  %v600_v11 = vld [vmem:[%s16413_s1 + $0x1e8] sm:$0xff]  ;;  %8060 = vmatprep.subr.mxu1 %v601_v8  ;;  %v567_v12 = vld [vmem:[%s16413_s1 + $0xe0] sm:$0xff]  ;;  %7982 = vmatprep.subr.mxu0 %v568_v7 }
   0x7   :  { %45 = vst [vmem:[#allocation2 + $0x60] sm:$0xff] %v10350_v6  ;;  %46 = vst [vmem:[#allocation2 + $0x68] sm:$0x3] %v10350_v6  ;;  %v584_v13 = vld [vmem:[%s16413_s1 + $0x168] sm:$0xff]  ;;  %8061 = vmatpush3.msra.mxu1 %v585_v10  ;;  %v551_v14 = vld [vmem:[%s16413_s1 + $0x60] sm:$0xff]  ;;  %7983 = vmatpush3.msra.mxu0 %v552_v9 }
   0x8   :  { %47 = vst [vmem:[#allocation2 + $0x70] sm:$0xff] %v10350_v6  ;;  %48 = vst [vmem:[#allocation2 + $0x78] sm:$0x3] %v10350_v6  ;;  %v599_v15 = vld [vmem:[%s16413_s1 + $0x1e0] sm:$0xff]  ;;  %8062 = vmatprep.subr.mxu1 %v600_v11  ;;  %v566_v16 = vld [vmem:[%s16413_s1 + $0xd8] sm:$0xff]  ;;  %7984 = vmatprep.subr.mxu0 %v567_v12 }
   0x9   :  { %49 = vst [vmem:[#allocation2 + $0x80] sm:$0xff] %v10350_v6  ;;  %50 = vst [vmem:[#allocation2 + $0x88] sm:$0x3] %v10350_v6  ;;  %v583_v17 = vld [vmem:[%s16413_s1 + $0x160] sm:$0xff]  ;;  %8063 = vmatpush3.msra.mxu1 %v584_v13  ;;  %v550_v18 = vld [vmem:[%s16413_s1 + $0x58] sm:$0xff]  ;;  %7985 = vmatpush3.msra.mxu0 %v551_v14 }
   0xa   :  { %51 = vst [vmem:[#allocation2 + $0x90] sm:$0xff] %v10350_v6  ;;  %52 = vst [vmem:[#allocation2 + $0x98] sm:$0x3] %v10350_v6  ;;  %v598_v19 = vld [vmem:[%s16413_s1 + $0x1d8] sm:$0xff]  ;;  %8064 = vmatprep.subr.mxu1 %v599_v15  ;;  %v565_v20 = vld [vmem:[%s16413_s1 + $0xd0] sm:$0xff]  ;;  %7986 = vmatprep.subr.mxu0 %v566_v16 }
   0xb   :  { %53 = vst [vmem:[#allocation2 + $0xa0] sm:$0xff] %v10350_v6  ;;  %54 = vst [vmem:[#allocation2 + $0xa8] sm:$0x3] %v10350_v6  ;;  %v582_v21 = vld [vmem:[%s16413_s1 + $0x158] sm:$0xff]  ;;  %8065 = vmatpush3.msra.mxu1 %v583_v17  ;;  %v549_v22 = vld [vmem:[%s16413_s1 + $0x50] sm:$0xff]  ;;  %7987 = vmatpush3.msra.mxu0 %v550_v18 }
   0xc   :  { %55 = vst [vmem:[#allocation2 + $0xb0] sm:$0xff] %v10350_v6  ;;  %56 = vst [vmem:[#allocation2 + $0xb8] sm:$0x3] %v10350_v6  ;;  %v597_v23 = vld [vmem:[%s16413_s1 + $0x1d0] sm:$0xff]  ;;  %8066 = vmatprep.subr.mxu1 %v598_v19  ;;  %v564_v24 = vld [vmem:[%s16413_s1 + $0xc8] sm:$0xff]  ;;  %7988 = vmatprep.subr.mxu0 %v565_v20 }
   0xd   :  { %57 = vst [vmem:[#allocation2 + $0xc0] sm:$0xff] %v10350_v6  ;;  %58 = vst [vmem:[#allocation2 + $0xc8] sm:$0x3] %v10350_v6  ;;  %v581_v25 = vld [vmem:[%s16413_s1 + $0x150] sm:$0xff]  ;;  %8067 = vmatpush3.msra.mxu1 %v582_v21  ;;  %v548_v26 = vld [vmem:[%s16413_s1 + $0x48] sm:$0xff]  ;;  %7989 = vmatpush3.msra.mxu0 %v549_v22 }
   0xe   :  { %59 = vst [vmem:[#allocation2 + $0xd0] sm:$0xff] %v10350_v6  ;;  %60 = vst [vmem:[#allocation2 + $0xd8] sm:$0x3] %v10350_v6  ;;  %v596_v27 = vld [vmem:[%s16413_s1 + $0x1c8] sm:$0xff]  ;;  %8068 = vmatprep.subr.mxu1 %v597_v23  ;;  %v563_v28 = vld [vmem:[%s16413_s1 + $0xc0] sm:$0xff]  ;;  %7990 = vmatprep.subr.mxu0 %v564_v24 }
   0xf   :  { %61 = vst [vmem:[#allocation2 + $0xe0] sm:$0xff] %v10350_v6  ;;  %62 = vst [vmem:[#allocation2 + $0xe8] sm:$0x3] %v10350_v6  ;;  %v580_v29 = vld [vmem:[%s16413_s1 + $0x148] sm:$0xff]  ;;  %8069 = vmatpush3.msra.mxu1 %v581_v25  ;;  %v547_v30 = vld [vmem:[%s16413_s1 + $0x40] sm:$0xff]  ;;  %7991 = vmatpush3.msra.mxu0 %v548_v26 }
  0x10   :  { %63 = vst [vmem:[#allocation2 + $0xf0] sm:$0xff] %v10350_v6  ;;  %64 = vst [vmem:[#allocation2 + $0xf8] sm:$0x3] %v10350_v6  ;;  %v595_v31 = vld [vmem:[%s16413_s1 + $0x1c0] sm:$0xff]  ;;  %8070 = vmatprep.subr.mxu1 %v596_v27  ;;  %v562_v32 = vld [vmem:[%s16413_s1 + $0xb8] sm:$0xff]  ;;  %7992 = vmatprep.subr.mxu0 %v563_v28 }
  0x11   :  { %65 = vst [vmem:[#allocation2 + $0x100] sm:$0xff] %v10350_v6  ;;  %66 = vst [vmem:[#allocation2 + $0x108] sm:$0x3] %v10350_v6  ;;  %v579_v33 = vld [vmem:[%s16413_s1 + $0x140] sm:$0xff]  ;;  %8071 = vmatpush3.msra.mxu1 %v580_v29  ;;  %v546_v34 = vld [vmem:[%s16413_s1 + $0x38] sm:$0xff]  ;;  %7993 = vmatpush3.msra.mxu0 %v547_v30 }
  0x12   :  { %67 = vst [vmem:[#allocation2 + $0x110] sm:$0xff] %v10350_v6  ;;  %68 = vst [vmem:[#allocation2 + $0x118] sm:$0x3] %v10350_v6  ;;  %v594_v35 = vld [vmem:[%s16413_s1 + $0x1b8] sm:$0xff]  ;;  %8072 = vmatprep.subr.mxu1 %v595_v31  ;;  %v561_v36 = vld [vmem:[%s16413_s1 + $0xb0] sm:$0xff]  ;;  %7994 = vmatprep.subr.mxu0 %v562_v32 }
  0x13   :  { %69 = vst [vmem:[#allocation2 + $0x120] sm:$0xff] %v10350_v6  ;;  %70 = vst [vmem:[#allocation2 + $0x128] sm:$0x3] %v10350_v6  ;;  %v578_v37 = vld [vmem:[%s16413_s1 + $0x138] sm:$0xff]  ;;  %8073 = vmatpush3.msra.mxu1 %v579_v33  ;;  %v545_v38 = vld [vmem:[%s16413_s1 + $0x30] sm:$0xff]  ;;  %7995 = vmatpush3.msra.mxu0 %v546_v34 }
  0x14   :  { %71 = vst [vmem:[#allocation2 + $0x130] sm:$0xff] %v10350_v6  ;;  %72 = vst [vmem:[#allocation2 + $0x138] sm:$0x3] %v10350_v6  ;;  %v593_v39 = vld [vmem:[%s16413_s1 + $0x1b0] sm:$0xff]  ;;  %8074 = vmatprep.subr.mxu1 %v594_v35  ;;  %v560_v40 = vld [vmem:[%s16413_s1 + $0xa8] sm:$0xff]  ;;  %7996 = vmatprep.subr.mxu0 %v561_v36 }
  0x15   :  { %v577_v41 = vld [vmem:[%s16413_s1 + $0x130] sm:$0xff]  ;;  %8075 = vmatpush3.msra.mxu1 %v578_v37  ;;  %v544_v42 = vld [vmem:[%s16413_s1 + $0x28] sm:$0xff]  ;;  %7997 = vmatpush3.msra.mxu0 %v545_v38  ;;  %v559_v44 = vld [vmem:[%s16413_s1 + $0xa0] sm:$0xff] }
  0x16   :  { %v592_v43 = vld [vmem:[%s16413_s1 + $0x1a8] sm:$0xff]  ;;  %8076 = vmatprep.subr.mxu1 %v593_v39  ;;  %7998 = vmatprep.subr.mxu0 %v560_v40  ;;  %v543_v46 = vld [vmem:[%s16413_s1 + $0x20] sm:$0xff]  ;;  %v558_v48 = vld [vmem:[%s16413_s1 + $0x98] sm:$0xff] }
  0x17   :  { %v576_v45 = vld [vmem:[%s16413_s1 + $0x128] sm:$0xff]  ;;  %8077 = vmatpush3.msra.mxu1 %v577_v41  ;;  %v591_v47 = vld [vmem:[%s16413_s1 + $0x1a0] sm:$0xff]  ;;  %7999 = vmatpush3.msra.mxu0 %v544_v42  ;;  %v542_v51 = vld [vmem:[%s16413_s1 + $0x18] sm:$0xff] }
  0x18   :  { %8078 = vmatprep.subr.mxu1 %v592_v43  ;;  %v575_v49 = vld [vmem:[%s16413_s1 + $0x120] sm:$0xff]  ;;  %8000 = vmatprep.subr.mxu0 %v559_v44  ;;  %v590_v52 = vld [vmem:[%s16413_s1 + $0x198] sm:$0xff]  ;;  %v10605_v53 = vld [vmem:[%s16412_s0 + $0x8] sm:$0xff] }
  0x19   :  { %v10593_v50 = vld [vmem:[%s16412_s0] sm:$0xff]  ;;  %8079 = vmatpush3.msra.mxu1 %v576_v45  ;;  %8001 = vmatpush3.msra.mxu0 %v543_v46  ;;  %v557_v54 = vld [vmem:[%s16413_s1 + $0x90] sm:$0xff]  ;;  %v574_v55 = vld [vmem:[%s16413_s1 + $0x118] sm:$0xff]  ;;  %91 = vst [vmem:[#allocation2 + $0x21] sm:$0xff] %v10605_v53 }
  0x1a   :  { %90 = vst [vmem:[#allocation2 + $0x11] sm:$0xff] %v10593_v50  ;;  %8080 = vmatprep.subr.mxu1 %v591_v47  ;;  %v10617_v56 = vld [vmem:[%s16412_s0 + $0x10] sm:$0xff]  ;;  %8002 = vmatprep.subr.mxu0 %v558_v48  ;;  %v10629_v59 = vld [vmem:[%s16412_s0 + $0x18] sm:$0xff]  ;;  %v556_v60 = vld [vmem:[%s16413_s1 + $0x88] sm:$0xff] }
  0x1b   :  { %8081 = vmatpush3.msra.mxu1 %v575_v49  ;;  %v541_v57 = vld [vmem:[%s16413_s1 + $0x10] sm:$0xff]  ;;  %92 = vst [vmem:[#allocation2 + $0x31] sm:$0xff] %v10617_v56  ;;  %8003 = vmatpush3.msra.mxu0 %v542_v51  ;;  %93 = vst [vmem:[#allocation2 + $0x41] sm:$0xff] %v10629_v59  ;;  %v10641_v62 = vld [vmem:[%s16412_s0 + $0x20] sm:$0xff] }
  0x1c   :  { %v589_v58 = vld [vmem:[%s16413_s1 + $0x190] sm:$0xff]  ;;  %8082 = vmatprep.subr.mxu1 %v590_v52  ;;  %8004 = vmatprep.subr.mxu0 %v557_v54  ;;  %v540_v63 = vld [vmem:[%s16413_s1 + $0x8] sm:$0xff]  ;;  %94 = vst [vmem:[#allocation2 + $0x51] sm:$0xff] %v10641_v62  ;;  %v555_v2 = vld [vmem:[%s16413_s1 + $0x80] sm:$0xff] }
  0x1d   :  { %v573_v61 = vld [vmem:[%s16413_s1 + $0x110] sm:$0xff]  ;;  %8083 = vmatpush3.msra.mxu1 %v574_v55  ;;  %v588_v0 = vld [vmem:[%s16413_s1 + $0x188] sm:$0xff]  ;;  %8005 = vmatpush3.msra.mxu0 %v541_v57  ;;  %v539_v5 = vld [vmem:[%s16413_s1] sm:$0xff] }
  0x1e   :  { %v10653_v1 = vld [vmem:[%s16412_s0 + $0x28] sm:$0xff]  ;;  %8084 = vmatprep.subr.mxu1 %v589_v58  ;;  %v10662_v4 = vld [vmem:[%s16412_s0 + $0x30] sm:$0xff]  ;;  %8006 = vmatprep.subr.mxu0 %v556_v60  ;;  %v10674_v8 = vld [vmem:[%s16412_s0 + $0x38] sm:$0xff] }
  0x1f   :  { %v138_v3 = vld [vmem:[#allocation2 + $0x1] sm:$0xff]  ;;  %95 = vst [vmem:[#allocation2 + $0x61] sm:$0xff] %v10653_v1  ;;  %8085 = vmatpush3.msra.mxu1 %v573_v61  ;;  %96 = vst [vmem:[#allocation2 + $0x71] sm:$0xff] %v10662_v4  ;;  %8007 = vmatpush3.msra.mxu0 %v540_v63  ;;  %v634_v10 = vld [vmem:[%s16413_s1 + $0x2f8] sm:$0xff] }
  0x20   :  { %v572_v7 = vld [vmem:[%s16413_s1 + $0x108] sm:$0xff]  ;;  %8086 = vmatprep.subr.mxu1 %v588_v0  ;;  %v587_v9 = vld [vmem:[%s16413_s1 + $0x180] sm:$0xff]  ;;  %97 = vst [vmem:[#allocation2 + $0x81] sm:$0xff] %v10674_v8  ;;  %8008 = vmatprep.subr.mxu0 %v555_v2  ;;  %v618_v13 = vld [vmem:[%s16413_s1 + $0x278] sm:$0xff] }
  0x21   :  { %754 = vmatprep.mubr.f32.mxu0 %v138_v3  ;;  %v571_v11 = vld [vmem:[%s16413_s1 + $0x100] sm:$0xff]  ;;  %8009 = vmatpush3.msra.mxu0 %v539_v5  ;;  %v202_v12 = vld [vmem:[#allocation2 + $0x10] sm:$0xff]  ;;  %v632_v19 = vld [vmem:[%s16413_s1 + $0x2e8] sm:$0xff] }
  0x22   :  { %8087 = vmatpush3.msra.mxu1 %v572_v7  ;;  %v10692_v14 = vld [vmem:[%s16412_s0 + $0x40] sm:$0xff]  ;;  %755 = vmatmul.mubr.f32.vlgmr.msra.gmra.mxu0 %v10350_v6  ;;  %v633_v16 = vld [vmem:[%s16413_s1 + $0x2f0] sm:$0xff]  ;;  %v616_v21 = vld [vmem:[%s16413_s1 + $0x268] sm:$0xff] }
  0x23   :  { %8088 = vmatprep.subr.mxu1 %v587_v9  ;;  %v170_v15 = vld [vmem:[#allocation2 + $0x2] sm:$0xff]  ;;  %98 = vst [vmem:[#allocation2 + $0xb1] sm:$0xff] %v10692_v14  ;;  %8138 = vmatprep.subr.mxu0 %v634_v10  ;;  %v617_v18 = vld [vmem:[%s16413_s1 + $0x270] sm:$0xff]  ;;  %v666_v26 = vld [vmem:[%s16413_s1 + $0x3f8] sm:$0xff] }
  0x24   :  { %8089 = vmatpush3.msra.mxu1 %v571_v11  ;;  %899 = vmatprep.mubr.f32.mxu1 %v202_v12  ;;  %v10699_v17 = vld [vmem:[#allocation2 + $0x20] sm:$0xff]  ;;  %v10708_v20 = vld [vmem:[#allocation2 + $0x12] sm:$0xff]  ;;  %v10719_v23 = vld [vmem:[%s16412_s0 + $0x48] sm:$0xff] }
  0x25   :  { %8139 = vmatpush3.msra.mxu0 %v618_v13  ;;  %900 = vmatmul.mubr.f32.vlgmr.msra.gmra.mxu1 %v170_v15  ;;  %v10714_v22 = vld [vmem:[#allocation2 + $0x30] sm:$0xff]  ;;  %v631_v24 = vld [vmem:[%s16413_s1 + $0x2e0] sm:$0xff]  ;;  %99 = vst [vmem:[#allocation2 + $0xc1] sm:$0xff] %v10719_v23  ;;  %v630_v28 = vld [vmem:[%s16413_s1 + $0x2d8] sm:$0xff] }
  0x26   :  { %759 = vmatprep.mubr.f32.mxu0 %v10593_v50  ;;  %8140 = vmatprep.subr.mxu0 %v633_v16  ;;  %v615_v25 = vld [vmem:[%s16413_s1 + $0x260] sm:$0xff]  ;;  %v10743_v29 = vld [vmem:[%s16412_s0 + $0x50] sm:$0xff]  ;;  %v614_v31 = vld [vmem:[%s16413_s1 + $0x258] sm:$0xff] }
  0x27   :  { %760 = vmatmul.mubr.f32.gmra.mxu0 %v202_v12  ;;  %904 = vmatprep.mubr.f32.mxu1 %v10699_v17  ;;  %v10735_v27 = vld [vmem:[#allocation2 + $0x22] sm:$0xff]  ;;  %100 = vst [vmem:[#allocation2 + $0xd1] sm:$0xff] %v10743_v29  ;;  %v10755_v32 = vld [vmem:[%s16412_s0 + $0x58] sm:$0xff]  ;;  %v629_v33 = vld [vmem:[%s16413_s1 + $0x2d0] sm:$0xff] }
  0x28   :  { %8141 = vmatpush3.msra.mxu0 %v617_v18  ;;  %764 = vmatprep.mubr.f32.mxu0 %v10605_v53  ;;  %v10746_v30 = vld [vmem:[#allocation2 + $0x40] sm:$0xff]  ;;  %v650_v34 = vld [vmem:[%s16413_s1 + $0x378] sm:$0xff]  ;;  %101 = vst [vmem:[#allocation2 + $0xe1] sm:$0xff] %v10755_v32  ;;  %v613_v36 = vld [vmem:[%s16413_s1 + $0x250] sm:$0xff] }
  0x29   :  { %8142 = vmatprep.subr.mxu0 %v632_v19  ;;  %905 = vmatmul.mubr.f32.gmra.mxu1 %v10708_v20  ;;  %v10767_v35 = vld [vmem:[#allocation2 + $0x32] sm:$0xff]  ;;  %v10775_v37 = vld [vmem:[%s16412_s0 + $0x60] sm:$0xff]  ;;  %v628_v39 = vld [vmem:[%s16413_s1 + $0x2c8] sm:$0xff] }
  0x2a   :  { %8143 = vmatpush3.msra.mxu0 %v616_v21  ;;  %909 = vmatprep.mubr.f32.mxu1 %v10714_v22  ;;  %v10778_v38 = vld [vmem:[#allocation2 + $0x50] sm:$0xff]  ;;  %102 = vst [vmem:[#allocation2 + $0xf1] sm:$0xff] %v10775_v37  ;;  %v612_v40 = vld [vmem:[%s16413_s1 + $0x248] sm:$0xff]  ;;  %v627_v44 = vld [vmem:[%s16413_s1 + $0x2c0] sm:$0xff] }
  0x2b   :  { %765 = vmatmul.mubr.f32.gmra.mxu0 %v10699_v17  ;;  %8144 = vmatprep.subr.mxu0 %v631_v24  ;;  %v665_v41 = vld [vmem:[%s16413_s1 + $0x3f0] sm:$0xff]  ;;  %v10794_v42 = vld [vmem:[%s16412_s0 + $0x68] sm:$0xff]  ;;  %v10805_v45 = vld [vmem:[#allocation2 + $0x60] sm:$0xff] }
  0x2c   :  { %769 = vmatprep.mubr.f32.mxu0 %v10617_v56  ;;  %8145 = vmatpush3.msra.mxu0 %v615_v25  ;;  %v10798_v43 = vld [vmem:[#allocation2 + $0x42] sm:$0xff]  ;;  %103 = vst [vmem:[#allocation2 + $0x101] sm:$0xff] %v10794_v42  ;;  %v626_v47 = vld [vmem:[%s16413_s1 + $0x2b8] sm:$0xff]  ;;  %v649_v48 = vld [vmem:[%s16413_s1 + $0x370] sm:$0xff] }
  0x2d   :  { %8218 = vmatprep.subr.mxu1 %v666_v26  ;;  %910 = vmatmul.mubr.f32.gmra.mxu1 %v10735_v27  ;;  %v611_v46 = vld [vmem:[%s16413_s1 + $0x240] sm:$0xff]  ;;  %v10820_v49 = vld [vmem:[%s16412_s0 + $0x70] sm:$0xff]  ;;  %v610_v52 = vld [vmem:[%s16413_s1 + $0x238] sm:$0xff] }
  0x2e   :  { %8146 = vmatprep.subr.mxu0 %v630_v28  ;;  %914 = vmatprep.mubr.f32.mxu1 %v10746_v30  ;;  %v10824_v51 = vld [vmem:[#allocation2 + $0x52] sm:$0xff]  ;;  %104 = vst [vmem:[#allocation2 + $0x111] sm:$0xff] %v10820_v49  ;;  %v664_v60 = vld [vmem:[%s16413_s1 + $0x3e8] sm:$0xff]  ;;  %v10857_v0 = vld [vmem:[#allocation2 + $0x80] sm:$0xff] }
  0x2f   :  { %770 = vmatmul.mubr.f32.gmra.mxu0 %v10714_v22  ;;  %8219 = vmatpush3.msra.mxu1 %v650_v34  ;;  %v10831_v54 = vld [vmem:[#allocation2 + $0x70] sm:$0xff]  ;;  %v10839_v57 = vld [vmem:[%s16412_s0 + $0x78] sm:$0xff]  ;;  %v10851_v61 = vld [vmem:[#allocation2 + $0x62] sm:$0xff] }
  0x30   :  { %774 = vmatprep.mubr.f32.mxu0 %v10629_v59  ;;  %8147 = vmatpush3.msra.mxu0 %v614_v31  ;;  %v625_v55 = vld [vmem:[%s16413_s1 + $0x2b0] sm:$0xff]  ;;  %105 = vst [vmem:[#allocation2 + $0x121] sm:$0xff] %v10839_v57  ;;  %v624_v63 = vld [vmem:[%s16413_s1 + $0x2a8] sm:$0xff]  ;;  %v663_v5 = vld [vmem:[%s16413_s1 + $0x3e0] sm:$0xff] }
  0x31   :  { %8148 = vmatprep.subr.mxu0 %v629_v33  ;;  %915 = vmatmul.mubr.f32.gmra.mxu1 %v10767_v35  ;;  %v609_v58 = vld [vmem:[%s16413_s1 + $0x230] sm:$0xff]  ;;  %v146_v2 = vld [vmem:[#allocation2 + $0xa1] sm:$0xff]  ;;  %v662_v13 = vld [vmem:[%s16413_s1 + $0x3d8] sm:$0xff] }
  0x32   :  { %8149 = vmatpush3.msra.mxu0 %v613_v36  ;;  %919 = vmatprep.mubr.f32.mxu1 %v10778_v38  ;;  %v648_v3 = vld [vmem:[%s16413_s1 + $0x368] sm:$0xff]  ;;  %v10871_v9 = vld [vmem:[#allocation2 + $0x72] sm:$0xff]  ;;  %v623_v10 = vld [vmem:[%s16413_s1 + $0x2a0] sm:$0xff] }
  0x33   :  { %775 = vmatmul.mubr.f32.gmra.mxu0 %v10746_v30  ;;  %8150 = vmatprep.subr.mxu0 %v628_v39  ;;  %v608_v7 = vld [vmem:[%s16413_s1 + $0x228] sm:$0xff]  ;;  %v210_v11 = vld [vmem:[#allocation2 + $0xb0] sm:$0xff]  ;;  %v647_v12 = vld [vmem:[%s16413_s1 + $0x360] sm:$0xff] }
  0x34   :  { %779 = vmatprep.mubr.f32.mxu0 %v10641_v62  ;;  %8151 = vmatpush3.msra.mxu0 %v612_v40  ;;  %v607_v15 = vld [vmem:[%s16413_s1 + $0x220] sm:$0xff]  ;;  %v622_v18 = vld [vmem:[%s16413_s1 + $0x298] sm:$0xff] }
  0x35   :  { %8220 = vmatprep.subr.mxu1 %v665_v41  ;;  %920 = vmatmul.mubr.f32.gmra.mxu1 %v10798_v43  ;;  %v178_v16 = vld [vmem:[#allocation2 + $0xa2] sm:$0xff] }
  0x36   :  { %8152 = vmatprep.subr.mxu0 %v627_v44  ;;  %924 = vmatprep.mubr.f32.mxu1 %v10805_v45  ;;  %v10891_v19 = vld [vmem:[#allocation2 + $0xc0] sm:$0xff] }
  0x37   :  { %780 = vmatmul.mubr.f32.gmra.mxu0 %v10778_v38  ;;  %8221 = vmatpush3.msra.mxu1 %v649_v48 }
  0x38   :  { %784 = vmatprep.mubr.f32.mxu0 %v10653_v1  ;;  %8153 = vmatpush3.msra.mxu0 %v611_v46 }
  0x39   :  { %8154 = vmatprep.subr.mxu0 %v626_v47  ;;  %925 = vmatmul.mubr.f32.gmra.mxu1 %v10824_v51 }
  0x3a   :  { %8155 = vmatpush3.msra.mxu0 %v610_v52  ;;  %929 = vmatprep.mubr.f32.mxu1 %v10831_v54 }
  0x3b   :  { %785 = vmatmul.mubr.f32.gmra.mxu0 %v10805_v45  ;;  %8156 = vmatprep.subr.mxu0 %v625_v55 }
  0x3c   :  { %789 = vmatprep.mubr.f32.mxu0 %v10662_v4  ;;  %8157 = vmatpush3.msra.mxu0 %v609_v58 }
  0x3d   :  { %8222 = vmatprep.subr.mxu1 %v664_v60  ;;  %930 = vmatmul.mubr.f32.gmra.mxu1 %v10851_v61 }
  0x3e   :  { %8158 = vmatprep.subr.mxu0 %v624_v63  ;;  %934 = vmatprep.mubr.f32.mxu1 %v10857_v0 }
  0x3f   :  { %790 = vmatmul.mubr.f32.gmra.mxu0 %v10831_v54  ;;  %8223 = vmatpush3.msra.mxu1 %v648_v3 }
  0x40   :  { %794 = vmatprep.mubr.f32.mxu0 %v146_v2  ;;  %8224 = vmatprep.subr.mxu1 %v663_v5 }
  0x41   :  { %8159 = vmatpush3.msra.mxu0 %v608_v7  ;;  %935 = vmatmul.mubr.f32.gmra.mxu1 %v10871_v9 }
  0x42   :  { %8160 = vmatprep.subr.mxu0 %v623_v10  ;;  %939 = vmatprep.mubr.f32.mxu1 %v210_v11 }
  0x43   :  { %795 = vmatmul.mubr.f32.gmra.mxu0 %v10350_v6  ;;  %8225 = vmatpush3.msra.mxu1 %v647_v12 }
  0x44   :  { %799 = vmatprep.mubr.f32.mxu0 %v10692_v14 }
  0x45   :  { %14 = vsyncpa [#allocation5], 0  ;;  %8226 = vmatprep.subr.mxu1 %v662_v13  ;;  %v646_v21 = vld [vmem:[%s16413_s1 + $0x358] sm:$0xff]  ;;  %8161 = vmatpush3.msra.mxu0 %v607_v15  ;;  %v661_v24 = vld [vmem:[%s16413_s1 + $0x3d0] sm:$0xff] }
  0x46   :  { %940 = vmatmul.mubr.f32.gmra.mxu1 %v178_v16  ;;  %8162 = vmatprep.subr.mxu0 %v622_v18  ;;  %v606_v25 = vld [vmem:[%s16413_s1 + $0x218] sm:$0xff]  ;;  %v621_v28 = vld [vmem:[%s16413_s1 + $0x290] sm:$0xff]  ;;  %v660_v34 = vld [vmem:[%s16413_s1 + $0x3c8] sm:$0xff] }
  0x47   :  { %800 = vmatmul.mubr.f32.gmra.mxu0 %v210_v11  ;;  %944 = vmatprep.mubr.f32.mxu1 %v10891_v19  ;;  %v10903_v26 = vld [vmem:[#allocation2 + $0xb2] sm:$0xff]  ;;  %v10923_v39 = vld [vmem:[#allocation2 + $0xc2] sm:$0xff] }
  0x48   :  { %804 = vmatprep.mubr.f32.mxu0 %v10719_v23  ;;  %v10909_v31 = vld [vmem:[#allocation2 + $0xd0] sm:$0xff]  ;;  %8227 = vmatpush3.msra.mxu1 %v646_v21  ;;  %v620_v40 = vld [vmem:[%s16413_s1 + $0x288] sm:$0xff]  ;;  %v10929_v41 = vld [vmem:[#allocation2 + $0xe0] sm:$0xff] }
  0x49   :  { %8228 = vmatprep.subr.mxu1 %v661_v24  ;;  %v645_v33 = vld [vmem:[%s16413_s1 + $0x350] sm:$0xff]  ;;  %8163 = vmatpush3.msra.mxu0 %v606_v25  ;;  %v644_v44 = vld [vmem:[%s16413_s1 + $0x348] sm:$0xff]  ;;  %v659_v46 = vld [vmem:[%s16413_s1 + $0x3c0] sm:$0xff] }
  0x4a   :  { %945 = vmatmul.mubr.f32.gmra.mxu1 %v10903_v26  ;;  %8164 = vmatprep.subr.mxu0 %v621_v28  ;;  %v605_v36 = vld [vmem:[%s16413_s1 + $0x210] sm:$0xff]  ;;  %v604_v47 = vld [vmem:[%s16413_s1 + $0x208] sm:$0xff]  ;;  %v619_v52 = vld [vmem:[%s16413_s1 + $0x280] sm:$0xff] }
  0x4b   :  { %805 = vmatmul.mubr.f32.gmra.mxu0 %v10891_v19  ;;  %949 = vmatprep.mubr.f32.mxu1 %v10909_v31  ;;  %v10943_v48 = vld [vmem:[#allocation2 + $0xd2] sm:$0xff]  ;;  %v643_v58 = vld [vmem:[%s16413_s1 + $0x340] sm:$0xff]  ;;  %v656_v13 = vld [vmem:[%s16413_s1 + $0x3a8] sm:$0xff] }
  0x4c   :  { %809 = vmatprep.mubr.f32.mxu0 %v10743_v29  ;;  %8229 = vmatpush3.msra.mxu1 %v645_v33  ;;  %v10949_v55 = vld [vmem:[#allocation2 + $0xf0] sm:$0xff]  ;;  %v658_v60 = vld [vmem:[%s16413_s1 + $0x3b8] sm:$0xff]  ;;  %v603_v63 = vld [vmem:[%s16413_s1 + $0x200] sm:$0xff] }
  0x4d   :  { %8230 = vmatprep.subr.mxu1 %v660_v34  ;;  %8165 = vmatpush3.msra.mxu0 %v605_v36  ;;  %v10963_v2 = vld [vmem:[#allocation2 + $0xe2] sm:$0xff]  ;;  %v682_v3 = vld [vmem:[%s16413_s1 + $0x478] sm:$0xff]  ;;  %v657_v7 = vld [vmem:[%s16413_s1 + $0x3b0] sm:$0xff] }
  0x4e   :  { %950 = vmatmul.mubr.f32.gmra.mxu1 %v10923_v39  ;;  %8166 = vmatprep.subr.mxu0 %v620_v40  ;;  %v642_v5 = vld [vmem:[%s16413_s1 + $0x338] sm:$0xff]  ;;  %v10975_v10 = vld [vmem:[#allocation2 + $0x100] sm:$0xff]  ;;  %v641_v11 = vld [vmem:[%s16413_s1 + $0x330] sm:$0xff] }
  0x4f   :  { %810 = vmatmul.mubr.f32.gmra.mxu0 %v10909_v31  ;;  %954 = vmatprep.mubr.f32.mxu1 %v10929_v41  ;;  %v10982_v12 = vld [vmem:[#allocation2 + $0xf2] sm:$0xff]  ;;  %v640_v15 = vld [vmem:[%s16413_s1 + $0x328] sm:$0xff]  ;;  %v655_v16 = vld [vmem:[%s16413_s1 + $0x3a0] sm:$0xff] }
  0x50   :  { %814 = vmatprep.mubr.f32.mxu0 %v10755_v32  ;;  %8231 = vmatpush3.msra.mxu1 %v644_v44  ;;  %v10995_v18 = vld [vmem:[#allocation2 + $0x110] sm:$0xff]  ;;  %v639_v21 = vld [vmem:[%s16413_s1 + $0x320] sm:$0xff]  ;;  %v654_v25 = vld [vmem:[%s16413_s1 + $0x398] sm:$0xff] }
  0x51   :  { %8232 = vmatprep.subr.mxu1 %v659_v46  ;;  %8167 = vmatpush3.msra.mxu0 %v604_v47  ;;  %v11002_v24 = vld [vmem:[#allocation2 + $0x102] sm:$0xff]  ;;  %v638_v28 = vld [vmem:[%s16413_s1 + $0x318] sm:$0xff]  ;;  %v653_v33 = vld [vmem:[%s16413_s1 + $0x390] sm:$0xff] }
  0x52   :  { %955 = vmatmul.mubr.f32.gmra.mxu1 %v10943_v48  ;;  %8168 = vmatprep.subr.mxu0 %v619_v52  ;;  %v11015_v34 = vld [vmem:[#allocation2 + $0x120] sm:$0xff]  ;;  %v637_v36 = vld [vmem:[%s16413_s1 + $0x310] sm:$0xff]  ;;  %v652_v44 = vld [vmem:[%s16413_s1 + $0x388] sm:$0xff] }
  0x53   :  { %815 = vmatmul.mubr.f32.gmra.mxu0 %v10929_v41  ;;  %959 = vmatprep.mubr.f32.mxu1 %v10949_v55  ;;  %v11022_v40 = vld [vmem:[#allocation2 + $0x112] sm:$0xff]  ;;  %v636_v46 = vld [vmem:[%s16413_s1 + $0x308] sm:$0xff]  ;;  %v651_v47 = vld [vmem:[%s16413_s1 + $0x380] sm:$0xff] }
  0x54   :  { %8233 = vmatpush3.msra.mxu1 %v643_v58  ;;  %819 = vmatprep.mubr.f32.mxu0 %v10775_v37  ;;  %v635_v52 = vld [vmem:[%s16413_s1 + $0x300] sm:$0xff]  ;;  %v680_v58 = vld [vmem:[%s16413_s1 + $0x468] sm:$0xff] }
  0x55   :  { %8234 = vmatprep.subr.mxu1 %v658_v60  ;;  %8169 = vmatpush3.msra.mxu0 %v603_v63  ;;  %v1918_v60 = vld [vmem:[%s16415_s3 + $0x38] sm:$0xff] }
  0x56   :  { %960 = vmatmul.mubr.f32.gmra.mxu1 %v10963_v2  ;;  %10154 = vmatprep.subr.mxu0 %v682_v3  ;;  %v1974_v63 = vld [vmem:[%s16415_s3 + $0x1f8] sm:$0xff] }
  0x57   :  { %8235 = vmatpush3.msra.mxu1 %v642_v5  ;;  %820 = vmatmul.mubr.f32.gmra.mxu0 %v10949_v55  ;;  %v1973_v5 = vld [vmem:[%s16415_s3 + $0x1f0] sm:$0xff] }
  0x58   :  { %8236 = vmatprep.subr.mxu1 %v657_v7  ;;  %964 = vmatprep.mubr.f32.mxu1 %v10975_v10  ;;  %v1957_v7 = vld [vmem:[%s16415_s3 + $0x170] sm:$0xff] }
  0x59   :  { %8237 = vmatpush3.msra.mxu1 %v641_v11  ;;  %824 = vmatprep.mubr.f32.mxu0 %v10794_v42  ;;  %v1972_v11 = vld [vmem:[%s16415_s3 + $0x1e8] sm:$0xff] }
  0x5a   :  { %965 = vmatmul.mubr.f32.gmra.mxu1 %v10982_v12  ;;  %8238 = vmatprep.subr.mxu1 %v656_v13  ;;  %v1956_v13 = vld [vmem:[%s16415_s3 + $0x168] sm:$0xff] }
  0x5b   :  { %8239 = vmatpush3.msra.mxu1 %v640_v15  ;;  %825 = vmatmul.mubr.f32.gmra.mxu0 %v10975_v10  ;;  %v1971_v15 = vld [vmem:[%s16415_s3 + $0x1e0] sm:$0xff] }
  0x5c   :  { %8240 = vmatprep.subr.mxu1 %v655_v16  ;;  %969 = vmatprep.mubr.f32.mxu1 %v10995_v18  ;;  %v1955_v16 = vld [vmem:[%s16415_s3 + $0x160] sm:$0xff] }
  0x5d   :  { %8241 = vmatpush3.msra.mxu1 %v639_v21  ;;  %829 = vmatprep.mubr.f32.mxu0 %v10820_v49  ;;  %v1970_v21 = vld [vmem:[%s16415_s3 + $0x1d8] sm:$0xff] }
  0x5e   :  { %970 = vmatmul.mubr.f32.gmra.mxu1 %v11002_v24  ;;  %8242 = vmatprep.subr.mxu1 %v654_v25  ;;  %v1954_v25 = vld [vmem:[%s16415_s3 + $0x158] sm:$0xff] }
  0x5f   :  { %8243 = vmatpush3.msra.mxu1 %v638_v28  ;;  %830 = vmatmul.mubr.f32.gmra.mxu0 %v10995_v18  ;;  %v1969_v28 = vld [vmem:[%s16415_s3 + $0x1d0] sm:$0xff] }
  0x60   :  { %8244 = vmatprep.subr.mxu1 %v653_v33  ;;  %974 = vmatprep.mubr.f32.mxu1 %v11015_v34  ;;  %v1953_v33 = vld [vmem:[%s16415_s3 + $0x150] sm:$0xff] }
  0x61   :  { %8245 = vmatpush3.msra.mxu1 %v637_v36  ;;  %1044 = vmatprep.mubr.f32.mxu0 %v10708_v20  ;;  %v681_v20 = vld [vmem:[%s16413_s1 + $0x470] sm:$0xff]  ;;  %v1968_v36 = vld [vmem:[%s16415_s3 + $0x1c8] sm:$0xff] }
  0x62   :  { %975 = vmatmul.mubr.f32.gmra.mxu1 %v11022_v40  ;;  %8246 = vmatprep.subr.mxu1 %v652_v44  ;;  %v1952_v44 = vld [vmem:[%s16415_s3 + $0x148] sm:$0xff] }
  0x63   :  { %8247 = vmatpush3.msra.mxu1 %v636_v46  ;;  %1045 = vmatmul.mubr.f32.vlgmr.msra.gmra.mxu0 %v10593_v50  ;;  %v679_v50 = vld [vmem:[%s16413_s1 + $0x460] sm:$0xff] }
  0x64   :  { %8248 = vmatprep.subr.mxu1 %v651_v47  ;;  %1189 = vmatprep.mubr.f32.mxu1 %v10605_v53  ;;  %v1967_v46 = vld [vmem:[%s16415_s3 + $0x1c0] sm:$0xff] }
  0x65   :  { %8249 = vmatpush3.msra.mxu1 %v635_v52  ;;  %10155 = vmatpush3.msra.mxu0 %v682_v3  ;;  %v1958_v3 = vld [vmem:[%s16415_s3 + $0x178] sm:$0xff] }
  0x66   :  { %1190 = vmatmul.mubr.f32.vlgmr.msra.gmra.mxu1 %v10699_v17  ;;  %1049 = vmatprep.mubr.f32.mxu0 %v10735_v27  ;;  %v677_v17 = vld [vmem:[%s16413_s1 + $0x450] sm:$0xff]  ;;  %v1914_v52 = vld [vmem:[%s16415_s3 + $0x18] sm:$0xff] }
  0x67   :  { %1050 = vmatmul.mubr.f32.gmra.mxu0 %v10605_v53  ;;  %10156 = vmatprep.subr.mxu0 %v681_v20  ;;  %v678_v53 = vld [vmem:[%s16413_s1 + $0x458] sm:$0xff] }
  0x68   :  { %1194 = vmatprep.mubr.f32.mxu1 %v10617_v56  ;;  %10157 = vmatpush3.msra.mxu0 %v681_v20  ;;  %v1951_v20 = vld [vmem:[%s16415_s3 + $0x140] sm:$0xff] }
  0x69   :  { %1054 = vmatprep.mubr.f32.mxu0 %v10767_v35  ;;  %10158 = vmatprep.subr.mxu0 %v680_v58 }
  0x6a   :  { %1195 = vmatmul.mubr.f32.gmra.mxu1 %v10714_v22  ;;  %10159 = vmatpush3.msra.mxu0 %v680_v58  ;;  %v674_v22 = vld [vmem:[%s16413_s1 + $0x438] sm:$0xff]  ;;  %v1929_v58 = vld [vmem:[%s16415_s3 + $0x90] sm:$0xff] }
  0x6b   :  { %1055 = vmatmul.mubr.f32.gmra.mxu0 %v10617_v56  ;;  %1199 = vmatprep.mubr.f32.mxu1 %v10629_v59  ;;  %v676_v56 = vld [vmem:[%s16413_s1 + $0x448] sm:$0xff] }
  0x6c   :  { %1059 = vmatprep.mubr.f32.mxu0 %v10798_v43  ;;  %10160 = vmatprep.subr.mxu0 %v679_v50 }
  0x6d   :  { %10161 = vmatpush3.msra.mxu0 %v679_v50  ;;  %v1966_v50 = vld [vmem:[%s16415_s3 + $0x1b8] sm:$0xff] }
  0x6e   :  { %1200 = vmatmul.mubr.f32.gmra.mxu1 %v10746_v30  ;;  %10162 = vmatprep.subr.mxu0 %v678_v53  ;;  %v673_v30 = vld [vmem:[%s16413_s1 + $0x430] sm:$0xff] }
  0x6f   :  { %1060 = vmatmul.mubr.f32.gmra.mxu0 %v10629_v59  ;;  %1204 = vmatprep.mubr.f32.mxu1 %v10641_v62  ;;  %v675_v59 = vld [vmem:[%s16413_s1 + $0x440] sm:$0xff] }
  0x70   :  { %1064 = vmatprep.mubr.f32.mxu0 %v10824_v51  ;;  %10163 = vmatpush3.msra.mxu0 %v678_v53  ;;  %v11296_v53 = vld [vmem:[%s16414_s2] ss:$0 sm:$0xff] }
  0x71   :  { %10164 = vmatprep.subr.mxu0 %v677_v17 }
  0x72   :  { %1205 = vmatmul.mubr.f32.gmra.mxu1 %v10778_v38  ;;  %10165 = vmatpush3.msra.mxu0 %v677_v17  ;;  %v338_v38 = vld [vmem:[#allocation2 + $0x91] sm:$0xff] }
  0x73   :  { %1065 = vmatmul.mubr.f32.gmra.mxu0 %v10641_v62  ;;  %1209 = vmatprep.mubr.f32.mxu1 %v10653_v1  ;;  %v11086_v62 = vld [vmem:[#allocation2 + $0x82] sm:$0xff] }
  0x74   :  { %1069 = vmatprep.mubr.f32.mxu0 %v10851_v61  ;;  %10166 = vmatprep.subr.mxu0 %v676_v56 }
  0x75   :  { %10167 = vmatpush3.msra.mxu0 %v676_v56  ;;  %v1913_v56 = vld [vmem:[%s16415_s3 + $0x10] sm:$0xff] }
  0x76   :  { %1210 = vmatmul.mubr.f32.gmra.mxu1 %v10805_v45  ;;  %10168 = vmatprep.subr.mxu0 %v675_v59  ;;  %v671_v45 = vld [vmem:[%s16413_s1 + $0x420] sm:$0xff] }
  0x77   :  { %1070 = vmatmul.mubr.f32.gmra.mxu0 %v10653_v1  ;;  %1214 = vmatprep.mubr.f32.mxu1 %v10662_v4  ;;  %v672_v1 = vld [vmem:[%s16413_s1 + $0x428] sm:$0xff] }
  0x78   :  { %1074 = vmatprep.mubr.f32.mxu0 %v10871_v9  ;;  %10169 = vmatpush3.msra.mxu0 %v675_v59  ;;  %v1950_v59 = vld [vmem:[%s16415_s3 + $0x138] sm:$0xff] }
  0x79   :  { %10170 = vmatprep.subr.mxu0 %v674_v22 }
  0x7a   :  { %1215 = vmatmul.mubr.f32.gmra.mxu1 %v10831_v54  ;;  %10171 = vmatpush3.msra.mxu0 %v674_v22  ;;  %v1924_v54 = vld [vmem:[%s16415_s3 + $0x68] sm:$0xff] }
  0x7b   :  { %1075 = vmatmul.mubr.f32.gmra.mxu0 %v10662_v4  ;;  %1219 = vmatprep.mubr.f32.mxu1 %v10674_v8  ;;  %v670_v4 = vld [vmem:[%s16413_s1 + $0x418] sm:$0xff] }
  0x7c   :  { %1079 = vmatprep.mubr.f32.mxu0 %v11086_v62  ;;  %10172 = vmatprep.subr.mxu0 %v673_v30 }
  0x7d   :  { %10173 = vmatpush3.msra.mxu0 %v673_v30  ;;  %v1965_v30 = vld [vmem:[%s16415_s3 + $0x1b0] sm:$0xff] }
  0x7e   :  { %1220 = vmatmul.mubr.f32.gmra.mxu1 %v10857_v0  ;;  %10174 = vmatprep.subr.mxu0 %v672_v1  ;;  %v1938_v0 = vld [vmem:[%s16415_s3 + $0xd8] sm:$0xff] }
  0x7f   :  { %1080 = vmatmul.mubr.f32.gmra.mxu0 %v10674_v8  ;;  %1224 = vmatprep.mubr.f32.mxu1 %v338_v38  ;;  %v669_v8 = vld [vmem:[%s16413_s1 + $0x410] sm:$0xff] }
  0x80   :  { %1084 = vmatprep.mubr.f32.mxu0 %v10903_v26  ;;  %10175 = vmatpush3.msra.mxu0 %v672_v1  ;;  %v1921_v26 = vld [vmem:[%s16415_s3 + $0x50] sm:$0xff]  ;;  %v1928_v1 = vld [vmem:[%s16415_s3 + $0x88] sm:$0xff] }
  0x81   :  { %10176 = vmatprep.subr.mxu0 %v671_v45 }
  0x82   :  { %1225 = vmatmul.mubr.f32.gmra.mxu1 %v10350_v6  ;;  %10177 = vmatpush3.msra.mxu0 %v671_v45  ;;  %v668_v6 = vld [vmem:[%s16413_s1 + $0x408] sm:$0xff]  ;;  %v1949_v45 = vld [vmem:[%s16415_s3 + $0x130] sm:$0xff] }
  0x83   :  { %1085 = vmatmul.mubr.f32.gmra.mxu0 %v10692_v14  ;;  %1229 = vmatprep.mubr.f32.mxu1 %v10719_v23  ;;  %v667_v14 = vld [vmem:[%s16413_s1 + $0x400] sm:$0xff] }
  0x84   :  { %1089 = vmatprep.mubr.f32.mxu0 %v10923_v39  ;;  %10178 = vmatprep.subr.mxu0 %v670_v4 }
  0x85   :  { %10179 = vmatpush3.msra.mxu0 %v670_v4  ;;  %v1912_v4 = vld [vmem:[%s16415_s3 + $0x8] sm:$0xff] }
  0x86   :  { %1230 = vmatmul.mubr.f32.gmra.mxu1 %v10891_v19  ;;  %10180 = vmatprep.subr.mxu0 %v669_v8  ;;  %v1937_v19 = vld [vmem:[%s16415_s3 + $0xd0] sm:$0xff] }
  0x87   :  { %1090 = vmatmul.mubr.f32.gmra.mxu0 %v10719_v23  ;;  %1234 = vmatprep.mubr.f32.mxu1 %v10743_v29  ;;  %v281_v23 = vld [vmem:[#allocation2 + $0x122] sm:$0xff] }
  0x88   :  { %1094 = vmatprep.mubr.f32.mxu0 %v10943_v48  ;;  %10181 = vmatpush3.msra.mxu0 %v669_v8 }
  0x89   :  { %10182 = vmatprep.subr.mxu0 %v668_v6 }
  0x8a   :  { %1235 = vmatmul.mubr.f32.gmra.mxu1 %v10909_v31  ;;  %10183 = vmatpush3.msra.mxu0 %v668_v6  ;;  %v1936_v31 = vld [vmem:[%s16415_s3 + $0xc8] sm:$0xff] }
  0x8b   :  { %1095 = vmatmul.mubr.f32.gmra.mxu0 %v10743_v29  ;;  %1239 = vmatprep.mubr.f32.mxu1 %v10755_v32  ;;  %v346_v29 = vld [vmem:[#allocation2 + $0x131] sm:$0xff] }
  0x8c   :  { %1099 = vmatprep.mubr.f32.mxu0 %v10963_v2  ;;  %10184 = vmatprep.subr.mxu0 %v667_v14 }
  0x8d   :  { %10185 = vmatpush3.msra.mxu0 %v667_v14  ;;  %v1964_v14 = vld [vmem:[%s16415_s3 + $0x1a8] sm:$0xff] }
  0x8e   :  { %1240 = vmatmul.mubr.f32.gmra.mxu1 %v10929_v41  ;;  %v1935_v41 = vld [vmem:[%s16415_s3 + $0xc0] sm:$0xff]  ;;  %8410 = vmatprep.subr.mxu0 %v1974_v63 }
  0x8f   :  { %1100 = vmatmul.mubr.f32.gmra.mxu0 %v10755_v32  ;;  %1244 = vmatprep.mubr.f32.mxu1 %v10775_v37  ;;  %v11146_v32 = vld [vmem:[#allocation2] sm:$0xff] }
  0x90   :  { %1104 = vmatprep.mubr.f32.mxu0 %v10982_v12 }
  0x92   :  { %1245 = vmatmul.mubr.f32.gmra.mxu1 %v10949_v55  ;;  %v1934_v55 = vld [vmem:[%s16415_s3 + $0xb8] sm:$0xff] }
  0x93   :  { %1105 = vmatmul.mubr.f32.gmra.mxu0 %v10775_v37  ;;  %1249 = vmatprep.mubr.f32.mxu1 %v10794_v42  ;;  %v370_v37 = vld [vmem:[#allocation2 + $0x92] sm:$0xff] }
  0x94   :  { %1109 = vmatprep.mubr.f32.mxu0 %v11002_v24 }
  0x96   :  { %1250 = vmatmul.mubr.f32.gmra.mxu1 %v10975_v10  ;;  %v1917_v10 = vld [vmem:[%s16415_s3 + $0x30] sm:$0xff] }
  0x97   :  { %1110 = vmatmul.mubr.f32.gmra.mxu0 %v10794_v42  ;;  %1254 = vmatprep.mubr.f32.mxu1 %v10820_v49  ;;  %v1941_v42 = vld [vmem:[%s16415_s3 + $0xf0] sm:$0xff] }
  0x98   :  { %1114 = vmatprep.mubr.f32.mxu0 %v11022_v40 }
  0x9a   :  { %1255 = vmatmul.mubr.f32.gmra.mxu1 %v10995_v18  ;;  %v1916_v18 = vld [vmem:[%s16415_s3 + $0x28] sm:$0xff] }
  0x9b   :  { %1115 = vmatmul.mubr.f32.gmra.mxu0 %v10820_v49  ;;  %1259 = vmatprep.mubr.f32.mxu1 %v10839_v57  ;;  %v1940_v49 = vld [vmem:[%s16415_s3 + $0xe8] sm:$0xff] }
  0x9c   :  { %1119 = vmatprep.mubr.f32.mxu0 %v281_v23 }
  0x9e   :  { %1260 = vmatmul.mubr.f32.gmra.mxu1 %v11015_v34  ;;  %v1915_v34 = vld [vmem:[%s16415_s3 + $0x20] sm:$0xff] }
  0x9f   :  { %1120 = vmatmul.mubr.f32.gmra.mxu0 %v10839_v57  ;;  %1264 = vmatprep.mubr.f32.mxu1 %v346_v29  ;;  %v1939_v57 = vld [vmem:[%s16415_s3 + $0xe0] sm:$0xff] }
  0xa0   :  { %10186 = vmatprep.mubr.f32.mxu0 %v10735_v27  ;;  %v1942_v27 = vld [vmem:[%s16415_s3 + $0xf8] sm:$0xff] }
  0xa1   :  { %8330 = vmatprep.subr.mxu1 %v1942_v27  ;;  %v1948_v27 = vld [vmem:[%s16415_s3 + $0x128] sm:$0xff] }
  0xa2   :  { %1265 = vmatmul.mubr.f32.gmra.mxu1 %v11146_v32 }
  0xa3   :  { %10187 = vmatmul.mubr.f32.vlgmr.msra.gmra.mxu0 %v10767_v35  ;;  %v1926_v35 = vld [vmem:[%s16415_s3 + $0x78] sm:$0xff] }
  0xa4   :  { %10189 = vmatprep.mubr.f32.mxu0 %v10798_v43  ;;  %8331 = vmatpush3.msra.mxu1 %v1926_v35  ;;  %v1925_v43 = vld [vmem:[%s16415_s3 + $0x70] sm:$0xff]  ;;  %v1911_v35 = vld [vmem:[%s16415_s3] sm:$0xff] }
  0xa5   :  { %8332 = vmatprep.subr.mxu1 %v1941_v42  ;;  %8411 = vmatpush3.msra.mxu0 %v1958_v3  ;;  %v1511_v42 = vld [vmem:[#allocation2 + $0x1] sm:$0xff] }
  0xa6   :  { %8333 = vmatpush3.msra.mxu1 %v1925_v43  ;;  %8412 = vmatprep.subr.mxu0 %v1973_v5  ;;  %v1960_v5 = vld [vmem:[%s16415_s3 + $0x188] sm:$0xff] }
  0xa7   :  { %10190 = vmatmul.mubr.f32.gmra.mxu0 %v10824_v51  ;;  %8334 = vmatprep.subr.mxu1 %v1940_v49  ;;  %v378_v51 = vld [vmem:[#allocation2 + $0x132] sm:$0xff] }
  0xa8   :  { %10192 = vmatprep.mubr.f32.mxu0 %v10851_v61  ;;  %8335 = vmatpush3.msra.mxu1 %v1924_v54  ;;  %v1923_v61 = vld [vmem:[%s16415_s3 + $0x60] sm:$0xff] }
  0xa9   :  { %8336 = vmatprep.subr.mxu1 %v1939_v57  ;;  %8413 = vmatpush3.msra.mxu0 %v1957_v7 }
  0xaa   :  { %8337 = vmatpush3.msra.mxu1 %v1923_v61  ;;  %8414 = vmatprep.subr.mxu0 %v1972_v11  ;;  %v1947_v61 = vld [vmem:[%s16415_s3 + $0x120] sm:$0xff]  ;;  %v1944_v11 = vld [vmem:[%s16415_s3 + $0x108] sm:$0xff] }
  0xab   :  { %10193 = vmatmul.mubr.f32.gmra.mxu0 %v10871_v9  ;;  %8338 = vmatprep.subr.mxu1 %v1938_v0  ;;  %v1922_v9 = vld [vmem:[%s16415_s3 + $0x58] sm:$0xff] }
  0xac   :  { %10195 = vmatprep.mubr.f32.mxu0 %v11086_v62  ;;  %8339 = vmatpush3.msra.mxu1 %v1922_v9 }
  0xad   :  { %8340 = vmatprep.subr.mxu1 %v1937_v19  ;;  %8415 = vmatpush3.msra.mxu0 %v1956_v13  ;;  %v1962_v19 = vld [vmem:[%s16415_s3 + $0x198] sm:$0xff] }
  0xae   :  { %8341 = vmatpush3.msra.mxu1 %v1921_v26  ;;  %8416 = vmatprep.subr.mxu0 %v1971_v15  ;;  %v1959_v15 = vld [vmem:[%s16415_s3 + $0x180] sm:$0xff] }
  0xaf   :  { %10196 = vmatmul.mubr.f32.gmra.mxu0 %v370_v37  ;;  %8342 = vmatprep.subr.mxu1 %v1936_v31 }
  0xb0   :  { %10198 = vmatprep.mubr.f32.mxu0 %v10923_v39  ;;  %v1920_v39 = vld [vmem:[%s16415_s3 + $0x48] sm:$0xff]  ;;  %8417 = vmatpush3.msra.mxu0 %v1955_v16 }
  0xb1   :  { %8343 = vmatpush3.msra.mxu1 %v1920_v39  ;;  %8418 = vmatprep.subr.mxu0 %v1970_v21  ;;  %v1946_v39 = vld [vmem:[%s16415_s3 + $0x118] sm:$0xff]  ;;  %v1943_v21 = vld [vmem:[%s16415_s3 + $0x100] sm:$0xff] }
  0xb2   :  { %8344 = vmatprep.subr.mxu1 %v1935_v41  ;;  %8419 = vmatpush3.msra.mxu0 %v1954_v25 }
  0xb3   :  { %10199 = vmatmul.mubr.f32.gmra.mxu0 %v10943_v48  ;;  %v1919_v48 = vld [vmem:[%s16415_s3 + $0x40] sm:$0xff]  ;;  %8420 = vmatprep.subr.mxu0 %v1969_v28 }
  0xb4   :  { %10201 = vmatprep.mubr.f32.mxu0 %v10963_v2  ;;  %8345 = vmatpush3.msra.mxu1 %v1919_v48  ;;  %v1933_v2 = vld [vmem:[%s16415_s3 + $0xb0] sm:$0xff] }
  0xb5   :  { %8346 = vmatprep.subr.mxu1 %v1934_v55  ;;  %8421 = vmatpush3.msra.mxu0 %v1953_v33  ;;  %v1961_v55 = vld [vmem:[%s16415_s3 + $0x190] sm:$0xff] }
  0xb6   :  { %8347 = vmatpush3.msra.mxu1 %v1918_v60  ;;  %8422 = vmatprep.subr.mxu0 %v1968_v36 }
  0xb7   :  { %10202 = vmatmul.mubr.f32.gmra.mxu0 %v10982_v12  ;;  %8348 = vmatprep.subr.mxu1 %v1933_v2  ;;  %v1932_v12 = vld [vmem:[%s16415_s3 + $0xa8] sm:$0xff] }
  0xb8   :  { %10204 = vmatprep.mubr.f32.mxu0 %v11002_v24  ;;  %8349 = vmatpush3.msra.mxu1 %v1917_v10  ;;  %v1931_v24 = vld [vmem:[%s16415_s3 + $0xa0] sm:$0xff] }
  0xb9   :  { %8350 = vmatprep.subr.mxu1 %v1932_v12  ;;  %8423 = vmatpush3.msra.mxu0 %v1952_v44 }
  0xba   :  { %8351 = vmatpush3.msra.mxu1 %v1916_v18  ;;  %8424 = vmatprep.subr.mxu0 %v1967_v46 }
  0xbb   :  { %10205 = vmatmul.mubr.f32.gmra.mxu0 %v11022_v40  ;;  %8352 = vmatprep.subr.mxu1 %v1931_v24  ;;  %v1930_v40 = vld [vmem:[%s16415_s3 + $0x98] sm:$0xff] }
  0xbc   :  { %10207 = vmatprep.mubr.f32.mxu0 %v281_v23  ;;  %8353 = vmatpush3.msra.mxu1 %v1915_v34  ;;  %v1927_v23 = vld [vmem:[%s16415_s3 + $0x80] sm:$0xff]  ;;  %v2006_v34 = vld [vmem:[%s16415_s3 + $0x2f8] sm:$0xff] }
  0xbd   :  { %8354 = vmatprep.subr.mxu1 %v1930_v40  ;;  %8425 = vmatpush3.msra.mxu0 %v1951_v20 }
  0xbe   :  { %8355 = vmatpush3.msra.mxu1 %v1914_v52  ;;  %8426 = vmatprep.subr.mxu0 %v1966_v50 }
  0xbf   :  { %10208 = vmatmul.mubr.f32.gmra.mxu0 %v378_v51  ;;  %8356 = vmatprep.subr.mxu1 %v1929_v58  ;;  %v1963_v51 = vld [vmem:[%s16415_s3 + $0x1a0] sm:$0xff] }
  0xc0   :  { %8357 = vmatpush3.msra.mxu1 %v1913_v56  ;;  %8427 = vmatpush3.msra.mxu0 %v1950_v59 }
  0xc1   :  { %8428 = vmatprep.subr.mxu0 %v1965_v30  ;;  %8358 = vmatprep.subr.mxu1 %v1928_v1  ;;  %v1989_v30 = vld [vmem:[%s16415_s3 + $0x270] sm:$0xff] }
  0xc2   :  { %8429 = vmatpush3.msra.mxu0 %v1949_v45  ;;  %8359 = vmatpush3.msra.mxu1 %v1912_v4 }
  0xc3   :  { %8430 = vmatprep.subr.mxu0 %v1964_v14  ;;  %8360 = vmatprep.subr.mxu1 %v1927_v23 }
  0xc4   :  { %8431 = vmatpush3.msra.mxu0 %v1948_v27  ;;  %8361 = vmatpush3.msra.mxu1 %v1911_v35 }
  0xc5   :  { %8432 = vmatprep.subr.mxu0 %v1963_v51  ;;  %2126 = vmatprep.mubr.f32.mxu1 %v1511_v42 }
  0xc6   :  { %8433 = vmatpush3.msra.mxu0 %v1947_v61  ;;  %2127 = vmatmul.mubr.f32.vlgmr.msra.gmra.mxu1 %v11146_v32  ;;  %v1945_v32 = vld [vmem:[%s16415_s3 + $0x110] sm:$0xff] }
  0xc7   :  { %8434 = vmatprep.subr.mxu0 %v1962_v19  ;;  %8490 = vmatprep.subr.mxu1 %v2006_v34  ;;  %v1999_v34 = vld [vmem:[%s16415_s3 + $0x2c0] sm:$0xff] }
  0xc8   :  { %8435 = vmatpush3.msra.mxu0 %v1946_v39 }
  0xc9   :  { %8436 = vmatprep.subr.mxu0 %v1961_v55 }
  0xca   :  { %8437 = vmatpush3.msra.mxu0 %v1945_v32 }
  0xcb   :  { %8438 = vmatprep.subr.mxu0 %v1960_v5  ;;  %v1985_v5 = vld [vmem:[%s16415_s3 + $0x250] sm:$0xff] }
  0xcc   :  { %8439 = vmatpush3.msra.mxu0 %v1944_v11  ;;  %v2000_v11 = vld [vmem:[%s16415_s3 + $0x2c8] sm:$0xff] }
  0xcd   :  { %8440 = vmatprep.subr.mxu0 %v1959_v15  ;;  %v1984_v15 = vld [vmem:[%s16415_s3 + $0x248] sm:$0xff] }
  0xce   :  { %8441 = vmatpush3.msra.mxu0 %v1943_v21 }
  0xe2   :  { %v8010_v47 = vpop.f32.mrf.mxu0 }
  0xe4   :  { %v8011_v17 = vpop.f32.mrf.mxu0 }
  0xe5   :  { %v8012_v22 = vadd.f32 %v8011_v17, %v8010_v47  ;;  %v8090_v62 = vpop.f32.mrf.mxu1  ;;  %v1990_v47 = vld [vmem:[%s16415_s3 + $0x278] sm:$0xff]  ;;  %v2005_v17 = vld [vmem:[%s16415_s3 + $0x2f0] sm:$0xff] }
  0xe6   :  { %8491 = vmatpush3.msra.mxu1 %v1990_v47 }
  0xe7   :  { %v8013_v38 = vpop.f32.mrf.mxu0  ;;  %v757_v8 = vadd.f32 %v8012_v22, %v11296_v53  ;;  %v8091_v6 = vpop.f32.mrf.mxu1  ;;  %8492 = vmatprep.subr.mxu1 %v2005_v17 }
  0xe8   :  { %v8092_v29 = vadd.f32 %v8091_v6, %v8090_v62  ;;  %8493 = vmatpush3.msra.mxu1 %v1989_v30  ;;  %v1982_v30 = vld [vmem:[%s16415_s3 + $0x238] sm:$0xff] }
  0xe9   :  { %v8014_v37 = vpop.f32.mrf.mxu0  ;;  %v8093_v49 = vpop.f32.mrf.mxu1 }
  0xea   :  { %v8015_v43 = vadd.f32 %v8014_v37, %v8013_v38  ;;  %v11332_v54 = vadd.f32 %v8092_v29, %v757_v8  ;;  %v2004_v8 = vld [vmem:[%s16415_s3 + $0x2e8] sm:$0xff] }
  0xeb   :  { %v8016_v57 = vpop.f32.mrf.mxu0  ;;  %v8094_v9 = vpop.f32.mrf.mxu1  ;;  %8494 = vmatprep.subr.mxu1 %v2004_v8  ;;  %v1988_v37 = vld [vmem:[%s16415_s3 + $0x268] sm:$0xff] }
  0xec   :  { %v762_v0 = vadd.f32 %v8015_v43, %v11296_v53  ;;  %v8095_v26 = vadd.f32 %v8094_v9, %v8093_v49  ;;  %8495 = vmatpush3.msra.mxu1 %v1988_v37  ;;  %v2003_v49 = vld [vmem:[%s16415_s3 + $0x2e0] sm:$0xff] }
  0xed   :  { %v8017_v31 = vpop.f32.mrf.mxu0  ;;  %v8096_v48 = vpop.f32.mrf.mxu1  ;;  %8496 = vmatprep.subr.mxu1 %v2003_v49  ;;  %v1987_v9 = vld [vmem:[%s16415_s3 + $0x260] sm:$0xff] }
  0xee   :  { %v8018_v41 = vadd.f32 %v8017_v31, %v8016_v57  ;;  %v11348_v60 = vadd.f32 %v8095_v26, %v762_v0  ;;  %8497 = vmatpush3.msra.mxu1 %v1987_v9  ;;  %v1996_v9 = vld [vmem:[%s16415_s3 + $0x2a8] sm:$0xff] }
  0xef   :  { %v8019_v63 = vpop.f32.mrf.mxu0  ;;  %v8097_v3 = vpop.f32.mrf.mxu1 }
  0xf0   :  { %v767_v2 = vadd.f32 %v8018_v41, %v11296_v53  ;;  %v8098_v7 = vadd.f32 %v8097_v3, %v8096_v48  ;;  %v2002_v41 = vld [vmem:[%s16415_s3 + $0x2d8] sm:$0xff]  ;;  %v2001_v3 = vld [vmem:[%s16415_s3 + $0x2d0] sm:$0xff] }
  0xf1   :  { %v8020_v10 = vpop.f32.mrf.mxu0  ;;  %v8099_v13 = vpop.f32.mrf.mxu1  ;;  %8498 = vmatprep.subr.mxu1 %v2002_v41 }
  0xf2   :  { %v8021_v12 = vadd.f32 %v8020_v10, %v8019_v63  ;;  %v11363_v16 = vadd.f32 %v8098_v7, %v767_v2  ;;  %v1986_v2 = vld [vmem:[%s16415_s3 + $0x258] sm:$0xff] }
  0xf3   :  { %v8022_v18 = vpop.f32.mrf.mxu0  ;;  %v8100_v25 = vpop.f32.mrf.mxu1  ;;  %8499 = vmatpush3.msra.mxu1 %v1986_v2 }
  0xf4   :  { %v772_v24 = vadd.f32 %v8021_v12, %v11296_v53  ;;  %v8101_v28 = vadd.f32 %v8100_v25, %v8099_v13  ;;  %8500 = vmatprep.subr.mxu1 %v2001_v3  ;;  %v1995_v3 = vld [vmem:[%s16415_s3 + $0x2a0] sm:$0xff] }
  0xf5   :  { %v8023_v33 = vpop.f32.mrf.mxu0  ;;  %v8102_v40 = vpop.f32.mrf.mxu1  ;;  %8501 = vmatpush3.msra.mxu1 %v1985_v5 }
  0xf6   :  { %v8024_v36 = vadd.f32 %v8023_v33, %v8022_v18  ;;  %v11372_v44 = vadd.f32 %v8101_v28, %v772_v24  ;;  %8502 = vmatprep.subr.mxu1 %v2000_v11 }
  0xf7   :  { %v8025_v46 = vpop.f32.mrf.mxu0  ;;  %v8103_v20 = vpop.f32.mrf.mxu1  ;;  %8503 = vmatpush3.msra.mxu1 %v1984_v15 }
  0xf8   :  { %v777_v52 = vadd.f32 %v8024_v36, %v11296_v53  ;;  %v8104_v58 = vadd.f32 %v8103_v20, %v8102_v40  ;;  %8504 = vmatprep.subr.mxu1 %v1999_v34  ;;  %v1978_v34 = vld [vmem:[%s16415_s3 + $0x218] sm:$0xff] }
  0xf9   :  { %v8026_v50 = vpop.f32.mrf.mxu0  ;;  %v8105_v59 = vpop.f32.mrf.mxu1 }
  0xfa   :  { %v8027_v56 = vadd.f32 %v8026_v50, %v8025_v46  ;;  %v11381_v22 = vadd.f32 %v8104_v58, %v777_v52  ;;  %v1983_v46 = vld [vmem:[%s16415_s3 + $0x240] sm:$0xff] }
  0xfb   :  { %v8028_v62 = vpop.f32.mrf.mxu0  ;;  %v8106_v38 = vpop.f32.mrf.mxu1  ;;  %8505 = vmatpush3.msra.mxu1 %v1983_v46 }
  0xfc   :  { %v782_v1 = vadd.f32 %v8027_v56, %v11296_v53  ;;  %v8107_v45 = vadd.f32 %v8106_v38, %v8105_v59  ;;  %v1998_v56 = vld [vmem:[%s16415_s3 + $0x2b8] sm:$0xff] }
  0xfd   :  { %v8029_v4 = vpop.f32.mrf.mxu0  ;;  %v8108_v14 = vpop.f32.mrf.mxu1  ;;  %8506 = vmatprep.subr.mxu1 %v1998_v56 }
  0xfe   :  { %v8030_v6 = vadd.f32 %v8029_v4, %v8028_v62  ;;  %v11390_v23 = vadd.f32 %v8107_v45, %v782_v1  ;;  %8507 = vmatpush3.msra.mxu1 %v1982_v30 }
  0xff   :  { %v8031_v29 = vpop.f32.mrf.mxu0  ;;  %v8109_v35 = vpop.f32.mrf.mxu1 }
 0x100   :  { %v787_v27 = vadd.f32 %v8030_v6, %v11296_v53  ;;  %v8110_v42 = vadd.f32 %v8109_v35, %v8108_v14  ;;  %v1997_v14 = vld [vmem:[%s16415_s3 + $0x2b0] sm:$0xff] }
 0x101   :  { %v8032_v43 = vpop.f32.mrf.mxu0  ;;  %v8111_v57 = vpop.f32.mrf.mxu1  ;;  %8508 = vmatprep.subr.mxu1 %v1997_v14  ;;  %v1981_v35 = vld [vmem:[%s16415_s3 + $0x230] sm:$0xff] }
 0x102   :  { %v8033_v51 = vadd.f32 %v8032_v43, %v8031_v29  ;;  %v11399_v61 = vadd.f32 %v8110_v42, %v787_v27  ;;  %v2038_v29 = vld [vmem:[%s16415_s3 + $0x3f8] sm:$0xff]  ;;  %8509 = vmatpush3.msra.mxu1 %v1981_v35 }
 0x103   :  { %v8034_v0 = vpop.f32.mrf.mxu0  ;;  %v8112_v26 = vpop.f32.mrf.mxu1  ;;  %8570 = vmatprep.subr.mxu0 %v2038_v29  ;;  %8510 = vmatprep.subr.mxu1 %v1996_v9  ;;  %v1975_v29 = vld [vmem:[%s16415_s3 + $0x200] sm:$0xff] }
 0x104   :  { %v792_v19 = vadd.f32 %v8033_v51, %v11296_v53  ;;  %v8113_v31 = vadd.f32 %v8112_v26, %v8111_v57 }
 0x105   :  { %v8035_v39 = vpop.f32.mrf.mxu0 }
 0x106   :  { %v8036_v48 = vadd.f32 %v8035_v39, %v8034_v0  ;;  %v8114_v55 = vpop.f32.mrf.mxu1  ;;  %v11408_v63 = vadd.f32 %v8113_v31, %v792_v19  ;;  %v1980_v31 = vld [vmem:[%s16415_s3 + $0x228] sm:$0xff] }
 0x107   :  { %v8037_v32 = vpop.f32.mrf.mxu0  ;;  %8511 = vmatpush3.msra.mxu1 %v1980_v31 }
 0x108   :  { %v797_v7 = vadd.f32 %v8036_v48, %v11296_v53  ;;  %v8115_v10 = vpop.f32.mrf.mxu1  ;;  %8512 = vmatprep.subr.mxu1 %v1995_v3 }
 0x109   :  { %v8116_v12 = vadd.f32 %v8115_v10, %v8114_v55  ;;  %v8038_v13 = vpop.f32.mrf.mxu0  ;;  %v1979_v10 = vld [vmem:[%s16415_s3 + $0x220] sm:$0xff] }
 0x10a   :  { %v8039_v18 = vadd.f32 %v8038_v13, %v8037_v32  ;;  %v8117_v21 = vpop.f32.mrf.mxu1  ;;  %8513 = vmatpush3.msra.mxu1 %v1979_v10 }
 0x10b   :  { %v11426_v24 = vadd.f32 %v8116_v12, %v797_v7  ;;  %v8040_v25 = vpop.f32.mrf.mxu0 }
 0x10c   :  { %v802_v28 = vadd.f32 %v8039_v18, %v11296_v53  ;;  %v8118_v33 = vpop.f32.mrf.mxu1 }
 0x10d   :  { %16424 = vst [vmem:[#allocation7_spill] sm:$0xff] %v11426_v24  ;;  %v8119_v36 = vadd.f32 %v8118_v33, %v8117_v21  ;;  %v8041_v40 = vpop.f32.mrf.mxu0 }
 0x10e   :  { %v8042_v47 = vadd.f32 %v8041_v40, %v8040_v25  ;;  %v8120_v52 = vpop.f32.mrf.mxu1  ;;  %v1994_v25 = vld [vmem:[%s16415_s3 + $0x298] sm:$0xff] }
 0x10f   :  { %v11435_v20 = vadd.f32 %v8119_v36, %v802_v28  ;;  %v8043_v58 = vpop.f32.mrf.mxu0  ;;  %8514 = vmatprep.subr.mxu1 %v1994_v25 }
 0x110   :  { %v807_v50 = vadd.f32 %v8042_v47, %v11296_v53  ;;  %v8121_v17 = vpop.f32.mrf.mxu1  ;;  %8515 = vmatpush3.msra.mxu1 %v1978_v34 }
 0x111   :  { %16425 = vst [vmem:[#allocation8_spill] sm:$0xff] %v11435_v20  ;;  %v8122_v59 = vadd.f32 %v8121_v17, %v8120_v52  ;;  %v8044_v62 = vpop.f32.mrf.mxu0  ;;  %v1993_v52 = vld [vmem:[%s16415_s3 + $0x290] sm:$0xff] }
 0x112   :  { %v8045_v1 = vadd.f32 %v8044_v62, %v8043_v58  ;;  %v8123_v38 = vpop.f32.mrf.mxu1  ;;  %8516 = vmatprep.subr.mxu1 %v1993_v52  ;;  %v1992_v62 = vld [vmem:[%s16415_s3 + $0x288] sm:$0xff] }
 0x113   :  { %v11444_v45 = vadd.f32 %v8122_v59, %v807_v50  ;;  %v8046_v4 = vpop.f32.mrf.mxu0  ;;  %v1977_v50 = vld [vmem:[%s16415_s3 + $0x210] sm:$0xff] }
 0x114   :  { %v812_v8 = vadd.f32 %v8045_v1, %v11296_v53  ;;  %v8124_v6 = vpop.f32.mrf.mxu1  ;;  %8517 = vmatpush3.msra.mxu1 %v1977_v50  ;;  %v1976_v1 = vld [vmem:[%s16415_s3 + $0x208] sm:$0xff] }
 0x115   :  { %16426 = vst [vmem:[#allocation9_spill] sm:$0xff] %v11444_v45  ;;  %v8125_v37 = vadd.f32 %v8124_v6, %v8123_v38  ;;  %v8047_v27 = vpop.f32.mrf.mxu0  ;;  %8518 = vmatprep.subr.mxu1 %v1992_v62  ;;  %v1991_v6 = vld [vmem:[%s16415_s3 + $0x280] sm:$0xff] }
 0x116   :  { %v8048_v42 = vadd.f32 %v8047_v27, %v8046_v4  ;;  %v8126_v43 = vpop.f32.mrf.mxu1  ;;  %8519 = vmatpush3.msra.mxu1 %v1976_v1 }
 0x117   :  { %v11456_v49 = vadd.f32 %v8125_v37, %v812_v8  ;;  %v8049_v51 = vpop.f32.mrf.mxu0  ;;  %8520 = vmatprep.subr.mxu1 %v1991_v6 }
 0x118   :  { %v817_v57 = vadd.f32 %v8048_v42, %v11296_v53  ;;  %v8127_v0 = vpop.f32.mrf.mxu1  ;;  %8521 = vmatpush3.msra.mxu1 %v1975_v29  ;;  %v11522_v42 = vld [vmem:[%s16415_s3 + $0x478] sm:$0xff] }
 0x119   :  { %16427 = vst [vmem:[#allocation10_spill] sm:$0xff] %v11456_v49  ;;  %v8128_v19 = vadd.f32 %v8127_v0, %v8126_v43  ;;  %v8050_v26 = vpop.f32.mrf.mxu0  ;;  %16431 = vst [vmem:[#allocation14_spill] sm:$0xff] %v11522_v42  ;;  %10210 = vmatprep.subr.mxu1 %v11522_v42 }
 0x11a   :  { %v8051_v39 = vadd.f32 %v8050_v26, %v8049_v51  ;;  %v8129_v41 = vpop.f32.mrf.mxu1 }
 0x11b   :  { %v11465_v48 = vadd.f32 %v8128_v19, %v817_v57  ;;  %v8052_v55 = vpop.f32.mrf.mxu0 }
 0x11c   :  { %v822_v32 = vadd.f32 %v8051_v39, %v11296_v53  ;;  %v8130_v2 = vpop.f32.mrf.mxu1 }
 0x11d   :  { %16428 = vst [vmem:[#allocation11_spill] sm:$0xff] %v11465_v48  ;;  %v8131_v5 = vadd.f32 %v8130_v2, %v8129_v41  ;;  %v8053_v7 = vpop.f32.mrf.mxu0 }
 0x11e   :  { %v8054_v11 = vadd.f32 %v8053_v7, %v8052_v55  ;;  %v8132_v12 = vpop.f32.mrf.mxu1 }
 0x11f   :  { %v11474_v13 = vadd.f32 %v8131_v5, %v822_v32  ;;  %v11476_v15 = vpop.f32.mrf.mxu0 }
 0x120   :  { %v827_v18 = vadd.f32 %v8054_v11, %v11296_v53  ;;  %v8133_v21 = vpop.f32.mrf.mxu1 }
 0x121   :  { %16429 = vst [vmem:[#allocation12_spill] sm:$0xff] %v11474_v13  ;;  %v8134_v28 = vadd.f32 %v8133_v21, %v8132_v12  ;;  %v11482_v33 = vpop.f32.mrf.mxu0 }
 0x122   :  { %v11487_v36 = vpop.f32.mrf.mxu1 }
 0x123   :  { %v11489_v40 = vadd.f32 %v8134_v28, %v827_v18  ;;  %v11491_v46 = vpop.f32.mrf.mxu0 }
 0x124   :  { %v11493_v47 = vpop.f32.mrf.mxu1 }
 0x125   :  { %16430 = vst [vmem:[#allocation13_spill] sm:$0xff] %v11489_v40  ;;  %v11498_v58 = vpop.f32.mrf.mxu0 }
 0x126   :  { %v11503_v17 = vpop.f32.mrf.mxu1 }
 0x127   :  { %v8173_v56 = vpop.f32.mrf.mxu0 }
 0x128   :  { %v11505_v59 = vpop.f32.mrf.mxu1 }
 0x129   :  { %v8174_v30 = vpop.f32.mrf.mxu0 }
 0x12a   :  { %v8253_v38 = vpop.f32.mrf.mxu1 }
 0x12b   :  { %v8176_v4 = vpop.f32.mrf.mxu0 }
 0x12c   :  { %v8254_v8 = vpop.f32.mrf.mxu1 }
 0x12d   :  { %v8177_v14 = vpop.f32.mrf.mxu0 }
 0x12e   :  { %v8256_v37 = vpop.f32.mrf.mxu1  ;;  %v8178_v24 = vadd.f32 %v8177_v14, %v8176_v4 }
 0x12f   :  { %v8179_v27 = vpop.f32.mrf.mxu0 }
 0x130   :  { %v8257_v35 = vpop.f32.mrf.mxu1 }
 0x131   :  { %v8180_v43 = vpop.f32.mrf.mxu0 }
 0x132   :  { %v8259_v51 = vpop.f32.mrf.mxu1 }
 0x133   :  { %v8182_v57 = vpop.f32.mrf.mxu0 }
 0x134   :  { %v8260_v0 = vpop.f32.mrf.mxu1 }
 0x135   :  { %v8183_v9 = vpop.f32.mrf.mxu0 }
 0x136   :  { %v11525_v19 = vpop.f32.mrf.mxu1  ;;  %v8184_v4 = vadd.f32 %v8183_v9, %v8182_v57 }
 0x137   :  { %v8185_v26 = vpop.f32.mrf.mxu0 }
 0x138   :  { %v11527_v31 = vpop.f32.mrf.mxu1 }
 0x139   :  { %v8186_v39 = vpop.f32.mrf.mxu0 }
 0x13a   :  { %v11529_v41 = vpop.f32.mrf.mxu1  ;;  %v8187_v14 = vadd.f32 %v8186_v39, %v8185_v26 }
 0x13b   :  { %v8188_v55 = vpop.f32.mrf.mxu0 }
 0x13c   :  { %v8266_v32 = vpop.f32.mrf.mxu1 }
 0x13d   :  { %v8189_v2 = vpop.f32.mrf.mxu0 }
 0x13e   :  { %v11531_v3 = vpop.f32.mrf.mxu1 }
 0x13f   :  { %v8191_v5 = vpop.f32.mrf.mxu0 }
 0x140   :  { %v11533_v7 = vpop.f32.mrf.mxu1 }
 0x141   :  { %v8192_v10 = vpop.f32.mrf.mxu0  ;;  %v8270_v57 = vadd.f32 %v11533_v7, %v11531_v3 }
 0x142   :  { %v11535_v11 = vpop.f32.mrf.mxu1 }
 0x143   :  { %v11537_v12 = vpop.f32.mrf.mxu0 }
 0x144   :  { %v11539_v18 = vpop.f32.mrf.mxu1 }
 0x145   :  { %v11541_v21 = vpop.f32.mrf.mxu0 }
 0x146   :  { %v11543_v25 = vpop.f32.mrf.mxu1 }
 0x147   :  { %16432 = vst [vmem:[#allocation15_spill] sm:$0xff] %v11543_v25  ;;  %v11545_v28 = vpop.f32.mrf.mxu0 }
 0x148   :  { %v11547_v34 = vpop.f32.mrf.mxu1 }
 0x149   :  { %16433 = vst [vmem:[#allocation16_spill] sm:$0xff] %v11547_v34  ;;  %v11549_v52 = vpop.f32.mrf.mxu0  ;;  %v8175_v34 = vadd.f32 %v8174_v30, %v8173_v56 }
 0x14a   :  { %v11551_v50 = vpop.f32.mrf.mxu1 }
 0x14b   :  { %16434 = vst [vmem:[#allocation17_spill] sm:$0xff] %v11551_v50  ;;  %v11553_v62 = vpop.f32.mrf.mxu0 }
 0x14c   :  { %v11555_v1 = vpop.f32.mrf.mxu1 }
 0x14d   :  { %16435 = vst [vmem:[#allocation18_spill] sm:$0xff] %v11555_v1  ;;  %v11557_v6 = vpop.f32.mrf.mxu0 }
 0x14e   :  { %v11559_v29 = vpop.f32.mrf.mxu1 }
 0x14f   :  { %16436 = vst [vmem:[#allocation19_spill] sm:$0xff] %v11559_v29  ;;  %v11561_v42 = vpop.f32.mrf.mxu0 }
 0x150   :  { %v11563_v40 = vpop.f32.mrf.mxu1 }
 0x151   :  { %16437 = vst [vmem:[#allocation20_spill] sm:$0xff] %v11563_v40  ;;  %v11565_v48 = vpop.f32.mrf.mxu0  ;;  %v8172_v40 = vadd.f32 %v11498_v58, %v11491_v46  ;;  %v1057_v46 = vadd.f32 %v8178_v24, %v11363_v16  ;;  %v8258_v58 = vadd.f32 %v8257_v35, %v8256_v37  ;;  %v11608_v16 = vadd.f32 %v11493_v47, %v11487_v36 }
 0x152   :  { %16438 = vst [vmem:[#allocation21_spill] sm:$0xff] %v11565_v48  ;;  %v11567_v13 = vpop.f32.mrf.mxu1  ;;  %v8181_v48 = vadd.f32 %v8180_v43, %v8179_v27  ;;  %v1067_v37 = vadd.f32 %v8184_v4, %v11381_v22 }
 0x153   :  { %16439 = vst [vmem:[#allocation22_spill] sm:$0xff] %v11567_v13  ;;  %v11569_v49 = vpop.f32.mrf.mxu0  ;;  %v1047_v30 = vadd.f32 %v8172_v40, %v11332_v54  ;;  %v8190_v54 = vadd.f32 %v8189_v2, %v8188_v55  ;;  %v8193_v40 = vadd.f32 %v8192_v10, %v8191_v5  ;;  %v8202_v5 = vadd.f32 %v11557_v6, %v11553_v62  ;;  %v16449_v6 = vld [vmem:[#allocation8_spill] sm:$0xff] }
 0x154   :  { %16440 = vst [vmem:[#allocation23_spill] sm:$0xff] %v11569_v49  ;;  %v11573_v50 = vpop.f32.mrf.mxu1  ;;  %v1052_v49 = vadd.f32 %v8175_v34, %v11348_v60  ;;  %v16446_v34 = vld [vmem:[#allocation7_spill] sm:$0xff] }
 0x155   :  { %v11571_v45 = vpop.f32.mrf.mxu0  ;;  %16442 = vst [vmem:[#allocation25_spill] sm:$0xff] %v11573_v50  ;;  %v1077_v47 = vadd.f32 %v8190_v54, %v11399_v61  ;;  %v1082_v22 = vadd.f32 %v8193_v40, %v11408_v63  ;;  %v8199_v61 = vadd.f32 %v11549_v52, %v11545_v28  ;;  %v16452_v40 = vld [vmem:[#allocation9_spill] sm:$0xff] }
 0x156   :  { %16441 = vst [vmem:[#allocation24_spill] sm:$0xff] %v11571_v45  ;;  %v11579_v29 = vpop.f32.mrf.mxu1  ;;  %v8255_v45 = vadd.f32 %v8254_v8, %v8253_v38  ;;  %v1062_v38 = vadd.f32 %v8181_v48, %v11372_v44  ;;  %v8261_v8 = vadd.f32 %v8260_v0, %v8259_v51  ;;  %v8264_v44 = vadd.f32 %v11527_v31, %v11525_v19 }
 0x157   :  { %v11575_v20 = vpop.f32.mrf.mxu0  ;;  %v8273_v0 = vadd.f32 %v11539_v18, %v11535_v11  ;;  %v8196_v31 = vadd.f32 %v11541_v21, %v11537_v12  ;;  %v1222_v18 = vadd.f32 %v8270_v57, %v1077_v47 }
 0x158   :  { %v11588_v50 = vpop.f32.mrf.mxu1  ;;  %v1207_v36 = vadd.f32 %v8261_v8, %v1062_v38  ;;  %v1212_v63 = vadd.f32 %v8264_v44, %v1067_v37  ;;  %v16455_v37 = vld [vmem:[#allocation10_spill] sm:$0xff] }
 0x159   :  { %v11577_v1 = vpop.f32.mrf.mxu0  ;;  %v16445_v7 = vld [vmem:[#allocation21_spill] sm:$0xff]  ;;  %v1227_v12 = vadd.f32 %v8273_v0, %v1082_v22  ;;  %v1087_v52 = vadd.f32 %v8196_v31, %v16446_v34 }
 0x15a   :  { %16443 = vst [vmem:[#allocation26_spill] sm:$0xff] %v11577_v1  ;;  %v8057_v1 = vadd.f32 %v11482_v33, %v11476_v15  ;;  %v11601_v27 = vpop.f32.mrf.mxu1  ;;  %v1197_v15 = vadd.f32 %v8255_v45, %v1052_v49  ;;  %v1072_v45 = vadd.f32 %v8187_v14, %v11390_v23  ;;  %v8205_v10 = vadd.f32 %v16445_v7, %v11561_v42  ;;  %v16450_v42 = vld [vmem:[#allocation17_spill] sm:$0xff] }
 0x15b   :  { %v11581_v25 = vpop.f32.mrf.mxu0  ;;  %v2021_v34 = vld [vmem:[%s16415_s3 + $0x370] sm:$0xff] }
 0x15c   :  { %16444 = vst [vmem:[#allocation27_spill] sm:$0xff] %v11581_v25  ;;  %v8252_v25 = vadd.f32 %v11505_v59, %v11503_v17  ;;  %v11604_v33 = vadd.f32 %v8057_v1, %v11296_v53  ;;  %v1202_v59 = vadd.f32 %v8258_v58, %v1057_v46  ;;  %v8267_v53 = vadd.f32 %v8266_v32, %v11529_v41  ;;  %v11615_v48 = vpop.f32.mrf.mxu1  ;;  %v16447_v1 = vld [vmem:[#allocation15_spill] sm:$0xff]  ;;  %v16451_v58 = vld [vmem:[#allocation18_spill] sm:$0xff] }
 0x15d   :  { %v11585_v13 = vpop.f32.mrf.mxu0  ;;  %v1092_v46 = vadd.f32 %v8199_v61, %v16449_v6  ;;  %v8279_v4 = vadd.f32 %v16451_v58, %v16450_v42  ;;  %v1102_v44 = vadd.f32 %v8205_v10, %v16455_v37 }
 0x15e   :  { %v1192_v17 = vadd.f32 %v8252_v25, %v1047_v30  ;;  %v1217_v41 = vadd.f32 %v8267_v53, %v1072_v45  ;;  %v11630_v55 = vpop.f32.mrf.mxu1  ;;  %v16448_v30 = vld [vmem:[#allocation16_spill] sm:$0xff]  ;;  %v16456_v45 = vld [vmem:[#allocation22_spill] sm:$0xff]  ;;  %v16457_v53 = vld [vmem:[#allocation25_spill] sm:$0xff]  ;;  %v977_v57 = vadd.f32 %v11608_v16, %v11604_v33 }
 0x15f   :  { %v11592_v56 = vpop.f32.mrf.mxu0  ;;  %v8276_v62 = vadd.f32 %v16448_v30, %v16447_v1  ;;  %v2022_v33 = vld [vmem:[%s16415_s3 + $0x378] sm:$0xff]  ;;  %v16459_v16 = vld [vmem:[#allocation23_spill] sm:$0xff]  ;;  %v8291_v30 = vadd.f32 %v11615_v48, %v11601_v27 }
 0x160   :  { %v11649_v38 = vpop.f32.mrf.mxu1  ;;  %v2036_v27 = vld [vmem:[%s16415_s3 + $0x3e8] sm:$0xff] }
 0x161   :  { %v11598_v60 = vpop.f32.mrf.mxu0  ;;  %v16458_v22 = vld [vmem:[#allocation26_spill] sm:$0xff]  ;;  %v1232_v31 = vadd.f32 %v8276_v62, %v1087_v52  ;;  %v16461_v52 = vld [vmem:[#allocation12_spill] sm:$0xff]  ;;  %v16462_v48 = vld [vmem:[#allocation11_spill] sm:$0xff] }
 0x162   :  { %v8211_v0 = vadd.f32 %v16458_v22, %v11575_v20  ;;  %v8295_v61 = vpop.f32.mrf.mxu1  ;;  %v8217_v62 = vadd.f32 %v11598_v60, %v11592_v56  ;;  %v8288_v56 = vadd.f32 %v11588_v50, %v11579_v29  ;;  %v2035_v29 = vld [vmem:[%s16415_s3 + $0x3e0] sm:$0xff]  ;;  %v8294_v22 = vadd.f32 %v11649_v38, %v11630_v55  ;;  %v2018_v38 = vld [vmem:[%s16415_s3 + $0x358] sm:$0xff] }
 0x163   :  { %v10188_v43 = vpop.f32.mrf.mxu0  ;;  %v16463_v60 = vld [vmem:[#allocation27_spill] sm:$0xff] }
 0x164   :  { %v1342_v24 = vadd.f32 %v10188_v43, %v1197_v15  ;;  %v1097_v43 = vadd.f32 %v8202_v5, %v16452_v40  ;;  %v1112_v1 = vadd.f32 %v8211_v0, %v16461_v52 }
 0x165   :  { %v1336_v49 = vpop.f32.mrf.mxu0 }
 0x166   :  { %vm1416_vm0 = vcmp.gt.f32.partialorder %v1342_v24, 0.0  ;;  %v1432_v35 = vmul.f32 0.01, %v1342_v24  ;;  %v1337_v51 = vadd.f32 %v1336_v49, %v1192_v17  ;;  %v16454_v17 = vld [vmem:[#allocation20_spill] sm:$0xff]  ;;  %v8285_v49 = vadd.f32 %v16457_v53, %v16456_v45 }
 0x167   :  { %v10191_v23 = vpop.f32.mrf.mxu0  ;;  %v1257_v45 = vadd.f32 %v8291_v30, %v1112_v1  ;;  %v2032_v1 = vld [vmem:[%s16415_s3 + $0x3c8] sm:$0xff] }
 0x168   :  { %v11623_v9 = vsel %vm1416_vm0, %v1342_v24, %v1432_v35  ;;  %vm1415_vm1 = vcmp.gt.f32.partialorder %v1337_v51, 0.0  ;;  %v1431_v19 = vmul.f32 0.01, %v1337_v51  ;;  %v1352_v26 = vadd.f32 %v10191_v23, %v1207_v36  ;;  %v16453_v24 = vld [vmem:[#allocation19_spill] sm:$0xff] }
 0x169   :  { %1464 = vst [vmem:[#allocation2 + $0x21] sm:$0xff] %v11623_v9  ;;  %v1346_v39 = vpop.f32.mrf.mxu0  ;;  %v1247_v7 = vadd.f32 %v8285_v49, %v1102_v44 }
 0x16a   :  { %v11632_v32 = vsel %vm1415_vm1, %v1337_v51, %v1431_v19  ;;  %vm1418_vm2 = vcmp.gt.f32.partialorder %v1352_v26, 0.0  ;;  %v1434_v2 = vmul.f32 0.01, %v1352_v26  ;;  %v1347_v3 = vadd.f32 %v1346_v39, %v1202_v59 }
 0x16b   :  { %1463 = vst [vmem:[#allocation2 + $0x11] sm:$0xff] %v11632_v32  ;;  %v10194_v11 = vpop.f32.mrf.mxu0  ;;  %2131 = vmatprep.mubr.f32.mxu1 %v11632_v32  ;;  %v8282_v59 = vadd.f32 %v16454_v17, %v16453_v24  ;;  %v1237_v19 = vadd.f32 %v8279_v4, %v1092_v46  ;;  %v8296_v46 = vpop.f32.mrf.mxu1 }
 0x16c   :  { %v11640_v21 = vsel %vm1418_vm2, %v1352_v26, %v1434_v2  ;;  %vm1417_vm3 = vcmp.gt.f32.partialorder %v1347_v3, 0.0  ;;  %v1433_v25 = vmul.f32 0.01, %v1347_v3  ;;  %v1362_v28 = vadd.f32 %v10194_v11, %v1217_v41  ;;  %v1543_v26 = vld [vmem:[#allocation2 + $0x2] sm:$0xff]  ;;  %v2037_v11 = vld [vmem:[%s16415_s3 + $0x3f0] sm:$0xff] }
 0x16d   :  { %1466 = vst [vmem:[#allocation2 + $0x41] sm:$0xff] %v11640_v21  ;;  %v1356_v14 = vpop.f32.mrf.mxu0  ;;  %v1242_v10 = vadd.f32 %v8282_v59, %v1097_v43  ;;  %v2020_v43 = vld [vmem:[%s16415_s3 + $0x368] sm:$0xff]  ;;  %v1122_v59 = vadd.f32 %v8217_v62, %v977_v57  ;;  %v8297_v37 = vadd.f32 %v8296_v46, %v8295_v61 }
 0x16e   :  { %v11651_v8 = vsel %vm1417_vm3, %v1347_v3, %v1433_v25  ;;  %vm1420_vm4 = vcmp.gt.f32.partialorder %v1362_v28, 0.0  ;;  %v1436_v15 = vmul.f32 0.01, %v1362_v28  ;;  %v1357_v54 = vadd.f32 %v1356_v14, %v1212_v63  ;;  %v16460_v3 = vld [vmem:[#allocation24_spill] sm:$0xff] }
 0x16f   :  { %1465 = vst [vmem:[#allocation2 + $0x31] sm:$0xff] %v11651_v8  ;;  %v10197_v35 = vpop.f32.mrf.mxu0  ;;  %v8208_v20 = vadd.f32 %v16460_v3, %v16459_v16 }
 0x170   :  { %v11660_v51 = vsel %vm1420_vm4, %v1362_v28, %v1436_v15  ;;  %vm1419_vm5 = vcmp.gt.f32.partialorder %v1357_v54, 0.0  ;;  %v1435_v36 = vmul.f32 0.01, %v1357_v54  ;;  %v1372_v47 = vadd.f32 %v10197_v35, %v1227_v12  ;;  %v11681_v28 = vld [vmem:[#allocation2 + $0x20] sm:$0xff] }
 0x171   :  { %1468 = vst [vmem:[#allocation2 + $0x61] sm:$0xff] %v11660_v51  ;;  %v1366_v23 = vpop.f32.mrf.mxu0  ;;  %v1107_v14 = vadd.f32 %v8208_v20, %v16462_v48  ;;  %v8214_v15 = vadd.f32 %v11585_v13, %v16463_v60  ;;  %v2033_v20 = vld [vmem:[%s16415_s3 + $0x3d0] sm:$0xff]  ;;  %v2015_v60 = vld [vmem:[%s16415_s3 + $0x340] sm:$0xff] }
 0x172   :  { %v11667_v39 = vsel %vm1419_vm5, %v1357_v54, %v1435_v36  ;;  %vm1422_vm6 = vcmp.gt.f32.partialorder %v1372_v47, 0.0  ;;  %v1438_v41 = vmul.f32 0.01, %v1372_v47  ;;  %v1367_v63 = vadd.f32 %v1366_v23, %v1222_v18  ;;  %v1575_v2 = vld [vmem:[#allocation2 + $0x10] sm:$0xff]  ;;  %v2019_v36 = vld [vmem:[%s16415_s3 + $0x360] sm:$0xff] }
 0x173   :  { %1467 = vst [vmem:[#allocation2 + $0x51] sm:$0xff] %v11667_v39  ;;  %v10200_v5 = vpop.f32.mrf.mxu0  ;;  %2271 = vmatprep.mubr.f32.mxu0 %v1575_v2  ;;  %2132 = vmatmul.mubr.f32.gmra.mxu1 %v1575_v2  ;;  %v11705_v40 = vld [vmem:[#allocation2 + $0x12] sm:$0xff]  ;;  %v11731_v23 = vld [vmem:[#allocation2 + $0x22] sm:$0xff]  ;;  %v1267_v2 = vadd.f32 %v8297_v37, %v1122_v59 }
 0x174   :  { %v11678_v12 = vsel %vm1422_vm6, %v1372_v47, %v1438_v41  ;;  %vm1421_vm7 = vcmp.gt.f32.partialorder %v1367_v63, 0.0  ;;  %v1437_v18 = vmul.f32 0.01, %v1367_v63  ;;  %v1382_v25 = vadd.f32 %v10200_v5, %v1237_v19  ;;  %2272 = vmatmul.mubr.f32.vlgmr.msra.gmra.mxu0 %v1543_v26  ;;  %2136 = vmatprep.mubr.f32.mxu1 %v11623_v9  ;;  %v16464_v47 = vld [vmem:[#allocation13_spill] sm:$0xff]  ;;  %v11740_v55 = vld [vmem:[#allocation2 + $0x40] sm:$0xff] }
 0x175   :  { %1470 = vst [vmem:[#allocation2 + $0x81] sm:$0xff] %v11678_v12  ;;  %v1376_v6 = vpop.f32.mrf.mxu0  ;;  %2276 = vmatprep.mubr.f32.mxu0 %v11681_v28  ;;  %8571 = vmatpush3.msra.mxu0 %v2022_v33  ;;  %v1117_v57 = vadd.f32 %v8214_v15, %v16464_v47  ;;  %v1252_v19 = vadd.f32 %v8288_v56, %v1107_v14  ;;  %v2034_v26 = vld [vmem:[%s16415_s3 + $0x3d8] sm:$0xff]  ;;  %v1519_v59 = vld [vmem:[#allocation2 + $0xa1] sm:$0xff]  ;;  %v2013_v37 = vld [vmem:[%s16415_s3 + $0x330] sm:$0xff] }
 0x176   :  { %v11693_v42 = vsel %vm1421_vm7, %v1367_v63, %v1437_v18  ;;  %vm1424_vm8 = vcmp.gt.f32.partialorder %v1382_v25, 0.0  ;;  %v1440_v58 = vmul.f32 0.01, %v1382_v25  ;;  %v1377_v4 = vadd.f32 %v1376_v6, %v1232_v31  ;;  %8572 = vmatprep.subr.mxu0 %v2037_v11  ;;  %v11714_v13 = vld [vmem:[#allocation2 + $0x30] sm:$0xff]  ;;  %v11832_v47 = vld [vmem:[#allocation2] sm:$0xff] }
 0x177   :  { %1469 = vst [vmem:[#allocation2 + $0x71] sm:$0xff] %v11693_v42  ;;  %v10203_v54 = vpop.f32.mrf.mxu0  ;;  %2137 = vmatmul.mubr.f32.gmra.mxu1 %v11681_v28  ;;  %8573 = vmatpush3.msra.mxu0 %v2021_v34  ;;  %v2017_v11 = vld [vmem:[%s16415_s3 + $0x350] sm:$0xff] }
 0x178   :  { %v11710_v24 = vsel %vm1424_vm8, %v1382_v25, %v1440_v58  ;;  %vm1423_vm9 = vcmp.gt.f32.partialorder %v1377_v4, 0.0  ;;  %v1439_v17 = vmul.f32 0.01, %v1377_v4  ;;  %v1392_v50 = vadd.f32 %v10203_v54, %v1247_v7  ;;  %2277 = vmatmul.mubr.f32.gmra.mxu0 %v11705_v40  ;;  %2141 = vmatprep.mubr.f32.mxu1 %v11651_v8  ;;  %v11754_v7 = vld [vmem:[#allocation2 + $0x32] sm:$0xff]  ;;  %v2016_v58 = vld [vmem:[%s16415_s3 + $0x348] sm:$0xff]  ;;  %v11786_v56 = vld [vmem:[#allocation2 + $0x60] sm:$0xff] }
 0x179   :  { %1472 = vst [vmem:[#allocation2 + $0xc1] sm:$0xff] %v11710_v24  ;;  %v1386_v44 = vpop.f32.mrf.mxu0  ;;  %2281 = vmatprep.mubr.f32.mxu0 %v11714_v13  ;;  %8574 = vmatprep.subr.mxu0 %v2036_v27  ;;  %v2031_v27 = vld [vmem:[%s16415_s3 + $0x3c0] sm:$0xff]  ;;  %v2030_v54 = vld [vmem:[%s16415_s3 + $0x3b8] sm:$0xff] }
 0x17a   :  { %v11721_v53 = vsel %vm1423_vm9, %v1377_v4, %v1439_v17  ;;  %vm1426_vm10 = vcmp.gt.f32.partialorder %v1392_v50, 0.0  ;;  %v1442_v49 = vmul.f32 0.01, %v1392_v50  ;;  %v1387_v35 = vadd.f32 %v1386_v44, %v1242_v10  ;;  %8575 = vmatpush3.msra.mxu0 %v2020_v43  ;;  %v11763_v52 = vld [vmem:[#allocation2 + $0x50] sm:$0xff]  ;;  %v11777_v4 = vld [vmem:[#allocation2 + $0x42] sm:$0xff]  ;;  %v2014_v17 = vld [vmem:[%s16415_s3 + $0x338] sm:$0xff] }
 0x17b   :  { %1471 = vst [vmem:[#allocation2 + $0xb1] sm:$0xff] %v11721_v53  ;;  %v10206_v0 = vpop.f32.mrf.mxu0  ;;  %2142 = vmatmul.mubr.f32.gmra.mxu1 %v11714_v13  ;;  %8576 = vmatprep.subr.mxu0 %v2035_v29  ;;  %v1262_v10 = vadd.f32 %v8294_v22, %v1117_v57  ;;  %v11800_v43 = vld [vmem:[#allocation2 + $0x52] sm:$0xff]  ;;  %v11817_v44 = vld [vmem:[#allocation2 + $0x62] sm:$0xff] }
 0x17c   :  { %v11736_v31 = vsel %vm1426_vm10, %v1392_v50, %v1442_v49  ;;  %vm1425_vm11 = vcmp.gt.f32.partialorder %v1387_v35, 0.0  ;;  %v1441_v61 = vmul.f32 0.01, %v1387_v35  ;;  %v1402_v41 = vadd.f32 %v10206_v0, %v1257_v45  ;;  %2282 = vmatmul.mubr.f32.gmra.mxu0 %v11731_v23  ;;  %2146 = vmatprep.mubr.f32.mxu1 %v11640_v21  ;;  %v2029_v29 = vld [vmem:[%s16415_s3 + $0x3b0] sm:$0xff]  ;;  %v2028_v45 = vld [vmem:[%s16415_s3 + $0x3a8] sm:$0xff]  ;;  %v11823_v49 = vld [vmem:[#allocation2 + $0x80] sm:$0xff] }
 0x17d   :  { %1474 = vst [vmem:[#allocation2 + $0xe1] sm:$0xff] %v11736_v31  ;;  %v1396_v63 = vpop.f32.mrf.mxu0  ;;  %2286 = vmatprep.mubr.f32.mxu0 %v11740_v55  ;;  %8577 = vmatpush3.msra.mxu0 %v2019_v36  ;;  %v2027_v36 = vld [vmem:[%s16415_s3 + $0x3a0] sm:$0xff] }
 0x17e   :  { %v11747_v33 = vsel %vm1425_vm11, %v1387_v35, %v1441_v61  ;;  %vm1428_vm12 = vcmp.gt.f32.partialorder %v1402_v41, 0.0  ;;  %v1444_v16 = vmul.f32 0.01, %v1402_v41  ;;  %v1397_v3 = vadd.f32 %v1396_v63, %v1252_v19  ;;  %8578 = vmatprep.subr.mxu0 %v2034_v26  ;;  %v11807_v50 = vld [vmem:[#allocation2 + $0x70] sm:$0xff]  ;;  %v2012_v35 = vld [vmem:[%s16415_s3 + $0x328] sm:$0xff]  ;;  %v2011_v22 = vld [vmem:[%s16415_s3 + $0x320] sm:$0xff] }
 0x17f   :  { %1473 = vst [vmem:[#allocation2 + $0xd1] sm:$0xff] %v11747_v33  ;;  %v10209_v5 = vpop.f32.mrf.mxu0  ;;  %2147 = vmatmul.mubr.f32.gmra.mxu1 %v11740_v55  ;;  %8579 = vmatpush3.msra.mxu0 %v2018_v38  ;;  %v11835_v57 = vld [vmem:[#allocation2 + $0x72] sm:$0xff]  ;;  %v1551_v26 = vld [vmem:[#allocation2 + $0xa2] sm:$0xff] }
 0x180   :  { %v11759_v18 = vsel %vm1428_vm12, %v1402_v41, %v1444_v16  ;;  %vm1427_vm13 = vcmp.gt.f32.partialorder %v1397_v3, 0.0  ;;  %v1443_v25 = vmul.f32 0.01, %v1397_v3  ;;  %v1412_v34 = vadd.f32 %v10209_v5, %v1267_v2  ;;  %2287 = vmatmul.mubr.f32.gmra.mxu0 %v11754_v7  ;;  %2151 = vmatprep.mubr.f32.mxu1 %v11667_v39  ;;  %v2026_v19 = vld [vmem:[%s16415_s3 + $0x398] sm:$0xff]  ;;  %v2025_v41 = vld [vmem:[%s16415_s3 + $0x390] sm:$0xff]  ;;  %v11852_v38 = vld [vmem:[#allocation2 + $0xc0] sm:$0xff] }
 0x181   :  { %1476 = vst [vmem:[#allocation2 + $0x101] sm:$0xff] %v11759_v18  ;;  %v1406_v30 = vpop.f32.mrf.mxu0  ;;  %2291 = vmatprep.mubr.f32.mxu0 %v11763_v52  ;;  %8580 = vmatprep.subr.mxu0 %v2033_v20  ;;  %v2010_v61 = vld [vmem:[%s16415_s3 + $0x318] sm:$0xff]  ;;  %v2009_v63 = vld [vmem:[%s16415_s3 + $0x310] sm:$0xff]  ;;  %v2024_v2 = vld [vmem:[%s16415_s3 + $0x388] sm:$0xff] }
 0x182   :  { %v11770_v62 = vsel %vm1427_vm13, %v1397_v3, %v1443_v25  ;;  %vm1430_vm14 = vcmp.gt.f32.partialorder %v1412_v34, 0.0  ;;  %v1446_v6 = vmul.f32 0.01, %v1412_v34  ;;  %v1407_v46 = vadd.f32 %v1406_v30, %v1262_v10  ;;  %8581 = vmatpush3.msra.mxu0 %v2017_v11  ;;  %v1583_v0 = vld [vmem:[#allocation2 + $0xb0] sm:$0xff]  ;;  %v2008_v3 = vld [vmem:[%s16415_s3 + $0x308] sm:$0xff]  ;;  %v2023_v5 = vld [vmem:[%s16415_s3 + $0x380] sm:$0xff] }
 0x183   :  { %1475 = vst [vmem:[#allocation2 + $0xf1] sm:$0xff] %v11770_v62  ;;  %2152 = vmatmul.mubr.f32.gmra.mxu1 %v11763_v52  ;;  %8582 = vmatprep.subr.mxu0 %v2032_v1  ;;  %v11862_v16 = vld [vmem:[#allocation2 + $0xb2] sm:$0xff]  ;;  %v2007_v10 = vld [vmem:[%s16415_s3 + $0x300] sm:$0xff] }
 0x184   :  { %v11782_v48 = vsel %vm1430_vm14, %v1412_v34, %v1446_v6  ;;  %vm1429_vm15 = vcmp.gt.f32.partialorder %v1407_v46, 0.0  ;;  %v1445_v14 = vmul.f32 0.01, %v1407_v46  ;;  %2292 = vmatmul.mubr.f32.gmra.mxu0 %v11777_v4  ;;  %2156 = vmatprep.mubr.f32.mxu1 %v11660_v51  ;;  %v11879_v11 = vld [vmem:[#allocation2 + $0xc2] sm:$0xff] }
 0x185   :  { %1478 = vst [vmem:[#allocation2 + $0x121] sm:$0xff] %v11782_v48  ;;  %2296 = vmatprep.mubr.f32.mxu0 %v11786_v56  ;;  %8583 = vmatpush3.msra.mxu0 %v2016_v58  ;;  %v11883_v25 = vld [vmem:[#allocation2 + $0xe0] sm:$0xff] }
 0x186   :  { %v11793_v15 = vsel %vm1429_vm15, %v1407_v46, %v1445_v14  ;;  %8584 = vmatprep.subr.mxu0 %v2031_v27  ;;  %v11869_v20 = vld [vmem:[#allocation2 + $0xd0] sm:$0xff]  ;;  %v11895_v30 = vld [vmem:[#allocation2 + $0xe2] sm:$0xff] }
 0x187   :  { %1477 = vst [vmem:[#allocation2 + $0x111] sm:$0xff] %v11793_v15  ;;  %2157 = vmatmul.mubr.f32.gmra.mxu1 %v11786_v56  ;;  %8585 = vmatpush3.msra.mxu0 %v2015_v60  ;;  %v11887_v34 = vld [vmem:[#allocation2 + $0xd2] sm:$0xff] }
 0x188   :  { %2297 = vmatmul.mubr.f32.gmra.mxu0 %v11800_v43  ;;  %2161 = vmatprep.mubr.f32.mxu1 %v11693_v42  ;;  %v11899_v6 = vld [vmem:[#allocation2 + $0x100] sm:$0xff] }
 0x189   :  { %2301 = vmatprep.mubr.f32.mxu0 %v11807_v50  ;;  %8586 = vmatprep.subr.mxu0 %v2030_v54  ;;  %v11911_v27 = vld [vmem:[#allocation2 + $0x102] sm:$0xff]  ;;  %v2053_v54 = vld [vmem:[%s16415_s3 + $0x470] sm:$0xff] }
 0x18a   :  { %8587 = vmatpush3.msra.mxu0 %v2014_v17  ;;  %v11891_v1 = vld [vmem:[#allocation2 + $0xf0] sm:$0xff]  ;;  %v16465_v17 = vld [vmem:[#allocation14_spill] sm:$0xff] }
 0x18b   :  { %2162 = vmatmul.mubr.f32.gmra.mxu1 %v11807_v50  ;;  %8588 = vmatprep.subr.mxu0 %v2029_v29  ;;  %v11903_v46 = vld [vmem:[#allocation2 + $0xf2] sm:$0xff]  ;;  %v3295_v29 = vld [vmem:[%s16417_s5 + $0x60] sm:$0xff] }
 0x18c   :  { %2302 = vmatmul.mubr.f32.gmra.mxu0 %v11817_v44  ;;  %2166 = vmatprep.mubr.f32.mxu1 %v1519_v59  ;;  %v11914_v14 = vld [vmem:[#allocation2 + $0x120] sm:$0xff]  ;;  %v3310_v59 = vld [vmem:[%s16417_s5 + $0xd8] sm:$0xff] }
 0x18d   :  { %2306 = vmatprep.mubr.f32.mxu0 %v11823_v49  ;;  %8589 = vmatpush3.msra.mxu0 %v2013_v37  ;;  %v3294_v37 = vld [vmem:[%s16417_s5 + $0x58] sm:$0xff] }
 0x18e   :  { %8590 = vmatprep.subr.mxu0 %v2028_v45  ;;  %v11907_v58 = vld [vmem:[#allocation2 + $0x110] sm:$0xff] }
 0x18f   :  { %2167 = vmatmul.mubr.f32.gmra.mxu1 %v11832_v47  ;;  %8591 = vmatpush3.msra.mxu0 %v2012_v35  ;;  %v11918_v60 = vld [vmem:[#allocation2 + $0x112] sm:$0xff]  ;;  %v3292_v35 = vld [vmem:[%s16417_s5 + $0x48] sm:$0xff] }
 0x190   :  { %2307 = vmatmul.mubr.f32.gmra.mxu0 %v11835_v57  ;;  %2171 = vmatprep.mubr.f32.mxu1 %v11721_v53  ;;  %v3293_v45 = vld [vmem:[%s16417_s5 + $0x50] sm:$0xff] }
 0x191   :  { %2311 = vmatprep.mubr.f32.mxu0 %v1583_v0  ;;  %8592 = vmatprep.subr.mxu0 %v2027_v36  ;;  %v3307_v36 = vld [vmem:[%s16417_s5 + $0xc0] sm:$0xff] }
 0x192   :  { %8593 = vmatpush3.msra.mxu0 %v2011_v22  ;;  %v3306_v22 = vld [vmem:[%s16417_s5 + $0xb8] sm:$0xff] }
 0x193   :  { %2172 = vmatmul.mubr.f32.gmra.mxu1 %v1583_v0  ;;  %8594 = vmatprep.subr.mxu0 %v2026_v19  ;;  %v3290_v0 = vld [vmem:[%s16417_s5 + $0x38] sm:$0xff]  ;;  %v3305_v19 = vld [vmem:[%s16417_s5 + $0xb0] sm:$0xff] }
 0x194   :  { %2312 = vmatmul.mubr.f32.gmra.mxu0 %v1551_v26  ;;  %2176 = vmatprep.mubr.f32.mxu1 %v11710_v24  ;;  %v3346_v26 = vld [vmem:[%s16417_s5 + $0x1f8] sm:$0xff] }
 0x195   :  { %2316 = vmatprep.mubr.f32.mxu0 %v11852_v38  ;;  %8595 = vmatpush3.msra.mxu0 %v2010_v61  ;;  %v3330_v61 = vld [vmem:[%s16417_s5 + $0x178] sm:$0xff] }
 0x196   :  { %8596 = vmatprep.subr.mxu0 %v2025_v41  ;;  %v3345_v41 = vld [vmem:[%s16417_s5 + $0x1f0] sm:$0xff] }
 0x197   :  { %2177 = vmatmul.mubr.f32.gmra.mxu1 %v11852_v38  ;;  %8597 = vmatpush3.msra.mxu0 %v2009_v63  ;;  %v3289_v63 = vld [vmem:[%s16417_s5 + $0x30] sm:$0xff] }
 0x198   :  { %2317 = vmatmul.mubr.f32.gmra.mxu0 %v11862_v16  ;;  %2181 = vmatprep.mubr.f32.mxu1 %v11747_v33 }
 0x199   :  { %2321 = vmatprep.mubr.f32.mxu0 %v11869_v20  ;;  %8598 = vmatprep.subr.mxu0 %v2024_v2  ;;  %v3304_v2 = vld [vmem:[%s16417_s5 + $0xa8] sm:$0xff] }
 0x19a   :  { %8599 = vmatpush3.msra.mxu0 %v2008_v3  ;;  %v3328_v3 = vld [vmem:[%s16417_s5 + $0x168] sm:$0xff] }
 0x19b   :  { %2182 = vmatmul.mubr.f32.gmra.mxu1 %v11869_v20  ;;  %8600 = vmatprep.subr.mxu0 %v2023_v5  ;;  %v3327_v5 = vld [vmem:[%s16417_s5 + $0x160] sm:$0xff] }
 0x19c   :  { %2322 = vmatmul.mubr.f32.gmra.mxu0 %v11879_v11  ;;  %2186 = vmatprep.mubr.f32.mxu1 %v11736_v31 }
 0x19d   :  { %2326 = vmatprep.mubr.f32.mxu0 %v11883_v25  ;;  %8601 = vmatpush3.msra.mxu0 %v2007_v10  ;;  %v3288_v10 = vld [vmem:[%s16417_s5 + $0x28] sm:$0xff] }
 0x19f   :  { %2187 = vmatmul.mubr.f32.gmra.mxu1 %v11883_v25 }
 0x1a0   :  { %2327 = vmatmul.mubr.f32.gmra.mxu0 %v11887_v34  ;;  %2191 = vmatprep.mubr.f32.mxu1 %v11770_v62 }
 0x1a1   :  { %2331 = vmatprep.mubr.f32.mxu0 %v11891_v1 }
 0x1a3   :  { %2192 = vmatmul.mubr.f32.gmra.mxu1 %v11891_v1 }
 0x1a4   :  { %2332 = vmatmul.mubr.f32.gmra.mxu0 %v11895_v30  ;;  %2196 = vmatprep.mubr.f32.mxu1 %v11759_v18 }
 0x1a5   :  { %2336 = vmatprep.mubr.f32.mxu0 %v11899_v6 }
 0x1a7   :  { %2197 = vmatmul.mubr.f32.gmra.mxu1 %v11899_v6 }
 0x1a8   :  { %2337 = vmatmul.mubr.f32.gmra.mxu0 %v11903_v46  ;;  %2201 = vmatprep.mubr.f32.mxu1 %v11793_v15 }
 0x1a9   :  { %2341 = vmatprep.mubr.f32.mxu0 %v11907_v58 }
 0x1ab   :  { %2202 = vmatmul.mubr.f32.gmra.mxu1 %v11907_v58 }
 0x1ac   :  { %2342 = vmatmul.mubr.f32.gmra.mxu0 %v11911_v27  ;;  %2416 = vmatprep.mubr.f32.mxu1 %v11705_v40  ;;  %v2052_v40 = vld [vmem:[%s16415_s3 + $0x468] sm:$0xff] }
 0x1ad   :  { %2346 = vmatprep.mubr.f32.mxu0 %v11914_v14 }
 0x1af   :  { %2417 = vmatmul.mubr.f32.vlgmr.msra.gmra.mxu1 %v11632_v32  ;;  %v2051_v32 = vld [vmem:[%s16415_s3 + $0x460] sm:$0xff] }
 0x1b0   :  { %2347 = vmatmul.mubr.f32.gmra.mxu0 %v11918_v60  ;;  %2421 = vmatprep.mubr.f32.mxu1 %v11731_v23 }
 0x1b1   :  { %2561 = vmatprep.mubr.f32.mxu0 %v11623_v9  ;;  %10211 = vmatpush3.msra.mxu1 %v16465_v17  ;;  %v3323_v17 = vld [vmem:[%s16417_s5 + $0x140] sm:$0xff] }
 0x1b2   :  { %10212 = vmatprep.subr.mxu1 %v2053_v54 }
 0x1b3   :  { %2422 = vmatmul.mubr.f32.gmra.mxu1 %v11623_v9  ;;  %v2050_v9 = vld [vmem:[%s16415_s3 + $0x458] sm:$0xff] }
 0x1b4   :  { %2562 = vmatmul.mubr.f32.vlgmr.msra.gmra.mxu0 %v11681_v28  ;;  %2426 = vmatprep.mubr.f32.mxu1 %v11754_v7  ;;  %v1710_v28 = vld [vmem:[#allocation2 + $0x91] sm:$0xff] }
 0x1b5   :  { %2566 = vmatprep.mubr.f32.mxu0 %v11651_v8  ;;  %10213 = vmatpush3.msra.mxu1 %v2053_v54  ;;  %v3286_v54 = vld [vmem:[%s16417_s5 + $0x18] sm:$0xff] }
 0x1b6   :  { %10214 = vmatprep.subr.mxu1 %v2052_v40 }
 0x1b7   :  { %2427 = vmatmul.mubr.f32.gmra.mxu1 %v11651_v8  ;;  %v2049_v8 = vld [vmem:[%s16415_s3 + $0x450] sm:$0xff] }
 0x1b8   :  { %2567 = vmatmul.mubr.f32.gmra.mxu0 %v11714_v13  ;;  %2431 = vmatprep.mubr.f32.mxu1 %v11777_v4  ;;  %v2045_v13 = vld [vmem:[%s16415_s3 + $0x430] sm:$0xff] }
 0x1b9   :  { %2571 = vmatprep.mubr.f32.mxu0 %v11640_v21  ;;  %10215 = vmatpush3.msra.mxu1 %v2052_v40 }
 0x1ba   :  { %10216 = vmatprep.subr.mxu1 %v2051_v32 }
 0x1bb   :  { %2432 = vmatmul.mubr.f32.gmra.mxu1 %v11640_v21  ;;  %v2048_v21 = vld [vmem:[%s16415_s3 + $0x448] sm:$0xff] }
 0x1bc   :  { %2572 = vmatmul.mubr.f32.gmra.mxu0 %v11740_v55  ;;  %2436 = vmatprep.mubr.f32.mxu1 %v11800_v43  ;;  %v2041_v55 = vld [vmem:[%s16415_s3 + $0x410] sm:$0xff] }
 0x1bd   :  { %2576 = vmatprep.mubr.f32.mxu0 %v11667_v39  ;;  %10217 = vmatpush3.msra.mxu1 %v2051_v32  ;;  %v3301_v32 = vld [vmem:[%s16417_s5 + $0x90] sm:$0xff] }
 0x1be   :  { %10218 = vmatprep.subr.mxu1 %v2050_v9 }
 0x1bf   :  { %2437 = vmatmul.mubr.f32.gmra.mxu1 %v11667_v39  ;;  %v11964_v39 = vld [vmem:[#allocation2 + $0x82] sm:$0xff] }
 0x1c0   :  { %2577 = vmatmul.mubr.f32.gmra.mxu0 %v11763_v52  ;;  %2441 = vmatprep.mubr.f32.mxu1 %v11817_v44  ;;  %v2039_v52 = vld [vmem:[%s16415_s3 + $0x400] sm:$0xff] }
 0x1c1   :  { %2581 = vmatprep.mubr.f32.mxu0 %v11660_v51  ;;  %10219 = vmatpush3.msra.mxu1 %v2050_v9  ;;  %v3338_v9 = vld [vmem:[%s16417_s5 + $0x1b8] sm:$0xff] }
 0x1c2   :  { %10220 = vmatprep.subr.mxu1 %v2049_v8 }
 0x1c3   :  { %2442 = vmatmul.mubr.f32.gmra.mxu1 %v11660_v51  ;;  %v2047_v51 = vld [vmem:[%s16415_s3 + $0x440] sm:$0xff] }
 0x1c4   :  { %2582 = vmatmul.mubr.f32.gmra.mxu0 %v11786_v56  ;;  %2446 = vmatprep.mubr.f32.mxu1 %v11835_v57  ;;  %v3312_v56 = vld [vmem:[%s16417_s5 + $0xe8] sm:$0xff] }
 0x1c5   :  { %2586 = vmatprep.mubr.f32.mxu0 %v11693_v42  ;;  %10221 = vmatpush3.msra.mxu1 %v2049_v8  ;;  %v3285_v8 = vld [vmem:[%s16417_s5 + $0x10] sm:$0xff] }
 0x1c6   :  { %10222 = vmatprep.subr.mxu1 %v2048_v21 }
 0x1c7   :  { %2447 = vmatmul.mubr.f32.gmra.mxu1 %v11693_v42  ;;  %v2046_v42 = vld [vmem:[%s16415_s3 + $0x438] sm:$0xff] }
 0x1c8   :  { %2587 = vmatmul.mubr.f32.gmra.mxu0 %v11807_v50  ;;  %2451 = vmatprep.mubr.f32.mxu1 %v11964_v39  ;;  %v3311_v50 = vld [vmem:[%s16417_s5 + $0xe0] sm:$0xff] }
 0x1c9   :  { %2591 = vmatprep.mubr.f32.mxu0 %v11678_v12  ;;  %10223 = vmatpush3.msra.mxu1 %v2048_v21  ;;  %v3322_v21 = vld [vmem:[%s16417_s5 + $0x138] sm:$0xff] }
 0x1ca   :  { %10224 = vmatprep.subr.mxu1 %v2047_v51 }
 0x1cb   :  { %2452 = vmatmul.mubr.f32.gmra.mxu1 %v11678_v12  ;;  %v2044_v12 = vld [vmem:[%s16415_s3 + $0x428] sm:$0xff] }
 0x1cc   :  { %2592 = vmatmul.mubr.f32.gmra.mxu0 %v11823_v49  ;;  %2456 = vmatprep.mubr.f32.mxu1 %v11862_v16  ;;  %v3308_v49 = vld [vmem:[%s16417_s5 + $0xc8] sm:$0xff] }
 0x1cd   :  { %10225 = vmatpush3.msra.mxu1 %v2047_v51  ;;  %2596 = vmatprep.mubr.f32.mxu0 %v1710_v28  ;;  %v3344_v16 = vld [vmem:[%s16417_s5 + $0x1e8] sm:$0xff] }
 0x1ce   :  { %10226 = vmatprep.subr.mxu1 %v2046_v42  ;;  %v3300_v51 = vld [vmem:[%s16417_s5 + $0x88] sm:$0xff] }
 0x1cf   :  { %2457 = vmatmul.mubr.f32.gmra.mxu1 %v11721_v53  ;;  %v2043_v53 = vld [vmem:[%s16415_s3 + $0x420] sm:$0xff] }
 0x1d0   :  { %2597 = vmatmul.mubr.f32.gmra.mxu0 %v11832_v47  ;;  %2461 = vmatprep.mubr.f32.mxu1 %v11879_v11 }
 0x1d1   :  { %2601 = vmatprep.mubr.f32.mxu0 %v11710_v24  ;;  %10227 = vmatpush3.msra.mxu1 %v2046_v42 }
 0x1d2   :  { %10228 = vmatprep.subr.mxu1 %v2045_v13 }
 0x1d3   :  { %2462 = vmatmul.mubr.f32.gmra.mxu1 %v11710_v24  ;;  %v2042_v24 = vld [vmem:[%s16415_s3 + $0x418] sm:$0xff] }
 0x1d4   :  { %2602 = vmatmul.mubr.f32.gmra.mxu0 %v11852_v38  ;;  %2466 = vmatprep.mubr.f32.mxu1 %v11887_v34  ;;  %v3329_v38 = vld [vmem:[%s16417_s5 + $0x170] sm:$0xff] }
 0x1d5   :  { %2606 = vmatprep.mubr.f32.mxu0 %v11747_v33  ;;  %10229 = vmatpush3.msra.mxu1 %v2045_v13  ;;  %v3321_v13 = vld [vmem:[%s16417_s5 + $0x130] sm:$0xff] }
 0x1d6   :  { %10230 = vmatprep.subr.mxu1 %v2044_v12 }
 0x1d7   :  { %2467 = vmatmul.mubr.f32.gmra.mxu1 %v11747_v33  ;;  %v1654_v33 = vld [vmem:[#allocation2 + $0x122] sm:$0xff] }
 0x1d8   :  { %2607 = vmatmul.mubr.f32.gmra.mxu0 %v11869_v20  ;;  %2471 = vmatprep.mubr.f32.mxu1 %v11895_v30  ;;  %v3343_v20 = vld [vmem:[%s16417_s5 + $0x1e0] sm:$0xff] }
 0x1d9   :  { %2611 = vmatprep.mubr.f32.mxu0 %v11736_v31  ;;  %10231 = vmatpush3.msra.mxu1 %v2044_v12  ;;  %v3284_v12 = vld [vmem:[%s16417_s5 + $0x8] sm:$0xff] }
 0x1da   :  { %10232 = vmatprep.subr.mxu1 %v2043_v53 }
 0x1db   :  { %2472 = vmatmul.mubr.f32.gmra.mxu1 %v11736_v31  ;;  %v2040_v31 = vld [vmem:[%s16415_s3 + $0x408] sm:$0xff] }
 0x1dc   :  { %2612 = vmatmul.mubr.f32.gmra.mxu0 %v11883_v25  ;;  %2476 = vmatprep.mubr.f32.mxu1 %v11903_v46  ;;  %v3342_v25 = vld [vmem:[%s16417_s5 + $0x1d8] sm:$0xff] }
 0x1dd   :  { %2616 = vmatprep.mubr.f32.mxu0 %v11770_v62  ;;  %10233 = vmatpush3.msra.mxu1 %v2043_v53  ;;  %v12195_v53 = vld [vmem:[%s16416_s4] ss:$0 sm:$0xff] }
 0x1de   :  { %10234 = vmatprep.subr.mxu1 %v2042_v24 }
 0x1df   :  { %2477 = vmatmul.mubr.f32.gmra.mxu1 %v11770_v62  ;;  %v1742_v62 = vld [vmem:[#allocation2 + $0x92] sm:$0xff] }
 0x1e0   :  { %2617 = vmatmul.mubr.f32.gmra.mxu0 %v11891_v1  ;;  %2481 = vmatprep.mubr.f32.mxu1 %v11911_v27  ;;  %v3341_v1 = vld [vmem:[%s16417_s5 + $0x1d0] sm:$0xff] }
 0x1e1   :  { %2621 = vmatprep.mubr.f32.mxu0 %v11759_v18  ;;  %10235 = vmatpush3.msra.mxu1 %v2042_v24 }
 0x1e2   :  { %10236 = vmatprep.subr.mxu1 %v2041_v55 }
 0x1e3   :  { %2482 = vmatmul.mubr.f32.gmra.mxu1 %v11759_v18  ;;  %v1718_v18 = vld [vmem:[#allocation2 + $0x131] sm:$0xff] }
 0x1e4   :  { %2622 = vmatmul.mubr.f32.gmra.mxu0 %v11899_v6  ;;  %2486 = vmatprep.mubr.f32.mxu1 %v11918_v60  ;;  %v8362_v6 = vpop.f32.mrf.mxu1 }
 0x1e5   :  { %2626 = vmatprep.mubr.f32.mxu0 %v11793_v15  ;;  %10237 = vmatpush3.msra.mxu1 %v2041_v55  ;;  %v3336_v55 = vld [vmem:[%s16417_s5 + $0x1a8] sm:$0xff] }
 0x1e6   :  { %10238 = vmatprep.subr.mxu1 %v2040_v31  ;;  %v8363_v40 = vpop.f32.mrf.mxu1 }
 0x1e7   :  { %2487 = vmatmul.mubr.f32.gmra.mxu1 %v11793_v15  ;;  %v1750_v15 = vld [vmem:[#allocation2 + $0x132] sm:$0xff]  ;;  %v8364_v28 = vadd.f32 %v8363_v40, %v8362_v6 }
 0x1e8   :  { %2627 = vmatmul.mubr.f32.gmra.mxu0 %v11907_v58  ;;  %2491 = vmatprep.mubr.f32.mxu1 %v1654_v33  ;;  %v3302_v58 = vld [vmem:[%s16417_s5 + $0x98] sm:$0xff] }
 0x1e9   :  { %2631 = vmatprep.mubr.f32.mxu0 %v11782_v48  ;;  %10239 = vmatpush3.msra.mxu1 %v2040_v31  ;;  %v3299_v31 = vld [vmem:[%s16417_s5 + $0x80] sm:$0xff] }
 0x1ea   :  { %10240 = vmatprep.subr.mxu1 %v2039_v52 }
 0x1eb   :  { %2492 = vmatmul.mubr.f32.gmra.mxu1 %v11782_v48  ;;  %v3297_v48 = vld [vmem:[%s16417_s5 + $0x70] sm:$0xff] }
 0x1ec   :  { %2632 = vmatmul.mubr.f32.gmra.mxu0 %v11914_v14  ;;  %10241 = vmatpush3.msra.mxu1 %v2039_v52  ;;  %v3324_v14 = vld [vmem:[%s16417_s5 + $0x148] sm:$0xff] }
 0x1ed   :  { %10242 = vmatprep.mubr.f32.mxu1 %v11731_v23  ;;  %2636 = vmatprep.mubr.f32.mxu0 %v1718_v18  ;;  %v3314_v23 = vld [vmem:[%s16417_s5 + $0xf8] sm:$0xff]  ;;  %v3320_v52 = vld [vmem:[%s16417_s5 + $0x128] sm:$0xff]  ;;  %v3283_v18 = vld [vmem:[%s16417_s5] sm:$0xff] }
 0x1ee   :  { %8682 = vmatprep.subr.mxu0 %v3314_v23  ;;  %8762 = vmatprep.subr.mxu1 %v3346_v26 }
 0x1ef   :  { %10243 = vmatmul.mubr.f32.vlgmr.msra.gmra.mxu1 %v11754_v7  ;;  %v3298_v7 = vld [vmem:[%s16417_s5 + $0x78] sm:$0xff] }
 0x1f0   :  { %2637 = vmatmul.mubr.f32.gmra.mxu0 %v11832_v47  ;;  %10245 = vmatprep.mubr.f32.mxu1 %v11777_v4  ;;  %v3313_v4 = vld [vmem:[%s16417_s5 + $0xf0] sm:$0xff] }
 0x1f1   :  { %8683 = vmatpush3.msra.mxu0 %v3298_v7  ;;  %8763 = vmatpush3.msra.mxu1 %v3330_v61  ;;  %v3335_v7 = vld [vmem:[%s16417_s5 + $0x1a0] sm:$0xff] }
 0x1f2   :  { %8684 = vmatprep.subr.mxu0 %v3313_v4  ;;  %8764 = vmatprep.subr.mxu1 %v3345_v41  ;;  %v2129_v4 = vadd.f32 %v8364_v28, %v12195_v53  ;;  %v3316_v41 = vld [vmem:[%s16417_s5 + $0x108] sm:$0xff] }
 0x1f3   :  { %10246 = vmatmul.mubr.f32.gmra.mxu1 %v11800_v43  ;;  %8685 = vmatpush3.msra.mxu0 %v3297_v48  ;;  %v3296_v43 = vld [vmem:[%s16417_s5 + $0x68] sm:$0xff] }
 0x1f4   :  { %10248 = vmatprep.mubr.f32.mxu1 %v11817_v44  ;;  %8686 = vmatprep.subr.mxu0 %v3312_v56  ;;  %v3309_v44 = vld [vmem:[%s16417_s5 + $0xd0] sm:$0xff] }
 0x1f5   :  { %8687 = vmatpush3.msra.mxu0 %v3296_v43  ;;  %8765 = vmatpush3.msra.mxu1 %v3329_v38  ;;  %v3319_v43 = vld [vmem:[%s16417_s5 + $0x120] sm:$0xff] }
 0x1f6   :  { %8688 = vmatprep.subr.mxu0 %v3311_v50  ;;  %8766 = vmatprep.subr.mxu1 %v3344_v16 }
 0x1f7   :  { %10249 = vmatmul.mubr.f32.gmra.mxu1 %v11835_v57  ;;  %8689 = vmatpush3.msra.mxu0 %v3295_v29  ;;  %v3291_v57 = vld [vmem:[%s16417_s5 + $0x40] sm:$0xff]  ;;  %v3334_v29 = vld [vmem:[%s16417_s5 + $0x198] sm:$0xff] }
 0x1f8   :  { %10251 = vmatprep.mubr.f32.mxu1 %v11964_v39  ;;  %8690 = vmatprep.subr.mxu0 %v3310_v59  ;;  %v3337_v39 = vld [vmem:[%s16417_s5 + $0x1b0] sm:$0xff] }
 0x1f9   :  { %8691 = vmatpush3.msra.mxu0 %v3294_v37  ;;  %8767 = vmatpush3.msra.mxu1 %v3328_v3 }
 0x1fa   :  { %8692 = vmatprep.subr.mxu0 %v3309_v44  ;;  %8768 = vmatprep.subr.mxu1 %v3343_v20  ;;  %v3318_v44 = vld [vmem:[%s16417_s5 + $0x118] sm:$0xff] }
 0x1fb   :  { %10252 = vmatmul.mubr.f32.gmra.mxu1 %v1742_v62  ;;  %8693 = vmatpush3.msra.mxu0 %v3293_v45  ;;  %v2883_v62 = vld [vmem:[#allocation2 + $0x1] sm:$0xff] }
 0x1fc   :  { %10254 = vmatprep.mubr.f32.mxu1 %v11879_v11  ;;  %8694 = vmatprep.subr.mxu0 %v3308_v49  ;;  %v3303_v11 = vld [vmem:[%s16417_s5 + $0xa0] sm:$0xff]  ;;  %v3333_v49 = vld [vmem:[%s16417_s5 + $0x190] sm:$0xff] }
 0x1fd   :  { %8695 = vmatpush3.msra.mxu0 %v3292_v35  ;;  %8769 = vmatpush3.msra.mxu1 %v3327_v5  ;;  %v3315_v5 = vld [vmem:[%s16417_s5 + $0x100] sm:$0xff] }
 0x1fe   :  { %8696 = vmatprep.subr.mxu0 %v3307_v36  ;;  %8770 = vmatprep.subr.mxu1 %v3342_v25 }
 0x1ff   :  { %10255 = vmatmul.mubr.f32.gmra.mxu1 %v11887_v34  ;;  %8697 = vmatpush3.msra.mxu0 %v3291_v57  ;;  %v3326_v34 = vld [vmem:[%s16417_s5 + $0x158] sm:$0xff] }
 0x200   :  { %10257 = vmatprep.mubr.f32.mxu1 %v11895_v30  ;;  %8698 = vmatprep.subr.mxu0 %v3306_v22  ;;  %v3325_v30 = vld [vmem:[%s16417_s5 + $0x150] sm:$0xff] }
 0x201   :  { %8699 = vmatpush3.msra.mxu0 %v3290_v0  ;;  %8771 = vmatpush3.msra.mxu1 %v3326_v34  ;;  %v3378_v34 = vld [vmem:[%s16417_s5 + $0x2f8] sm:$0xff] }
 0x202   :  { %8700 = vmatprep.subr.mxu0 %v3305_v19  ;;  %8772 = vmatprep.subr.mxu1 %v3341_v1  ;;  %v3332_v19 = vld [vmem:[%s16417_s5 + $0x188] sm:$0xff] }
 0x203   :  { %10258 = vmatmul.mubr.f32.gmra.mxu1 %v11903_v46  ;;  %8701 = vmatpush3.msra.mxu0 %v3289_v63  ;;  %v3287_v46 = vld [vmem:[%s16417_s5 + $0x20] sm:$0xff] }
 0x204   :  { %10260 = vmatprep.mubr.f32.mxu1 %v11911_v27  ;;  %8702 = vmatprep.subr.mxu0 %v3304_v2  ;;  %v3340_v27 = vld [vmem:[%s16417_s5 + $0x1c8] sm:$0xff]  ;;  %v3331_v63 = vld [vmem:[%s16417_s5 + $0x180] sm:$0xff] }
 0x205   :  { %8703 = vmatpush3.msra.mxu0 %v3288_v10  ;;  %8773 = vmatpush3.msra.mxu1 %v3325_v30 }
 0x206   :  { %8704 = vmatprep.subr.mxu0 %v3303_v11  ;;  %8774 = vmatprep.subr.mxu1 %v3340_v27  ;;  %v3362_v27 = vld [vmem:[%s16417_s5 + $0x278] sm:$0xff] }
 0x207   :  { %10261 = vmatmul.mubr.f32.gmra.mxu1 %v11918_v60  ;;  %8705 = vmatpush3.msra.mxu0 %v3287_v46  ;;  %v3339_v60 = vld [vmem:[%s16417_s5 + $0x1c0] sm:$0xff] }
 0x208   :  { %10263 = vmatprep.mubr.f32.mxu1 %v1654_v33  ;;  %8706 = vmatprep.subr.mxu0 %v3302_v58 }
 0x209   :  { %8775 = vmatpush3.msra.mxu1 %v3324_v14  ;;  %8707 = vmatpush3.msra.mxu0 %v3286_v54 }
 0x20a   :  { %8776 = vmatprep.subr.mxu1 %v3339_v60  ;;  %8708 = vmatprep.subr.mxu0 %v3301_v32 }
 0x20b   :  { %10264 = vmatmul.mubr.f32.gmra.mxu1 %v1750_v15  ;;  %8709 = vmatpush3.msra.mxu0 %v3285_v8 }
 0x20c   :  { %8777 = vmatpush3.msra.mxu1 %v3323_v17  ;;  %8710 = vmatprep.subr.mxu0 %v3300_v51  ;;  %v3377_v17 = vld [vmem:[%s16417_s5 + $0x2f0] sm:$0xff] }
 0x20d   :  { %8778 = vmatprep.subr.mxu1 %v3338_v9  ;;  %8711 = vmatpush3.msra.mxu0 %v3284_v12 }
 0x20e   :  { %8779 = vmatpush3.msra.mxu1 %v3322_v21  ;;  %8712 = vmatprep.subr.mxu0 %v3299_v31 }
 0x20f   :  { %8780 = vmatprep.subr.mxu1 %v3337_v39  ;;  %8713 = vmatpush3.msra.mxu0 %v3283_v18  ;;  %v3361_v39 = vld [vmem:[%s16417_s5 + $0x270] sm:$0xff] }
 0x210   :  { %8781 = vmatpush3.msra.mxu1 %v3321_v13  ;;  %3498 = vmatprep.mubr.f32.mxu0 %v2883_v62  ;;  %v3376_v13 = vld [vmem:[%s16417_s5 + $0x2e8] sm:$0xff] }
 0x211   :  { %8782 = vmatprep.subr.mxu1 %v3336_v55  ;;  %3499 = vmatmul.mubr.f32.vlgmr.msra.gmra.mxu0 %v11832_v47  ;;  %v3317_v47 = vld [vmem:[%s16417_s5 + $0x110] sm:$0xff] }
 0x212   :  { %8783 = vmatpush3.msra.mxu1 %v3320_v52  ;;  %8842 = vmatprep.subr.mxu0 %v3378_v34  ;;  %v3360_v52 = vld [vmem:[%s16417_s5 + $0x268] sm:$0xff]  ;;  %v3371_v34 = vld [vmem:[%s16417_s5 + $0x2c0] sm:$0xff] }
 0x213   :  { %8784 = vmatprep.subr.mxu1 %v3335_v7  ;;  %8843 = vmatpush3.msra.mxu0 %v3362_v27  ;;  %v3375_v7 = vld [vmem:[%s16417_s5 + $0x2e0] sm:$0xff] }
 0x214   :  { %8785 = vmatpush3.msra.mxu1 %v3319_v43  ;;  %8844 = vmatprep.subr.mxu0 %v3377_v17 }
 0x215   :  { %8786 = vmatprep.subr.mxu1 %v3334_v29  ;;  %8845 = vmatpush3.msra.mxu0 %v3361_v39 }
 0x216   :  { %8787 = vmatpush3.msra.mxu1 %v3318_v44  ;;  %8846 = vmatprep.subr.mxu0 %v3376_v13 }
 0x217   :  { %8788 = vmatprep.subr.mxu1 %v3333_v49  ;;  %8847 = vmatpush3.msra.mxu0 %v3360_v52  ;;  %v3353_v52 = vld [vmem:[%s16417_s5 + $0x230] sm:$0xff] }
 0x218   :  { %8789 = vmatpush3.msra.mxu1 %v3317_v47  ;;  %8848 = vmatprep.subr.mxu0 %v3375_v7  ;;  %v3358_v47 = vld [vmem:[%s16417_s5 + $0x258] sm:$0xff] }
 0x219   :  { %8790 = vmatprep.subr.mxu1 %v3332_v19  ;;  %v3357_v19 = vld [vmem:[%s16417_s5 + $0x250] sm:$0xff] }
 0x21a   :  { %8791 = vmatpush3.msra.mxu1 %v3316_v41  ;;  %v3372_v41 = vld [vmem:[%s16417_s5 + $0x2c8] sm:$0xff] }
 0x21b   :  { %8792 = vmatprep.subr.mxu1 %v3331_v63 }
 0x21c   :  { %8793 = vmatpush3.msra.mxu1 %v3315_v5 }
 0x233   :  { %v8365_v42 = vpop.f32.mrf.mxu1 }
 0x234   :  { %v8442_v24 = vpop.f32.mrf.mxu0 }
 0x235   :  { %v8366_v33 = vpop.f32.mrf.mxu1 }
 0x236   :  { %v8443_v23 = vpop.f32.mrf.mxu0  ;;  %v8367_v48 = vadd.f32 %v8366_v33, %v8365_v42 }
 0x237   :  { %v8444_v56 = vadd.f32 %v8443_v23, %v8442_v24  ;;  %v8368_v15 = vpop.f32.mrf.mxu1 }
 0x238   :  { %v8445_v50 = vpop.f32.mrf.mxu0  ;;  %v2134_v35 = vadd.f32 %v8367_v48, %v12195_v53 }
 0x239   :  { %v12220_v59 = vadd.f32 %v8444_v56, %v2129_v4  ;;  %v8369_v37 = vpop.f32.mrf.mxu1 }
 0x23a   :  { %v8446_v45 = vpop.f32.mrf.mxu0  ;;  %v8370_v36 = vadd.f32 %v8369_v37, %v8368_v15 }
 0x23b   :  { %v8447_v57 = vadd.f32 %v8446_v45, %v8445_v50  ;;  %v8371_v22 = vpop.f32.mrf.mxu1  ;;  %v3359_v50 = vld [vmem:[%s16417_s5 + $0x260] sm:$0xff]  ;;  %v3374_v45 = vld [vmem:[%s16417_s5 + $0x2d8] sm:$0xff] }
 0x23c   :  { %v8448_v0 = vpop.f32.mrf.mxu0  ;;  %v2139_v2 = vadd.f32 %v8370_v36, %v12195_v53  ;;  %8849 = vmatpush3.msra.mxu0 %v3359_v50 }
 0x23d   :  { %v12235_v26 = vadd.f32 %v8447_v57, %v2134_v35  ;;  %v8372_v61 = vpop.f32.mrf.mxu1  ;;  %8850 = vmatprep.subr.mxu0 %v3374_v45 }
 0x23e   :  { %v8449_v38 = vpop.f32.mrf.mxu0  ;;  %v8373_v16 = vadd.f32 %v8372_v61, %v8371_v22  ;;  %8851 = vmatpush3.msra.mxu0 %v3358_v47 }
 0x23f   :  { %v8450_v3 = vadd.f32 %v8449_v38, %v8448_v0  ;;  %v8374_v20 = vpop.f32.mrf.mxu1  ;;  %v3373_v0 = vld [vmem:[%s16417_s5 + $0x2d0] sm:$0xff] }
 0x240   :  { %v8451_v10 = vpop.f32.mrf.mxu0  ;;  %v2144_v30 = vadd.f32 %v8373_v16, %v12195_v53  ;;  %8852 = vmatprep.subr.mxu0 %v3373_v0 }
 0x241   :  { %v12247_v11 = vadd.f32 %v8450_v3, %v2139_v2  ;;  %v8375_v25 = vpop.f32.mrf.mxu1  ;;  %v3356_v2 = vld [vmem:[%s16417_s5 + $0x248] sm:$0xff]  ;;  %8853 = vmatpush3.msra.mxu0 %v3357_v19  ;;  %v3351_v19 = vld [vmem:[%s16417_s5 + $0x220] sm:$0xff] }
 0x242   :  { %v8452_v1 = vpop.f32.mrf.mxu0  ;;  %v8376_v6 = vadd.f32 %v8375_v25, %v8374_v20  ;;  %8854 = vmatprep.subr.mxu0 %v3372_v41 }
 0x243   :  { %v8453_v46 = vadd.f32 %v8452_v1, %v8451_v10  ;;  %v8377_v58 = vpop.f32.mrf.mxu1  ;;  %8855 = vmatpush3.msra.mxu0 %v3356_v2 }
 0x244   :  { %v8454_v14 = vpop.f32.mrf.mxu0  ;;  %v2149_v32 = vadd.f32 %v8376_v6, %v12195_v53  ;;  %8856 = vmatprep.subr.mxu0 %v3371_v34  ;;  %v3355_v6 = vld [vmem:[%s16417_s5 + $0x240] sm:$0xff] }
 0x245   :  { %v12256_v60 = vadd.f32 %v8453_v46, %v2144_v30  ;;  %v8378_v54 = vpop.f32.mrf.mxu1  ;;  %8857 = vmatpush3.msra.mxu0 %v3355_v6 }
 0x246   :  { %v8455_v40 = vpop.f32.mrf.mxu0  ;;  %v8379_v9 = vadd.f32 %v8378_v54, %v8377_v58 }
 0x247   :  { %v8456_v8 = vadd.f32 %v8455_v40, %v8454_v14  ;;  %v8380_v21 = vpop.f32.mrf.mxu1  ;;  %v3370_v40 = vld [vmem:[%s16417_s5 + $0x2b8] sm:$0xff] }
 0x248   :  { %v8457_v51 = vpop.f32.mrf.mxu0  ;;  %v2154_v24 = vadd.f32 %v8379_v9, %v12195_v53  ;;  %8858 = vmatprep.subr.mxu0 %v3370_v40 }
 0x249   :  { %v12265_v28 = vadd.f32 %v8456_v8, %v2149_v32  ;;  %v8381_v42 = vpop.f32.mrf.mxu1  ;;  %v3354_v8 = vld [vmem:[%s16417_s5 + $0x238] sm:$0xff] }
 0x24a   :  { %v8458_v12 = vpop.f32.mrf.mxu0  ;;  %v8382_v55 = vadd.f32 %v8381_v42, %v8380_v21  ;;  %8859 = vmatpush3.msra.mxu0 %v3354_v8 }
 0x24b   :  { %v8459_v31 = vadd.f32 %v8458_v12, %v8457_v51  ;;  %v8383_v33 = vpop.f32.mrf.mxu1 }
 0x24c   :  { %v8460_v18 = vpop.f32.mrf.mxu0  ;;  %v2159_v48 = vadd.f32 %v8382_v55, %v12195_v53  ;;  %v3410_v55 = vld [vmem:[%s16417_s5 + $0x3f8] sm:$0xff] }
 0x24d   :  { %v12274_v62 = vadd.f32 %v8459_v31, %v2154_v24  ;;  %v8384_v23 = vpop.f32.mrf.mxu1  ;;  %v3369_v24 = vld [vmem:[%s16417_s5 + $0x2b0] sm:$0xff]  ;;  %8922 = vmatprep.subr.mxu1 %v3410_v55 }
 0x24e   :  { %v8461_v4 = vpop.f32.mrf.mxu0  ;;  %v8385_v56 = vadd.f32 %v8384_v23, %v8383_v33  ;;  %8860 = vmatprep.subr.mxu0 %v3369_v24  ;;  %v3363_v24 = vld [vmem:[%s16417_s5 + $0x280] sm:$0xff] }
 0x24f   :  { %v8462_v15 = vadd.f32 %v8461_v4, %v8460_v18  ;;  %v8386_v43 = vpop.f32.mrf.mxu1  ;;  %8861 = vmatpush3.msra.mxu0 %v3353_v52 }
 0x250   :  { %v8463_v29 = vpop.f32.mrf.mxu0  ;;  %v2164_v35 = vadd.f32 %v8385_v56, %v12195_v53 }
 0x251   :  { %v12283_v37 = vadd.f32 %v8462_v15, %v2159_v48  ;;  %v8387_v44 = vpop.f32.mrf.mxu1  ;;  %v3368_v15 = vld [vmem:[%s16417_s5 + $0x2a8] sm:$0xff] }
 0x252   :  { %v8464_v49 = vpop.f32.mrf.mxu0  ;;  %v8388_v36 = vadd.f32 %v8387_v44, %v8386_v43  ;;  %8862 = vmatprep.subr.mxu0 %v3368_v15 }
 0x253   :  { %v8465_v57 = vadd.f32 %v8464_v49, %v8463_v29  ;;  %v8389_v22 = vpop.f32.mrf.mxu1  ;;  %v3352_v29 = vld [vmem:[%s16417_s5 + $0x228] sm:$0xff] }
 0x254   :  { %v8466_v61 = vpop.f32.mrf.mxu0  ;;  %v2169_v3 = vadd.f32 %v8388_v36, %v12195_v53  ;;  %8863 = vmatpush3.msra.mxu0 %v3352_v29 }
 0x255   :  { %v12301_v38 = vadd.f32 %v8465_v57, %v2164_v35  ;;  %v8390_v63 = vpop.f32.mrf.mxu1 }
 0x256   :  { %v8467_v16 = vpop.f32.mrf.mxu0  ;;  %v8391_v20 = vadd.f32 %v8390_v63, %v8389_v22  ;;  %v3367_v22 = vld [vmem:[%s16417_s5 + $0x2a0] sm:$0xff] }
 0x257   :  { %v8468_v5 = vadd.f32 %v8467_v16, %v8466_v61  ;;  %v8392_v10 = vpop.f32.mrf.mxu1  ;;  %8864 = vmatprep.subr.mxu0 %v3367_v22 }
 0x258   :  { %v8469_v25 = vpop.f32.mrf.mxu0  ;;  %v2174_v58 = vadd.f32 %v8391_v20, %v12195_v53  ;;  %8865 = vmatpush3.msra.mxu0 %v3351_v19  ;;  %v3366_v20 = vld [vmem:[%s16417_s5 + $0x298] sm:$0xff] }
 0x259   :  { %v12310_v1 = vadd.f32 %v8468_v5, %v2169_v3  ;;  %v8393_v30 = vpop.f32.mrf.mxu1  ;;  %8866 = vmatprep.subr.mxu0 %v3366_v20 }
 0x25a   :  { %v8470_v46 = vpop.f32.mrf.mxu0  ;;  %v8394_v27 = vadd.f32 %v8393_v30, %v8392_v10 }
 0x25b   :  { %v8471_v14 = vadd.f32 %v8470_v46, %v8469_v25  ;;  %v8395_v54 = vpop.f32.mrf.mxu1  ;;  %v3350_v25 = vld [vmem:[%s16417_s5 + $0x218] sm:$0xff] }
 0x25c   :  { %v8472_v17 = vpop.f32.mrf.mxu0  ;;  %v2179_v39 = vadd.f32 %v8394_v27, %v12195_v53  ;;  %8867 = vmatpush3.msra.mxu0 %v3350_v25  ;;  %v3365_v27 = vld [vmem:[%s16417_s5 + $0x290] sm:$0xff] }
 0x25d   :  { %v12319_v32 = vadd.f32 %v8471_v14, %v2174_v58  ;;  %v8396_v9 = vpop.f32.mrf.mxu1  ;;  %8868 = vmatprep.subr.mxu0 %v3365_v27 }
 0x25e   :  { %v8473_v21 = vpop.f32.mrf.mxu0  ;;  %v8397_v51 = vadd.f32 %v8396_v9, %v8395_v54 }
 0x25f   :  { %16466 = vst [vmem:[#allocation21_spill] sm:$0xff] %v12319_v32  ;;  %v8474_v42 = vadd.f32 %v8473_v21, %v8472_v17  ;;  %v8398_v13 = vpop.f32.mrf.mxu1  ;;  %v3349_v17 = vld [vmem:[%s16417_s5 + $0x210] sm:$0xff]  ;;  %v3364_v21 = vld [vmem:[%s16417_s5 + $0x288] sm:$0xff] }
 0x260   :  { %v8475_v12 = vpop.f32.mrf.mxu0  ;;  %v2184_v23 = vadd.f32 %v8397_v51, %v12195_v53  ;;  %8869 = vmatpush3.msra.mxu0 %v3349_v17  ;;  %v3348_v51 = vld [vmem:[%s16417_s5 + $0x208] sm:$0xff] }
 0x261   :  { %v12331_v31 = vadd.f32 %v8474_v42, %v2179_v39  ;;  %v8399_v33 = vpop.f32.mrf.mxu1  ;;  %8870 = vmatprep.subr.mxu0 %v3364_v21 }
 0x262   :  { %v8476_v18 = vpop.f32.mrf.mxu0  ;;  %v8400_v7 = vadd.f32 %v8399_v33, %v8398_v13  ;;  %8871 = vmatpush3.msra.mxu0 %v3348_v51  ;;  %v3347_v33 = vld [vmem:[%s16417_s5 + $0x200] sm:$0xff] }
 0x263   :  { %16467 = vst [vmem:[#allocation7_spill] sm:$0xff] %v12331_v31  ;;  %v8477_v4 = vadd.f32 %v8476_v18, %v8475_v12  ;;  %v8401_v48 = vpop.f32.mrf.mxu1  ;;  %8872 = vmatprep.subr.mxu0 %v3363_v24 }
 0x264   :  { %v8478_v56 = vpop.f32.mrf.mxu0  ;;  %v2189_v45 = vadd.f32 %v8400_v7, %v12195_v53  ;;  %8873 = vmatpush3.msra.mxu0 %v3347_v33  ;;  %v12403_v7 = vld [vmem:[%s16417_s5 + $0x478] sm:$0xff] }
 0x265   :  { %v12340_v43 = vadd.f32 %v8477_v4, %v2184_v23  ;;  %v8402_v50 = vpop.f32.mrf.mxu1  ;;  %16472 = vst [vmem:[#allocation18_spill] sm:$0xff] %v12403_v7  ;;  %10266 = vmatprep.subr.mxu0 %v12403_v7 }
 0x266   :  { %v8479_v44 = vpop.f32.mrf.mxu0  ;;  %v8403_v49 = vadd.f32 %v8402_v50, %v8401_v48 }
 0x267   :  { %16468 = vst [vmem:[#allocation15_spill] sm:$0xff] %v12340_v43  ;;  %v8480_v35 = vadd.f32 %v8479_v44, %v8478_v56  ;;  %v8404_v36 = vpop.f32.mrf.mxu1 }
 0x268   :  { %v8481_v57 = vpop.f32.mrf.mxu0  ;;  %v2194_v41 = vadd.f32 %v8403_v49, %v12195_v53 }
 0x269   :  { %v12349_v47 = vadd.f32 %v8480_v35, %v2189_v45  ;;  %v8405_v0 = vpop.f32.mrf.mxu1 }
 0x26a   :  { %v8482_v61 = vpop.f32.mrf.mxu0  ;;  %v8406_v63 = vadd.f32 %v8405_v0, %v8404_v36 }
 0x26b   :  { %16469 = vst [vmem:[#allocation16_spill] sm:$0xff] %v12349_v47  ;;  %v8483_v2 = vadd.f32 %v8482_v61, %v8481_v57  ;;  %v12355_v16 = vpop.f32.mrf.mxu1 }
 0x26c   :  { %v8484_v3 = vpop.f32.mrf.mxu0  ;;  %v2199_v30 = vadd.f32 %v8406_v63, %v12195_v53 }
 0x26d   :  { %v12360_v5 = vadd.f32 %v8483_v2, %v2194_v41  ;;  %v12362_v10 = vpop.f32.mrf.mxu1 }
 0x26e   :  { %v8485_v34 = vpop.f32.mrf.mxu0 }
 0x26f   :  { %16470 = vst [vmem:[#allocation8_spill] sm:$0xff] %v12360_v5  ;;  %v8486_v6 = vadd.f32 %v8485_v34, %v8484_v3  ;;  %v12368_v46 = vpop.f32.mrf.mxu1 }
 0x270   :  { %v12370_v58 = vpop.f32.mrf.mxu0 }
 0x271   :  { %v12375_v14 = vadd.f32 %v8486_v6, %v2199_v30  ;;  %v12377_v54 = vpop.f32.mrf.mxu1 }
 0x272   :  { %v12382_v40 = vpop.f32.mrf.mxu0 }
 0x273   :  { %16471 = vst [vmem:[#allocation17_spill] sm:$0xff] %v12375_v14  ;;  %v8525_v9 = vpop.f32.mrf.mxu1 }
 0x274   :  { %v12384_v8 = vpop.f32.mrf.mxu0 }
 0x275   :  { %v8526_v39 = vpop.f32.mrf.mxu1 }
 0x276   :  { %v12392_v42 = vpop.f32.mrf.mxu0 }
 0x277   :  { %v8528_v13 = vpop.f32.mrf.mxu1 }
 0x278   :  { %v8605_v12 = vpop.f32.mrf.mxu0 }
 0x279   :  { %v8529_v55 = vpop.f32.mrf.mxu1 }
 0x27a   :  { %v8606_v52 = vpop.f32.mrf.mxu0 }
 0x27b   :  { %v8531_v18 = vpop.f32.mrf.mxu1 }
 0x27c   :  { %v8608_v23 = vpop.f32.mrf.mxu0 }
 0x27d   :  { %v8532_v4 = vpop.f32.mrf.mxu1 }
 0x27e   :  { %v8609_v48 = vpop.f32.mrf.mxu0 }
 0x27f   :  { %v8534_v56 = vpop.f32.mrf.mxu1 }
 0x280   :  { %v8611_v15 = vpop.f32.mrf.mxu0 }
 0x281   :  { %v8535_v50 = vpop.f32.mrf.mxu1 }
 0x282   :  { %v8612_v29 = vpop.f32.mrf.mxu0 }
 0x283   :  { %v8537_v44 = vpop.f32.mrf.mxu1 }
 0x284   :  { %v8614_v45 = vpop.f32.mrf.mxu0 }
 0x285   :  { %v8538_v49 = vpop.f32.mrf.mxu1 }
 0x286   :  { %v8615_v35 = vpop.f32.mrf.mxu0 }
 0x287   :  { %v8540_v36 = vpop.f32.mrf.mxu1 }
 0x288   :  { %v8617_v57 = vpop.f32.mrf.mxu0 }
 0x289   :  { %v8541_v22 = vpop.f32.mrf.mxu1 }
 0x28a   :  { %v8618_v0 = vpop.f32.mrf.mxu0 }
 0x28b   :  { %v12406_v19 = vpop.f32.mrf.mxu1 }
 0x28c   :  { %v12408_v61 = vpop.f32.mrf.mxu0 }
 0x28d   :  { %v12410_v41 = vpop.f32.mrf.mxu1 }
 0x28e   :  { %v12412_v63 = vpop.f32.mrf.mxu0 }
 0x28f   :  { %v12414_v2 = vpop.f32.mrf.mxu1 }
 0x290   :  { %v12416_v3 = vpop.f32.mrf.mxu0 }
 0x291   :  { %v12418_v20 = vpop.f32.mrf.mxu1 }
 0x292   :  { %v12420_v25 = vpop.f32.mrf.mxu0 }
 0x293   :  { %v12422_v34 = vpop.f32.mrf.mxu1 }
 0x294   :  { %v12424_v30 = vpop.f32.mrf.mxu0 }
 0x295   :  { %v12426_v6 = vpop.f32.mrf.mxu1 }
 0x296   :  { %v12428_v27 = vpop.f32.mrf.mxu0 }
 0x297   :  { %v12430_v17 = vpop.f32.mrf.mxu1 }
 0x298   :  { %v12432_v21 = vpop.f32.mrf.mxu0 }
 0x299   :  { %16473 = vst [vmem:[#allocation9_spill] sm:$0xff] %v12432_v21  ;;  %v12434_v51 = vpop.f32.mrf.mxu1 }
 0x29a   :  { %16474 = vst [vmem:[#allocation19_spill] sm:$0xff] %v12434_v51  ;;  %v12436_v24 = vpop.f32.mrf.mxu0 }
 0x29b   :  { %16475 = vst [vmem:[#allocation20_spill] sm:$0xff] %v12436_v24  ;;  %v12438_v33 = vpop.f32.mrf.mxu1 }
 0x29c   :  { %16476 = vst [vmem:[#allocation10_spill] sm:$0xff] %v12438_v33  ;;  %v12440_v7 = vpop.f32.mrf.mxu0 }
 0x29d   :  { %16477 = vst [vmem:[#allocation22_spill] sm:$0xff] %v12440_v7  ;;  %v12442_v14 = vpop.f32.mrf.mxu1  ;;  %v8527_v7 = vadd.f32 %v8526_v39, %v8525_v9  ;;  %v8604_v9 = vadd.f32 %v12392_v42, %v12384_v8  ;;  %v8533_v39 = vadd.f32 %v8532_v4, %v8531_v18 }
 0x29e   :  { %16478 = vst [vmem:[#allocation25_spill] sm:$0xff] %v12442_v14  ;;  %v12444_v5 = vpop.f32.mrf.mxu0 }
 0x29f   :  { %16479 = vst [vmem:[#allocation26_spill] sm:$0xff] %v12444_v5  ;;  %v12446_v47 = vpop.f32.mrf.mxu1  ;;  %v2434_v8 = vadd.f32 %v8533_v39, %v12256_v60  ;;  %v8622_v60 = vadd.f32 %v12412_v63, %v12408_v61  ;;  %v8628_v61 = vadd.f32 %v12428_v27, %v12424_v30 }
 0x2a0   :  { %16480 = vst [vmem:[#allocation23_spill] sm:$0xff] %v12446_v47  ;;  %v12448_v43 = vpop.f32.mrf.mxu0  ;;  %v8409_v47 = vadd.f32 %v12362_v10, %v12355_v16  ;;  %v8536_v16 = vadd.f32 %v8535_v50, %v8534_v56  ;;  %v8545_v56 = vadd.f32 %v12410_v41, %v12406_v19 }
 0x2a1   :  { %16481 = vst [vmem:[#allocation24_spill] sm:$0xff] %v12448_v43  ;;  %v12450_v31 = vpop.f32.mrf.mxu1  ;;  %v8524_v43 = vadd.f32 %v12377_v54, %v12368_v46 }
 0x2a2   :  { %16482 = vst [vmem:[#allocation12_spill] sm:$0xff] %v12450_v31  ;;  %v12452_v32 = vpop.f32.mrf.mxu0  ;;  %v8607_v31 = vadd.f32 %v8606_v52, %v8605_v12  ;;  %v2204_v46 = vadd.f32 %v8409_v47, %v12195_v53  ;;  %v8542_v53 = vadd.f32 %v8541_v22, %v8540_v36  ;;  %v8619_v47 = vadd.f32 %v8618_v0, %v8617_v57 }
 0x2a3   :  { %16483 = vst [vmem:[#allocation11_spill] sm:$0xff] %v12452_v32  ;;  %v12454_v21 = vpop.f32.mrf.mxu1  ;;  %v8530_v32 = vadd.f32 %v8529_v55, %v8528_v13  ;;  %v2419_v54 = vadd.f32 %v8524_v43, %v12220_v59  ;;  %v8613_v13 = vadd.f32 %v8612_v29, %v8611_v15  ;;  %v2454_v19 = vadd.f32 %v8545_v56, %v12301_v38  ;;  %v16488_v38 = vld [vmem:[#allocation19_spill] sm:$0xff] }
 0x2a4   :  { %16484 = vst [vmem:[#allocation27_spill] sm:$0xff] %v12454_v21  ;;  %v12458_v24 = vpop.f32.mrf.mxu0 }
 0x2a5   :  { %v12456_v51 = vpop.f32.mrf.mxu1  ;;  %16485 = vst [vmem:[#allocation13_spill] sm:$0xff] %v12458_v24  ;;  %v8489_v24 = vadd.f32 %v12382_v40, %v12370_v58  ;;  %v2429_v58 = vadd.f32 %v8530_v32, %v12247_v11  ;;  %v8539_v40 = vadd.f32 %v8538_v49, %v8537_v44  ;;  %v2564_v18 = vadd.f32 %v8604_v9, %v2419_v54  ;;  %v16491_v54 = vld [vmem:[#allocation21_spill] sm:$0xff] }
 0x2a6   :  { %v12468_v5 = vpop.f32.mrf.mxu0  ;;  %v2579_v32 = vadd.f32 %v8613_v13, %v2434_v8  ;;  %v2449_v44 = vadd.f32 %v8542_v53, %v12283_v37  ;;  %v8551_v37 = vadd.f32 %v12426_v6, %v12422_v34  ;;  %v16489_v34 = vld [vmem:[#allocation9_spill] sm:$0xff]  ;;  %v16490_v6 = vld [vmem:[#allocation20_spill] sm:$0xff]  ;;  %v16496_v53 = vld [vmem:[#allocation7_spill] sm:$0xff] }
 0x2a7   :  { %v12460_v33 = vpop.f32.mrf.mxu1 }
 0x2a8   :  { %16486 = vst [vmem:[#allocation14_spill] sm:$0xff] %v12460_v33  ;;  %v2424_v33 = vadd.f32 %v8527_v7, %v12235_v26  ;;  %v12481_v12 = vpop.f32.mrf.mxu0  ;;  %v8616_v26 = vadd.f32 %v8615_v35, %v8614_v45  ;;  %v12484_v7 = vadd.f32 %v8489_v24, %v2204_v46  ;;  %v8548_v45 = vadd.f32 %v12418_v20, %v12414_v2 }
 0x2a9   :  { %v12462_v14 = vpop.f32.mrf.mxu1  ;;  %v2594_v63 = vadd.f32 %v8622_v60, %v2449_v44  ;;  %v8554_v24 = vadd.f32 %v16488_v38, %v12430_v17  ;;  %v2464_v13 = vadd.f32 %v8551_v37, %v16491_v54  ;;  %v16494_v17 = vld [vmem:[#allocation22_spill] sm:$0xff]  ;;  %v16504_v54 = vld [vmem:[#allocation8_spill] sm:$0xff] }
 0x2aa   :  { %16487 = vst [vmem:[#allocation28_spill] sm:$0xff] %v12462_v14  ;;  %v8610_v14 = vadd.f32 %v8609_v48, %v8608_v23  ;;  %v2569_v55 = vadd.f32 %v8607_v31, %v2424_v33  ;;  %v2439_v23 = vadd.f32 %v8536_v16, %v12265_v28  ;;  %v12488_v4 = vpop.f32.mrf.mxu0  ;;  %v2444_v48 = vadd.f32 %v8539_v40, %v12274_v62  ;;  %v16495_v40 = vld [vmem:[#allocation26_spill] sm:$0xff] }
 0x2ab   :  { %v12470_v21 = vpop.f32.mrf.mxu1  ;;  %v8625_v62 = vadd.f32 %v12420_v25, %v12416_v3  ;;  %v2459_v25 = vadd.f32 %v8548_v45, %v12310_v1  ;;  %v8631_v33 = vadd.f32 %v16490_v6, %v16489_v34  ;;  %v16492_v1 = vld [vmem:[#allocation10_spill] sm:$0xff] }
 0x2ac   :  { %v2574_v43 = vadd.f32 %v8610_v14, %v2429_v58  ;;  %v2584_v28 = vadd.f32 %v8616_v26, %v2439_v23  ;;  %v2589_v35 = vadd.f32 %v8619_v47, %v2444_v48  ;;  %v12503_v36 = vpop.f32.mrf.mxu0  ;;  %v8634_v26 = vadd.f32 %v16495_v40, %v16494_v17  ;;  %v3392_v17 = vld [vmem:[%s16417_s5 + $0x368] sm:$0xff] }
 0x2ad   :  { %v12477_v10 = vpop.f32.mrf.mxu1  ;;  %v2599_v27 = vadd.f32 %v8625_v62, %v2454_v19  ;;  %v2604_v8 = vadd.f32 %v8628_v61, %v2459_v25  ;;  %v2469_v47 = vadd.f32 %v8554_v24, %v16496_v53  ;;  %v2609_v60 = vadd.f32 %v8631_v33, %v2464_v13  ;;  %v3394_v62 = vld [vmem:[%s16417_s5 + $0x378] sm:$0xff]  ;;  %v3409_v61 = vld [vmem:[%s16417_s5 + $0x3f0] sm:$0xff] }
 0x2ae   :  { %v12522_v9 = vpop.f32.mrf.mxu0  ;;  %v16503_v25 = vld [vmem:[#allocation16_spill] sm:$0xff]  ;;  %v8643_v24 = vadd.f32 %v12488_v4, %v12481_v12  ;;  %v16505_v4 = vld [vmem:[#allocation13_spill] sm:$0xff] }
 0x2af   :  { %v10244_v52 = vpop.f32.mrf.mxu1  ;;  %v2614_v37 = vadd.f32 %v8634_v26, %v2469_v47  ;;  %v8640_v13 = vadd.f32 %v12468_v5, %v16505_v4  ;;  %v3403_v4 = vld [vmem:[%s16417_s5 + $0x3c0] sm:$0xff] }
 0x2b0   :  { %v2714_v42 = vadd.f32 %v10244_v52, %v2569_v55  ;;  %v16493_v55 = vld [vmem:[#allocation25_spill] sm:$0xff] }
 0x2b1   :  { %v2708_v59 = vpop.f32.mrf.mxu1  ;;  %v8557_v58 = vadd.f32 %v16493_v55, %v16492_v1  ;;  %v8569_v1 = vadd.f32 %v12477_v10, %v12470_v21  ;;  %v3407_v10 = vld [vmem:[%s16417_s5 + $0x3e0] sm:$0xff] }
 0x2b2   :  { %vm2788_vm0 = vcmp.gt.f32.partialorder %v2714_v42, 0.0  ;;  %v2804_v31 = vmul.f32 0.01, %v2714_v42  ;;  %v2709_v11 = vadd.f32 %v2708_v59, %v2564_v18  ;;  %v16497_v59 = vld [vmem:[#allocation23_spill] sm:$0xff] }
 0x2b3   :  { %v10247_v15 = vpop.f32.mrf.mxu1 }
 0x2b4   :  { %v12495_v50 = vsel %vm2788_vm0, %v2714_v42, %v2804_v31  ;;  %vm2787_vm1 = vcmp.gt.f32.partialorder %v2709_v11, 0.0  ;;  %v2803_v14 = vmul.f32 0.01, %v2709_v11  ;;  %v2724_v29 = vadd.f32 %v10247_v15, %v2579_v32  ;;  %v16500_v32 = vld [vmem:[#allocation11_spill] sm:$0xff] }
 0x2b5   :  { %2836 = vst [vmem:[#allocation2 + $0x21] sm:$0xff] %v12495_v50  ;;  %v2718_v49 = vpop.f32.mrf.mxu1  ;;  %v2915_v15 = vld [vmem:[#allocation2 + $0x2] sm:$0xff] }
 0x2b6   :  { %v12505_v57 = vsel %vm2787_vm1, %v2709_v11, %v2803_v14  ;;  %vm2790_vm2 = vcmp.gt.f32.partialorder %v2724_v29, 0.0  ;;  %v2806_v22 = vmul.f32 0.01, %v2724_v29  ;;  %v2719_v0 = vadd.f32 %v2718_v49, %v2574_v43  ;;  %v16498_v43 = vld [vmem:[#allocation12_spill] sm:$0xff]  ;;  %v16501_v49 = vld [vmem:[#allocation15_spill] sm:$0xff] }
 0x2b7   :  { %2835 = vst [vmem:[#allocation2 + $0x11] sm:$0xff] %v12505_v57  ;;  %v10250_v41 = vpop.f32.mrf.mxu1  ;;  %3503 = vmatprep.mubr.f32.mxu0 %v12505_v57  ;;  %v8560_v31 = vadd.f32 %v16498_v43, %v16497_v59  ;;  %v16499_v11 = vld [vmem:[#allocation24_spill] sm:$0xff] }
 0x2b8   :  { %v12514_v2 = vsel %vm2790_vm2, %v2724_v29, %v2806_v22  ;;  %vm2789_vm3 = vcmp.gt.f32.partialorder %v2719_v0, 0.0  ;;  %v2805_v3 = vmul.f32 0.01, %v2719_v0  ;;  %v2734_v20 = vadd.f32 %v10250_v41, %v2589_v35  ;;  %v16502_v22 = vld [vmem:[#allocation27_spill] sm:$0xff] }
 0x2b9   :  { %2838 = vst [vmem:[#allocation2 + $0x41] sm:$0xff] %v12514_v2  ;;  %v2728_v30 = vpop.f32.mrf.mxu1  ;;  %v8637_v48 = vadd.f32 %v16500_v32, %v16499_v11  ;;  %v2474_v35 = vadd.f32 %v8557_v58, %v16501_v49  ;;  %v2479_v38 = vadd.f32 %v8560_v31, %v16503_v25  ;;  %v3391_v11 = vld [vmem:[%s16417_s5 + $0x360] sm:$0xff]  ;;  %v2494_v32 = vadd.f32 %v8569_v1, %v12484_v7 }
 0x2ba   :  { %v12524_v39 = vsel %vm2789_vm3, %v2719_v0, %v2805_v3  ;;  %vm2792_vm4 = vcmp.gt.f32.partialorder %v2734_v20, 0.0  ;;  %v2808_v16 = vmul.f32 0.01, %v2734_v20  ;;  %v2729_v46 = vadd.f32 %v2728_v30, %v2584_v28  ;;  %v8647_v28 = vpop.f32.mrf.mxu0 }
 0x2bb   :  { %2837 = vst [vmem:[#allocation2 + $0x31] sm:$0xff] %v12524_v39  ;;  %v10253_v52 = vpop.f32.mrf.mxu1  ;;  %v8563_v0 = vadd.f32 %v12456_v51, %v16502_v22  ;;  %v3393_v51 = vld [vmem:[%s16417_s5 + $0x370] sm:$0xff]  ;;  %v2619_v6 = vadd.f32 %v8637_v48, %v2474_v35  ;;  %v8646_v48 = vadd.f32 %v12522_v9, %v12503_v36  ;;  %v3390_v9 = vld [vmem:[%s16417_s5 + $0x358] sm:$0xff] }
 0x2bc   :  { %v12532_v42 = vsel %vm2792_vm4, %v2734_v20, %v2808_v16  ;;  %vm2791_vm5 = vcmp.gt.f32.partialorder %v2729_v46, 0.0  ;;  %v2807_v18 = vmul.f32 0.01, %v2729_v46  ;;  %v2744_v23 = vadd.f32 %v10253_v52, %v2599_v27  ;;  %v12555_v20 = vld [vmem:[#allocation2 + $0x20] sm:$0xff]  ;;  %v8648_v33 = vpop.f32.mrf.mxu0 }
 0x2bd   :  { %2840 = vst [vmem:[#allocation2 + $0x61] sm:$0xff] %v12532_v42  ;;  %v2738_v56 = vpop.f32.mrf.mxu1  ;;  %v2484_v12 = vadd.f32 %v8563_v0, %v16504_v54  ;;  %v16506_v52 = vld [vmem:[#allocation14_spill] sm:$0xff]  ;;  %v3388_v54 = vld [vmem:[%s16417_s5 + $0x348] sm:$0xff] }
 0x2be   :  { %v12540_v14 = vsel %vm2791_vm5, %v2729_v46, %v2807_v18  ;;  %vm2794_vm6 = vcmp.gt.f32.partialorder %v2744_v23, 0.0  ;;  %v2810_v29 = vmul.f32 0.01, %v2744_v23  ;;  %v2739_v44 = vadd.f32 %v2738_v56, %v2594_v63  ;;  %v2947_v45 = vld [vmem:[#allocation2 + $0x10] sm:$0xff]  ;;  %v3408_v46 = vld [vmem:[%s16417_s5 + $0x3e8] sm:$0xff] }
 0x2bf   :  { %2839 = vst [vmem:[#allocation2 + $0x51] sm:$0xff] %v12540_v14  ;;  %v10256_v19 = vpop.f32.mrf.mxu1  ;;  %3643 = vmatprep.mubr.f32.mxu1 %v2947_v45  ;;  %3504 = vmatmul.mubr.f32.gmra.mxu0 %v2947_v45  ;;  %v12577_v58 = vld [vmem:[#allocation2 + $0x12] sm:$0xff]  ;;  %v2629_v47 = vadd.f32 %v8643_v24, %v2484_v12 }
 0x2c0   :  { %v12552_v41 = vsel %vm2794_vm6, %v2744_v23, %v2810_v29  ;;  %vm2793_vm7 = vcmp.gt.f32.partialorder %v2739_v44, 0.0  ;;  %v2809_v63 = vmul.f32 0.01, %v2739_v44  ;;  %v2754_v3 = vadd.f32 %v10256_v19, %v2609_v60  ;;  %3644 = vmatmul.mubr.f32.vlgmr.msra.gmra.mxu1 %v2915_v15  ;;  %3508 = vmatprep.mubr.f32.mxu0 %v12495_v50  ;;  %v12605_v60 = vld [vmem:[#allocation2 + $0x22] sm:$0xff]  ;;  %v16508_v45 = vld [vmem:[#allocation17_spill] sm:$0xff] }
 0x2c1   :  { %2842 = vst [vmem:[#allocation2 + $0x81] sm:$0xff] %v12552_v41  ;;  %v2748_v34 = vpop.f32.mrf.mxu1  ;;  %3648 = vmatprep.mubr.f32.mxu1 %v12555_v20  ;;  %8923 = vmatpush3.msra.mxu1 %v3394_v62  ;;  %v8649_v23 = vadd.f32 %v8648_v33, %v8647_v28  ;;  %v2624_v15 = vadd.f32 %v8640_v13, %v2479_v38  ;;  %v3406_v28 = vld [vmem:[%s16417_s5 + $0x3d8] sm:$0xff]  ;;  %v12614_v36 = vld [vmem:[#allocation2 + $0x40] sm:$0xff] }
 0x2c2   :  { %v12565_v30 = vsel %vm2793_vm7, %v2739_v44, %v2809_v63  ;;  %vm2796_vm8 = vcmp.gt.f32.partialorder %v2754_v3, 0.0  ;;  %v2812_v27 = vmul.f32 0.01, %v2754_v3  ;;  %v2749_v16 = vadd.f32 %v2748_v34, %v2604_v8  ;;  %8924 = vmatprep.subr.mxu1 %v3409_v61  ;;  %v12586_v21 = vld [vmem:[#allocation2 + $0x30] sm:$0xff]  ;;  %v12652_v12 = vld [vmem:[#allocation2 + $0x42] sm:$0xff] }
 0x2c3   :  { %2841 = vst [vmem:[#allocation2 + $0x71] sm:$0xff] %v12565_v30  ;;  %v10259_v55 = vpop.f32.mrf.mxu1  ;;  %3509 = vmatmul.mubr.f32.gmra.mxu0 %v12555_v20  ;;  %8925 = vmatpush3.msra.mxu1 %v3393_v51  ;;  %v16507_v8 = vld [vmem:[#allocation28_spill] sm:$0xff]  ;;  %v2639_v35 = vadd.f32 %v8649_v23, %v2494_v32  ;;  %v12629_v63 = vld [vmem:[#allocation2 + $0x32] sm:$0xff]  ;;  %v2891_v23 = vld [vmem:[#allocation2 + $0xa1] sm:$0xff] }
 0x2c4   :  { %v12582_v40 = vsel %vm2796_vm8, %v2754_v3, %v2812_v27  ;;  %vm2795_vm9 = vcmp.gt.f32.partialorder %v2749_v16, 0.0  ;;  %v2811_v26 = vmul.f32 0.01, %v2749_v16  ;;  %v2764_v5 = vadd.f32 %v10259_v55, %v2619_v6  ;;  %3649 = vmatmul.mubr.f32.gmra.mxu1 %v12577_v58  ;;  %3513 = vmatprep.mubr.f32.mxu0 %v12524_v39  ;;  %v3389_v51 = vld [vmem:[%s16417_s5 + $0x350] sm:$0xff]  ;;  %v3404_v6 = vld [vmem:[%s16417_s5 + $0x3c8] sm:$0xff]  ;;  %v12661_v55 = vld [vmem:[#allocation2 + $0x60] sm:$0xff] }
 0x2c5   :  { %v8566_v18 = vadd.f32 %v16507_v8, %v16506_v52  ;;  %2844 = vst [vmem:[#allocation2 + $0xc1] sm:$0xff] %v12582_v40  ;;  %v2758_v53 = vpop.f32.mrf.mxu1  ;;  %3653 = vmatprep.mubr.f32.mxu1 %v12586_v21  ;;  %8926 = vmatprep.subr.mxu1 %v3408_v46  ;;  %v3386_v52 = vld [vmem:[%s16417_s5 + $0x338] sm:$0xff]  ;;  %v3399_v32 = vld [vmem:[%s16417_s5 + $0x3a0] sm:$0xff] }
 0x2c6   :  { %v12595_v59 = vsel %vm2795_vm9, %v2749_v16, %v2811_v26  ;;  %vm2798_vm10 = vcmp.gt.f32.partialorder %v2764_v5, 0.0  ;;  %v2814_v43 = vmul.f32 0.01, %v2764_v5  ;;  %v2759_v31 = vadd.f32 %v2758_v53, %v2614_v37  ;;  %8927 = vmatpush3.msra.mxu1 %v3392_v17  ;;  %v3405_v37 = vld [vmem:[%s16417_s5 + $0x3d0] sm:$0xff]  ;;  %v3387_v17 = vld [vmem:[%s16417_s5 + $0x340] sm:$0xff] }
 0x2c7   :  { %2843 = vst [vmem:[#allocation2 + $0xb1] sm:$0xff] %v12595_v59  ;;  %v10262_v56 = vpop.f32.mrf.mxu1  ;;  %3514 = vmatmul.mubr.f32.gmra.mxu0 %v12586_v21  ;;  %8928 = vmatprep.subr.mxu1 %v3407_v10  ;;  %v2489_v62 = vadd.f32 %v8566_v18, %v16508_v45  ;;  %v12638_v34 = vld [vmem:[#allocation2 + $0x50] sm:$0xff] }
 0x2c8   :  { %v12610_v29 = vsel %vm2798_vm10, %v2764_v5, %v2814_v43  ;;  %vm2797_vm11 = vcmp.gt.f32.partialorder %v2759_v31, 0.0  ;;  %v2813_v7 = vmul.f32 0.01, %v2759_v31  ;;  %v2774_v44 = vadd.f32 %v10262_v56, %v2629_v47  ;;  %3654 = vmatmul.mubr.f32.gmra.mxu1 %v12605_v60  ;;  %3518 = vmatprep.mubr.f32.mxu0 %v12514_v2  ;;  %v3402_v5 = vld [vmem:[%s16417_s5 + $0x3b8] sm:$0xff]  ;;  %v3401_v18 = vld [vmem:[%s16417_s5 + $0x3b0] sm:$0xff]  ;;  %v12692_v47 = vld [vmem:[#allocation2 + $0x62] sm:$0xff] }
 0x2c9   :  { %2846 = vst [vmem:[#allocation2 + $0xe1] sm:$0xff] %v12610_v29  ;;  %v2768_v49 = vpop.f32.mrf.mxu1  ;;  %3658 = vmatprep.mubr.f32.mxu1 %v12614_v36  ;;  %8929 = vmatpush3.msra.mxu1 %v3391_v11  ;;  %v2634_v3 = vadd.f32 %v8646_v48, %v2489_v62  ;;  %v12675_v10 = vld [vmem:[#allocation2 + $0x52] sm:$0xff]  ;;  %v3400_v43 = vld [vmem:[%s16417_s5 + $0x3a8] sm:$0xff]  ;;  %v12707_v48 = vld [vmem:[#allocation2] sm:$0xff] }
 0x2ca   :  { %v12622_v22 = vsel %vm2797_vm11, %v2759_v31, %v2813_v7  ;;  %vm2800_vm12 = vcmp.gt.f32.partialorder %v2774_v44, 0.0  ;;  %v2816_v0 = vmul.f32 0.01, %v2774_v44  ;;  %v2769_v19 = vadd.f32 %v2768_v49, %v2624_v15  ;;  %8930 = vmatprep.subr.mxu1 %v3406_v28  ;;  %v12682_v8 = vld [vmem:[#allocation2 + $0x70] sm:$0xff]  ;;  %v12698_v31 = vld [vmem:[#allocation2 + $0x80] sm:$0xff]  ;;  %v3384_v11 = vld [vmem:[%s16417_s5 + $0x328] sm:$0xff] }
 0x2cb   :  { %2845 = vst [vmem:[#allocation2 + $0xd1] sm:$0xff] %v12622_v22  ;;  %v10265_v61 = vpop.f32.mrf.mxu1  ;;  %3519 = vmatmul.mubr.f32.gmra.mxu0 %v12614_v36  ;;  %8931 = vmatpush3.msra.mxu1 %v3390_v9  ;;  %v3385_v53 = vld [vmem:[%s16417_s5 + $0x330] sm:$0xff]  ;;  %v3383_v15 = vld [vmem:[%s16417_s5 + $0x320] sm:$0xff]  ;;  %v3398_v7 = vld [vmem:[%s16417_s5 + $0x398] sm:$0xff] }
 0x2cc   :  { %v12634_v25 = vsel %vm2800_vm12, %v2774_v44, %v2816_v0  ;;  %vm2799_vm13 = vcmp.gt.f32.partialorder %v2769_v19, 0.0  ;;  %v2815_v38 = vmul.f32 0.01, %v2769_v19  ;;  %v2784_v24 = vadd.f32 %v10265_v61, %v2639_v35  ;;  %3659 = vmatmul.mubr.f32.gmra.mxu1 %v12629_v63  ;;  %3523 = vmatprep.mubr.f32.mxu0 %v12540_v14  ;;  %v12710_v56 = vld [vmem:[#allocation2 + $0x72] sm:$0xff]  ;;  %v2923_v44 = vld [vmem:[#allocation2 + $0xa2] sm:$0xff] }
 0x2cd   :  { %2848 = vst [vmem:[#allocation2 + $0x101] sm:$0xff] %v12634_v25  ;;  %v2778_v33 = vpop.f32.mrf.mxu1  ;;  %3663 = vmatprep.mubr.f32.mxu1 %v12638_v34  ;;  %8932 = vmatprep.subr.mxu1 %v3405_v37  ;;  %v3382_v9 = vld [vmem:[%s16417_s5 + $0x318] sm:$0xff]  ;;  %v3397_v45 = vld [vmem:[%s16417_s5 + $0x390] sm:$0xff]  ;;  %v12727_v62 = vld [vmem:[#allocation2 + $0xc0] sm:$0xff] }
 0x2ce   :  { %v12645_v27 = vsel %vm2799_vm13, %v2769_v19, %v2815_v38  ;;  %vm2802_vm14 = vcmp.gt.f32.partialorder %v2784_v24, 0.0  ;;  %v2818_v16 = vmul.f32 0.01, %v2784_v24  ;;  %v2779_v46 = vadd.f32 %v2778_v33, %v2634_v3  ;;  %8933 = vmatpush3.msra.mxu1 %v3389_v51  ;;  %v2955_v28 = vld [vmem:[#allocation2 + $0xb0] sm:$0xff]  ;;  %v3396_v35 = vld [vmem:[%s16417_s5 + $0x388] sm:$0xff]  ;;  %v3395_v61 = vld [vmem:[%s16417_s5 + $0x380] sm:$0xff] }
 0x2cf   :  { %2847 = vst [vmem:[#allocation2 + $0xf1] sm:$0xff] %v12645_v27  ;;  %3524 = vmatmul.mubr.f32.gmra.mxu0 %v12638_v34  ;;  %8934 = vmatprep.subr.mxu1 %v3404_v6  ;;  %v3381_v49 = vld [vmem:[%s16417_s5 + $0x310] sm:$0xff]  ;;  %v3380_v19 = vld [vmem:[%s16417_s5 + $0x308] sm:$0xff]  ;;  %v3379_v3 = vld [vmem:[%s16417_s5 + $0x300] sm:$0xff] }
 0x2d0   :  { %v12657_v13 = vsel %vm2802_vm14, %v2784_v24, %v2818_v16  ;;  %vm2801_vm15 = vcmp.gt.f32.partialorder %v2779_v46, 0.0  ;;  %v2817_v1 = vmul.f32 0.01, %v2779_v46  ;;  %3664 = vmatmul.mubr.f32.gmra.mxu1 %v12652_v12  ;;  %3528 = vmatprep.mubr.f32.mxu0 %v12532_v42  ;;  %v12737_v0 = vld [vmem:[#allocation2 + $0xb2] sm:$0xff]  ;;  %v12754_v51 = vld [vmem:[#allocation2 + $0xc2] sm:$0xff] }
 0x2d1   :  { %2850 = vst [vmem:[#allocation2 + $0x121] sm:$0xff] %v12657_v13  ;;  %3668 = vmatprep.mubr.f32.mxu1 %v12661_v55  ;;  %8935 = vmatpush3.msra.mxu1 %v3388_v54  ;;  %v12758_v38 = vld [vmem:[#allocation2 + $0xe0] sm:$0xff] }
 0x2d2   :  { %v12668_v26 = vsel %vm2801_vm15, %v2779_v46, %v2817_v1  ;;  %8936 = vmatprep.subr.mxu1 %v3403_v4  ;;  %v12744_v37 = vld [vmem:[#allocation2 + $0xd0] sm:$0xff]  ;;  %v12770_v33 = vld [vmem:[#allocation2 + $0xe2] sm:$0xff] }
 0x2d3   :  { %2849 = vst [vmem:[#allocation2 + $0x111] sm:$0xff] %v12668_v26  ;;  %3529 = vmatmul.mubr.f32.gmra.mxu0 %v12661_v55  ;;  %8937 = vmatpush3.msra.mxu1 %v3387_v17  ;;  %v12762_v24 = vld [vmem:[#allocation2 + $0xd2] sm:$0xff] }
 0x2d4   :  { %3669 = vmatmul.mubr.f32.gmra.mxu1 %v12675_v10  ;;  %3533 = vmatprep.mubr.f32.mxu0 %v12565_v30  ;;  %v12774_v16 = vld [vmem:[#allocation2 + $0x100] sm:$0xff] }
 0x2d5   :  { %3673 = vmatprep.mubr.f32.mxu1 %v12682_v8  ;;  %8938 = vmatprep.subr.mxu1 %v3402_v5  ;;  %v12786_v4 = vld [vmem:[#allocation2 + $0x102] sm:$0xff]  ;;  %v3425_v5 = vld [vmem:[%s16417_s5 + $0x470] sm:$0xff] }
 0x2d6   :  { %8939 = vmatpush3.msra.mxu1 %v3386_v52  ;;  %v12766_v6 = vld [vmem:[#allocation2 + $0xf0] sm:$0xff]  ;;  %v16509_v52 = vld [vmem:[#allocation18_spill] sm:$0xff] }
 0x2d7   :  { %3534 = vmatmul.mubr.f32.gmra.mxu0 %v12682_v8  ;;  %8940 = vmatprep.subr.mxu1 %v3401_v18  ;;  %v12778_v46 = vld [vmem:[#allocation2 + $0xf2] sm:$0xff]  ;;  %v4219_v18 = vld [vmem:[%s16419_s7 + $0x60] sm:$0xff] }
 0x2d8   :  { %3674 = vmatmul.mubr.f32.gmra.mxu1 %v12692_v47  ;;  %3538 = vmatprep.mubr.f32.mxu0 %v2891_v23  ;;  %v12789_v1 = vld [vmem:[#allocation2 + $0x120] sm:$0xff]  ;;  %v4234_v23 = vld [vmem:[%s16419_s7 + $0xd8] sm:$0xff] }
 0x2d9   :  { %3678 = vmatprep.mubr.f32.mxu1 %v12698_v31  ;;  %8941 = vmatpush3.msra.mxu1 %v3385_v53  ;;  %v4218_v53 = vld [vmem:[%s16419_s7 + $0x58] sm:$0xff] }
 0x2da   :  { %8942 = vmatprep.subr.mxu1 %v3400_v43  ;;  %v12782_v54 = vld [vmem:[#allocation2 + $0x110] sm:$0xff] }
 0x2db   :  { %3539 = vmatmul.mubr.f32.gmra.mxu0 %v12707_v48  ;;  %8943 = vmatpush3.msra.mxu1 %v3384_v11  ;;  %v12793_v17 = vld [vmem:[#allocation2 + $0x112] sm:$0xff]  ;;  %v8714_v11 = vpop.f32.mrf.mxu0 }
 0x2dc   :  { %3679 = vmatmul.mubr.f32.gmra.mxu1 %v12710_v56  ;;  %3543 = vmatprep.mubr.f32.mxu0 %v12595_v59  ;;  %v4217_v43 = vld [vmem:[%s16419_s7 + $0x50] sm:$0xff] }
 0x2dd   :  { %3683 = vmatprep.mubr.f32.mxu1 %v2955_v28  ;;  %8944 = vmatprep.subr.mxu1 %v3399_v32  ;;  %v4216_v32 = vld [vmem:[%s16419_s7 + $0x48] sm:$0xff] }
 0x2de   :  { %8945 = vmatpush3.msra.mxu1 %v3383_v15  ;;  %v4215_v15 = vld [vmem:[%s16419_s7 + $0x40] sm:$0xff] }
 0x2df   :  { %3544 = vmatmul.mubr.f32.gmra.mxu0 %v2955_v28  ;;  %8946 = vmatprep.subr.mxu1 %v3398_v7  ;;  %v4270_v28 = vld [vmem:[%s16419_s7 + $0x1f8] sm:$0xff] }
 0x2e0   :  { %3684 = vmatmul.mubr.f32.gmra.mxu1 %v2923_v44  ;;  %3548 = vmatprep.mubr.f32.mxu0 %v12582_v40  ;;  %v4254_v7 = vld [vmem:[%s16419_s7 + $0x178] sm:$0xff] }
 0x2e1   :  { %3688 = vmatprep.mubr.f32.mxu1 %v12727_v62  ;;  %8947 = vmatpush3.msra.mxu1 %v3382_v9 }
 0x2e2   :  { %8948 = vmatprep.subr.mxu1 %v3397_v45  ;;  %v4269_v45 = vld [vmem:[%s16419_s7 + $0x1f0] sm:$0xff] }
 0x2e3   :  { %3549 = vmatmul.mubr.f32.gmra.mxu0 %v12727_v62  ;;  %8949 = vmatpush3.msra.mxu1 %v3381_v49 }
 0x2e4   :  { %3689 = vmatmul.mubr.f32.gmra.mxu1 %v12737_v0  ;;  %3553 = vmatprep.mubr.f32.mxu0 %v12622_v22 }
 0x2e5   :  { %3693 = vmatprep.mubr.f32.mxu1 %v12744_v37  ;;  %8950 = vmatprep.subr.mxu1 %v3396_v35  ;;  %v4230_v35 = vld [vmem:[%s16419_s7 + $0xb8] sm:$0xff] }
 0x2e6   :  { %8951 = vmatpush3.msra.mxu1 %v3380_v19 }
 0x2e7   :  { %3554 = vmatmul.mubr.f32.gmra.mxu0 %v12744_v37  ;;  %8952 = vmatprep.subr.mxu1 %v3395_v61 }
 0x2e8   :  { %3694 = vmatmul.mubr.f32.gmra.mxu1 %v12754_v51  ;;  %3558 = vmatprep.mubr.f32.mxu0 %v12610_v29 }
 0x2e9   :  { %3698 = vmatprep.mubr.f32.mxu1 %v12758_v38  ;;  %8953 = vmatpush3.msra.mxu1 %v3379_v3 }
 0x2eb   :  { %3559 = vmatmul.mubr.f32.gmra.mxu0 %v12758_v38 }
 0x2ec   :  { %3699 = vmatmul.mubr.f32.gmra.mxu1 %v12762_v24  ;;  %3563 = vmatprep.mubr.f32.mxu0 %v12645_v27 }
 0x2ed   :  { %3703 = vmatprep.mubr.f32.mxu1 %v12766_v6 }
 0x2ef   :  { %3564 = vmatmul.mubr.f32.gmra.mxu0 %v12766_v6 }
 0x2f0   :  { %3704 = vmatmul.mubr.f32.gmra.mxu1 %v12770_v33  ;;  %3568 = vmatprep.mubr.f32.mxu0 %v12634_v25 }
 0x2f1   :  { %3708 = vmatprep.mubr.f32.mxu1 %v12774_v16 }
 0x2f3   :  { %3569 = vmatmul.mubr.f32.gmra.mxu0 %v12774_v16 }
 0x2f4   :  { %3709 = vmatmul.mubr.f32.gmra.mxu1 %v12778_v46  ;;  %3573 = vmatprep.mubr.f32.mxu0 %v12668_v26 }
 0x2f5   :  { %3713 = vmatprep.mubr.f32.mxu1 %v12782_v54 }
 0x2f7   :  { %3574 = vmatmul.mubr.f32.gmra.mxu0 %v12782_v54 }
 0x2f8   :  { %3714 = vmatmul.mubr.f32.gmra.mxu1 %v12786_v4  ;;  %3788 = vmatprep.mubr.f32.mxu0 %v12577_v58  ;;  %v3424_v58 = vld [vmem:[%s16417_s5 + $0x468] sm:$0xff] }
 0x2f9   :  { %3718 = vmatprep.mubr.f32.mxu1 %v12789_v1 }
 0x2fb   :  { %3789 = vmatmul.mubr.f32.vlgmr.msra.gmra.mxu0 %v12505_v57  ;;  %v3423_v57 = vld [vmem:[%s16417_s5 + $0x460] sm:$0xff] }
 0x2fc   :  { %3719 = vmatmul.mubr.f32.gmra.mxu1 %v12793_v17  ;;  %3793 = vmatprep.mubr.f32.mxu0 %v12605_v60 }
 0x2fd   :  { %3933 = vmatprep.mubr.f32.mxu1 %v12495_v50  ;;  %10267 = vmatpush3.msra.mxu0 %v16509_v52 }
 0x2fe   :  { %10268 = vmatprep.subr.mxu0 %v3425_v5 }
 0x2ff   :  { %3794 = vmatmul.mubr.f32.gmra.mxu0 %v12495_v50  ;;  %v3422_v50 = vld [vmem:[%s16417_s5 + $0x458] sm:$0xff] }
 0x300   :  { %3934 = vmatmul.mubr.f32.vlgmr.msra.gmra.mxu1 %v12555_v20  ;;  %3798 = vmatprep.mubr.f32.mxu0 %v12629_v63  ;;  %v3082_v20 = vld [vmem:[#allocation2 + $0x91] sm:$0xff] }
 0x301   :  { %3938 = vmatprep.mubr.f32.mxu1 %v12524_v39  ;;  %10269 = vmatpush3.msra.mxu0 %v3425_v5  ;;  %v4266_v5 = vld [vmem:[%s16419_s7 + $0x1d8] sm:$0xff] }
 0x302   :  { %10270 = vmatprep.subr.mxu0 %v3424_v58 }
 0x303   :  { %3799 = vmatmul.mubr.f32.gmra.mxu0 %v12524_v39  ;;  %v3421_v39 = vld [vmem:[%s16417_s5 + $0x450] sm:$0xff] }
 0x304   :  { %3939 = vmatmul.mubr.f32.gmra.mxu1 %v12586_v21  ;;  %3803 = vmatprep.mubr.f32.mxu0 %v12652_v12  ;;  %v3417_v21 = vld [vmem:[%s16417_s5 + $0x430] sm:$0xff] }
 0x305   :  { %3943 = vmatprep.mubr.f32.mxu1 %v12514_v2  ;;  %10271 = vmatpush3.msra.mxu0 %v3424_v58 }
 0x306   :  { %10272 = vmatprep.subr.mxu0 %v3423_v57 }
 0x307   :  { %3804 = vmatmul.mubr.f32.gmra.mxu0 %v12514_v2  ;;  %v3420_v2 = vld [vmem:[%s16417_s5 + $0x448] sm:$0xff] }
 0x308   :  { %3944 = vmatmul.mubr.f32.gmra.mxu1 %v12614_v36  ;;  %3808 = vmatprep.mubr.f32.mxu0 %v12675_v10  ;;  %v3413_v36 = vld [vmem:[%s16417_s5 + $0x410] sm:$0xff] }
 0x309   :  { %3948 = vmatprep.mubr.f32.mxu1 %v12540_v14  ;;  %10273 = vmatpush3.msra.mxu0 %v3423_v57  ;;  %v4213_v57 = vld [vmem:[%s16419_s7 + $0x30] sm:$0xff] }
 0x30a   :  { %10274 = vmatprep.subr.mxu0 %v3422_v50 }
 0x30b   :  { %3809 = vmatmul.mubr.f32.gmra.mxu0 %v12540_v14  ;;  %v12839_v14 = vld [vmem:[#allocation2 + $0x82] sm:$0xff] }
 0x30c   :  { %3949 = vmatmul.mubr.f32.gmra.mxu1 %v12638_v34  ;;  %3813 = vmatprep.mubr.f32.mxu0 %v12692_v47  ;;  %v3411_v34 = vld [vmem:[%s16417_s5 + $0x400] sm:$0xff] }
 0x30d   :  { %3953 = vmatprep.mubr.f32.mxu1 %v12532_v42  ;;  %10275 = vmatpush3.msra.mxu0 %v3422_v50  ;;  %v4250_v50 = vld [vmem:[%s16419_s7 + $0x158] sm:$0xff] }
 0x30e   :  { %10276 = vmatprep.subr.mxu0 %v3421_v39 }
 0x30f   :  { %3814 = vmatmul.mubr.f32.gmra.mxu0 %v12532_v42  ;;  %v3419_v42 = vld [vmem:[%s16417_s5 + $0x440] sm:$0xff] }
 0x310   :  { %3954 = vmatmul.mubr.f32.gmra.mxu1 %v12661_v55  ;;  %3818 = vmatprep.mubr.f32.mxu0 %v12710_v56  ;;  %v4221_v55 = vld [vmem:[%s16419_s7 + $0x70] sm:$0xff] }
 0x311   :  { %3958 = vmatprep.mubr.f32.mxu1 %v12565_v30  ;;  %10277 = vmatpush3.msra.mxu0 %v3421_v39 }
 0x312   :  { %10278 = vmatprep.subr.mxu0 %v3420_v2 }
 0x313   :  { %3819 = vmatmul.mubr.f32.gmra.mxu0 %v12565_v30  ;;  %v3418_v30 = vld [vmem:[%s16417_s5 + $0x438] sm:$0xff] }
 0x314   :  { %3959 = vmatmul.mubr.f32.gmra.mxu1 %v12682_v8  ;;  %3823 = vmatprep.mubr.f32.mxu0 %v12839_v14  ;;  %v4235_v8 = vld [vmem:[%s16419_s7 + $0xe0] sm:$0xff] }
 0x315   :  { %3963 = vmatprep.mubr.f32.mxu1 %v12552_v41  ;;  %10279 = vmatpush3.msra.mxu0 %v3420_v2 }
 0x316   :  { %10280 = vmatprep.subr.mxu0 %v3419_v42 }
 0x317   :  { %3824 = vmatmul.mubr.f32.gmra.mxu0 %v12552_v41  ;;  %v3416_v41 = vld [vmem:[%s16417_s5 + $0x428] sm:$0xff] }
 0x318   :  { %3964 = vmatmul.mubr.f32.gmra.mxu1 %v12698_v31  ;;  %3828 = vmatprep.mubr.f32.mxu0 %v12737_v0  ;;  %v4232_v31 = vld [vmem:[%s16419_s7 + $0xc8] sm:$0xff]  ;;  %v4253_v0 = vld [vmem:[%s16419_s7 + $0x170] sm:$0xff] }
 0x319   :  { %10281 = vmatpush3.msra.mxu0 %v3419_v42  ;;  %3968 = vmatprep.mubr.f32.mxu1 %v3082_v20  ;;  %v4265_v42 = vld [vmem:[%s16419_s7 + $0x1d0] sm:$0xff] }
 0x31a   :  { %10282 = vmatprep.subr.mxu0 %v3418_v30 }
 0x31b   :  { %3829 = vmatmul.mubr.f32.gmra.mxu0 %v12595_v59  ;;  %v3415_v59 = vld [vmem:[%s16417_s5 + $0x420] sm:$0xff] }
 0x31c   :  { %3969 = vmatmul.mubr.f32.gmra.mxu1 %v12707_v48  ;;  %3833 = vmatprep.mubr.f32.mxu0 %v12754_v51 }
 0x31d   :  { %3973 = vmatprep.mubr.f32.mxu1 %v12582_v40  ;;  %10283 = vmatpush3.msra.mxu0 %v3418_v30  ;;  %v4228_v30 = vld [vmem:[%s16419_s7 + $0xa8] sm:$0xff] }
 0x31e   :  { %10284 = vmatprep.subr.mxu0 %v3417_v21 }
 0x31f   :  { %3834 = vmatmul.mubr.f32.gmra.mxu0 %v12582_v40  ;;  %v3414_v40 = vld [vmem:[%s16417_s5 + $0x418] sm:$0xff] }
 0x320   :  { %3974 = vmatmul.mubr.f32.gmra.mxu1 %v12727_v62  ;;  %3838 = vmatprep.mubr.f32.mxu0 %v12762_v24  ;;  %v12977_v62 = vld [vmem:[%s16418_s6] ss:$0 sm:$0xff] }
 0x321   :  { %3978 = vmatprep.mubr.f32.mxu1 %v12622_v22  ;;  %10285 = vmatpush3.msra.mxu0 %v3417_v21  ;;  %v4249_v21 = vld [vmem:[%s16419_s7 + $0x150] sm:$0xff] }
 0x322   :  { %10286 = vmatprep.subr.mxu0 %v3416_v41 }
 0x323   :  { %3839 = vmatmul.mubr.f32.gmra.mxu0 %v12622_v22  ;;  %v3026_v22 = vld [vmem:[#allocation2 + $0x122] sm:$0xff] }
 0x324   :  { %3979 = vmatmul.mubr.f32.gmra.mxu1 %v12744_v37  ;;  %3843 = vmatprep.mubr.f32.mxu0 %v12770_v33  ;;  %v4268_v37 = vld [vmem:[%s16419_s7 + $0x1e8] sm:$0xff] }
 0x325   :  { %3983 = vmatprep.mubr.f32.mxu1 %v12610_v29  ;;  %10287 = vmatpush3.msra.mxu0 %v3416_v41 }
 0x326   :  { %10288 = vmatprep.subr.mxu0 %v3415_v59 }
 0x327   :  { %3844 = vmatmul.mubr.f32.gmra.mxu0 %v12610_v29  ;;  %v3412_v29 = vld [vmem:[%s16417_s5 + $0x408] sm:$0xff] }
 0x328   :  { %3984 = vmatmul.mubr.f32.gmra.mxu1 %v12758_v38  ;;  %3848 = vmatprep.mubr.f32.mxu0 %v12778_v46  ;;  %v4252_v38 = vld [vmem:[%s16419_s7 + $0x168] sm:$0xff] }
 0x329   :  { %3988 = vmatprep.mubr.f32.mxu1 %v12645_v27  ;;  %10289 = vmatpush3.msra.mxu0 %v3415_v59 }
 0x32a   :  { %10290 = vmatprep.subr.mxu0 %v3414_v40 }
 0x32b   :  { %3849 = vmatmul.mubr.f32.gmra.mxu0 %v12645_v27  ;;  %v3114_v27 = vld [vmem:[#allocation2 + $0x92] sm:$0xff] }
 0x32c   :  { %3989 = vmatmul.mubr.f32.gmra.mxu1 %v12766_v6  ;;  %3853 = vmatprep.mubr.f32.mxu0 %v12786_v4 }
 0x32d   :  { %3993 = vmatprep.mubr.f32.mxu1 %v12634_v25  ;;  %10291 = vmatpush3.msra.mxu0 %v3414_v40  ;;  %v4264_v40 = vld [vmem:[%s16419_s7 + $0x1c8] sm:$0xff] }
 0x32e   :  { %10292 = vmatprep.subr.mxu0 %v3413_v36 }
 0x32f   :  { %3854 = vmatmul.mubr.f32.gmra.mxu0 %v12634_v25  ;;  %v3090_v25 = vld [vmem:[#allocation2 + $0x131] sm:$0xff] }
 0x330   :  { %3994 = vmatmul.mubr.f32.gmra.mxu1 %v12774_v16  ;;  %3858 = vmatprep.mubr.f32.mxu0 %v12793_v17  ;;  %v4267_v16 = vld [vmem:[%s16419_s7 + $0x1e0] sm:$0xff] }
 0x331   :  { %3998 = vmatprep.mubr.f32.mxu1 %v12668_v26  ;;  %10293 = vmatpush3.msra.mxu0 %v3413_v36 }
 0x332   :  { %10294 = vmatprep.subr.mxu0 %v3412_v29 }
 0x333   :  { %3859 = vmatmul.mubr.f32.gmra.mxu0 %v12668_v26  ;;  %v4236_v26 = vld [vmem:[%s16419_s7 + $0xe8] sm:$0xff] }
 0x334   :  { %3999 = vmatmul.mubr.f32.gmra.mxu1 %v12782_v54  ;;  %3863 = vmatprep.mubr.f32.mxu0 %v3026_v22  ;;  %v4229_v54 = vld [vmem:[%s16419_s7 + $0xb0] sm:$0xff] }
 0x335   :  { %4003 = vmatprep.mubr.f32.mxu1 %v12657_v13  ;;  %10295 = vmatpush3.msra.mxu0 %v3412_v29 }
 0x336   :  { %10296 = vmatprep.subr.mxu0 %v3411_v34 }
 0x337   :  { %3864 = vmatmul.mubr.f32.gmra.mxu0 %v12657_v13  ;;  %v4237_v13 = vld [vmem:[%s16419_s7 + $0xf0] sm:$0xff] }
 0x338   :  { %4004 = vmatmul.mubr.f32.gmra.mxu1 %v12789_v1  ;;  %10297 = vmatpush3.msra.mxu0 %v3411_v34  ;;  %v4248_v34 = vld [vmem:[%s16419_s7 + $0x148] sm:$0xff] }
 0x339   :  { %10298 = vmatprep.mubr.f32.mxu0 %v12605_v60  ;;  %4008 = vmatprep.mubr.f32.mxu1 %v3090_v25  ;;  %v3122_v60 = vld [vmem:[#allocation2 + $0x132] sm:$0xff] }
 0x33a   :  { %9069 = vmatprep.subr.mxu0 %v4270_v28 }
 0x33b   :  { %10299 = vmatmul.mubr.f32.vlgmr.msra.gmra.mxu0 %v12629_v63  ;;  %v4238_v63 = vld [vmem:[%s16419_s7 + $0xf8] sm:$0xff] }
 0x33c   :  { %4009 = vmatmul.mubr.f32.gmra.mxu1 %v12707_v48  ;;  %10301 = vmatprep.mubr.f32.mxu0 %v12652_v12  ;;  %v4222_v12 = vld [vmem:[%s16419_s7 + $0x78] sm:$0xff]  ;;  %v4231_v48 = vld [vmem:[%s16419_s7 + $0xc0] sm:$0xff] }
 0x33d   :  { %9034 = vmatprep.subr.mxu1 %v4238_v63  ;;  %9070 = vmatpush3.msra.mxu0 %v4254_v7  ;;  %v4263_v63 = vld [vmem:[%s16419_s7 + $0x1c0] sm:$0xff]  ;;  %v4226_v7 = vld [vmem:[%s16419_s7 + $0x98] sm:$0xff] }
 0x33e   :  { %9035 = vmatpush3.msra.mxu1 %v4222_v12  ;;  %9071 = vmatprep.subr.mxu0 %v4269_v45 }
 0x33f   :  { %10302 = vmatmul.mubr.f32.gmra.mxu0 %v12675_v10  ;;  %9036 = vmatprep.subr.mxu1 %v4237_v13  ;;  %v4220_v10 = vld [vmem:[%s16419_s7 + $0x68] sm:$0xff]  ;;  %v4227_v13 = vld [vmem:[%s16419_s7 + $0xa0] sm:$0xff] }
 0x340   :  { %10304 = vmatprep.mubr.f32.mxu0 %v12692_v47  ;;  %9037 = vmatpush3.msra.mxu1 %v4221_v55  ;;  %v4233_v47 = vld [vmem:[%s16419_s7 + $0xd0] sm:$0xff]  ;;  %v4247_v55 = vld [vmem:[%s16419_s7 + $0x140] sm:$0xff] }
 0x341   :  { %9038 = vmatprep.subr.mxu1 %v4236_v26  ;;  %9072 = vmatpush3.msra.mxu0 %v4253_v0 }
 0x342   :  { %9039 = vmatpush3.msra.mxu1 %v4220_v10  ;;  %9073 = vmatprep.subr.mxu0 %v4268_v37  ;;  %v4210_v37 = vld [vmem:[%s16419_s7 + $0x18] sm:$0xff] }
 0x343   :  { %10305 = vmatmul.mubr.f32.gmra.mxu0 %v12710_v56  ;;  %9040 = vmatprep.subr.mxu1 %v4235_v8  ;;  %v8715_v56 = vpop.f32.mrf.mxu0  ;;  %v4262_v8 = vld [vmem:[%s16419_s7 + $0x1b8] sm:$0xff] }
 0x344   :  { %10307 = vmatprep.mubr.f32.mxu0 %v12839_v14  ;;  %9041 = vmatpush3.msra.mxu1 %v4219_v18  ;;  %v8716_v44 = vadd.f32 %v8715_v56, %v8714_v11  ;;  %v4245_v56 = vld [vmem:[%s16419_s7 + $0x130] sm:$0xff] }
 0x345   :  { %9042 = vmatprep.subr.mxu1 %v4234_v23  ;;  %9074 = vmatpush3.msra.mxu0 %v4252_v38 }
 0x346   :  { %9043 = vmatpush3.msra.mxu1 %v4218_v53  ;;  %9075 = vmatprep.subr.mxu0 %v4267_v16  ;;  %v4211_v53 = vld [vmem:[%s16419_s7 + $0x20] sm:$0xff] }
 0x347   :  { %10308 = vmatmul.mubr.f32.gmra.mxu0 %v3114_v27  ;;  %9044 = vmatprep.subr.mxu1 %v4233_v47  ;;  %v4246_v47 = vld [vmem:[%s16419_s7 + $0x138] sm:$0xff] }
 0x348   :  { %10310 = vmatprep.mubr.f32.mxu0 %v12754_v51  ;;  %9045 = vmatpush3.msra.mxu1 %v4217_v43  ;;  %v4214_v51 = vld [vmem:[%s16419_s7 + $0x38] sm:$0xff] }
 0x349   :  { %9046 = vmatprep.subr.mxu1 %v4232_v31 }
 0x34a   :  { %9047 = vmatpush3.msra.mxu1 %v4216_v32  ;;  %v4261_v32 = vld [vmem:[%s16419_s7 + $0x1b0] sm:$0xff] }
 0x34b   :  { %10311 = vmatmul.mubr.f32.gmra.mxu0 %v12762_v24  ;;  %9048 = vmatprep.subr.mxu1 %v4231_v48  ;;  %v3501_v24 = vadd.f32 %v8716_v44, %v12977_v62  ;;  %v4260_v44 = vld [vmem:[%s16419_s7 + $0x1a8] sm:$0xff] }
 0x34c   :  { %10313 = vmatprep.mubr.f32.mxu0 %v12770_v33  ;;  %9049 = vmatpush3.msra.mxu1 %v4215_v15 }
 0x34d   :  { %9050 = vmatprep.subr.mxu1 %v4230_v35 }
 0x34e   :  { %9051 = vmatpush3.msra.mxu1 %v4214_v51  ;;  %v4243_v51 = vld [vmem:[%s16419_s7 + $0x120] sm:$0xff] }
 0x34f   :  { %10314 = vmatmul.mubr.f32.gmra.mxu0 %v12778_v46  ;;  %9052 = vmatprep.subr.mxu1 %v4229_v54  ;;  %v4209_v54 = vld [vmem:[%s16419_s7 + $0x10] sm:$0xff] }
 0x350   :  { %10316 = vmatprep.mubr.f32.mxu0 %v12786_v4  ;;  %v4251_v4 = vld [vmem:[%s16419_s7 + $0x160] sm:$0xff]  ;;  %9053 = vmatpush3.msra.mxu1 %v4213_v57  ;;  %v4257_v57 = vld [vmem:[%s16419_s7 + $0x190] sm:$0xff] }
 0x351   :  { %9076 = vmatpush3.msra.mxu0 %v4251_v4  ;;  %9054 = vmatprep.subr.mxu1 %v4228_v30  ;;  %v4242_v4 = vld [vmem:[%s16419_s7 + $0x118] sm:$0xff]  ;;  %v4256_v30 = vld [vmem:[%s16419_s7 + $0x188] sm:$0xff] }
 0x352   :  { %9077 = vmatprep.subr.mxu0 %v4266_v5 }
 0x353   :  { %10317 = vmatmul.mubr.f32.gmra.mxu0 %v12793_v17 }
 0x354   :  { %10319 = vmatprep.mubr.f32.mxu0 %v3026_v22  ;;  %9078 = vmatpush3.msra.mxu0 %v4250_v50  ;;  %v4212_v22 = vld [vmem:[%s16419_s7 + $0x28] sm:$0xff] }
 0x355   :  { %9079 = vmatprep.subr.mxu0 %v4265_v42  ;;  %9055 = vmatpush3.msra.mxu1 %v4212_v22 }
 0x356   :  { %9080 = vmatpush3.msra.mxu0 %v4249_v21  ;;  %9056 = vmatprep.subr.mxu1 %v4227_v13 }
 0x357   :  { %10320 = vmatmul.mubr.f32.gmra.mxu0 %v3122_v60  ;;  %9081 = vmatprep.subr.mxu0 %v4264_v40  ;;  %v4207_v40 = vld [vmem:[%s16419_s7] sm:$0xff] }
 0x358   :  { %9082 = vmatpush3.msra.mxu0 %v4248_v34  ;;  %9057 = vmatpush3.msra.mxu1 %v4211_v53  ;;  %v4334_v53 = vld [vmem:[%s16419_s7 + $0x3f8] sm:$0xff] }
 0x359   :  { %9083 = vmatprep.subr.mxu0 %v4263_v63  ;;  %9058 = vmatprep.subr.mxu1 %v4226_v7  ;;  %v4239_v63 = vld [vmem:[%s16419_s7 + $0x100] sm:$0xff] }
 0x35a   :  { %9084 = vmatpush3.msra.mxu0 %v4247_v55  ;;  %9059 = vmatpush3.msra.mxu1 %v4210_v37 }
 0x35b   :  { %9085 = vmatprep.subr.mxu0 %v4262_v8 }
 0x35c   :  { %9086 = vmatpush3.msra.mxu0 %v4246_v47 }
 0x35d   :  { %9087 = vmatprep.subr.mxu0 %v4261_v32 }
 0x35e   :  { %9088 = vmatpush3.msra.mxu0 %v4245_v56 }
 0x35f   :  { %9089 = vmatprep.subr.mxu0 %v4260_v44 }
 0x37f   :  { %v8717_v9 = vpop.f32.mrf.mxu0 }
 0x380   :  { %v8794_v49 = vpop.f32.mrf.mxu1 }
 0x381   :  { %v8718_v19 = vpop.f32.mrf.mxu0 }
 0x382   :  { %v8719_v61 = vadd.f32 %v8718_v19, %v8717_v9  ;;  %v8795_v3 = vpop.f32.mrf.mxu1 }
 0x383   :  { %v8796_v6 = vadd.f32 %v8795_v3, %v8794_v49  ;;  %v8720_v33 = vpop.f32.mrf.mxu0  ;;  %v4244_v49 = vld [vmem:[%s16419_s7 + $0x128] sm:$0xff] }
 0x384   :  { %v8797_v46 = vpop.f32.mrf.mxu1  ;;  %v3506_v39 = vadd.f32 %v8719_v61, %v12977_v62  ;;  %9090 = vmatpush3.msra.mxu0 %v4244_v49  ;;  %v4259_v61 = vld [vmem:[%s16419_s7 + $0x1a0] sm:$0xff] }
 0x385   :  { %v13004_v1 = vadd.f32 %v8796_v6, %v3501_v24  ;;  %v8721_v17 = vpop.f32.mrf.mxu0  ;;  %9091 = vmatprep.subr.mxu0 %v4259_v61  ;;  %v4225_v6 = vld [vmem:[%s16419_s7 + $0x90] sm:$0xff] }
 0x386   :  { %v8722_v52 = vadd.f32 %v8721_v17, %v8720_v33  ;;  %v8798_v58 = vpop.f32.mrf.mxu1  ;;  %9092 = vmatpush3.msra.mxu0 %v4243_v51  ;;  %v4258_v33 = vld [vmem:[%s16419_s7 + $0x198] sm:$0xff]  ;;  %9060 = vmatprep.subr.mxu1 %v4225_v6 }
 0x387   :  { %v8799_v2 = vadd.f32 %v8798_v58, %v8797_v46  ;;  %v8723_v14 = vpop.f32.mrf.mxu0  ;;  %9093 = vmatprep.subr.mxu0 %v4258_v33  ;;  %9061 = vmatpush3.msra.mxu1 %v4209_v54  ;;  %v4224_v58 = vld [vmem:[%s16419_s7 + $0x88] sm:$0xff] }
 0x388   :  { %v8800_v20 = vpop.f32.mrf.mxu1  ;;  %v3511_v25 = vadd.f32 %v8722_v52, %v12977_v62  ;;  %9094 = vmatpush3.msra.mxu0 %v4242_v4  ;;  %9062 = vmatprep.subr.mxu1 %v4224_v58 }
 0x389   :  { %v13025_v41 = vadd.f32 %v8799_v2, %v3506_v39  ;;  %v8724_v59 = vpop.f32.mrf.mxu0  ;;  %v4208_v39 = vld [vmem:[%s16419_s7 + $0x8] sm:$0xff]  ;;  %9095 = vmatprep.subr.mxu0 %v4257_v57  ;;  %v4241_v2 = vld [vmem:[%s16419_s7 + $0x110] sm:$0xff] }
 0x38a   :  { %v8725_v36 = vadd.f32 %v8724_v59, %v8723_v14  ;;  %v8801_v29 = vpop.f32.mrf.mxu1  ;;  %9063 = vmatpush3.msra.mxu1 %v4208_v39  ;;  %9096 = vmatpush3.msra.mxu0 %v4241_v2 }
 0x38b   :  { %v8802_v27 = vadd.f32 %v8801_v29, %v8800_v20  ;;  %v8726_v60 = vpop.f32.mrf.mxu0  ;;  %v4223_v20 = vld [vmem:[%s16419_s7 + $0x80] sm:$0xff]  ;;  %9097 = vmatprep.subr.mxu0 %v4256_v30 }
 0x38c   :  { %v8803_v12 = vpop.f32.mrf.mxu1  ;;  %v3516_v43 = vadd.f32 %v8725_v36, %v12977_v62  ;;  %9064 = vmatprep.subr.mxu1 %v4223_v20  ;;  %v4240_v36 = vld [vmem:[%s16419_s7 + $0x108] sm:$0xff] }
 0x38d   :  { %v13046_v26 = vadd.f32 %v8802_v27, %v3511_v25  ;;  %v8727_v10 = vpop.f32.mrf.mxu0  ;;  %9065 = vmatpush3.msra.mxu1 %v4207_v40  ;;  %9098 = vmatpush3.msra.mxu0 %v4240_v36  ;;  %v4255_v25 = vld [vmem:[%s16419_s7 + $0x180] sm:$0xff]  ;;  %v4302_v27 = vld [vmem:[%s16419_s7 + $0x2f8] sm:$0xff] }
 0x38e   :  { %v8728_v18 = vadd.f32 %v8727_v10, %v8726_v60  ;;  %v8804_v23 = vpop.f32.mrf.mxu1  ;;  %9099 = vmatprep.subr.mxu0 %v4255_v25  ;;  %9104 = vmatprep.subr.mxu1 %v4302_v27 }
 0x38f   :  { %v8805_v31 = vadd.f32 %v8804_v23, %v8803_v12  ;;  %v8729_v11 = vpop.f32.mrf.mxu0  ;;  %9100 = vmatpush3.msra.mxu0 %v4239_v63 }
 0x390   :  { %v8806_v48 = vpop.f32.mrf.mxu1  ;;  %v3521_v35 = vadd.f32 %v8728_v18, %v12977_v62  ;;  %9139 = vmatprep.subr.mxu0 %v4334_v53 }
 0x391   :  { %v13064_v15 = vadd.f32 %v8805_v31, %v3516_v43  ;;  %v8730_v28 = vpop.f32.mrf.mxu0 }
 0x392   :  { %v8731_v9 = vadd.f32 %v8730_v28, %v8729_v11  ;;  %v8807_v45 = vpop.f32.mrf.mxu1 }
 0x393   :  { %v8808_v0 = vadd.f32 %v8807_v45, %v8806_v48  ;;  %v8732_v19 = vpop.f32.mrf.mxu0 }
 0x394   :  { %v8809_v3 = vpop.f32.mrf.mxu1  ;;  %v3526_v17 = vadd.f32 %v8731_v9, %v12977_v62 }
 0x395   :  { %v13085_v38 = vadd.f32 %v8808_v0, %v3521_v35  ;;  %v8733_v24 = vpop.f32.mrf.mxu0 }
 0x396   :  { %v8734_v16 = vadd.f32 %v8733_v24, %v8732_v19  ;;  %v8810_v46 = vpop.f32.mrf.mxu1 }
 0x397   :  { %v8811_v5 = vadd.f32 %v8810_v46, %v8809_v3  ;;  %v8735_v52 = vpop.f32.mrf.mxu0 }
 0x398   :  { %v8812_v50 = vpop.f32.mrf.mxu1  ;;  %v3531_v29 = vadd.f32 %v8734_v16, %v12977_v62 }
 0x399   :  { %v13112_v14 = vadd.f32 %v8811_v5, %v3526_v17  ;;  %v8736_v42 = vpop.f32.mrf.mxu0 }
 0x39a   :  { %v8737_v21 = vadd.f32 %v8736_v42, %v8735_v52  ;;  %v8813_v59 = vpop.f32.mrf.mxu1 }
 0x39b   :  { %v8814_v22 = vadd.f32 %v8813_v59, %v8812_v50  ;;  %v8738_v34 = vpop.f32.mrf.mxu0 }
 0x39c   :  { %v8815_v60 = vpop.f32.mrf.mxu1  ;;  %v3536_v8 = vadd.f32 %v8737_v21, %v12977_v62 }
 0x39d   :  { %v13136_v12 = vadd.f32 %v8814_v22, %v3531_v29  ;;  %v8739_v13 = vpop.f32.mrf.mxu0 }
 0x39e   :  { %v13138_v55 = vadd.f32 %v8739_v13, %v8738_v34  ;;  %v8816_v10 = vpop.f32.mrf.mxu1 }
 0x39f   :  { %v8817_v18 = vadd.f32 %v8816_v10, %v8815_v60  ;;  %v8741_v23 = vpop.f32.mrf.mxu0 }
 0x3a0   :  { %v13144_v47 = vpop.f32.mrf.mxu1 }
 0x3a1   :  { %v13146_v43 = vadd.f32 %v8817_v18, %v3536_v8  ;;  %v8742_v31 = vpop.f32.mrf.mxu0 }
 0x3a2   :  { %v8743_v11 = vadd.f32 %v8742_v31, %v8741_v23  ;;  %v13148_v32 = vpop.f32.mrf.mxu1 }
 0x3a3   :  { %v8744_v48 = vpop.f32.mrf.mxu0 }
 0x3a4   :  { %v8821_v56 = vpop.f32.mrf.mxu1  ;;  %v3546_v9 = vadd.f32 %v8743_v11, %v12977_v62 }
 0x3a5   :  { %v8745_v28 = vpop.f32.mrf.mxu0 }
 0x3a6   :  { %v8746_v7 = vadd.f32 %v8745_v28, %v8744_v48  ;;  %v8822_v44 = vpop.f32.mrf.mxu1 }
 0x3a7   :  { %v8823_v45 = vadd.f32 %v8822_v44, %v8821_v56  ;;  %v8747_v49 = vpop.f32.mrf.mxu0 }
 0x3a8   :  { %v8824_v35 = vpop.f32.mrf.mxu1  ;;  %v3551_v3 = vadd.f32 %v8746_v7, %v12977_v62 }
 0x3a9   :  { %v13151_v0 = vadd.f32 %v8823_v45, %v3546_v9  ;;  %v8748_v19 = vpop.f32.mrf.mxu0 }
 0x3aa   :  { %v8749_v37 = vadd.f32 %v8748_v19, %v8747_v49  ;;  %v8825_v61 = vpop.f32.mrf.mxu1 }
 0x3ab   :  { %v8826_v51 = vadd.f32 %v8825_v61, %v8824_v35  ;;  %v8750_v24 = vpop.f32.mrf.mxu0 }
 0x3ac   :  { %v8827_v6 = vpop.f32.mrf.mxu1  ;;  %v3556_v4 = vadd.f32 %v8749_v37, %v12977_v62 }
 0x3ad   :  { %v13154_v33 = vadd.f32 %v8826_v51, %v3551_v3  ;;  %v8751_v16 = vpop.f32.mrf.mxu0 }
 0x3ae   :  { %v8752_v46 = vadd.f32 %v8751_v16, %v8750_v24  ;;  %v8828_v54 = vpop.f32.mrf.mxu1 }
 0x3af   :  { %v8829_v17 = vadd.f32 %v8828_v54, %v8827_v6  ;;  %v8753_v5 = vpop.f32.mrf.mxu0 }
 0x3b0   :  { %v8830_v52 = vpop.f32.mrf.mxu1  ;;  %v3561_v2 = vadd.f32 %v8752_v46, %v12977_v62 }
 0x3b1   :  { %v13157_v58 = vadd.f32 %v8829_v17, %v3556_v4  ;;  %v8754_v57 = vpop.f32.mrf.mxu0 }
 0x3b2   :  { %v8755_v50 = vadd.f32 %v8754_v57, %v8753_v5  ;;  %v8831_v39 = vpop.f32.mrf.mxu1 }
 0x3b3   :  { %v8832_v42 = vadd.f32 %v8831_v39, %v8830_v52  ;;  %v8756_v20 = vpop.f32.mrf.mxu0 }
 0x3b4   :  { %v8833_v30 = vpop.f32.mrf.mxu1  ;;  %v3566_v29 = vadd.f32 %v8755_v50, %v12977_v62 }
 0x3b5   :  { %v13160_v21 = vadd.f32 %v8832_v42, %v3561_v2  ;;  %v8757_v59 = vpop.f32.mrf.mxu0 }
 0x3b6   :  { %v8758_v40 = vadd.f32 %v8757_v59, %v8756_v20  ;;  %v8834_v36 = vpop.f32.mrf.mxu1 }
 0x3b7   :  { %v8835_v22 = vadd.f32 %v8834_v36, %v8833_v30  ;;  %v8759_v34 = vpop.f32.mrf.mxu0 }
 0x3b8   :  { %v8836_v25 = vpop.f32.mrf.mxu1  ;;  %v3571_v10 = vadd.f32 %v8758_v40, %v12977_v62 }
 0x3b9   :  { %v13163_v27 = vadd.f32 %v8835_v22, %v3566_v29  ;;  %v8760_v60 = vpop.f32.mrf.mxu0 }
 0x3ba   :  { %v8761_v63 = vadd.f32 %v8760_v60, %v8759_v34  ;;  %v8837_v13 = vpop.f32.mrf.mxu1 }
 0x3bb   :  { %v8838_v8 = vadd.f32 %v8837_v13, %v8836_v25  ;;  %v8874_v18 = vpop.f32.mrf.mxu0 }
 0x3bc   :  { %v8839_v23 = vpop.f32.mrf.mxu1  ;;  %v3576_v56 = vadd.f32 %v8761_v63, %v12977_v62 }
 0x3bd   :  { %v13166_v53 = vadd.f32 %v8838_v8, %v3571_v10  ;;  %v8875_v31 = vpop.f32.mrf.mxu0 }
 0x3be   :  { %v8840_v11 = vpop.f32.mrf.mxu1  ;;  %v8876_v48 = vadd.f32 %v8875_v31, %v8874_v18 }
 0x3bf   :  { %v8841_v28 = vadd.f32 %v8840_v11, %v8839_v23  ;;  %v8877_v7 = vpop.f32.mrf.mxu0 }
 0x3c0   :  { %v13170_v44 = vadd.f32 %v8876_v48, %v13004_v1  ;;  %v13172_v9 = vpop.f32.mrf.mxu1 }
 0x3c1   :  { %v13174_v45 = vadd.f32 %v8841_v28, %v3576_v56  ;;  %v8878_v49 = vpop.f32.mrf.mxu0 }
 0x3c2   :  { %v8879_v35 = vadd.f32 %v8878_v49, %v8877_v7  ;;  %v13176_v19 = vpop.f32.mrf.mxu1 }
 0x3c3   :  { %v8880_v37 = vpop.f32.mrf.mxu0 }
 0x3c4   :  { %v3796_v61 = vadd.f32 %v8879_v35, %v13025_v41  ;;  %v8957_v3 = vpop.f32.mrf.mxu1 }
 0x3c5   :  { %v8881_v51 = vpop.f32.mrf.mxu0 }
 0x3c6   :  { %v8882_v24 = vadd.f32 %v8881_v51, %v8880_v37  ;;  %v8958_v6 = vpop.f32.mrf.mxu1 }
 0x3c7   :  { %v8959_v16 = vadd.f32 %v8958_v6, %v8957_v3  ;;  %v8883_v46 = vpop.f32.mrf.mxu0 }
 0x3c8   :  { %v3801_v1 = vadd.f32 %v8882_v24, %v13046_v26  ;;  %v8960_v54 = vpop.f32.mrf.mxu1 }
 0x3c9   :  { %v8884_v4 = vpop.f32.mrf.mxu0  ;;  %v13180_v17 = vadd.f32 %v8959_v16, %v3796_v61 }
 0x3ca   :  { %v8885_v5 = vadd.f32 %v8884_v4, %v8883_v46  ;;  %v8961_v52 = vpop.f32.mrf.mxu1 }
 0x3cb   :  { %v8962_v57 = vadd.f32 %v8961_v52, %v8960_v54  ;;  %v8886_v50 = vpop.f32.mrf.mxu0 }
 0x3cc   :  { %v3806_v39 = vadd.f32 %v8885_v5, %v13064_v15  ;;  %v8963_v2 = vpop.f32.mrf.mxu1 }
 0x3cd   :  { %v8887_v41 = vpop.f32.mrf.mxu0  ;;  %v13183_v42 = vadd.f32 %v8962_v57, %v3801_v1 }
 0x3ce   :  { %v8888_v20 = vadd.f32 %v8887_v41, %v8886_v50  ;;  %v8964_v30 = vpop.f32.mrf.mxu1 }
 0x3cf   :  { %v8965_v59 = vadd.f32 %v8964_v30, %v8963_v2  ;;  %v8889_v40 = vpop.f32.mrf.mxu0 }
 0x3d0   :  { %v3811_v26 = vadd.f32 %v8888_v20, %v13085_v38  ;;  %v8966_v36 = vpop.f32.mrf.mxu1 }
 0x3d1   :  { %v8890_v29 = vpop.f32.mrf.mxu0  ;;  %v13186_v22 = vadd.f32 %v8965_v59, %v3806_v39 }
 0x3d2   :  { %v8891_v34 = vadd.f32 %v8890_v29, %v8889_v40  ;;  %v8967_v25 = vpop.f32.mrf.mxu1 }
 0x3d3   :  { %v8968_v60 = vadd.f32 %v8967_v25, %v8966_v36  ;;  %v8892_v63 = vpop.f32.mrf.mxu0 }
 0x3d4   :  { %v3816_v15 = vadd.f32 %v8891_v34, %v13112_v14  ;;  %v8969_v13 = vpop.f32.mrf.mxu1 }
 0x3d5   :  { %v8893_v10 = vpop.f32.mrf.mxu0  ;;  %v13189_v8 = vadd.f32 %v8968_v60, %v3811_v26 }
 0x3d6   :  { %v8894_v18 = vadd.f32 %v8893_v10, %v8892_v63  ;;  %v8970_v23 = vpop.f32.mrf.mxu1 }
 0x3d7   :  { %v8971_v31 = vadd.f32 %v8970_v23, %v8969_v13  ;;  %v8895_v11 = vpop.f32.mrf.mxu0 }
 0x3d8   :  { %v3821_v38 = vadd.f32 %v8894_v18, %v13136_v12  ;;  %v8972_v48 = vpop.f32.mrf.mxu1 }
 0x3d9   :  { %v8896_v56 = vpop.f32.mrf.mxu0  ;;  %v13192_v28 = vadd.f32 %v8971_v31, %v3816_v15 }
 0x3da   :  { %v8897_v7 = vadd.f32 %v8896_v56, %v8895_v11  ;;  %v8973_v49 = vpop.f32.mrf.mxu1 }
 0x3db   :  { %v8974_v35 = vadd.f32 %v8973_v49, %v8972_v48  ;;  %v8898_v37 = vpop.f32.mrf.mxu0 }
 0x3dc   :  { %v3826_v14 = vadd.f32 %v8897_v7, %v13146_v43  ;;  %v8975_v61 = vpop.f32.mrf.mxu1 }
 0x3dd   :  { %v8899_v3 = vpop.f32.mrf.mxu0  ;;  %v13195_v51 = vadd.f32 %v8974_v35, %v3821_v38 }
 0x3de   :  { %v8976_v24 = vpop.f32.mrf.mxu1 }
 0x3df   :  { %v8977_v6 = vadd.f32 %v8976_v24, %v8975_v61  ;;  %v8901_v16 = vpop.f32.mrf.mxu0 }
 0x3e0   :  { %v8978_v46 = vpop.f32.mrf.mxu1 }
 0x3e1   :  { %v8902_v1 = vpop.f32.mrf.mxu0  ;;  %v13197_v12 = vadd.f32 %v8977_v6, %v3826_v14  ;;  %v10351_v6 = vmov 1966171168  }
 0x3e2   :  { %v8903_v54 = vadd.f32 %v8902_v1, %v8901_v16  ;;  %v8979_v4 = vpop.f32.mrf.mxu1  ;;  %v5257_v16 = vunpack.c.l.s4 %v10351_v6 }
 0x3e3   :  { %v8904_v5 = vpop.f32.mrf.mxu0 }
 0x3e4   :  { %v13200_v52 = vadd.f32 %v8903_v54, %v13151_v0  ;;  %v8981_v57 = vpop.f32.mrf.mxu1  ;;  %v5259_v54 = vlaneseq }
 0x3e5   :  { %v8905_v50 = vpop.f32.mrf.mxu0 }
 0x3e6   :  { %v8906_v43 = vadd.f32 %v8905_v50, %v8904_v5  ;;  %v8982_v39 = vpop.f32.mrf.mxu1  ;;  %v8956_v5 = vadd.f32 %v13176_v19, %v13172_v9  ;;  %v3541_v50 = vadd.f32 %v13138_v55, %v12977_v62 }
 0x3e7   :  { %v8907_v2 = vpop.f32.mrf.mxu0 }
 0x3e8   :  { %v13203_v41 = vadd.f32 %v8906_v43, %v13154_v33  ;;  %v8984_v20 = vpop.f32.mrf.mxu1  ;;  %v8900_v43 = vadd.f32 %v8899_v3, %v8898_v37  ;;  %v3936_v9 = vadd.f32 %v8956_v5, %v13170_v44 }
 0x3e9   :  { %v8908_v30 = vpop.f32.mrf.mxu0 }
 0x3ea   :  { %v8909_v59 = vadd.f32 %v8908_v30, %v8907_v2  ;;  %v8985_v40 = vpop.f32.mrf.mxu1 }
 0x3eb   :  { %v8910_v26 = vpop.f32.mrf.mxu0 }
 0x3ec   :  { %v13206_v36 = vadd.f32 %v8909_v59, %v13157_v58  ;;  %v8987_v29 = vpop.f32.mrf.mxu1  ;;  %v5258_v59 = vunpack.c.0.s8 %v5257_v16 }
 0x3ed   :  { %v8911_v34 = vpop.f32.mrf.mxu0 }
 0x3ee   :  { %v8912_v0 = vadd.f32 %v8911_v34, %v8910_v26  ;;  %v8988_v25 = vpop.f32.mrf.mxu1  ;;  %v8980_v34 = vadd.f32 %v8979_v4, %v8978_v46 }
 0x3ef   :  { %v8913_v60 = vpop.f32.mrf.mxu0  ;;  %v8989_v62 = vadd.f32 %v8988_v25, %v8987_v29 }
 0x3f0   :  { %v13209_v63 = vadd.f32 %v8912_v0, %v13160_v21  ;;  %v8990_v15 = vpop.f32.mrf.mxu1  ;;  %v5260_v0 = vshrl.u32 %v5259_v54, 7 }
 0x3f1   :  { %v8914_v13 = vpop.f32.mrf.mxu0 }
 0x3f2   :  { %v8915_v33 = vadd.f32 %v8914_v13, %v8913_v60  ;;  %v8991_v10 = vpop.f32.mrf.mxu1  ;;  %v8983_v60 = vadd.f32 %v8982_v39, %v8981_v57  ;;  %v8986_v13 = vadd.f32 %v8985_v40, %v8984_v20  ;;  %v3991_v40 = vadd.f32 %v8989_v62, %v13206_v36 }
 0x3f3   :  { %v8916_v18 = vpop.f32.mrf.mxu0  ;;  %v8992_v55 = vadd.f32 %v8991_v10, %v8990_v15 }
 0x3f4   :  { %v3856_v23 = vadd.f32 %v8915_v33, %v13163_v27  ;;  %v8993_v31 = vpop.f32.mrf.mxu1  ;;  %v8820_v27 = vadd.f32 %v13148_v32, %v13144_v47  ;;  %v3986_v57 = vadd.f32 %v8986_v13, %v13203_v41 }
 0x3f5   :  { %v8917_v11 = vpop.f32.mrf.mxu0  ;;  %v3996_v25 = vadd.f32 %v8992_v55, %v13209_v63 }
 0x3f6   :  { %v8918_v38 = vadd.f32 %v8917_v11, %v8916_v18  ;;  %v8994_v58 = vpop.f32.mrf.mxu1  ;;  %v3686_v26 = vadd.f32 %v8820_v27, %v3541_v50 }
 0x3f7   :  { %v8919_v48 = vpop.f32.mrf.mxu0  ;;  %v8995_v37 = vadd.f32 %v8994_v58, %v8993_v31 }
 0x3f8   :  { %v3861_v56 = vadd.f32 %v8918_v38, %v13166_v53  ;;  %v8996_v49 = vpop.f32.mrf.mxu1  ;;  %v13228_v38 = vsub.s32 %v5258_v59, %v5260_v0 }
 0x3f9   :  { %v8920_v7 = vpop.f32.mrf.mxu0  ;;  %v4001_v29 = vadd.f32 %v8995_v37, %v3856_v23 }
 0x3fa   :  { %v8921_v35 = vadd.f32 %v8920_v7, %v8919_v48  ;;  %v8997_v24 = vpop.f32.mrf.mxu1 }
 0x3fb   :  { %v10300_v14 = vpop.f32.mrf.mxu0  ;;  %v8998_v33 = vadd.f32 %v8997_v24, %v8996_v49 }
 0x3fc   :  { %v13214_v21 = vadd.f32 %v8921_v35, %v13174_v45  ;;  %v8999_v2 = vpop.f32.mrf.mxu1  ;;  %v4086_v47 = vadd.f32 %v10300_v14, %v13180_v17 }
 0x3fd   :  { %v4080_v61 = vpop.f32.mrf.mxu0  ;;  %v13238_v10 = vadd.f32 %v8998_v33, %v3861_v56 }
 0x3fe   :  { %v4081_v18 = vadd.f32 %v4080_v61, %v3936_v9  ;;  %v4176_v4 = vmul.f32 0.01, %v4086_v47  ;;  %vm4160_vm0 = vcmp.gt.f32.partialorder %v4086_v47, 0.0 }
 0x3ff   :  { %v10303_v1 = vpop.f32.mrf.mxu0 }
 0x400   :  { %v4096_v53 = vadd.f32 %v10303_v1, %v13186_v22  ;;  %v3831_v22 = vadd.f32 %v8900_v43, %v3686_v26  ;;  %vm4159_vm1 = vcmp.gt.f32.partialorder %v4081_v18, 0.0  ;;  %v13240_v31 = vsel %vm4160_vm0, %v4086_v47, %v4176_v4 }
 0x401   :  { %v4090_v45 = vpop.f32.mrf.mxu0  ;;  %vm7958_vm0 = vcmask 254976  }
 0x402   :  { %v4091_v30 = vadd.f32 %v4090_v45, %v13183_v42  ;;  %v9000_v42 = vpop.f32.mrf.mxu1  ;;  %v3976_v11 = vadd.f32 %v8980_v34, %v3831_v22  ;;  %vm4162_vm2 = vcmp.gt.f32.partialorder %v4096_v53, 0.0 }
 0x403   :  { %v10306_v32 = vpop.f32.mrf.mxu0  ;;  %v9001_v39 = vadd.f32 %v9000_v42, %v8999_v2 }
 0x404   :  { %v4106_v19 = vadd.f32 %v10306_v32, %v13192_v28  ;;  %v3981_v28 = vadd.f32 %v8983_v60, %v13200_v52  ;;  %v4177_v52 = vmul.f32 0.01, %v4091_v30  ;;  %vm4161_vm3 = vcmp.gt.f32.partialorder %v4091_v30, 0.0 }
 0x405   :  { %v4100_v3 = vpop.f32.mrf.mxu0  ;;  %v4011_v7 = vadd.f32 %v9001_v39, %v13214_v21 }
 0x406   :  { %v4101_v46 = vadd.f32 %v4100_v3, %v13189_v8  ;;  %v4175_v8 = vmul.f32 0.01, %v4081_v18  ;;  %v4180_v58 = vmul.f32 0.01, %v4106_v19  ;;  %vm4164_vm4 = vcmp.gt.f32.partialorder %v4106_v19, 0.0 }
 0x407   :  { %v10309_v17 = vpop.f32.mrf.mxu0  ;;  %v13246_v14 = vsel %vm4161_vm3, %v4091_v30, %v4177_v52 }
 0x408   :  { %v4116_v44 = vadd.f32 %v10309_v17, %v13197_v12  ;;  %v4178_v12 = vmul.f32 0.01, %v4096_v53  ;;  %vm4163_vm5 = vcmp.gt.f32.partialorder %v4101_v46, 0.0  ;;  %v4179_v23 = vmul.f32 0.01, %v4101_v46 }
 0x409   :  { %v4110_v20 = vpop.f32.mrf.mxu0  ;;  %v4191_v49 = vsel %vm4159_vm1, %v4081_v18, %v4175_v8  ;;  %v13248_v61 = vsel %vm4164_vm4, %v4106_v19, %v4180_v58  ;;  %v4286_v8 = vld [vmem:[%s16419_s7 + $0x278] sm:$0xff]  ;;  %v4301_v58 = vld [vmem:[%s16419_s7 + $0x2f0] sm:$0xff] }
 0x40a   :  { %v13236_v15 = vadd.f32 %v4110_v20, %v13195_v51  ;;  %v4182_v63 = vmul.f32 0.01, %v4116_v44  ;;  %vm4166_vm6 = vcmp.gt.f32.partialorder %v4116_v44, 0.0  ;;  %v13244_v35 = vsel %vm4162_vm2, %v4096_v53, %v4178_v12 }
 0x40b   :  { %v10312_v41 = vpop.f32.mrf.mxu0  ;;  %v13251_v1 = vsel %vm4163_vm5, %v4101_v46, %v4179_v23 }
 0x40c   :  { %v4126_v36 = vadd.f32 %v10312_v41, %v3981_v28  ;;  %v13253_v21 = vsel %vm4166_vm6, %v4116_v44, %v4182_v63  ;;  %vm4165_vm10 = vcmp.gt.f32.partialorder %v13236_v15, 0.0  ;;  %v4181_v2 = vmul.f32 0.01, %v13236_v15  ;;  %v4285_v63 = vld [vmem:[%s16419_s7 + $0x270] sm:$0xff] }
 0x40d   :  { %v4120_v48 = vpop.f32.mrf.mxu0 }
 0x40e   :  { %vm4168_vm7 = vcmp.gt.f32.partialorder %v4126_v36, 0.0  ;;  %v4184_v51 = vmul.f32 0.01, %v4126_v36  ;;  %v4121_v56 = vadd.f32 %v4120_v48, %v3976_v11 }
 0x40f   :  { %v10315_v24 = vpop.f32.mrf.mxu0 }
 0x410   :  { %v4200_v6 = vsel %vm4168_vm7, %v4126_v36, %v4184_v51  ;;  %vm4167_vm8 = vcmp.gt.f32.partialorder %v4121_v56, 0.0  ;;  %v4183_v16 = vmul.f32 0.01, %v4121_v56  ;;  %v4136_v27 = vadd.f32 %v10315_v24, %v3991_v40 }
 0x411   :  { %v5304_v54 = vcombine.low %v13240_v31, %v4200_v6  ;;  %v5305_v5 = vcombine.high %v13240_v31, %v4200_v6  ;;  %v4130_v53 = vpop.f32.mrf.mxu0  ;;  %v13323_v24 = vsel %vm4165_vm10, %v13236_v15, %v4181_v2 }
 0x412   :  { %v4199_v50 = vsel %vm4167_vm8, %v4121_v56, %v4183_v16  ;;  %vm4170_vm9 = vcmp.gt.f32.partialorder %v4136_v27, 0.0  ;;  %v4186_v43 = vmul.f32 0.01, %v4136_v27  ;;  %v4131_v45 = vadd.f32 %v4130_v53, %v3986_v57  ;;  %v4318_v56 = vld [vmem:[%s16419_s7 + $0x378] sm:$0xff]  ;;  %v4333_v16 = vld [vmem:[%s16419_s7 + $0x3f0] sm:$0xff]  ;;  %v4284_v53 = vld [vmem:[%s16419_s7 + $0x268] sm:$0xff] }
 0x413   :  { %v5254_v30 = vcombine.low %v4191_v49, %v4199_v50  ;;  %v5255_v59 = vcombine.high %v4191_v49, %v4199_v50  ;;  %v10318_v26 = vpop.f32.mrf.mxu0  ;;  %v13260_v34 = vrot.slane %v5305_v5, %v13228_v38  ;;  %v13287_v20 = vrot.slane %v5304_v54, %v13228_v38  ;;  %v4300_v49 = vld [vmem:[%s16419_s7 + $0x2e8] sm:$0xff]  ;;  %v4317_v50 = vld [vmem:[%s16419_s7 + $0x370] sm:$0xff] }
 0x414   :  { %v13262_v47 = vsel %vm4170_vm9, %v4136_v27, %v4186_v43  ;;  %vm4169_vm11 = vcmp.gt.f32.partialorder %v4131_v45, 0.0  ;;  %v4185_v32 = vmul.f32 0.01, %v4131_v45  ;;  %v4146_v0 = vadd.f32 %v10318_v26, %v4001_v29  ;;  %v4299_v43 = vld [vmem:[%s16419_s7 + $0x2e0] sm:$0xff] }
 0x415   :  { %v5404_v60 = vcombine.low %v13244_v35, %v13262_v47  ;;  %v5405_v13 = vcombine.high %v13244_v35, %v13262_v47  ;;  %v4140_v9 = vpop.f32.mrf.mxu0  ;;  %v5262_v19 = vrot.slane %v5254_v30, %v13228_v38  ;;  %v13270_v22 = vrot.slane %v5255_v59, %v13228_v38  ;;  %v4283_v30 = vld [vmem:[%s16419_s7 + $0x260] sm:$0xff]  ;;  %v4316_v59 = vld [vmem:[%s16419_s7 + $0x368] sm:$0xff] }
 0x416   :  { %v13272_v62 = vsel %vm4169_vm11, %v4131_v45, %v4185_v32  ;;  %vm4172_vm12 = vcmp.gt.f32.partialorder %v4146_v0, 0.0  ;;  %v4188_v55 = vmul.f32 0.01, %v4146_v0  ;;  %v4141_v37 = vadd.f32 %v4140_v9, %v3996_v25  ;;  %v4332_v45 = vld [vmem:[%s16419_s7 + $0x3e8] sm:$0xff]  ;;  %v4331_v9 = vld [vmem:[%s16419_s7 + $0x3e0] sm:$0xff] }
 0x417   :  { %v5354_v3 = vcombine.low %v13246_v14, %v13272_v62  ;;  %v5355_v33 = vcombine.high %v13246_v14, %v13272_v62  ;;  %v10321_v42 = vpop.f32.mrf.mxu0  ;;  %v5270_v18 = vcombine.high %v5262_v19, %v5262_v19  ;;  %v5278_v46 = vrot.slane %v5262_v19, %v13228_v38  ;;  %v4297_v14 = vld [vmem:[%s16419_s7 + $0x2d0] sm:$0xff]  ;;  %v4330_v62 = vld [vmem:[%s16419_s7 + $0x3d8] sm:$0xff]  ;;  %v4295_v35 = vld [vmem:[%s16419_s7 + $0x2c0] sm:$0xff] }
 0x418   :  { %v13279_v4 = vsel %vm4172_vm12, %v4146_v0, %v4188_v55  ;;  %vm4171_vm13 = vcmp.gt.f32.partialorder %v4141_v37, 0.0  ;;  %v4187_v17 = vmul.f32 0.01, %v4141_v37  ;;  %v4156_v11 = vadd.f32 %v10321_v42, %v4011_v7  ;;  %v4298_v0 = vld [vmem:[%s16419_s7 + $0x2d8] sm:$0xff]  ;;  %v4328_v47 = vld [vmem:[%s16419_s7 + $0x3c8] sm:$0xff] }
 0x419   :  { %v5504_v44 = vcombine.low %v13248_v61, %v13279_v4  ;;  %v5505_v28 = vcombine.high %v13248_v61, %v13279_v4  ;;  %v4150_v57 = vpop.f32.mrf.mxu0  ;;  %v5292_v39 = vrot.slane %v5270_v18, %v13228_v38  ;;  %v5271_v41 = vcombine.high %v13270_v22, %v13270_v22  ;;  %v4282_v55 = vld [vmem:[%s16419_s7 + $0x258] sm:$0xff]  ;;  %v4291_v61 = vld [vmem:[%s16419_s7 + $0x2a0] sm:$0xff]  ;;  %v4324_v4 = vld [vmem:[%s16419_s7 + $0x3a8] sm:$0xff] }
 0x41a   :  { %v13289_v40 = vsel %vm4171_vm13, %v4141_v37, %v4187_v17  ;;  %vm4174_vm14 = vcmp.gt.f32.partialorder %v4156_v11, 0.0  ;;  %v4190_v29 = vmul.f32 0.01, %v4156_v11  ;;  %v4151_v25 = vadd.f32 %v4150_v57, %v13238_v10  ;;  %v4315_v37 = vld [vmem:[%s16419_s7 + $0x360] sm:$0xff]  ;;  %v4314_v17 = vld [vmem:[%s16419_s7 + $0x358] sm:$0xff] }
 0x41b   :  { %v5454_v31 = vcombine.low %v13251_v1, %v13289_v40  ;;  %v5455_v12 = vcombine.high %v13251_v1, %v13289_v40  ;;  %5782 = vmatprep.mubr.f32.mxu1 %v5292_v39  ;;  %v5302_v52 = vcombine.high %v5292_v39, %v5292_v39  ;;  %v5300_v23 = vcombine.high %v5278_v46, %v5278_v46  ;;  %v4296_v39 = vld [vmem:[%s16419_s7 + $0x2c8] sm:$0xff]  ;;  %v4293_v1 = vld [vmem:[%s16419_s7 + $0x2b0] sm:$0xff]  ;;  %v4326_v40 = vld [vmem:[%s16419_s7 + $0x3b8] sm:$0xff] }
 0x41c   :  { %v13304_v10 = vsel %vm4174_vm14, %v4156_v11, %v4190_v29  ;;  %vm4173_vm15 = vcmp.gt.f32.partialorder %v4151_v25, 0.0  ;;  %v4189_v36 = vmul.f32 0.01, %v4151_v25  ;;  %5783 = vmatmul.mubr.f32.vlgmr.msra.gmra.mxu1 %v5278_v46  ;;  %v5299_v51 = vrot.slane %v5271_v41, %v13228_v38  ;;  %v4281_v46 = vld [vmem:[%s16419_s7 + $0x250] sm:$0xff] }
 0x41d   :  { %v5604_v48 = vcombine.low %v13253_v21, %v13304_v10  ;;  %v5605_v7 = vcombine.high %v13253_v21, %v13304_v10  ;;  %9105 = vmatpush3.msra.mxu1 %v4286_v8  ;;  %5852 = vmatprep.mubr.f32.mxu0 %v5302_v52  ;;  %v13332_v27 = vrot.slane %v13287_v20, %v13228_v38  ;;  %v4329_v29 = vld [vmem:[%s16419_s7 + $0x3d0] sm:$0xff]  ;;  %v4287_v21 = vld [vmem:[%s16419_s7 + $0x280] sm:$0xff]  ;;  %v4320_v10 = vld [vmem:[%s16419_s7 + $0x388] sm:$0xff] }
 0x41e   :  { %v13325_v6 = vsel %vm4173_vm15, %v4151_v25, %v4189_v36  ;;  %9106 = vmatprep.subr.mxu1 %v4301_v58  ;;  %5853 = vmatmul.mubr.f32.vlgmr.msra.gmra.mxu0 %v5300_v23  ;;  %v5303_v15 = vcombine.high %v5299_v51, %v5299_v51  ;;  %v5321_v2 = vcombine.high %v13260_v34, %v13260_v34  ;;  %v4313_v52 = vld [vmem:[%s16419_s7 + $0x350] sm:$0xff]  ;;  %v4279_v23 = vld [vmem:[%s16419_s7 + $0x240] sm:$0xff] }
 0x41f   :  { %v5554_v54 = vcombine.low %v13323_v24, %v13325_v6  ;;  %v5555_v5 = vcombine.high %v13323_v24, %v13325_v6  ;;  %5922 = vmatprep.mubr.f32.mxu1 %v5299_v51  ;;  %9107 = vmatpush3.msra.mxu1 %v4285_v63  ;;  %v13360_v26 = vrot.slane %v13260_v34, %v13228_v38  ;;  %v4312_v63 = vld [vmem:[%s16419_s7 + $0x348] sm:$0xff]  ;;  %v4289_v24 = vld [vmem:[%s16419_s7 + $0x290] sm:$0xff]  ;;  %v4322_v6 = vld [vmem:[%s16419_s7 + $0x398] sm:$0xff] }
 0x420   :  { %9140 = vmatpush3.msra.mxu0 %v4318_v56  ;;  %9108 = vmatprep.subr.mxu1 %v4300_v49  ;;  %v5362_v32 = vrot.slane %v5354_v3, %v13228_v38  ;;  %v13370_v19 = vrot.slane %v5321_v2, %v13228_v38  ;;  %v5369_v34 = vrot.slane %v5355_v33, %v13228_v38  ;;  %v4294_v49 = vld [vmem:[%s16419_s7 + $0x2b8] sm:$0xff] }
 0x421   :  { %9141 = vmatprep.subr.mxu0 %v4333_v16  ;;  %5992 = vmatprep.mubr.f32.mxu0 %v5303_v15  ;;  %v5412_v57 = vrot.slane %v5404_v60, %v13228_v38  ;;  %v5419_v8 = vrot.slane %v5405_v13, %v13228_v38  ;;  %v4280_v60 = vld [vmem:[%s16419_s7 + $0x248] sm:$0xff]  ;;  %v5462_v56 = vrot.slane %v5454_v31, %v13228_v38  ;;  %v4327_v16 = vld [vmem:[%s16419_s7 + $0x3c0] sm:$0xff]  ;;  %v4278_v31 = vld [vmem:[%s16419_s7 + $0x238] sm:$0xff] }
 0x422   :  { %9109 = vmatpush3.msra.mxu1 %v4284_v53  ;;  %9142 = vmatpush3.msra.mxu0 %v4317_v50  ;;  %v5370_v3 = vcombine.high %v5362_v32, %v5362_v32  ;;  %v13383_v42 = vrot.slane %v5362_v32, %v13228_v38  ;;  %v5371_v33 = vcombine.high %v5369_v34, %v5369_v34  ;;  %v4311_v50 = vld [vmem:[%s16419_s7 + $0x340] sm:$0xff] }
 0x423   :  { %9110 = vmatprep.subr.mxu1 %v4299_v43  ;;  %9143 = vmatprep.subr.mxu0 %v4332_v45  ;;  %v13392_v18 = vrot.slane %v5369_v34, %v13228_v38  ;;  %v5420_v58 = vcombine.high %v5412_v57, %v5412_v57  ;;  %v13427_v41 = vrot.slane %v5412_v57, %v13228_v38  ;;  %v4325_v34 = vld [vmem:[%s16419_s7 + $0x3b0] sm:$0xff] }
 0x424   :  { %9111 = vmatpush3.msra.mxu1 %v4283_v30  ;;  %9144 = vmatpush3.msra.mxu0 %v4316_v59  ;;  %v13401_v11 = vrot.slane %v5370_v3, %v13228_v38  ;;  %v13414_v25 = vrot.slane %v5371_v33, %v13228_v38  ;;  %v5421_v13 = vcombine.high %v5419_v8, %v5419_v8  ;;  %v4277_v30 = vld [vmem:[%s16419_s7 + $0x230] sm:$0xff]  ;;  %v4310_v59 = vld [vmem:[%s16419_s7 + $0x338] sm:$0xff] }
 0x425   :  { %9112 = vmatprep.subr.mxu1 %v4298_v0  ;;  %9145 = vmatprep.subr.mxu0 %v4331_v9  ;;  %v13436_v36 = vrot.slane %v5419_v8, %v13228_v38  ;;  %v13445_v51 = vrot.slane %v5420_v58, %v13228_v38  ;;  %v5469_v53 = vrot.slane %v5455_v12, %v13228_v38  ;;  %v4292_v9 = vld [vmem:[%s16419_s7 + $0x2a8] sm:$0xff]  ;;  %v4309_v3 = vld [vmem:[%s16419_s7 + $0x330] sm:$0xff]  ;;  %v4323_v8 = vld [vmem:[%s16419_s7 + $0x3a0] sm:$0xff] }
 0x426   :  { %9113 = vmatpush3.msra.mxu1 %v4282_v55  ;;  %9146 = vmatpush3.msra.mxu0 %v4315_v37  ;;  %v13458_v15 = vrot.slane %v5421_v13, %v13228_v38  ;;  %v5470_v43 = vcombine.high %v5462_v56, %v5462_v56  ;;  %v13471_v45 = vrot.slane %v5462_v56, %v13228_v38  ;;  %v4307_v58 = vld [vmem:[%s16419_s7 + $0x320] sm:$0xff] }
 0x427   :  { %9114 = vmatprep.subr.mxu1 %v4297_v14  ;;  %9147 = vmatprep.subr.mxu0 %v4330_v62  ;;  %v5471_v12 = vcombine.high %v5469_v53, %v5469_v53  ;;  %v13480_v2 = vrot.slane %v5469_v53, %v13228_v38  ;;  %v5512_v0 = vrot.slane %v5504_v44, %v13228_v38  ;;  %v4276_v44 = vld [vmem:[%s16419_s7 + $0x228] sm:$0xff]  ;;  %v4321_v53 = vld [vmem:[%s16419_s7 + $0x390] sm:$0xff] }
 0x428   :  { %9115 = vmatpush3.msra.mxu1 %v4281_v46  ;;  %9148 = vmatpush3.msra.mxu0 %v4314_v17  ;;  %v13489_v32 = vrot.slane %v5470_v43, %v13228_v38  ;;  %v5519_v37 = vrot.slane %v5505_v28, %v13228_v38  ;;  %v4275_v46 = vld [vmem:[%s16419_s7 + $0x220] sm:$0xff]  ;;  %v4308_v17 = vld [vmem:[%s16419_s7 + $0x328] sm:$0xff]  ;;  %v4305_v43 = vld [vmem:[%s16419_s7 + $0x310] sm:$0xff] }
 0x429   :  { %9116 = vmatprep.subr.mxu1 %v4296_v39  ;;  %9149 = vmatprep.subr.mxu0 %v4329_v29  ;;  %v13502_v55 = vrot.slane %v5471_v12, %v13228_v38  ;;  %v5520_v14 = vcombine.high %v5512_v0, %v5512_v0  ;;  %v13515_v62 = vrot.slane %v5512_v0, %v13228_v38  ;;  %v4290_v29 = vld [vmem:[%s16419_s7 + $0x298] sm:$0xff]  ;;  %v4304_v0 = vld [vmem:[%s16419_s7 + $0x308] sm:$0xff] }
 0x42a   :  { %9117 = vmatpush3.msra.mxu1 %v4280_v60  ;;  %9150 = vmatpush3.msra.mxu0 %v4313_v52  ;;  %v5521_v28 = vcombine.high %v5519_v37, %v5519_v37  ;;  %v13524_v33 = vrot.slane %v5519_v37, %v13228_v38  ;;  %v5562_v39 = vrot.slane %v5554_v54, %v13228_v38  ;;  %v4274_v54 = vld [vmem:[%s16419_s7 + $0x218] sm:$0xff] }
 0x42b   :  { %9118 = vmatprep.subr.mxu1 %v4295_v35  ;;  %9151 = vmatprep.subr.mxu0 %v4328_v47  ;;  %v13533_v57 = vrot.slane %v5520_v14, %v13228_v38  ;;  %v5569_v52 = vrot.slane %v5555_v5, %v13228_v38 }
 0x42c   :  { %9119 = vmatpush3.msra.mxu1 %v4279_v23  ;;  %9152 = vmatpush3.msra.mxu0 %v4312_v63  ;;  %v13546_v60 = vrot.slane %v5521_v28, %v13228_v38  ;;  %v5570_v35 = vcombine.high %v5562_v39, %v5562_v39  ;;  %v13559_v47 = vrot.slane %v5562_v39, %v13228_v38  ;;  %v4273_v23 = vld [vmem:[%s16419_s7 + $0x210] sm:$0xff]  ;;  %v4306_v63 = vld [vmem:[%s16419_s7 + $0x318] sm:$0xff]  ;;  %v4364_v39 = vld [vmem:[%s16419_s7 + $0x4e8] sm:$0xff] }
 0x42d   :  { %9120 = vmatprep.subr.mxu1 %v4294_v49  ;;  %9153 = vmatprep.subr.mxu0 %v4327_v16  ;;  %v5571_v5 = vcombine.high %v5569_v52, %v5569_v52  ;;  %v13568_v13 = vrot.slane %v5569_v52, %v13228_v38  ;;  %v5612_v49 = vrot.slane %v5604_v48, %v13228_v38  ;;  %v4288_v16 = vld [vmem:[%s16419_s7 + $0x288] sm:$0xff]  ;;  %v4398_v28 = vld [vmem:[%s16419_s7 + $0x5f8] sm:$0xff]  ;;  %v4381_v52 = vld [vmem:[%s16419_s7 + $0x570] sm:$0xff] }
 0x42e   :  { %9121 = vmatpush3.msra.mxu1 %v4278_v31  ;;  %9154 = vmatpush3.msra.mxu0 %v4311_v50  ;;  %v13577_v56 = vrot.slane %v5570_v35, %v13228_v38  ;;  %v5619_v50 = vrot.slane %v5605_v7, %v13228_v38  ;;  %v4272_v48 = vld [vmem:[%s16419_s7 + $0x208] sm:$0xff]  ;;  %v5320_v7 = vcombine.high %v13287_v20, %v13287_v20  ;;  %v4347_v35 = vld [vmem:[%s16419_s7 + $0x460] sm:$0xff] }
 0x42f   :  { %9122 = vmatprep.subr.mxu1 %v4293_v1  ;;  %9155 = vmatprep.subr.mxu0 %v4326_v40  ;;  %v13590_v31 = vrot.slane %v5571_v5, %v13228_v38  ;;  %v5620_v1 = vcombine.high %v5612_v49, %v5612_v49  ;;  %v13603_v40 = vrot.slane %v5612_v49, %v13228_v38  ;;  %v4395_v5 = vld [vmem:[%s16419_s7 + $0x5e0] sm:$0xff]  ;;  %v4361_v49 = vld [vmem:[%s16419_s7 + $0x4d0] sm:$0xff] }
 0x430   :  { %9123 = vmatpush3.msra.mxu1 %v4277_v30  ;;  %9156 = vmatpush3.msra.mxu0 %v4310_v59  ;;  %v5621_v12 = vcombine.high %v5619_v50, %v5619_v50  ;;  %v13614_v30 = vrot.slane %v5619_v50, %v13228_v38  ;;  %v4271_v59 = vld [vmem:[%s16419_s7 + $0x200] sm:$0xff]  ;;  %v5285_v20 = vrot.slane %v13270_v22, %v13228_v38  ;;  %v4350_v22 = vld [vmem:[%s16419_s7 + $0x478] sm:$0xff] }
 0x431   :  { %9124 = vmatprep.subr.mxu1 %v4292_v9  ;;  %9157 = vmatprep.subr.mxu0 %v4325_v34  ;;  %v13623_v9 = vrot.slane %v5620_v1, %v13228_v38  ;;  %v4319_v34 = vld [vmem:[%s16419_s7 + $0x380] sm:$0xff]  ;;  %v5342_v14 = vrot.slane %v5320_v7, %v13228_v38  ;;  %v4378_v50 = vld [vmem:[%s16419_s7 + $0x558] sm:$0xff]  ;;  %v4344_v1 = vld [vmem:[%s16419_s7 + $0x448] sm:$0xff] }
 0x432   :  { %9125 = vmatpush3.msra.mxu1 %v4276_v44  ;;  %9158 = vmatpush3.msra.mxu0 %v4309_v3  ;;  %v13631_v37 = vrot.slane %v5621_v12, %v13228_v38  ;;  %v4366_v44 = vld [vmem:[%s16419_s7 + $0x4f8] sm:$0xff]  ;;  %v4303_v3 = vld [vmem:[%s16419_s7 + $0x300] sm:$0xff]  ;;  %v4392_v7 = vld [vmem:[%s16419_s7 + $0x5c8] sm:$0xff] }
 0x433   :  { %9126 = vmatprep.subr.mxu1 %v4291_v61  ;;  %9159 = vmatprep.subr.mxu0 %v4324_v4  ;;  %v4365_v61 = vld [vmem:[%s16419_s7 + $0x4f0] sm:$0xff]  ;;  %v5301_v4 = vcombine.high %v5285_v20, %v5285_v20  ;;  %v4382_v38 = vld [vmem:[%s16419_s7 + $0x578] sm:$0xff]  ;;  %v4343_v12 = vld [vmem:[%s16419_s7 + $0x440] sm:$0xff] }
 0x434   :  { %9127 = vmatpush3.msra.mxu1 %v4275_v46  ;;  %9160 = vmatpush3.msra.mxu0 %v4308_v17  ;;  %v4349_v46 = vld [vmem:[%s16419_s7 + $0x470] sm:$0xff]  ;;  %v5352_v17 = vcombine.high %v5342_v14, %v5342_v14 }
 0x435   :  { %9128 = vmatprep.subr.mxu1 %v4290_v29  ;;  %9161 = vmatprep.subr.mxu0 %v4323_v8  ;;  %v4397_v29 = vld [vmem:[%s16419_s7 + $0x5f0] sm:$0xff]  ;;  %v4348_v8 = vld [vmem:[%s16419_s7 + $0x468] sm:$0xff] }
 0x436   :  { %9129 = vmatpush3.msra.mxu1 %v4274_v54  ;;  %9162 = vmatpush3.msra.mxu0 %v4307_v58  ;;  %v4363_v54 = vld [vmem:[%s16419_s7 + $0x4e0] sm:$0xff]  ;;  %v4396_v58 = vld [vmem:[%s16419_s7 + $0x5e8] sm:$0xff] }
 0x437   :  { %9130 = vmatprep.subr.mxu1 %v4289_v24  ;;  %9163 = vmatprep.subr.mxu0 %v4322_v6  ;;  %v4380_v24 = vld [vmem:[%s16419_s7 + $0x568] sm:$0xff]  ;;  %v4362_v6 = vld [vmem:[%s16419_s7 + $0x4d8] sm:$0xff] }
 0x438   :  { %9131 = vmatpush3.msra.mxu1 %v4273_v23  ;;  %9164 = vmatpush3.msra.mxu0 %v4306_v63  ;;  %v4346_v23 = vld [vmem:[%s16419_s7 + $0x458] sm:$0xff]  ;;  %v4379_v63 = vld [vmem:[%s16419_s7 + $0x560] sm:$0xff] }
 0x439   :  { %9132 = vmatprep.subr.mxu1 %v4288_v16  ;;  %9165 = vmatprep.subr.mxu0 %v4321_v53  ;;  %v4394_v16 = vld [vmem:[%s16419_s7 + $0x5d8] sm:$0xff]  ;;  %v4345_v53 = vld [vmem:[%s16419_s7 + $0x450] sm:$0xff] }
 0x43a   :  { %9133 = vmatpush3.msra.mxu1 %v4272_v48  ;;  %9166 = vmatpush3.msra.mxu0 %v4305_v43  ;;  %v4360_v48 = vld [vmem:[%s16419_s7 + $0x4c8] sm:$0xff]  ;;  %v4393_v43 = vld [vmem:[%s16419_s7 + $0x5d0] sm:$0xff] }
 0x43b   :  { %9134 = vmatprep.subr.mxu1 %v4287_v21  ;;  %9167 = vmatprep.subr.mxu0 %v4320_v10  ;;  %v4377_v21 = vld [vmem:[%s16419_s7 + $0x550] sm:$0xff]  ;;  %v4359_v10 = vld [vmem:[%s16419_s7 + $0x4c0] sm:$0xff] }
 0x43c   :  { %9135 = vmatpush3.msra.mxu1 %v4271_v59  ;;  %9168 = vmatpush3.msra.mxu0 %v4304_v0  ;;  %v4376_v59 = vld [vmem:[%s16419_s7 + $0x548] sm:$0xff]  ;;  %v4358_v0 = vld [vmem:[%s16419_s7 + $0x4b8] sm:$0xff] }
 0x43d   :  { %5923 = vmatmul.mubr.f32.vlgmr.msra.gmra.mxu1 %v5285_v20  ;;  %9169 = vmatprep.subr.mxu0 %v4319_v34  ;;  %v4391_v20 = vld [vmem:[%s16419_s7 + $0x5c0] sm:$0xff]  ;;  %v4342_v34 = vld [vmem:[%s16419_s7 + $0x438] sm:$0xff] }
 0x43e   :  { %9174 = vmatprep.subr.mxu1 %v4366_v44  ;;  %9170 = vmatpush3.msra.mxu0 %v4303_v3  ;;  %v4375_v44 = vld [vmem:[%s16419_s7 + $0x540] sm:$0xff]  ;;  %v4357_v3 = vld [vmem:[%s16419_s7 + $0x4b0] sm:$0xff] }
 0x43f   :  { %9175 = vmatpush3.msra.mxu1 %v4350_v22  ;;  %6062 = vmatprep.mubr.f32.mxu1 %v5342_v14  ;;  %v4390_v22 = vld [vmem:[%s16419_s7 + $0x5b8] sm:$0xff]  ;;  %v4341_v14 = vld [vmem:[%s16419_s7 + $0x430] sm:$0xff] }
 0x440   :  { %5993 = vmatmul.mubr.f32.vlgmr.msra.gmra.mxu0 %v5301_v4  ;;  %9176 = vmatprep.subr.mxu1 %v4365_v61  ;;  %v4374_v61 = vld [vmem:[%s16419_s7 + $0x538] sm:$0xff]  ;;  %v4356_v4 = vld [vmem:[%s16419_s7 + $0x4a8] sm:$0xff] }
 0x441   :  { %9209 = vmatprep.subr.mxu0 %v4398_v28  ;;  %9177 = vmatpush3.msra.mxu1 %v4349_v46  ;;  %v4389_v28 = vld [vmem:[%s16419_s7 + $0x5b0] sm:$0xff]  ;;  %v4340_v46 = vld [vmem:[%s16419_s7 + $0x428] sm:$0xff] }
 0x442   :  { %9210 = vmatpush3.msra.mxu0 %v4382_v38  ;;  %6132 = vmatprep.mubr.f32.mxu0 %v5352_v17  ;;  %v4373_v38 = vld [vmem:[%s16419_s7 + $0x530] sm:$0xff]  ;;  %v4355_v17 = vld [vmem:[%s16419_s7 + $0x4a0] sm:$0xff] }
 0x443   :  { %9178 = vmatprep.subr.mxu1 %v4364_v39  ;;  %9211 = vmatprep.subr.mxu0 %v4397_v29  ;;  %v4388_v39 = vld [vmem:[%s16419_s7 + $0x5a8] sm:$0xff]  ;;  %v4339_v29 = vld [vmem:[%s16419_s7 + $0x420] sm:$0xff] }
 0x444   :  { %9179 = vmatpush3.msra.mxu1 %v4348_v8  ;;  %9212 = vmatpush3.msra.mxu0 %v4381_v52  ;;  %v4372_v8 = vld [vmem:[%s16419_s7 + $0x528] sm:$0xff]  ;;  %v4354_v52 = vld [vmem:[%s16419_s7 + $0x498] sm:$0xff] }
 0x445   :  { %9180 = vmatprep.subr.mxu1 %v4363_v54  ;;  %9213 = vmatprep.subr.mxu0 %v4396_v58  ;;  %v4387_v54 = vld [vmem:[%s16419_s7 + $0x5a0] sm:$0xff]  ;;  %v4338_v58 = vld [vmem:[%s16419_s7 + $0x418] sm:$0xff] }
 0x446   :  { %9181 = vmatpush3.msra.mxu1 %v4347_v35  ;;  %9214 = vmatpush3.msra.mxu0 %v4380_v24  ;;  %v4371_v35 = vld [vmem:[%s16419_s7 + $0x520] sm:$0xff]  ;;  %v4353_v24 = vld [vmem:[%s16419_s7 + $0x490] sm:$0xff] }
 0x447   :  { %9182 = vmatprep.subr.mxu1 %v4362_v6  ;;  %9215 = vmatprep.subr.mxu0 %v4395_v5  ;;  %v4386_v6 = vld [vmem:[%s16419_s7 + $0x598] sm:$0xff]  ;;  %v4337_v5 = vld [vmem:[%s16419_s7 + $0x410] sm:$0xff] }
 0x448   :  { %9183 = vmatpush3.msra.mxu1 %v4346_v23  ;;  %9216 = vmatpush3.msra.mxu0 %v4379_v63  ;;  %v4370_v23 = vld [vmem:[%s16419_s7 + $0x518] sm:$0xff]  ;;  %v4352_v63 = vld [vmem:[%s16419_s7 + $0x488] sm:$0xff] }
 0x449   :  { %9184 = vmatprep.subr.mxu1 %v4361_v49  ;;  %9217 = vmatprep.subr.mxu0 %v4394_v16  ;;  %v4385_v49 = vld [vmem:[%s16419_s7 + $0x590] sm:$0xff]  ;;  %v4336_v16 = vld [vmem:[%s16419_s7 + $0x408] sm:$0xff] }
 0x44a   :  { %9185 = vmatpush3.msra.mxu1 %v4345_v53  ;;  %9218 = vmatpush3.msra.mxu0 %v4378_v50  ;;  %v4369_v53 = vld [vmem:[%s16419_s7 + $0x510] sm:$0xff]  ;;  %v4351_v50 = vld [vmem:[%s16419_s7 + $0x480] sm:$0xff] }
 0x44b   :  { %9186 = vmatprep.subr.mxu1 %v4360_v48  ;;  %9219 = vmatprep.subr.mxu0 %v4393_v43  ;;  %v4384_v48 = vld [vmem:[%s16419_s7 + $0x588] sm:$0xff]  ;;  %v4335_v43 = vld [vmem:[%s16419_s7 + $0x400] sm:$0xff] }
 0x44c   :  { %9187 = vmatpush3.msra.mxu1 %v4344_v1  ;;  %9220 = vmatpush3.msra.mxu0 %v4377_v21  ;;  %v4368_v1 = vld [vmem:[%s16419_s7 + $0x508] sm:$0xff]  ;;  %v4383_v21 = vld [vmem:[%s16419_s7 + $0x580] sm:$0xff] }
 0x44d   :  { %9188 = vmatprep.subr.mxu1 %v4359_v10  ;;  %9221 = vmatprep.subr.mxu0 %v4392_v7  ;;  %v4430_v10 = vld [vmem:[%s16419_s7 + $0x6f8] sm:$0xff]  ;;  %v4367_v7 = vld [vmem:[%s16419_s7 + $0x500] sm:$0xff] }
 0x44e   :  { %9189 = vmatpush3.msra.mxu1 %v4343_v12  ;;  %9222 = vmatpush3.msra.mxu0 %v4376_v59  ;;  %v4414_v12 = vld [vmem:[%s16419_s7 + $0x678] sm:$0xff]  ;;  %v4429_v59 = vld [vmem:[%s16419_s7 + $0x6f0] sm:$0xff] }
 0x44f   :  { %9190 = vmatprep.subr.mxu1 %v4358_v0  ;;  %9223 = vmatprep.subr.mxu0 %v4391_v20  ;;  %v5350_v0 = vcombine.high %v13332_v27, %v13332_v27  ;;  %v4462_v20 = vld [vmem:[%s16419_s7 + $0x7f8] sm:$0xff] }
 0x450   :  { %9191 = vmatpush3.msra.mxu1 %v4342_v34  ;;  %9224 = vmatpush3.msra.mxu0 %v4375_v44  ;;  %v4413_v34 = vld [vmem:[%s16419_s7 + $0x670] sm:$0xff]  ;;  %v4446_v44 = vld [vmem:[%s16419_s7 + $0x778] sm:$0xff] }
 0x451   :  { %9192 = vmatprep.subr.mxu1 %v4357_v3  ;;  %9225 = vmatprep.subr.mxu0 %v4390_v22  ;;  %v4428_v3 = vld [vmem:[%s16419_s7 + $0x6e8] sm:$0xff]  ;;  %v4461_v22 = vld [vmem:[%s16419_s7 + $0x7f0] sm:$0xff] }
 0x452   :  { %9193 = vmatpush3.msra.mxu1 %v4341_v14  ;;  %9226 = vmatpush3.msra.mxu0 %v4374_v61  ;;  %v4412_v14 = vld [vmem:[%s16419_s7 + $0x668] sm:$0xff]  ;;  %v4445_v61 = vld [vmem:[%s16419_s7 + $0x770] sm:$0xff] }
 0x453   :  { %9194 = vmatprep.subr.mxu1 %v4356_v4  ;;  %9227 = vmatprep.subr.mxu0 %v4389_v28  ;;  %v4460_v4 = vld [vmem:[%s16419_s7 + $0x7e8] sm:$0xff]  ;;  %v4411_v28 = vld [vmem:[%s16419_s7 + $0x660] sm:$0xff] }
 0x454   :  { %9195 = vmatpush3.msra.mxu1 %v4340_v46  ;;  %9228 = vmatpush3.msra.mxu0 %v4373_v38  ;;  %v4444_v46 = vld [vmem:[%s16419_s7 + $0x768] sm:$0xff]  ;;  %v4426_v38 = vld [vmem:[%s16419_s7 + $0x6d8] sm:$0xff] }
 0x455   :  { %9196 = vmatprep.subr.mxu1 %v4355_v17  ;;  %9229 = vmatprep.subr.mxu0 %v4388_v39  ;;  %v4459_v17 = vld [vmem:[%s16419_s7 + $0x7e0] sm:$0xff]  ;;  %v4410_v39 = vld [vmem:[%s16419_s7 + $0x658] sm:$0xff] }
 0x456   :  { %9197 = vmatpush3.msra.mxu1 %v4339_v29  ;;  %9230 = vmatpush3.msra.mxu0 %v4372_v8  ;;  %v4443_v29 = vld [vmem:[%s16419_s7 + $0x760] sm:$0xff]  ;;  %v4425_v8 = vld [vmem:[%s16419_s7 + $0x6d0] sm:$0xff] }
 0x457   :  { %9198 = vmatprep.subr.mxu1 %v4354_v52  ;;  %9231 = vmatprep.subr.mxu0 %v4387_v54  ;;  %v4458_v52 = vld [vmem:[%s16419_s7 + $0x7d8] sm:$0xff]  ;;  %v4409_v54 = vld [vmem:[%s16419_s7 + $0x650] sm:$0xff] }
 0x458   :  { %9199 = vmatpush3.msra.mxu1 %v4338_v58  ;;  %9232 = vmatpush3.msra.mxu0 %v4371_v35  ;;  %v4442_v58 = vld [vmem:[%s16419_s7 + $0x758] sm:$0xff]  ;;  %v4424_v35 = vld [vmem:[%s16419_s7 + $0x6c8] sm:$0xff] }
 0x459   :  { %9200 = vmatprep.subr.mxu1 %v4353_v24  ;;  %9233 = vmatprep.subr.mxu0 %v4386_v6  ;;  %v4457_v24 = vld [vmem:[%s16419_s7 + $0x7d0] sm:$0xff]  ;;  %v4408_v6 = vld [vmem:[%s16419_s7 + $0x648] sm:$0xff] }
 0x45a   :  { %9201 = vmatpush3.msra.mxu1 %v4337_v5  ;;  %9234 = vmatpush3.msra.mxu0 %v4370_v23  ;;  %v4441_v5 = vld [vmem:[%s16419_s7 + $0x750] sm:$0xff]  ;;  %v4423_v23 = vld [vmem:[%s16419_s7 + $0x6c0] sm:$0xff] }
 0x45b   :  { %9202 = vmatprep.subr.mxu1 %v4352_v63  ;;  %9235 = vmatprep.subr.mxu0 %v4385_v49  ;;  %v4456_v63 = vld [vmem:[%s16419_s7 + $0x7c8] sm:$0xff]  ;;  %v4407_v49 = vld [vmem:[%s16419_s7 + $0x640] sm:$0xff] }
 0x45c   :  { %9203 = vmatpush3.msra.mxu1 %v4336_v16  ;;  %9236 = vmatpush3.msra.mxu0 %v4369_v53  ;;  %v4440_v16 = vld [vmem:[%s16419_s7 + $0x748] sm:$0xff]  ;;  %v4422_v53 = vld [vmem:[%s16419_s7 + $0x6b8] sm:$0xff] }
 0x45d   :  { %9204 = vmatprep.subr.mxu1 %v4351_v50  ;;  %9237 = vmatprep.subr.mxu0 %v4384_v48  ;;  %v4455_v50 = vld [vmem:[%s16419_s7 + $0x7c0] sm:$0xff]  ;;  %v4406_v48 = vld [vmem:[%s16419_s7 + $0x638] sm:$0xff] }
 0x45e   :  { %9205 = vmatpush3.msra.mxu1 %v4335_v43  ;;  %9238 = vmatpush3.msra.mxu0 %v4368_v1  ;;  %v4439_v43 = vld [vmem:[%s16419_s7 + $0x740] sm:$0xff]  ;;  %v4421_v1 = vld [vmem:[%s16419_s7 + $0x6b0] sm:$0xff] }
 0x45f   :  { %6063 = vmatmul.mubr.f32.vlgmr.msra.gmra.mxu1 %v13332_v27  ;;  %9239 = vmatprep.subr.mxu0 %v4383_v21  ;;  %v5353_v27 = vcombine.high %v13370_v19, %v13370_v19  ;;  %v4454_v21 = vld [vmem:[%s16419_s7 + $0x7b8] sm:$0xff] }
 0x460   :  { %9244 = vmatprep.subr.mxu1 %v4430_v10  ;;  %9240 = vmatpush3.msra.mxu0 %v4367_v7  ;;  %v4405_v10 = vld [vmem:[%s16419_s7 + $0x630] sm:$0xff]  ;;  %v4438_v7 = vld [vmem:[%s16419_s7 + $0x738] sm:$0xff] }
 0x461   :  { %9245 = vmatpush3.msra.mxu1 %v4414_v12  ;;  %6202 = vmatprep.mubr.f32.mxu1 %v13370_v19  ;;  %v4427_v19 = vld [vmem:[%s16419_s7 + $0x6e0] sm:$0xff]  ;;  %v4420_v12 = vld [vmem:[%s16419_s7 + $0x6a8] sm:$0xff] }
 0x462   :  { %6133 = vmatmul.mubr.f32.vlgmr.msra.gmra.mxu0 %v5350_v0  ;;  %9246 = vmatprep.subr.mxu1 %v4429_v59  ;;  %v4453_v59 = vld [vmem:[%s16419_s7 + $0x7b0] sm:$0xff]  ;;  %v4404_v0 = vld [vmem:[%s16419_s7 + $0x628] sm:$0xff] }
 0x463   :  { %9279 = vmatprep.subr.mxu0 %v4462_v20  ;;  %9247 = vmatpush3.msra.mxu1 %v4413_v34  ;;  %v4437_v20 = vld [vmem:[%s16419_s7 + $0x730] sm:$0xff]  ;;  %v4419_v34 = vld [vmem:[%s16419_s7 + $0x6a0] sm:$0xff] }
 0x464   :  { %9280 = vmatpush3.msra.mxu0 %v4446_v44  ;;  %6272 = vmatprep.mubr.f32.mxu0 %v5353_v27  ;;  %v4452_v44 = vld [vmem:[%s16419_s7 + $0x7a8] sm:$0xff]  ;;  %v4403_v27 = vld [vmem:[%s16419_s7 + $0x620] sm:$0xff] }
 0x465   :  { %9248 = vmatprep.subr.mxu1 %v4428_v3  ;;  %9281 = vmatprep.subr.mxu0 %v4461_v22  ;;  %v4436_v3 = vld [vmem:[%s16419_s7 + $0x728] sm:$0xff]  ;;  %v4418_v22 = vld [vmem:[%s16419_s7 + $0x698] sm:$0xff] }
 0x466   :  { %9249 = vmatpush3.msra.mxu1 %v4412_v14  ;;  %9282 = vmatpush3.msra.mxu0 %v4445_v61  ;;  %v4451_v14 = vld [vmem:[%s16419_s7 + $0x7a0] sm:$0xff]  ;;  %v4402_v61 = vld [vmem:[%s16419_s7 + $0x618] sm:$0xff] }
 0x467   :  { %9250 = vmatprep.subr.mxu1 %v4427_v19  ;;  %9283 = vmatprep.subr.mxu0 %v4460_v4  ;;  %v4435_v19 = vld [vmem:[%s16419_s7 + $0x720] sm:$0xff]  ;;  %v4417_v4 = vld [vmem:[%s16419_s7 + $0x690] sm:$0xff] }
 0x468   :  { %9251 = vmatpush3.msra.mxu1 %v4411_v28  ;;  %9284 = vmatpush3.msra.mxu0 %v4444_v46  ;;  %v4450_v28 = vld [vmem:[%s16419_s7 + $0x798] sm:$0xff]  ;;  %v4401_v46 = vld [vmem:[%s16419_s7 + $0x610] sm:$0xff] }
 0x469   :  { %9252 = vmatprep.subr.mxu1 %v4426_v38  ;;  %9285 = vmatprep.subr.mxu0 %v4459_v17  ;;  %v4434_v38 = vld [vmem:[%s16419_s7 + $0x718] sm:$0xff]  ;;  %v4416_v17 = vld [vmem:[%s16419_s7 + $0x688] sm:$0xff] }
 0x46a   :  { %9253 = vmatpush3.msra.mxu1 %v4410_v39  ;;  %9286 = vmatpush3.msra.mxu0 %v4443_v29  ;;  %v4449_v39 = vld [vmem:[%s16419_s7 + $0x790] sm:$0xff]  ;;  %v4400_v29 = vld [vmem:[%s16419_s7 + $0x608] sm:$0xff] }
 0x46b   :  { %9254 = vmatprep.subr.mxu1 %v4425_v8  ;;  %9287 = vmatprep.subr.mxu0 %v4458_v52  ;;  %v4433_v8 = vld [vmem:[%s16419_s7 + $0x710] sm:$0xff]  ;;  %v4415_v52 = vld [vmem:[%s16419_s7 + $0x680] sm:$0xff] }
 0x46c   :  { %9255 = vmatpush3.msra.mxu1 %v4409_v54  ;;  %9288 = vmatpush3.msra.mxu0 %v4442_v58  ;;  %v4448_v54 = vld [vmem:[%s16419_s7 + $0x788] sm:$0xff]  ;;  %v4399_v58 = vld [vmem:[%s16419_s7 + $0x600] sm:$0xff] }
 0x46d   :  { %9256 = vmatprep.subr.mxu1 %v4424_v35  ;;  %9289 = vmatprep.subr.mxu0 %v4457_v24  ;;  %v4432_v35 = vld [vmem:[%s16419_s7 + $0x708] sm:$0xff]  ;;  %v4447_v24 = vld [vmem:[%s16419_s7 + $0x780] sm:$0xff] }
 0x46e   :  { %9257 = vmatpush3.msra.mxu1 %v4408_v6  ;;  %9290 = vmatpush3.msra.mxu0 %v4441_v5  ;;  %v4494_v6 = vld [vmem:[%s16419_s7 + $0x8f8] sm:$0xff]  ;;  %v4431_v5 = vld [vmem:[%s16419_s7 + $0x700] sm:$0xff] }
 0x46f   :  { %9258 = vmatprep.subr.mxu1 %v4423_v23  ;;  %9291 = vmatprep.subr.mxu0 %v4456_v63  ;;  %v4478_v23 = vld [vmem:[%s16419_s7 + $0x878] sm:$0xff]  ;;  %v4493_v63 = vld [vmem:[%s16419_s7 + $0x8f0] sm:$0xff] }
 0x470   :  { %9259 = vmatpush3.msra.mxu1 %v4407_v49  ;;  %9292 = vmatpush3.msra.mxu0 %v4440_v16  ;;  %v5351_v49 = vcombine.high %v13360_v26, %v13360_v26  ;;  %v4526_v16 = vld [vmem:[%s16419_s7 + $0x9f8] sm:$0xff] }
 0x471   :  { %9260 = vmatprep.subr.mxu1 %v4422_v53  ;;  %9293 = vmatprep.subr.mxu0 %v4455_v50  ;;  %v4477_v53 = vld [vmem:[%s16419_s7 + $0x870] sm:$0xff]  ;;  %v4510_v50 = vld [vmem:[%s16419_s7 + $0x978] sm:$0xff] }
 0x472   :  { %9261 = vmatpush3.msra.mxu1 %v4406_v48  ;;  %9294 = vmatpush3.msra.mxu0 %v4439_v43  ;;  %v4492_v48 = vld [vmem:[%s16419_s7 + $0x8e8] sm:$0xff]  ;;  %v4525_v43 = vld [vmem:[%s16419_s7 + $0x9f0] sm:$0xff] }
 0x473   :  { %9262 = vmatprep.subr.mxu1 %v4421_v1  ;;  %9295 = vmatprep.subr.mxu0 %v4454_v21  ;;  %v4476_v1 = vld [vmem:[%s16419_s7 + $0x868] sm:$0xff]  ;;  %v4509_v21 = vld [vmem:[%s16419_s7 + $0x970] sm:$0xff] }
 0x474   :  { %9263 = vmatpush3.msra.mxu1 %v4405_v10  ;;  %9296 = vmatpush3.msra.mxu0 %v4438_v7  ;;  %v4524_v10 = vld [vmem:[%s16419_s7 + $0x9e8] sm:$0xff]  ;;  %v4475_v7 = vld [vmem:[%s16419_s7 + $0x860] sm:$0xff] }
 0x475   :  { %9264 = vmatprep.subr.mxu1 %v4420_v12  ;;  %9297 = vmatprep.subr.mxu0 %v4453_v59  ;;  %v4508_v12 = vld [vmem:[%s16419_s7 + $0x968] sm:$0xff]  ;;  %v4490_v59 = vld [vmem:[%s16419_s7 + $0x8d8] sm:$0xff] }
 0x476   :  { %9265 = vmatpush3.msra.mxu1 %v4404_v0  ;;  %9298 = vmatpush3.msra.mxu0 %v4437_v20  ;;  %v4523_v0 = vld [vmem:[%s16419_s7 + $0x9e0] sm:$0xff]  ;;  %v4474_v20 = vld [vmem:[%s16419_s7 + $0x858] sm:$0xff] }
 0x477   :  { %9266 = vmatprep.subr.mxu1 %v4419_v34  ;;  %9299 = vmatprep.subr.mxu0 %v4452_v44  ;;  %v4507_v34 = vld [vmem:[%s16419_s7 + $0x960] sm:$0xff]  ;;  %v4489_v44 = vld [vmem:[%s16419_s7 + $0x8d0] sm:$0xff] }
 0x478   :  { %9267 = vmatpush3.msra.mxu1 %v4403_v27  ;;  %9300 = vmatpush3.msra.mxu0 %v4436_v3  ;;  %v4522_v27 = vld [vmem:[%s16419_s7 + $0x9d8] sm:$0xff]  ;;  %v4473_v3 = vld [vmem:[%s16419_s7 + $0x850] sm:$0xff] }
 0x479   :  { %9268 = vmatprep.subr.mxu1 %v4418_v22  ;;  %9301 = vmatprep.subr.mxu0 %v4451_v14  ;;  %v4506_v22 = vld [vmem:[%s16419_s7 + $0x958] sm:$0xff]  ;;  %v4488_v14 = vld [vmem:[%s16419_s7 + $0x8c8] sm:$0xff] }
 0x47a   :  { %9269 = vmatpush3.msra.mxu1 %v4402_v61  ;;  %9302 = vmatpush3.msra.mxu0 %v4435_v19  ;;  %v4521_v61 = vld [vmem:[%s16419_s7 + $0x9d0] sm:$0xff]  ;;  %v4472_v19 = vld [vmem:[%s16419_s7 + $0x848] sm:$0xff] }
 0x47b   :  { %9270 = vmatprep.subr.mxu1 %v4417_v4  ;;  %9303 = vmatprep.subr.mxu0 %v4450_v28  ;;  %v4505_v4 = vld [vmem:[%s16419_s7 + $0x950] sm:$0xff]  ;;  %v4487_v28 = vld [vmem:[%s16419_s7 + $0x8c0] sm:$0xff] }
 0x47c   :  { %9271 = vmatpush3.msra.mxu1 %v4401_v46  ;;  %9304 = vmatpush3.msra.mxu0 %v4434_v38  ;;  %v4520_v46 = vld [vmem:[%s16419_s7 + $0x9c8] sm:$0xff]  ;;  %v4471_v38 = vld [vmem:[%s16419_s7 + $0x840] sm:$0xff] }
 0x47d   :  { %9272 = vmatprep.subr.mxu1 %v4416_v17  ;;  %9305 = vmatprep.subr.mxu0 %v4449_v39  ;;  %v4504_v17 = vld [vmem:[%s16419_s7 + $0x948] sm:$0xff]  ;;  %v4486_v39 = vld [vmem:[%s16419_s7 + $0x8b8] sm:$0xff] }
 0x47e   :  { %9273 = vmatpush3.msra.mxu1 %v4400_v29  ;;  %9306 = vmatpush3.msra.mxu0 %v4433_v8  ;;  %v4519_v29 = vld [vmem:[%s16419_s7 + $0x9c0] sm:$0xff]  ;;  %v4470_v8 = vld [vmem:[%s16419_s7 + $0x838] sm:$0xff] }
 0x47f   :  { %9274 = vmatprep.subr.mxu1 %v4415_v52  ;;  %9307 = vmatprep.subr.mxu0 %v4448_v54  ;;  %v4503_v52 = vld [vmem:[%s16419_s7 + $0x940] sm:$0xff]  ;;  %v4485_v54 = vld [vmem:[%s16419_s7 + $0x8b0] sm:$0xff] }
 0x480   :  { %9275 = vmatpush3.msra.mxu1 %v4399_v58  ;;  %9308 = vmatpush3.msra.mxu0 %v4432_v35  ;;  %v4518_v58 = vld [vmem:[%s16419_s7 + $0x9b8] sm:$0xff]  ;;  %v4469_v35 = vld [vmem:[%s16419_s7 + $0x830] sm:$0xff] }
 0x481   :  { %6203 = vmatmul.mubr.f32.vlgmr.msra.gmra.mxu1 %v13360_v26  ;;  %9309 = vmatprep.subr.mxu0 %v4447_v24  ;;  %v5402_v26 = vcombine.high %v13401_v11, %v13401_v11  ;;  %v4502_v24 = vld [vmem:[%s16419_s7 + $0x938] sm:$0xff] }
 0x482   :  { %9314 = vmatprep.subr.mxu1 %v4494_v6  ;;  %9310 = vmatpush3.msra.mxu0 %v4431_v5  ;;  %v4484_v6 = vld [vmem:[%s16419_s7 + $0x8a8] sm:$0xff]  ;;  %v4517_v5 = vld [vmem:[%s16419_s7 + $0x9b0] sm:$0xff] }
 0x483   :  { %9315 = vmatpush3.msra.mxu1 %v4478_v23  ;;  %6342 = vmatprep.mubr.f32.mxu1 %v13401_v11  ;;  %v4491_v11 = vld [vmem:[%s16419_s7 + $0x8e0] sm:$0xff]  ;;  %v4468_v23 = vld [vmem:[%s16419_s7 + $0x828] sm:$0xff] }
 0x484   :  { %6273 = vmatmul.mubr.f32.vlgmr.msra.gmra.mxu0 %v5351_v49  ;;  %9316 = vmatprep.subr.mxu1 %v4493_v63  ;;  %v4501_v63 = vld [vmem:[%s16419_s7 + $0x930] sm:$0xff]  ;;  %v4483_v49 = vld [vmem:[%s16419_s7 + $0x8a0] sm:$0xff] }
 0x485   :  { %9349 = vmatprep.subr.mxu0 %v4526_v16  ;;  %9317 = vmatpush3.msra.mxu1 %v4477_v53  ;;  %v4516_v16 = vld [vmem:[%s16419_s7 + $0x9a8] sm:$0xff]  ;;  %v4467_v53 = vld [vmem:[%s16419_s7 + $0x820] sm:$0xff] }
 0x486   :  { %9350 = vmatpush3.msra.mxu0 %v4510_v50  ;;  %6412 = vmatprep.mubr.f32.mxu0 %v5402_v26  ;;  %v4500_v50 = vld [vmem:[%s16419_s7 + $0x928] sm:$0xff]  ;;  %v4482_v26 = vld [vmem:[%s16419_s7 + $0x898] sm:$0xff] }
 0x487   :  { %9318 = vmatprep.subr.mxu1 %v4492_v48  ;;  %9351 = vmatprep.subr.mxu0 %v4525_v43  ;;  %v4515_v48 = vld [vmem:[%s16419_s7 + $0x9a0] sm:$0xff]  ;;  %v4466_v43 = vld [vmem:[%s16419_s7 + $0x818] sm:$0xff] }
 0x488   :  { %9319 = vmatpush3.msra.mxu1 %v4476_v1  ;;  %9352 = vmatpush3.msra.mxu0 %v4509_v21  ;;  %v4499_v1 = vld [vmem:[%s16419_s7 + $0x920] sm:$0xff]  ;;  %v4481_v21 = vld [vmem:[%s16419_s7 + $0x890] sm:$0xff] }
 0x489   :  { %9320 = vmatprep.subr.mxu1 %v4491_v11  ;;  %9353 = vmatprep.subr.mxu0 %v4524_v10  ;;  %v4514_v11 = vld [vmem:[%s16419_s7 + $0x998] sm:$0xff]  ;;  %v4465_v10 = vld [vmem:[%s16419_s7 + $0x810] sm:$0xff] }
 0x48a   :  { %9321 = vmatpush3.msra.mxu1 %v4475_v7  ;;  %9354 = vmatpush3.msra.mxu0 %v4508_v12  ;;  %v4498_v7 = vld [vmem:[%s16419_s7 + $0x918] sm:$0xff]  ;;  %v4480_v12 = vld [vmem:[%s16419_s7 + $0x888] sm:$0xff] }
 0x48b   :  { %9322 = vmatprep.subr.mxu1 %v4490_v59  ;;  %9355 = vmatprep.subr.mxu0 %v4523_v0  ;;  %v4513_v59 = vld [vmem:[%s16419_s7 + $0x990] sm:$0xff]  ;;  %v4464_v0 = vld [vmem:[%s16419_s7 + $0x808] sm:$0xff] }
 0x48c   :  { %9323 = vmatpush3.msra.mxu1 %v4474_v20  ;;  %9356 = vmatpush3.msra.mxu0 %v4507_v34  ;;  %v4497_v20 = vld [vmem:[%s16419_s7 + $0x910] sm:$0xff]  ;;  %v4479_v34 = vld [vmem:[%s16419_s7 + $0x880] sm:$0xff] }
 0x48d   :  { %9324 = vmatprep.subr.mxu1 %v4489_v44  ;;  %9357 = vmatprep.subr.mxu0 %v4522_v27  ;;  %v4512_v44 = vld [vmem:[%s16419_s7 + $0x988] sm:$0xff]  ;;  %v4463_v27 = vld [vmem:[%s16419_s7 + $0x800] sm:$0xff] }
 0x48e   :  { %9325 = vmatpush3.msra.mxu1 %v4473_v3  ;;  %9358 = vmatpush3.msra.mxu0 %v4506_v22  ;;  %v4496_v3 = vld [vmem:[%s16419_s7 + $0x908] sm:$0xff]  ;;  %v4511_v22 = vld [vmem:[%s16419_s7 + $0x980] sm:$0xff] }
 0x48f   :  { %9326 = vmatprep.subr.mxu1 %v4488_v14  ;;  %9359 = vmatprep.subr.mxu0 %v4521_v61  ;;  %v4558_v14 = vld [vmem:[%s16419_s7 + $0xaf8] sm:$0xff]  ;;  %v4495_v61 = vld [vmem:[%s16419_s7 + $0x900] sm:$0xff] }
 0x490   :  { %9327 = vmatpush3.msra.mxu1 %v4472_v19  ;;  %9360 = vmatpush3.msra.mxu0 %v4505_v4  ;;  %v4542_v19 = vld [vmem:[%s16419_s7 + $0xa78] sm:$0xff]  ;;  %v4557_v4 = vld [vmem:[%s16419_s7 + $0xaf0] sm:$0xff] }
 0x491   :  { %9328 = vmatprep.subr.mxu1 %v4487_v28  ;;  %9361 = vmatprep.subr.mxu0 %v4520_v46  ;;  %v5400_v28 = vcombine.high %v13383_v42, %v13383_v42  ;;  %v4590_v46 = vld [vmem:[%s16419_s7 + $0xbf8] sm:$0xff] }
 0x492   :  { %9329 = vmatpush3.msra.mxu1 %v4471_v38  ;;  %9362 = vmatpush3.msra.mxu0 %v4504_v17  ;;  %v4541_v38 = vld [vmem:[%s16419_s7 + $0xa70] sm:$0xff]  ;;  %v4574_v17 = vld [vmem:[%s16419_s7 + $0xb78] sm:$0xff] }
 0x493   :  { %9330 = vmatprep.subr.mxu1 %v4486_v39  ;;  %9363 = vmatprep.subr.mxu0 %v4519_v29  ;;  %v4556_v39 = vld [vmem:[%s16419_s7 + $0xae8] sm:$0xff]  ;;  %v4589_v29 = vld [vmem:[%s16419_s7 + $0xbf0] sm:$0xff] }
 0x494   :  { %9331 = vmatpush3.msra.mxu1 %v4470_v8  ;;  %9364 = vmatpush3.msra.mxu0 %v4503_v52  ;;  %v4540_v8 = vld [vmem:[%s16419_s7 + $0xa68] sm:$0xff]  ;;  %v4573_v52 = vld [vmem:[%s16419_s7 + $0xb70] sm:$0xff] }
 0x495   :  { %9332 = vmatprep.subr.mxu1 %v4485_v54  ;;  %9365 = vmatprep.subr.mxu0 %v4518_v58  ;;  %v4588_v54 = vld [vmem:[%s16419_s7 + $0xbe8] sm:$0xff]  ;;  %v4539_v58 = vld [vmem:[%s16419_s7 + $0xa60] sm:$0xff] }
 0x496   :  { %9333 = vmatpush3.msra.mxu1 %v4469_v35  ;;  %9366 = vmatpush3.msra.mxu0 %v4502_v24  ;;  %v4572_v35 = vld [vmem:[%s16419_s7 + $0xb68] sm:$0xff]  ;;  %v4554_v24 = vld [vmem:[%s16419_s7 + $0xad8] sm:$0xff] }
 0x497   :  { %9334 = vmatprep.subr.mxu1 %v4484_v6  ;;  %9367 = vmatprep.subr.mxu0 %v4517_v5  ;;  %v4587_v6 = vld [vmem:[%s16419_s7 + $0xbe0] sm:$0xff]  ;;  %v4538_v5 = vld [vmem:[%s16419_s7 + $0xa58] sm:$0xff] }
 0x498   :  { %9335 = vmatpush3.msra.mxu1 %v4468_v23  ;;  %9368 = vmatpush3.msra.mxu0 %v4501_v63  ;;  %v4571_v23 = vld [vmem:[%s16419_s7 + $0xb60] sm:$0xff]  ;;  %v4553_v63 = vld [vmem:[%s16419_s7 + $0xad0] sm:$0xff] }
 0x499   :  { %9336 = vmatprep.subr.mxu1 %v4483_v49  ;;  %9369 = vmatprep.subr.mxu0 %v4516_v16  ;;  %v4586_v49 = vld [vmem:[%s16419_s7 + $0xbd8] sm:$0xff]  ;;  %v4537_v16 = vld [vmem:[%s16419_s7 + $0xa50] sm:$0xff] }
 0x49a   :  { %9337 = vmatpush3.msra.mxu1 %v4467_v53  ;;  %9370 = vmatpush3.msra.mxu0 %v4500_v50  ;;  %v4570_v53 = vld [vmem:[%s16419_s7 + $0xb58] sm:$0xff]  ;;  %v4552_v50 = vld [vmem:[%s16419_s7 + $0xac8] sm:$0xff] }
 0x49b   :  { %9338 = vmatprep.subr.mxu1 %v4482_v26  ;;  %9371 = vmatprep.subr.mxu0 %v4515_v48  ;;  %v4585_v26 = vld [vmem:[%s16419_s7 + $0xbd0] sm:$0xff]  ;;  %v4536_v48 = vld [vmem:[%s16419_s7 + $0xa48] sm:$0xff] }
 0x49c   :  { %9339 = vmatpush3.msra.mxu1 %v4466_v43  ;;  %9372 = vmatpush3.msra.mxu0 %v4499_v1  ;;  %v4569_v43 = vld [vmem:[%s16419_s7 + $0xb50] sm:$0xff]  ;;  %v4551_v1 = vld [vmem:[%s16419_s7 + $0xac0] sm:$0xff] }
 0x49d   :  { %9340 = vmatprep.subr.mxu1 %v4481_v21  ;;  %9373 = vmatprep.subr.mxu0 %v4514_v11  ;;  %v4584_v21 = vld [vmem:[%s16419_s7 + $0xbc8] sm:$0xff]  ;;  %v4535_v11 = vld [vmem:[%s16419_s7 + $0xa40] sm:$0xff] }
 0x49e   :  { %9341 = vmatpush3.msra.mxu1 %v4465_v10  ;;  %9374 = vmatpush3.msra.mxu0 %v4498_v7  ;;  %v4568_v10 = vld [vmem:[%s16419_s7 + $0xb48] sm:$0xff]  ;;  %v4550_v7 = vld [vmem:[%s16419_s7 + $0xab8] sm:$0xff] }
 0x49f   :  { %9342 = vmatprep.subr.mxu1 %v4480_v12  ;;  %9375 = vmatprep.subr.mxu0 %v4513_v59  ;;  %v4583_v12 = vld [vmem:[%s16419_s7 + $0xbc0] sm:$0xff]  ;;  %v4534_v59 = vld [vmem:[%s16419_s7 + $0xa38] sm:$0xff] }
 0x4a0   :  { %9343 = vmatpush3.msra.mxu1 %v4464_v0  ;;  %9376 = vmatpush3.msra.mxu0 %v4497_v20  ;;  %v4567_v0 = vld [vmem:[%s16419_s7 + $0xb40] sm:$0xff]  ;;  %v4549_v20 = vld [vmem:[%s16419_s7 + $0xab0] sm:$0xff] }
 0x4a1   :  { %9344 = vmatprep.subr.mxu1 %v4479_v34  ;;  %9377 = vmatprep.subr.mxu0 %v4512_v44  ;;  %v4582_v34 = vld [vmem:[%s16419_s7 + $0xbb8] sm:$0xff]  ;;  %v4533_v44 = vld [vmem:[%s16419_s7 + $0xa30] sm:$0xff] }
 0x4a2   :  { %9345 = vmatpush3.msra.mxu1 %v4463_v27  ;;  %9378 = vmatpush3.msra.mxu0 %v4496_v3  ;;  %v4566_v27 = vld [vmem:[%s16419_s7 + $0xb38] sm:$0xff]  ;;  %v4548_v3 = vld [vmem:[%s16419_s7 + $0xaa8] sm:$0xff] }
 0x4a3   :  { %6343 = vmatmul.mubr.f32.vlgmr.msra.gmra.mxu1 %v13383_v42  ;;  %9379 = vmatprep.subr.mxu0 %v4511_v22  ;;  %v5403_v42 = vcombine.high %v13414_v25, %v13414_v25  ;;  %v4581_v22 = vld [vmem:[%s16419_s7 + $0xbb0] sm:$0xff] }
 0x4a4   :  { %9384 = vmatprep.subr.mxu1 %v4558_v14  ;;  %9380 = vmatpush3.msra.mxu0 %v4495_v61  ;;  %v4532_v14 = vld [vmem:[%s16419_s7 + $0xa28] sm:$0xff]  ;;  %v4565_v61 = vld [vmem:[%s16419_s7 + $0xb30] sm:$0xff] }
 0x4a5   :  { %9385 = vmatpush3.msra.mxu1 %v4542_v19  ;;  %6482 = vmatprep.mubr.f32.mxu1 %v13414_v25  ;;  %v4555_v25 = vld [vmem:[%s16419_s7 + $0xae0] sm:$0xff] }
 0x4a6   :  { %6413 = vmatmul.mubr.f32.vlgmr.msra.gmra.mxu0 %v5400_v28  ;;  %9386 = vmatprep.subr.mxu1 %v4557_v4  ;;  %v4547_v19 = vld [vmem:[%s16419_s7 + $0xaa0] sm:$0xff]  ;;  %v4580_v4 = vld [vmem:[%s16419_s7 + $0xba8] sm:$0xff] }
 0x4a7   :  { %9419 = vmatprep.subr.mxu0 %v4590_v46  ;;  %9387 = vmatpush3.msra.mxu1 %v4541_v38  ;;  %v4531_v28 = vld [vmem:[%s16419_s7 + $0xa20] sm:$0xff]  ;;  %v4564_v46 = vld [vmem:[%s16419_s7 + $0xb28] sm:$0xff]  ;;  %v4546_v38 = vld [vmem:[%s16419_s7 + $0xa98] sm:$0xff] }
 0x4a8   :  { %9420 = vmatpush3.msra.mxu0 %v4574_v17  ;;  %6552 = vmatprep.mubr.f32.mxu0 %v5403_v42  ;;  %v4579_v17 = vld [vmem:[%s16419_s7 + $0xba0] sm:$0xff]  ;;  %v4530_v42 = vld [vmem:[%s16419_s7 + $0xa18] sm:$0xff] }
 0x4a9   :  { %9388 = vmatprep.subr.mxu1 %v4556_v39  ;;  %9421 = vmatprep.subr.mxu0 %v4589_v29  ;;  %v4563_v39 = vld [vmem:[%s16419_s7 + $0xb20] sm:$0xff]  ;;  %v4545_v29 = vld [vmem:[%s16419_s7 + $0xa90] sm:$0xff] }
 0x4aa   :  { %9389 = vmatpush3.msra.mxu1 %v4540_v8  ;;  %9422 = vmatpush3.msra.mxu0 %v4573_v52  ;;  %v4578_v8 = vld [vmem:[%s16419_s7 + $0xb98] sm:$0xff]  ;;  %v4529_v52 = vld [vmem:[%s16419_s7 + $0xa10] sm:$0xff] }
 0x4ab   :  { %9390 = vmatprep.subr.mxu1 %v4555_v25  ;;  %9423 = vmatprep.subr.mxu0 %v4588_v54  ;;  %v4562_v25 = vld [vmem:[%s16419_s7 + $0xb18] sm:$0xff]  ;;  %v4544_v54 = vld [vmem:[%s16419_s7 + $0xa88] sm:$0xff] }
 0x4ac   :  { %9391 = vmatpush3.msra.mxu1 %v4539_v58  ;;  %9424 = vmatpush3.msra.mxu0 %v4572_v35  ;;  %v4577_v58 = vld [vmem:[%s16419_s7 + $0xb90] sm:$0xff]  ;;  %v4528_v35 = vld [vmem:[%s16419_s7 + $0xa08] sm:$0xff] }
 0x4ad   :  { %9392 = vmatprep.subr.mxu1 %v4554_v24  ;;  %9425 = vmatprep.subr.mxu0 %v4587_v6  ;;  %v4561_v24 = vld [vmem:[%s16419_s7 + $0xb10] sm:$0xff]  ;;  %v4543_v6 = vld [vmem:[%s16419_s7 + $0xa80] sm:$0xff] }
 0x4ae   :  { %9393 = vmatpush3.msra.mxu1 %v4538_v5  ;;  %9426 = vmatpush3.msra.mxu0 %v4571_v23  ;;  %v4576_v5 = vld [vmem:[%s16419_s7 + $0xb88] sm:$0xff]  ;;  %v4527_v23 = vld [vmem:[%s16419_s7 + $0xa00] sm:$0xff] }
 0x4af   :  { %9394 = vmatprep.subr.mxu1 %v4553_v63  ;;  %9427 = vmatprep.subr.mxu0 %v4586_v49  ;;  %v4560_v63 = vld [vmem:[%s16419_s7 + $0xb08] sm:$0xff]  ;;  %v4575_v49 = vld [vmem:[%s16419_s7 + $0xb80] sm:$0xff] }
 0x4b0   :  { %9395 = vmatpush3.msra.mxu1 %v4537_v16  ;;  %9428 = vmatpush3.msra.mxu0 %v4570_v53  ;;  %v4622_v16 = vld [vmem:[%s16419_s7 + $0xcf8] sm:$0xff]  ;;  %v4559_v53 = vld [vmem:[%s16419_s7 + $0xb00] sm:$0xff] }
 0x4b1   :  { %9396 = vmatprep.subr.mxu1 %v4552_v50  ;;  %9429 = vmatprep.subr.mxu0 %v4585_v26  ;;  %v4606_v50 = vld [vmem:[%s16419_s7 + $0xc78] sm:$0xff]  ;;  %v4621_v26 = vld [vmem:[%s16419_s7 + $0xcf0] sm:$0xff] }
 0x4b2   :  { %9397 = vmatpush3.msra.mxu1 %v4536_v48  ;;  %9430 = vmatpush3.msra.mxu0 %v4569_v43  ;;  %v5401_v48 = vcombine.high %v13392_v18, %v13392_v18  ;;  %v4654_v43 = vld [vmem:[%s16419_s7 + $0xdf8] sm:$0xff] }
 0x4b3   :  { %9398 = vmatprep.subr.mxu1 %v4551_v1  ;;  %9431 = vmatprep.subr.mxu0 %v4584_v21  ;;  %v4605_v1 = vld [vmem:[%s16419_s7 + $0xc70] sm:$0xff]  ;;  %v4638_v21 = vld [vmem:[%s16419_s7 + $0xd78] sm:$0xff] }
 0x4b4   :  { %9399 = vmatpush3.msra.mxu1 %v4535_v11  ;;  %9432 = vmatpush3.msra.mxu0 %v4568_v10  ;;  %v4620_v11 = vld [vmem:[%s16419_s7 + $0xce8] sm:$0xff]  ;;  %v4653_v10 = vld [vmem:[%s16419_s7 + $0xdf0] sm:$0xff] }
 0x4b5   :  { %9400 = vmatprep.subr.mxu1 %v4550_v7  ;;  %9433 = vmatprep.subr.mxu0 %v4583_v12  ;;  %v4604_v7 = vld [vmem:[%s16419_s7 + $0xc68] sm:$0xff]  ;;  %v4637_v12 = vld [vmem:[%s16419_s7 + $0xd70] sm:$0xff] }
 0x4b6   :  { %9401 = vmatpush3.msra.mxu1 %v4534_v59  ;;  %9434 = vmatpush3.msra.mxu0 %v4567_v0  ;;  %v4652_v59 = vld [vmem:[%s16419_s7 + $0xde8] sm:$0xff]  ;;  %v4603_v0 = vld [vmem:[%s16419_s7 + $0xc60] sm:$0xff] }
 0x4b7   :  { %9402 = vmatprep.subr.mxu1 %v4549_v20  ;;  %9435 = vmatprep.subr.mxu0 %v4582_v34  ;;  %v4636_v20 = vld [vmem:[%s16419_s7 + $0xd68] sm:$0xff]  ;;  %v4618_v34 = vld [vmem:[%s16419_s7 + $0xcd8] sm:$0xff] }
 0x4b8   :  { %9403 = vmatpush3.msra.mxu1 %v4533_v44  ;;  %9436 = vmatpush3.msra.mxu0 %v4566_v27  ;;  %v4651_v44 = vld [vmem:[%s16419_s7 + $0xde0] sm:$0xff]  ;;  %v4602_v27 = vld [vmem:[%s16419_s7 + $0xc58] sm:$0xff] }
 0x4b9   :  { %9404 = vmatprep.subr.mxu1 %v4548_v3  ;;  %9437 = vmatprep.subr.mxu0 %v4581_v22  ;;  %v4635_v3 = vld [vmem:[%s16419_s7 + $0xd60] sm:$0xff]  ;;  %v4617_v22 = vld [vmem:[%s16419_s7 + $0xcd0] sm:$0xff] }
 0x4ba   :  { %9405 = vmatpush3.msra.mxu1 %v4532_v14  ;;  %9438 = vmatpush3.msra.mxu0 %v4565_v61  ;;  %v4650_v14 = vld [vmem:[%s16419_s7 + $0xdd8] sm:$0xff]  ;;  %v4601_v61 = vld [vmem:[%s16419_s7 + $0xc50] sm:$0xff] }
 0x4bb   :  { %9406 = vmatprep.subr.mxu1 %v4547_v19  ;;  %9439 = vmatprep.subr.mxu0 %v4580_v4  ;;  %v4634_v19 = vld [vmem:[%s16419_s7 + $0xd58] sm:$0xff]  ;;  %v4616_v4 = vld [vmem:[%s16419_s7 + $0xcc8] sm:$0xff] }
 0x4bc   :  { %9407 = vmatpush3.msra.mxu1 %v4531_v28  ;;  %9440 = vmatpush3.msra.mxu0 %v4564_v46  ;;  %v4649_v28 = vld [vmem:[%s16419_s7 + $0xdd0] sm:$0xff]  ;;  %v4600_v46 = vld [vmem:[%s16419_s7 + $0xc48] sm:$0xff] }
 0x4bd   :  { %9408 = vmatprep.subr.mxu1 %v4546_v38  ;;  %9441 = vmatprep.subr.mxu0 %v4579_v17  ;;  %v4633_v38 = vld [vmem:[%s16419_s7 + $0xd50] sm:$0xff]  ;;  %v4615_v17 = vld [vmem:[%s16419_s7 + $0xcc0] sm:$0xff] }
 0x4be   :  { %9409 = vmatpush3.msra.mxu1 %v4530_v42  ;;  %9442 = vmatpush3.msra.mxu0 %v4563_v39  ;;  %v4648_v42 = vld [vmem:[%s16419_s7 + $0xdc8] sm:$0xff]  ;;  %v4599_v39 = vld [vmem:[%s16419_s7 + $0xc40] sm:$0xff] }
 0x4bf   :  { %9410 = vmatprep.subr.mxu1 %v4545_v29  ;;  %9443 = vmatprep.subr.mxu0 %v4578_v8  ;;  %v4632_v29 = vld [vmem:[%s16419_s7 + $0xd48] sm:$0xff]  ;;  %v4614_v8 = vld [vmem:[%s16419_s7 + $0xcb8] sm:$0xff] }
 0x4c0   :  { %9411 = vmatpush3.msra.mxu1 %v4529_v52  ;;  %9444 = vmatpush3.msra.mxu0 %v4562_v25  ;;  %v4647_v52 = vld [vmem:[%s16419_s7 + $0xdc0] sm:$0xff]  ;;  %v4598_v25 = vld [vmem:[%s16419_s7 + $0xc38] sm:$0xff] }
 0x4c1   :  { %9412 = vmatprep.subr.mxu1 %v4544_v54  ;;  %9445 = vmatprep.subr.mxu0 %v4577_v58  ;;  %v4631_v54 = vld [vmem:[%s16419_s7 + $0xd40] sm:$0xff]  ;;  %v4613_v58 = vld [vmem:[%s16419_s7 + $0xcb0] sm:$0xff] }
 0x4c2   :  { %9413 = vmatpush3.msra.mxu1 %v4528_v35  ;;  %9446 = vmatpush3.msra.mxu0 %v4561_v24  ;;  %v4646_v35 = vld [vmem:[%s16419_s7 + $0xdb8] sm:$0xff]  ;;  %v4597_v24 = vld [vmem:[%s16419_s7 + $0xc30] sm:$0xff] }
 0x4c3   :  { %9414 = vmatprep.subr.mxu1 %v4543_v6  ;;  %9447 = vmatprep.subr.mxu0 %v4576_v5  ;;  %v4630_v6 = vld [vmem:[%s16419_s7 + $0xd38] sm:$0xff]  ;;  %v4612_v5 = vld [vmem:[%s16419_s7 + $0xca8] sm:$0xff] }
 0x4c4   :  { %9415 = vmatpush3.msra.mxu1 %v4527_v23  ;;  %9448 = vmatpush3.msra.mxu0 %v4560_v63  ;;  %v4645_v23 = vld [vmem:[%s16419_s7 + $0xdb0] sm:$0xff]  ;;  %v4596_v63 = vld [vmem:[%s16419_s7 + $0xc28] sm:$0xff] }
 0x4c5   :  { %6483 = vmatmul.mubr.f32.vlgmr.msra.gmra.mxu1 %v13392_v18  ;;  %9449 = vmatprep.subr.mxu0 %v4575_v49  ;;  %v5452_v18 = vcombine.high %v13445_v51, %v13445_v51  ;;  %v4629_v49 = vld [vmem:[%s16419_s7 + $0xd30] sm:$0xff] }
 0x4c6   :  { %9454 = vmatprep.subr.mxu1 %v4622_v16  ;;  %9450 = vmatpush3.msra.mxu0 %v4559_v53  ;;  %v4611_v16 = vld [vmem:[%s16419_s7 + $0xca0] sm:$0xff]  ;;  %v4644_v53 = vld [vmem:[%s16419_s7 + $0xda8] sm:$0xff] }
 0x4c7   :  { %9455 = vmatpush3.msra.mxu1 %v4606_v50  ;;  %6622 = vmatprep.mubr.f32.mxu1 %v13445_v51  ;;  %v4619_v51 = vld [vmem:[%s16419_s7 + $0xce0] sm:$0xff] }
 0x4c8   :  { %6553 = vmatmul.mubr.f32.vlgmr.msra.gmra.mxu0 %v5401_v48  ;;  %9456 = vmatprep.subr.mxu1 %v4621_v26  ;;  %v4595_v50 = vld [vmem:[%s16419_s7 + $0xc20] sm:$0xff]  ;;  %v4628_v26 = vld [vmem:[%s16419_s7 + $0xd28] sm:$0xff]  ;;  %v4610_v48 = vld [vmem:[%s16419_s7 + $0xc98] sm:$0xff] }
 0x4c9   :  { %9489 = vmatprep.subr.mxu0 %v4654_v43  ;;  %9457 = vmatpush3.msra.mxu1 %v4605_v1  ;;  %v4643_v43 = vld [vmem:[%s16419_s7 + $0xda0] sm:$0xff]  ;;  %v4594_v1 = vld [vmem:[%s16419_s7 + $0xc18] sm:$0xff] }
 0x4ca   :  { %9490 = vmatpush3.msra.mxu0 %v4638_v21  ;;  %6692 = vmatprep.mubr.f32.mxu0 %v5452_v18  ;;  %v4627_v21 = vld [vmem:[%s16419_s7 + $0xd20] sm:$0xff]  ;;  %v4609_v18 = vld [vmem:[%s16419_s7 + $0xc90] sm:$0xff] }
 0x4cb   :  { %9458 = vmatprep.subr.mxu1 %v4620_v11  ;;  %9491 = vmatprep.subr.mxu0 %v4653_v10  ;;  %v4642_v11 = vld [vmem:[%s16419_s7 + $0xd98] sm:$0xff]  ;;  %v4593_v10 = vld [vmem:[%s16419_s7 + $0xc10] sm:$0xff] }
 0x4cc   :  { %9459 = vmatpush3.msra.mxu1 %v4604_v7  ;;  %9492 = vmatpush3.msra.mxu0 %v4637_v12  ;;  %v4626_v7 = vld [vmem:[%s16419_s7 + $0xd18] sm:$0xff]  ;;  %v4608_v12 = vld [vmem:[%s16419_s7 + $0xc88] sm:$0xff] }
 0x4cd   :  { %9460 = vmatprep.subr.mxu1 %v4619_v51  ;;  %9493 = vmatprep.subr.mxu0 %v4652_v59  ;;  %v4641_v51 = vld [vmem:[%s16419_s7 + $0xd90] sm:$0xff]  ;;  %v4592_v59 = vld [vmem:[%s16419_s7 + $0xc08] sm:$0xff] }
 0x4ce   :  { %9461 = vmatpush3.msra.mxu1 %v4603_v0  ;;  %9494 = vmatpush3.msra.mxu0 %v4636_v20  ;;  %v4625_v0 = vld [vmem:[%s16419_s7 + $0xd10] sm:$0xff]  ;;  %v4607_v20 = vld [vmem:[%s16419_s7 + $0xc80] sm:$0xff] }
 0x4cf   :  { %9462 = vmatprep.subr.mxu1 %v4618_v34  ;;  %9495 = vmatprep.subr.mxu0 %v4651_v44  ;;  %v4640_v34 = vld [vmem:[%s16419_s7 + $0xd88] sm:$0xff]  ;;  %v4591_v44 = vld [vmem:[%s16419_s7 + $0xc00] sm:$0xff] }
 0x4d0   :  { %9463 = vmatpush3.msra.mxu1 %v4602_v27  ;;  %9496 = vmatpush3.msra.mxu0 %v4635_v3  ;;  %v4624_v27 = vld [vmem:[%s16419_s7 + $0xd08] sm:$0xff]  ;;  %v4639_v3 = vld [vmem:[%s16419_s7 + $0xd80] sm:$0xff] }
 0x4d1   :  { %9464 = vmatprep.subr.mxu1 %v4617_v22  ;;  %9497 = vmatprep.subr.mxu0 %v4650_v14  ;;  %v4686_v22 = vld [vmem:[%s16419_s7 + $0xef8] sm:$0xff]  ;;  %v4623_v14 = vld [vmem:[%s16419_s7 + $0xd00] sm:$0xff] }
 0x4d2   :  { %9465 = vmatpush3.msra.mxu1 %v4601_v61  ;;  %9498 = vmatpush3.msra.mxu0 %v4634_v19  ;;  %v4670_v61 = vld [vmem:[%s16419_s7 + $0xe78] sm:$0xff]  ;;  %v4685_v19 = vld [vmem:[%s16419_s7 + $0xef0] sm:$0xff] }
 0x4d3   :  { %9466 = vmatprep.subr.mxu1 %v4616_v4  ;;  %9499 = vmatprep.subr.mxu0 %v4649_v28  ;;  %v5450_v4 = vcombine.high %v13427_v41, %v13427_v41  ;;  %v4718_v28 = vld [vmem:[%s16419_s7 + $0xff8] sm:$0xff] }
 0x4d4   :  { %9467 = vmatpush3.msra.mxu1 %v4600_v46  ;;  %9500 = vmatpush3.msra.mxu0 %v4633_v38  ;;  %v4669_v46 = vld [vmem:[%s16419_s7 + $0xe70] sm:$0xff]  ;;  %v4702_v38 = vld [vmem:[%s16419_s7 + $0xf78] sm:$0xff] }
 0x4d5   :  { %9468 = vmatprep.subr.mxu1 %v4615_v17  ;;  %9501 = vmatprep.subr.mxu0 %v4648_v42  ;;  %v4684_v17 = vld [vmem:[%s16419_s7 + $0xee8] sm:$0xff]  ;;  %v4717_v42 = vld [vmem:[%s16419_s7 + $0xff0] sm:$0xff] }
 0x4d6   :  { %9469 = vmatpush3.msra.mxu1 %v4599_v39  ;;  %9502 = vmatpush3.msra.mxu0 %v4632_v29  ;;  %v4668_v39 = vld [vmem:[%s16419_s7 + $0xe68] sm:$0xff]  ;;  %v4701_v29 = vld [vmem:[%s16419_s7 + $0xf70] sm:$0xff] }
 0x4d7   :  { %9470 = vmatprep.subr.mxu1 %v4614_v8  ;;  %9503 = vmatprep.subr.mxu0 %v4647_v52  ;;  %v4716_v8 = vld [vmem:[%s16419_s7 + $0xfe8] sm:$0xff]  ;;  %v4667_v52 = vld [vmem:[%s16419_s7 + $0xe60] sm:$0xff] }
 0x4d8   :  { %9471 = vmatpush3.msra.mxu1 %v4598_v25  ;;  %9504 = vmatpush3.msra.mxu0 %v4631_v54  ;;  %v4700_v25 = vld [vmem:[%s16419_s7 + $0xf68] sm:$0xff]  ;;  %v4682_v54 = vld [vmem:[%s16419_s7 + $0xed8] sm:$0xff] }
 0x4d9   :  { %9472 = vmatprep.subr.mxu1 %v4613_v58  ;;  %9505 = vmatprep.subr.mxu0 %v4646_v35  ;;  %v4715_v58 = vld [vmem:[%s16419_s7 + $0xfe0] sm:$0xff]  ;;  %v4666_v35 = vld [vmem:[%s16419_s7 + $0xe58] sm:$0xff] }
 0x4da   :  { %9473 = vmatpush3.msra.mxu1 %v4597_v24  ;;  %9506 = vmatpush3.msra.mxu0 %v4630_v6  ;;  %v4699_v24 = vld [vmem:[%s16419_s7 + $0xf60] sm:$0xff]  ;;  %v4681_v6 = vld [vmem:[%s16419_s7 + $0xed0] sm:$0xff] }
 0x4db   :  { %9474 = vmatprep.subr.mxu1 %v4612_v5  ;;  %9507 = vmatprep.subr.mxu0 %v4645_v23  ;;  %v4714_v5 = vld [vmem:[%s16419_s7 + $0xfd8] sm:$0xff]  ;;  %v4665_v23 = vld [vmem:[%s16419_s7 + $0xe50] sm:$0xff] }
 0x4dc   :  { %9475 = vmatpush3.msra.mxu1 %v4596_v63  ;;  %9508 = vmatpush3.msra.mxu0 %v4629_v49  ;;  %v4698_v63 = vld [vmem:[%s16419_s7 + $0xf58] sm:$0xff]  ;;  %v4680_v49 = vld [vmem:[%s16419_s7 + $0xec8] sm:$0xff] }
 0x4dd   :  { %9476 = vmatprep.subr.mxu1 %v4611_v16  ;;  %9509 = vmatprep.subr.mxu0 %v4644_v53  ;;  %v4713_v16 = vld [vmem:[%s16419_s7 + $0xfd0] sm:$0xff]  ;;  %v4664_v53 = vld [vmem:[%s16419_s7 + $0xe48] sm:$0xff] }
 0x4de   :  { %9477 = vmatpush3.msra.mxu1 %v4595_v50  ;;  %9510 = vmatpush3.msra.mxu0 %v4628_v26  ;;  %v4697_v50 = vld [vmem:[%s16419_s7 + $0xf50] sm:$0xff]  ;;  %v4679_v26 = vld [vmem:[%s16419_s7 + $0xec0] sm:$0xff] }
 0x4df   :  { %9478 = vmatprep.subr.mxu1 %v4610_v48  ;;  %9511 = vmatprep.subr.mxu0 %v4643_v43  ;;  %v4712_v48 = vld [vmem:[%s16419_s7 + $0xfc8] sm:$0xff]  ;;  %v4663_v43 = vld [vmem:[%s16419_s7 + $0xe40] sm:$0xff] }
 0x4e0   :  { %9479 = vmatpush3.msra.mxu1 %v4594_v1  ;;  %9512 = vmatpush3.msra.mxu0 %v4627_v21  ;;  %v4696_v1 = vld [vmem:[%s16419_s7 + $0xf48] sm:$0xff]  ;;  %v4678_v21 = vld [vmem:[%s16419_s7 + $0xeb8] sm:$0xff] }
 0x4e1   :  { %9480 = vmatprep.subr.mxu1 %v4609_v18  ;;  %9513 = vmatprep.subr.mxu0 %v4642_v11  ;;  %v4711_v18 = vld [vmem:[%s16419_s7 + $0xfc0] sm:$0xff]  ;;  %v4662_v11 = vld [vmem:[%s16419_s7 + $0xe38] sm:$0xff] }
 0x4e2   :  { %9481 = vmatpush3.msra.mxu1 %v4593_v10  ;;  %9514 = vmatpush3.msra.mxu0 %v4626_v7  ;;  %v4695_v10 = vld [vmem:[%s16419_s7 + $0xf40] sm:$0xff]  ;;  %v4677_v7 = vld [vmem:[%s16419_s7 + $0xeb0] sm:$0xff] }
 0x4e3   :  { %9482 = vmatprep.subr.mxu1 %v4608_v12  ;;  %9515 = vmatprep.subr.mxu0 %v4641_v51  ;;  %v4710_v12 = vld [vmem:[%s16419_s7 + $0xfb8] sm:$0xff]  ;;  %v4661_v51 = vld [vmem:[%s16419_s7 + $0xe30] sm:$0xff] }
 0x4e4   :  { %9483 = vmatpush3.msra.mxu1 %v4592_v59  ;;  %9516 = vmatpush3.msra.mxu0 %v4625_v0  ;;  %v4694_v59 = vld [vmem:[%s16419_s7 + $0xf38] sm:$0xff]  ;;  %v4676_v0 = vld [vmem:[%s16419_s7 + $0xea8] sm:$0xff] }
 0x4e5   :  { %9484 = vmatprep.subr.mxu1 %v4607_v20  ;;  %9517 = vmatprep.subr.mxu0 %v4640_v34  ;;  %v4709_v20 = vld [vmem:[%s16419_s7 + $0xfb0] sm:$0xff]  ;;  %v4660_v34 = vld [vmem:[%s16419_s7 + $0xe28] sm:$0xff] }
 0x4e6   :  { %9485 = vmatpush3.msra.mxu1 %v4591_v44  ;;  %9518 = vmatpush3.msra.mxu0 %v4624_v27  ;;  %v4693_v44 = vld [vmem:[%s16419_s7 + $0xf30] sm:$0xff]  ;;  %v4675_v27 = vld [vmem:[%s16419_s7 + $0xea0] sm:$0xff] }
 0x4e7   :  { %6623 = vmatmul.mubr.f32.vlgmr.msra.gmra.mxu1 %v13427_v41  ;;  %9519 = vmatprep.subr.mxu0 %v4639_v3  ;;  %v5453_v41 = vcombine.high %v13458_v15, %v13458_v15  ;;  %v4708_v3 = vld [vmem:[%s16419_s7 + $0xfa8] sm:$0xff] }
 0x4e8   :  { %9524 = vmatprep.subr.mxu1 %v4686_v22  ;;  %9520 = vmatpush3.msra.mxu0 %v4623_v14  ;;  %v4659_v22 = vld [vmem:[%s16419_s7 + $0xe20] sm:$0xff]  ;;  %v4692_v14 = vld [vmem:[%s16419_s7 + $0xf28] sm:$0xff] }
 0x4e9   :  { %9525 = vmatpush3.msra.mxu1 %v4670_v61  ;;  %6762 = vmatprep.mubr.f32.mxu1 %v13458_v15  ;;  %v4683_v15 = vld [vmem:[%s16419_s7 + $0xee0] sm:$0xff]  ;;  %v4674_v61 = vld [vmem:[%s16419_s7 + $0xe98] sm:$0xff] }
 0x4ea   :  { %6693 = vmatmul.mubr.f32.vlgmr.msra.gmra.mxu0 %v5450_v4  ;;  %9526 = vmatprep.subr.mxu1 %v4685_v19  ;;  %v4707_v19 = vld [vmem:[%s16419_s7 + $0xfa0] sm:$0xff]  ;;  %v4658_v4 = vld [vmem:[%s16419_s7 + $0xe18] sm:$0xff] }
 0x4eb   :  { %9559 = vmatprep.subr.mxu0 %v4718_v28  ;;  %9527 = vmatpush3.msra.mxu1 %v4669_v46  ;;  %v4691_v28 = vld [vmem:[%s16419_s7 + $0xf20] sm:$0xff]  ;;  %v4673_v46 = vld [vmem:[%s16419_s7 + $0xe90] sm:$0xff] }
 0x4ec   :  { %9560 = vmatpush3.msra.mxu0 %v4702_v38  ;;  %6832 = vmatprep.mubr.f32.mxu0 %v5453_v41  ;;  %v4706_v38 = vld [vmem:[%s16419_s7 + $0xf98] sm:$0xff]  ;;  %v4657_v41 = vld [vmem:[%s16419_s7 + $0xe10] sm:$0xff] }
 0x4ed   :  { %9528 = vmatprep.subr.mxu1 %v4684_v17  ;;  %9561 = vmatprep.subr.mxu0 %v4717_v42  ;;  %v4690_v17 = vld [vmem:[%s16419_s7 + $0xf18] sm:$0xff]  ;;  %v4672_v42 = vld [vmem:[%s16419_s7 + $0xe88] sm:$0xff] }
 0x4ee   :  { %9529 = vmatpush3.msra.mxu1 %v4668_v39  ;;  %9562 = vmatpush3.msra.mxu0 %v4701_v29  ;;  %v4705_v39 = vld [vmem:[%s16419_s7 + $0xf90] sm:$0xff]  ;;  %v4656_v29 = vld [vmem:[%s16419_s7 + $0xe08] sm:$0xff] }
 0x4ef   :  { %9530 = vmatprep.subr.mxu1 %v4683_v15  ;;  %9563 = vmatprep.subr.mxu0 %v4716_v8  ;;  %v4689_v15 = vld [vmem:[%s16419_s7 + $0xf10] sm:$0xff]  ;;  %v4671_v8 = vld [vmem:[%s16419_s7 + $0xe80] sm:$0xff] }
 0x4f0   :  { %9531 = vmatpush3.msra.mxu1 %v4667_v52  ;;  %9564 = vmatpush3.msra.mxu0 %v4700_v25  ;;  %v4704_v52 = vld [vmem:[%s16419_s7 + $0xf88] sm:$0xff]  ;;  %v4655_v25 = vld [vmem:[%s16419_s7 + $0xe00] sm:$0xff] }
 0x4f1   :  { %9532 = vmatprep.subr.mxu1 %v4682_v54  ;;  %9565 = vmatprep.subr.mxu0 %v4715_v58  ;;  %v4688_v54 = vld [vmem:[%s16419_s7 + $0xf08] sm:$0xff]  ;;  %v4703_v58 = vld [vmem:[%s16419_s7 + $0xf80] sm:$0xff] }
 0x4f2   :  { %9533 = vmatpush3.msra.mxu1 %v4666_v35  ;;  %9566 = vmatpush3.msra.mxu0 %v4699_v24  ;;  %v4750_v35 = vld [vmem:[%s16419_s7 + $0x10f8] sm:$0xff]  ;;  %v4687_v24 = vld [vmem:[%s16419_s7 + $0xf00] sm:$0xff] }
 0x4f3   :  { %9534 = vmatprep.subr.mxu1 %v4681_v6  ;;  %9567 = vmatprep.subr.mxu0 %v4714_v5  ;;  %v4734_v6 = vld [vmem:[%s16419_s7 + $0x1078] sm:$0xff]  ;;  %v4749_v5 = vld [vmem:[%s16419_s7 + $0x10f0] sm:$0xff] }
 0x4f4   :  { %9535 = vmatpush3.msra.mxu1 %v4665_v23  ;;  %9568 = vmatpush3.msra.mxu0 %v4698_v63  ;;  %v5451_v23 = vcombine.high %v13436_v36, %v13436_v36  ;;  %v4782_v63 = vld [vmem:[%s16419_s7 + $0x11f8] sm:$0xff] }
 0x4f5   :  { %9536 = vmatprep.subr.mxu1 %v4680_v49  ;;  %9569 = vmatprep.subr.mxu0 %v4713_v16  ;;  %v4733_v49 = vld [vmem:[%s16419_s7 + $0x1070] sm:$0xff]  ;;  %v4766_v16 = vld [vmem:[%s16419_s7 + $0x1178] sm:$0xff] }
 0x4f6   :  { %9537 = vmatpush3.msra.mxu1 %v4664_v53  ;;  %9570 = vmatpush3.msra.mxu0 %v4697_v50  ;;  %v4748_v53 = vld [vmem:[%s16419_s7 + $0x10e8] sm:$0xff]  ;;  %v4781_v50 = vld [vmem:[%s16419_s7 + $0x11f0] sm:$0xff] }
 0x4f7   :  { %9538 = vmatprep.subr.mxu1 %v4679_v26  ;;  %9571 = vmatprep.subr.mxu0 %v4712_v48  ;;  %v4732_v26 = vld [vmem:[%s16419_s7 + $0x1068] sm:$0xff]  ;;  %v4765_v48 = vld [vmem:[%s16419_s7 + $0x1170] sm:$0xff] }
 0x4f8   :  { %9539 = vmatpush3.msra.mxu1 %v4663_v43  ;;  %9572 = vmatpush3.msra.mxu0 %v4696_v1  ;;  %v4780_v43 = vld [vmem:[%s16419_s7 + $0x11e8] sm:$0xff]  ;;  %v4731_v1 = vld [vmem:[%s16419_s7 + $0x1060] sm:$0xff] }
 0x4f9   :  { %9540 = vmatprep.subr.mxu1 %v4678_v21  ;;  %9573 = vmatprep.subr.mxu0 %v4711_v18  ;;  %v4764_v21 = vld [vmem:[%s16419_s7 + $0x1168] sm:$0xff]  ;;  %v4746_v18 = vld [vmem:[%s16419_s7 + $0x10d8] sm:$0xff] }
 0x4fa   :  { %9541 = vmatpush3.msra.mxu1 %v4662_v11  ;;  %9574 = vmatpush3.msra.mxu0 %v4695_v10  ;;  %v4779_v11 = vld [vmem:[%s16419_s7 + $0x11e0] sm:$0xff]  ;;  %v4730_v10 = vld [vmem:[%s16419_s7 + $0x1058] sm:$0xff] }
 0x4fb   :  { %9542 = vmatprep.subr.mxu1 %v4677_v7  ;;  %9575 = vmatprep.subr.mxu0 %v4710_v12  ;;  %v4763_v7 = vld [vmem:[%s16419_s7 + $0x1160] sm:$0xff]  ;;  %v4745_v12 = vld [vmem:[%s16419_s7 + $0x10d0] sm:$0xff] }
 0x4fc   :  { %9543 = vmatpush3.msra.mxu1 %v4661_v51  ;;  %9576 = vmatpush3.msra.mxu0 %v4694_v59  ;;  %v4778_v51 = vld [vmem:[%s16419_s7 + $0x11d8] sm:$0xff]  ;;  %v4729_v59 = vld [vmem:[%s16419_s7 + $0x1050] sm:$0xff] }
 0x4fd   :  { %9544 = vmatprep.subr.mxu1 %v4676_v0  ;;  %9577 = vmatprep.subr.mxu0 %v4709_v20  ;;  %v4762_v0 = vld [vmem:[%s16419_s7 + $0x1158] sm:$0xff]  ;;  %v4744_v20 = vld [vmem:[%s16419_s7 + $0x10c8] sm:$0xff] }
 0x4fe   :  { %9545 = vmatpush3.msra.mxu1 %v4660_v34  ;;  %9578 = vmatpush3.msra.mxu0 %v4693_v44  ;;  %v4777_v34 = vld [vmem:[%s16419_s7 + $0x11d0] sm:$0xff]  ;;  %v4728_v44 = vld [vmem:[%s16419_s7 + $0x1048] sm:$0xff] }
 0x4ff   :  { %9546 = vmatprep.subr.mxu1 %v4675_v27  ;;  %9579 = vmatprep.subr.mxu0 %v4708_v3  ;;  %v4761_v27 = vld [vmem:[%s16419_s7 + $0x1150] sm:$0xff]  ;;  %v4743_v3 = vld [vmem:[%s16419_s7 + $0x10c0] sm:$0xff] }
 0x500   :  { %9547 = vmatpush3.msra.mxu1 %v4659_v22  ;;  %9580 = vmatpush3.msra.mxu0 %v4692_v14  ;;  %v4776_v22 = vld [vmem:[%s16419_s7 + $0x11c8] sm:$0xff]  ;;  %v4727_v14 = vld [vmem:[%s16419_s7 + $0x1040] sm:$0xff] }
 0x501   :  { %9548 = vmatprep.subr.mxu1 %v4674_v61  ;;  %9581 = vmatprep.subr.mxu0 %v4707_v19  ;;  %v4760_v61 = vld [vmem:[%s16419_s7 + $0x1148] sm:$0xff]  ;;  %v4742_v19 = vld [vmem:[%s16419_s7 + $0x10b8] sm:$0xff] }
 0x502   :  { %9549 = vmatpush3.msra.mxu1 %v4658_v4  ;;  %9582 = vmatpush3.msra.mxu0 %v4691_v28  ;;  %v4775_v4 = vld [vmem:[%s16419_s7 + $0x11c0] sm:$0xff]  ;;  %v4726_v28 = vld [vmem:[%s16419_s7 + $0x1038] sm:$0xff] }
 0x503   :  { %9550 = vmatprep.subr.mxu1 %v4673_v46  ;;  %9583 = vmatprep.subr.mxu0 %v4706_v38  ;;  %v4759_v46 = vld [vmem:[%s16419_s7 + $0x1140] sm:$0xff]  ;;  %v4741_v38 = vld [vmem:[%s16419_s7 + $0x10b0] sm:$0xff] }
 0x504   :  { %9551 = vmatpush3.msra.mxu1 %v4657_v41  ;;  %9584 = vmatpush3.msra.mxu0 %v4690_v17  ;;  %v4774_v41 = vld [vmem:[%s16419_s7 + $0x11b8] sm:$0xff]  ;;  %v4725_v17 = vld [vmem:[%s16419_s7 + $0x1030] sm:$0xff] }
 0x505   :  { %9552 = vmatprep.subr.mxu1 %v4672_v42  ;;  %9585 = vmatprep.subr.mxu0 %v4705_v39  ;;  %v4758_v42 = vld [vmem:[%s16419_s7 + $0x1138] sm:$0xff]  ;;  %v4740_v39 = vld [vmem:[%s16419_s7 + $0x10a8] sm:$0xff] }
 0x506   :  { %9553 = vmatpush3.msra.mxu1 %v4656_v29  ;;  %9586 = vmatpush3.msra.mxu0 %v4689_v15  ;;  %v4773_v29 = vld [vmem:[%s16419_s7 + $0x11b0] sm:$0xff]  ;;  %v4724_v15 = vld [vmem:[%s16419_s7 + $0x1028] sm:$0xff] }
 0x507   :  { %9554 = vmatprep.subr.mxu1 %v4671_v8  ;;  %9587 = vmatprep.subr.mxu0 %v4704_v52  ;;  %v4757_v8 = vld [vmem:[%s16419_s7 + $0x1130] sm:$0xff]  ;;  %v4739_v52 = vld [vmem:[%s16419_s7 + $0x10a0] sm:$0xff] }
 0x508   :  { %9555 = vmatpush3.msra.mxu1 %v4655_v25  ;;  %9588 = vmatpush3.msra.mxu0 %v4688_v54  ;;  %v4772_v25 = vld [vmem:[%s16419_s7 + $0x11a8] sm:$0xff]  ;;  %v4723_v54 = vld [vmem:[%s16419_s7 + $0x1020] sm:$0xff] }
 0x509   :  { %6763 = vmatmul.mubr.f32.vlgmr.msra.gmra.mxu1 %v13436_v36  ;;  %9589 = vmatprep.subr.mxu0 %v4703_v58  ;;  %v5502_v36 = vcombine.high %v13489_v32, %v13489_v32  ;;  %v4756_v58 = vld [vmem:[%s16419_s7 + $0x1128] sm:$0xff] }
 0x50a   :  { %9594 = vmatprep.subr.mxu1 %v4750_v35  ;;  %9590 = vmatpush3.msra.mxu0 %v4687_v24  ;;  %v4738_v35 = vld [vmem:[%s16419_s7 + $0x1098] sm:$0xff]  ;;  %v4771_v24 = vld [vmem:[%s16419_s7 + $0x11a0] sm:$0xff] }
 0x50b   :  { %9595 = vmatpush3.msra.mxu1 %v4734_v6  ;;  %6902 = vmatprep.mubr.f32.mxu1 %v13489_v32  ;;  %v4747_v32 = vld [vmem:[%s16419_s7 + $0x10e0] sm:$0xff]  ;;  %v4722_v6 = vld [vmem:[%s16419_s7 + $0x1018] sm:$0xff] }
 0x50c   :  { %6833 = vmatmul.mubr.f32.vlgmr.msra.gmra.mxu0 %v5451_v23  ;;  %9596 = vmatprep.subr.mxu1 %v4749_v5  ;;  %v4755_v5 = vld [vmem:[%s16419_s7 + $0x1120] sm:$0xff]  ;;  %v4737_v23 = vld [vmem:[%s16419_s7 + $0x1090] sm:$0xff] }
 0x50d   :  { %9629 = vmatprep.subr.mxu0 %v4782_v63  ;;  %9597 = vmatpush3.msra.mxu1 %v4733_v49  ;;  %v4770_v63 = vld [vmem:[%s16419_s7 + $0x1198] sm:$0xff]  ;;  %v4721_v49 = vld [vmem:[%s16419_s7 + $0x1010] sm:$0xff] }
 0x50e   :  { %9630 = vmatpush3.msra.mxu0 %v4766_v16  ;;  %6972 = vmatprep.mubr.f32.mxu0 %v5502_v36  ;;  %v4754_v16 = vld [vmem:[%s16419_s7 + $0x1118] sm:$0xff]  ;;  %v4736_v36 = vld [vmem:[%s16419_s7 + $0x1088] sm:$0xff] }
 0x50f   :  { %9598 = vmatprep.subr.mxu1 %v4748_v53  ;;  %9631 = vmatprep.subr.mxu0 %v4781_v50  ;;  %v4769_v53 = vld [vmem:[%s16419_s7 + $0x1190] sm:$0xff]  ;;  %v4720_v50 = vld [vmem:[%s16419_s7 + $0x1008] sm:$0xff] }
 0x510   :  { %9599 = vmatpush3.msra.mxu1 %v4732_v26  ;;  %9632 = vmatpush3.msra.mxu0 %v4765_v48  ;;  %v4753_v26 = vld [vmem:[%s16419_s7 + $0x1110] sm:$0xff]  ;;  %v4735_v48 = vld [vmem:[%s16419_s7 + $0x1080] sm:$0xff] }
 0x511   :  { %9600 = vmatprep.subr.mxu1 %v4747_v32  ;;  %9633 = vmatprep.subr.mxu0 %v4780_v43  ;;  %v4768_v32 = vld [vmem:[%s16419_s7 + $0x1188] sm:$0xff]  ;;  %v4719_v43 = vld [vmem:[%s16419_s7 + $0x1000] sm:$0xff] }
 0x512   :  { %9601 = vmatpush3.msra.mxu1 %v4731_v1  ;;  %9634 = vmatpush3.msra.mxu0 %v4764_v21  ;;  %v4752_v1 = vld [vmem:[%s16419_s7 + $0x1108] sm:$0xff]  ;;  %v4767_v21 = vld [vmem:[%s16419_s7 + $0x1180] sm:$0xff] }
 0x513   :  { %9602 = vmatprep.subr.mxu1 %v4746_v18  ;;  %9635 = vmatprep.subr.mxu0 %v4779_v11  ;;  %v4814_v18 = vld [vmem:[%s16419_s7 + $0x12f8] sm:$0xff]  ;;  %v4751_v11 = vld [vmem:[%s16419_s7 + $0x1100] sm:$0xff] }
 0x514   :  { %9603 = vmatpush3.msra.mxu1 %v4730_v10  ;;  %9636 = vmatpush3.msra.mxu0 %v4763_v7  ;;  %v4798_v10 = vld [vmem:[%s16419_s7 + $0x1278] sm:$0xff]  ;;  %v4813_v7 = vld [vmem:[%s16419_s7 + $0x12f0] sm:$0xff] }
 0x515   :  { %9604 = vmatprep.subr.mxu1 %v4745_v12  ;;  %9637 = vmatprep.subr.mxu0 %v4778_v51  ;;  %v5500_v12 = vcombine.high %v13471_v45, %v13471_v45  ;;  %v4846_v51 = vld [vmem:[%s16419_s7 + $0x13f8] sm:$0xff] }
 0x516   :  { %9605 = vmatpush3.msra.mxu1 %v4729_v59  ;;  %9638 = vmatpush3.msra.mxu0 %v4762_v0  ;;  %v4797_v59 = vld [vmem:[%s16419_s7 + $0x1270] sm:$0xff]  ;;  %v4830_v0 = vld [vmem:[%s16419_s7 + $0x1378] sm:$0xff] }
 0x517   :  { %9606 = vmatprep.subr.mxu1 %v4744_v20  ;;  %9639 = vmatprep.subr.mxu0 %v4777_v34  ;;  %v4812_v20 = vld [vmem:[%s16419_s7 + $0x12e8] sm:$0xff]  ;;  %v4845_v34 = vld [vmem:[%s16419_s7 + $0x13f0] sm:$0xff] }
 0x518   :  { %9607 = vmatpush3.msra.mxu1 %v4728_v44  ;;  %9640 = vmatpush3.msra.mxu0 %v4761_v27  ;;  %v4796_v44 = vld [vmem:[%s16419_s7 + $0x1268] sm:$0xff]  ;;  %v4829_v27 = vld [vmem:[%s16419_s7 + $0x1370] sm:$0xff] }
 0x519   :  { %9608 = vmatprep.subr.mxu1 %v4743_v3  ;;  %9641 = vmatprep.subr.mxu0 %v4776_v22  ;;  %v4844_v3 = vld [vmem:[%s16419_s7 + $0x13e8] sm:$0xff]  ;;  %v4795_v22 = vld [vmem:[%s16419_s7 + $0x1260] sm:$0xff] }
 0x51a   :  { %9609 = vmatpush3.msra.mxu1 %v4727_v14  ;;  %9642 = vmatpush3.msra.mxu0 %v4760_v61  ;;  %v4828_v14 = vld [vmem:[%s16419_s7 + $0x1368] sm:$0xff]  ;;  %v4810_v61 = vld [vmem:[%s16419_s7 + $0x12d8] sm:$0xff] }
 0x51b   :  { %9610 = vmatprep.subr.mxu1 %v4742_v19  ;;  %9643 = vmatprep.subr.mxu0 %v4775_v4  ;;  %v4843_v19 = vld [vmem:[%s16419_s7 + $0x13e0] sm:$0xff]  ;;  %v4794_v4 = vld [vmem:[%s16419_s7 + $0x1258] sm:$0xff] }
 0x51c   :  { %9611 = vmatpush3.msra.mxu1 %v4726_v28  ;;  %9644 = vmatpush3.msra.mxu0 %v4759_v46  ;;  %v4827_v28 = vld [vmem:[%s16419_s7 + $0x1360] sm:$0xff]  ;;  %v4809_v46 = vld [vmem:[%s16419_s7 + $0x12d0] sm:$0xff] }
 0x51d   :  { %9612 = vmatprep.subr.mxu1 %v4741_v38  ;;  %9645 = vmatprep.subr.mxu0 %v4774_v41  ;;  %v4842_v38 = vld [vmem:[%s16419_s7 + $0x13d8] sm:$0xff]  ;;  %v4793_v41 = vld [vmem:[%s16419_s7 + $0x1250] sm:$0xff] }
 0x51e   :  { %9613 = vmatpush3.msra.mxu1 %v4725_v17  ;;  %9646 = vmatpush3.msra.mxu0 %v4758_v42  ;;  %v4826_v17 = vld [vmem:[%s16419_s7 + $0x1358] sm:$0xff]  ;;  %v4808_v42 = vld [vmem:[%s16419_s7 + $0x12c8] sm:$0xff] }
 0x51f   :  { %9614 = vmatprep.subr.mxu1 %v4740_v39  ;;  %9647 = vmatprep.subr.mxu0 %v4773_v29  ;;  %v4841_v39 = vld [vmem:[%s16419_s7 + $0x13d0] sm:$0xff]  ;;  %v4792_v29 = vld [vmem:[%s16419_s7 + $0x1248] sm:$0xff] }
 0x520   :  { %9615 = vmatpush3.msra.mxu1 %v4724_v15  ;;  %9648 = vmatpush3.msra.mxu0 %v4757_v8  ;;  %v4825_v15 = vld [vmem:[%s16419_s7 + $0x1350] sm:$0xff]  ;;  %v4807_v8 = vld [vmem:[%s16419_s7 + $0x12c0] sm:$0xff] }
 0x521   :  { %9616 = vmatprep.subr.mxu1 %v4739_v52  ;;  %9649 = vmatprep.subr.mxu0 %v4772_v25  ;;  %v4840_v52 = vld [vmem:[%s16419_s7 + $0x13c8] sm:$0xff]  ;;  %v4791_v25 = vld [vmem:[%s16419_s7 + $0x1240] sm:$0xff] }
 0x522   :  { %9617 = vmatpush3.msra.mxu1 %v4723_v54  ;;  %9650 = vmatpush3.msra.mxu0 %v4756_v58  ;;  %v4824_v54 = vld [vmem:[%s16419_s7 + $0x1348] sm:$0xff]  ;;  %v4806_v58 = vld [vmem:[%s16419_s7 + $0x12b8] sm:$0xff] }
 0x523   :  { %9618 = vmatprep.subr.mxu1 %v4738_v35  ;;  %9651 = vmatprep.subr.mxu0 %v4771_v24  ;;  %v4839_v35 = vld [vmem:[%s16419_s7 + $0x13c0] sm:$0xff]  ;;  %v4790_v24 = vld [vmem:[%s16419_s7 + $0x1238] sm:$0xff] }
 0x524   :  { %9619 = vmatpush3.msra.mxu1 %v4722_v6  ;;  %9652 = vmatpush3.msra.mxu0 %v4755_v5  ;;  %v4823_v6 = vld [vmem:[%s16419_s7 + $0x1340] sm:$0xff]  ;;  %v4805_v5 = vld [vmem:[%s16419_s7 + $0x12b0] sm:$0xff] }
 0x525   :  { %9620 = vmatprep.subr.mxu1 %v4737_v23  ;;  %9653 = vmatprep.subr.mxu0 %v4770_v63  ;;  %v4838_v23 = vld [vmem:[%s16419_s7 + $0x13b8] sm:$0xff]  ;;  %v4789_v63 = vld [vmem:[%s16419_s7 + $0x1230] sm:$0xff] }
 0x526   :  { %9621 = vmatpush3.msra.mxu1 %v4721_v49  ;;  %9654 = vmatpush3.msra.mxu0 %v4754_v16  ;;  %v4822_v49 = vld [vmem:[%s16419_s7 + $0x1338] sm:$0xff]  ;;  %v4804_v16 = vld [vmem:[%s16419_s7 + $0x12a8] sm:$0xff] }
 0x527   :  { %9622 = vmatprep.subr.mxu1 %v4736_v36  ;;  %9655 = vmatprep.subr.mxu0 %v4769_v53  ;;  %v4837_v36 = vld [vmem:[%s16419_s7 + $0x13b0] sm:$0xff]  ;;  %v4788_v53 = vld [vmem:[%s16419_s7 + $0x1228] sm:$0xff] }
 0x528   :  { %9623 = vmatpush3.msra.mxu1 %v4720_v50  ;;  %9656 = vmatpush3.msra.mxu0 %v4753_v26  ;;  %v4821_v50 = vld [vmem:[%s16419_s7 + $0x1330] sm:$0xff]  ;;  %v4803_v26 = vld [vmem:[%s16419_s7 + $0x12a0] sm:$0xff] }
 0x529   :  { %9624 = vmatprep.subr.mxu1 %v4735_v48  ;;  %9657 = vmatprep.subr.mxu0 %v4768_v32  ;;  %v4836_v48 = vld [vmem:[%s16419_s7 + $0x13a8] sm:$0xff]  ;;  %v4787_v32 = vld [vmem:[%s16419_s7 + $0x1220] sm:$0xff] }
 0x52a   :  { %9625 = vmatpush3.msra.mxu1 %v4719_v43  ;;  %9658 = vmatpush3.msra.mxu0 %v4752_v1  ;;  %v4820_v43 = vld [vmem:[%s16419_s7 + $0x1328] sm:$0xff]  ;;  %v4802_v1 = vld [vmem:[%s16419_s7 + $0x1298] sm:$0xff] }
 0x52b   :  { %6903 = vmatmul.mubr.f32.vlgmr.msra.gmra.mxu1 %v13471_v45  ;;  %9659 = vmatprep.subr.mxu0 %v4767_v21  ;;  %v5503_v45 = vcombine.high %v13502_v55, %v13502_v55  ;;  %v4835_v21 = vld [vmem:[%s16419_s7 + $0x13a0] sm:$0xff] }
 0x52c   :  { %9664 = vmatprep.subr.mxu1 %v4814_v18  ;;  %9660 = vmatpush3.msra.mxu0 %v4751_v11  ;;  %v4786_v18 = vld [vmem:[%s16419_s7 + $0x1218] sm:$0xff]  ;;  %v4819_v11 = vld [vmem:[%s16419_s7 + $0x1320] sm:$0xff] }
 0x52d   :  { %9665 = vmatpush3.msra.mxu1 %v4798_v10  ;;  %7042 = vmatprep.mubr.f32.mxu1 %v13502_v55  ;;  %v4811_v55 = vld [vmem:[%s16419_s7 + $0x12e0] sm:$0xff]  ;;  %v4801_v10 = vld [vmem:[%s16419_s7 + $0x1290] sm:$0xff] }
 0x52e   :  { %6973 = vmatmul.mubr.f32.vlgmr.msra.gmra.mxu0 %v5500_v12  ;;  %9666 = vmatprep.subr.mxu1 %v4813_v7  ;;  %v4834_v7 = vld [vmem:[%s16419_s7 + $0x1398] sm:$0xff]  ;;  %v4785_v12 = vld [vmem:[%s16419_s7 + $0x1210] sm:$0xff] }
 0x52f   :  { %9699 = vmatprep.subr.mxu0 %v4846_v51  ;;  %9667 = vmatpush3.msra.mxu1 %v4797_v59  ;;  %v4818_v51 = vld [vmem:[%s16419_s7 + $0x1318] sm:$0xff]  ;;  %v4800_v59 = vld [vmem:[%s16419_s7 + $0x1288] sm:$0xff] }
 0x530   :  { %9700 = vmatpush3.msra.mxu0 %v4830_v0  ;;  %7112 = vmatprep.mubr.f32.mxu0 %v5503_v45  ;;  %v4833_v0 = vld [vmem:[%s16419_s7 + $0x1390] sm:$0xff]  ;;  %v4784_v45 = vld [vmem:[%s16419_s7 + $0x1208] sm:$0xff] }
 0x531   :  { %9668 = vmatprep.subr.mxu1 %v4812_v20  ;;  %9701 = vmatprep.subr.mxu0 %v4845_v34  ;;  %v4817_v20 = vld [vmem:[%s16419_s7 + $0x1310] sm:$0xff]  ;;  %v4799_v34 = vld [vmem:[%s16419_s7 + $0x1280] sm:$0xff] }
 0x532   :  { %9669 = vmatpush3.msra.mxu1 %v4796_v44  ;;  %9702 = vmatpush3.msra.mxu0 %v4829_v27  ;;  %v4832_v44 = vld [vmem:[%s16419_s7 + $0x1388] sm:$0xff]  ;;  %v4783_v27 = vld [vmem:[%s16419_s7 + $0x1200] sm:$0xff] }
 0x533   :  { %9670 = vmatprep.subr.mxu1 %v4811_v55  ;;  %9703 = vmatprep.subr.mxu0 %v4844_v3  ;;  %v4816_v55 = vld [vmem:[%s16419_s7 + $0x1308] sm:$0xff]  ;;  %v4831_v3 = vld [vmem:[%s16419_s7 + $0x1380] sm:$0xff] }
 0x534   :  { %9671 = vmatpush3.msra.mxu1 %v4795_v22  ;;  %9704 = vmatpush3.msra.mxu0 %v4828_v14  ;;  %v4878_v22 = vld [vmem:[%s16419_s7 + $0x14f8] sm:$0xff]  ;;  %v4815_v14 = vld [vmem:[%s16419_s7 + $0x1300] sm:$0xff] }
 0x535   :  { %9672 = vmatprep.subr.mxu1 %v4810_v61  ;;  %9705 = vmatprep.subr.mxu0 %v4843_v19  ;;  %v4862_v61 = vld [vmem:[%s16419_s7 + $0x1478] sm:$0xff]  ;;  %v4877_v19 = vld [vmem:[%s16419_s7 + $0x14f0] sm:$0xff] }
 0x536   :  { %9673 = vmatpush3.msra.mxu1 %v4794_v4  ;;  %9706 = vmatpush3.msra.mxu0 %v4827_v28  ;;  %v5501_v4 = vcombine.high %v13480_v2, %v13480_v2  ;;  %v4910_v28 = vld [vmem:[%s16419_s7 + $0x15f8] sm:$0xff] }
 0x537   :  { %9674 = vmatprep.subr.mxu1 %v4809_v46  ;;  %9707 = vmatprep.subr.mxu0 %v4842_v38  ;;  %v4861_v46 = vld [vmem:[%s16419_s7 + $0x1470] sm:$0xff]  ;;  %v4894_v38 = vld [vmem:[%s16419_s7 + $0x1578] sm:$0xff] }
 0x538   :  { %9675 = vmatpush3.msra.mxu1 %v4793_v41  ;;  %9708 = vmatpush3.msra.mxu0 %v4826_v17  ;;  %v4876_v41 = vld [vmem:[%s16419_s7 + $0x14e8] sm:$0xff]  ;;  %v4909_v17 = vld [vmem:[%s16419_s7 + $0x15f0] sm:$0xff] }
 0x539   :  { %9676 = vmatprep.subr.mxu1 %v4808_v42  ;;  %9709 = vmatprep.subr.mxu0 %v4841_v39  ;;  %v4860_v42 = vld [vmem:[%s16419_s7 + $0x1468] sm:$0xff]  ;;  %v4893_v39 = vld [vmem:[%s16419_s7 + $0x1570] sm:$0xff] }
 0x53a   :  { %9677 = vmatpush3.msra.mxu1 %v4792_v29  ;;  %9710 = vmatpush3.msra.mxu0 %v4825_v15  ;;  %v4908_v29 = vld [vmem:[%s16419_s7 + $0x15e8] sm:$0xff]  ;;  %v4859_v15 = vld [vmem:[%s16419_s7 + $0x1460] sm:$0xff] }
 0x53b   :  { %9678 = vmatprep.subr.mxu1 %v4807_v8  ;;  %9711 = vmatprep.subr.mxu0 %v4840_v52  ;;  %v4892_v8 = vld [vmem:[%s16419_s7 + $0x1568] sm:$0xff]  ;;  %v4874_v52 = vld [vmem:[%s16419_s7 + $0x14d8] sm:$0xff] }
 0x53c   :  { %9679 = vmatpush3.msra.mxu1 %v4791_v25  ;;  %9712 = vmatpush3.msra.mxu0 %v4824_v54  ;;  %v4907_v25 = vld [vmem:[%s16419_s7 + $0x15e0] sm:$0xff]  ;;  %v4858_v54 = vld [vmem:[%s16419_s7 + $0x1458] sm:$0xff] }
 0x53d   :  { %9680 = vmatprep.subr.mxu1 %v4806_v58  ;;  %9713 = vmatprep.subr.mxu0 %v4839_v35  ;;  %v4891_v58 = vld [vmem:[%s16419_s7 + $0x1560] sm:$0xff]  ;;  %v4873_v35 = vld [vmem:[%s16419_s7 + $0x14d0] sm:$0xff] }
 0x53e   :  { %9681 = vmatpush3.msra.mxu1 %v4790_v24  ;;  %9714 = vmatpush3.msra.mxu0 %v4823_v6  ;;  %v4906_v24 = vld [vmem:[%s16419_s7 + $0x15d8] sm:$0xff]  ;;  %v4857_v6 = vld [vmem:[%s16419_s7 + $0x1450] sm:$0xff] }
 0x53f   :  { %9682 = vmatprep.subr.mxu1 %v4805_v5  ;;  %9715 = vmatprep.subr.mxu0 %v4838_v23  ;;  %v4890_v5 = vld [vmem:[%s16419_s7 + $0x1558] sm:$0xff]  ;;  %v4872_v23 = vld [vmem:[%s16419_s7 + $0x14c8] sm:$0xff] }
 0x540   :  { %9683 = vmatpush3.msra.mxu1 %v4789_v63  ;;  %9716 = vmatpush3.msra.mxu0 %v4822_v49  ;;  %v4905_v63 = vld [vmem:[%s16419_s7 + $0x15d0] sm:$0xff]  ;;  %v4856_v49 = vld [vmem:[%s16419_s7 + $0x1448] sm:$0xff] }
 0x541   :  { %9684 = vmatprep.subr.mxu1 %v4804_v16  ;;  %9717 = vmatprep.subr.mxu0 %v4837_v36  ;;  %v4889_v16 = vld [vmem:[%s16419_s7 + $0x1550] sm:$0xff]  ;;  %v4871_v36 = vld [vmem:[%s16419_s7 + $0x14c0] sm:$0xff] }
 0x542   :  { %9685 = vmatpush3.msra.mxu1 %v4788_v53  ;;  %9718 = vmatpush3.msra.mxu0 %v4821_v50  ;;  %v4904_v53 = vld [vmem:[%s16419_s7 + $0x15c8] sm:$0xff]  ;;  %v4855_v50 = vld [vmem:[%s16419_s7 + $0x1440] sm:$0xff] }
 0x543   :  { %9686 = vmatprep.subr.mxu1 %v4803_v26  ;;  %9719 = vmatprep.subr.mxu0 %v4836_v48  ;;  %v4888_v26 = vld [vmem:[%s16419_s7 + $0x1548] sm:$0xff]  ;;  %v4870_v48 = vld [vmem:[%s16419_s7 + $0x14b8] sm:$0xff] }
 0x544   :  { %9687 = vmatpush3.msra.mxu1 %v4787_v32  ;;  %9720 = vmatpush3.msra.mxu0 %v4820_v43  ;;  %v4903_v32 = vld [vmem:[%s16419_s7 + $0x15c0] sm:$0xff]  ;;  %v4854_v43 = vld [vmem:[%s16419_s7 + $0x1438] sm:$0xff] }
 0x545   :  { %9688 = vmatprep.subr.mxu1 %v4802_v1  ;;  %9721 = vmatprep.subr.mxu0 %v4835_v21  ;;  %v4887_v1 = vld [vmem:[%s16419_s7 + $0x1540] sm:$0xff]  ;;  %v4869_v21 = vld [vmem:[%s16419_s7 + $0x14b0] sm:$0xff] }
 0x546   :  { %9689 = vmatpush3.msra.mxu1 %v4786_v18  ;;  %9722 = vmatpush3.msra.mxu0 %v4819_v11  ;;  %v4902_v18 = vld [vmem:[%s16419_s7 + $0x15b8] sm:$0xff]  ;;  %v4853_v11 = vld [vmem:[%s16419_s7 + $0x1430] sm:$0xff] }
 0x547   :  { %9690 = vmatprep.subr.mxu1 %v4801_v10  ;;  %9723 = vmatprep.subr.mxu0 %v4834_v7  ;;  %v4886_v10 = vld [vmem:[%s16419_s7 + $0x1538] sm:$0xff]  ;;  %v4868_v7 = vld [vmem:[%s16419_s7 + $0x14a8] sm:$0xff] }
 0x548   :  { %9691 = vmatpush3.msra.mxu1 %v4785_v12  ;;  %9724 = vmatpush3.msra.mxu0 %v4818_v51  ;;  %v4901_v12 = vld [vmem:[%s16419_s7 + $0x15b0] sm:$0xff]  ;;  %v4852_v51 = vld [vmem:[%s16419_s7 + $0x1428] sm:$0xff] }
 0x549   :  { %9692 = vmatprep.subr.mxu1 %v4800_v59  ;;  %9725 = vmatprep.subr.mxu0 %v4833_v0  ;;  %v4885_v59 = vld [vmem:[%s16419_s7 + $0x1530] sm:$0xff]  ;;  %v4867_v0 = vld [vmem:[%s16419_s7 + $0x14a0] sm:$0xff] }
 0x54a   :  { %9693 = vmatpush3.msra.mxu1 %v4784_v45  ;;  %9726 = vmatpush3.msra.mxu0 %v4817_v20  ;;  %v4900_v45 = vld [vmem:[%s16419_s7 + $0x15a8] sm:$0xff]  ;;  %v4851_v20 = vld [vmem:[%s16419_s7 + $0x1420] sm:$0xff] }
 0x54b   :  { %9694 = vmatprep.subr.mxu1 %v4799_v34  ;;  %9727 = vmatprep.subr.mxu0 %v4832_v44  ;;  %v4884_v34 = vld [vmem:[%s16419_s7 + $0x1528] sm:$0xff]  ;;  %v4866_v44 = vld [vmem:[%s16419_s7 + $0x1498] sm:$0xff] }
 0x54c   :  { %9695 = vmatpush3.msra.mxu1 %v4783_v27  ;;  %9728 = vmatpush3.msra.mxu0 %v4816_v55  ;;  %v4899_v27 = vld [vmem:[%s16419_s7 + $0x15a0] sm:$0xff]  ;;  %v4850_v55 = vld [vmem:[%s16419_s7 + $0x1418] sm:$0xff] }
 0x54d   :  { %7043 = vmatmul.mubr.f32.vlgmr.msra.gmra.mxu1 %v13480_v2  ;;  %9729 = vmatprep.subr.mxu0 %v4831_v3  ;;  %v5552_v2 = vcombine.high %v13533_v57, %v13533_v57  ;;  %v4883_v3 = vld [vmem:[%s16419_s7 + $0x1520] sm:$0xff] }
 0x54e   :  { %9734 = vmatprep.subr.mxu1 %v4878_v22  ;;  %9730 = vmatpush3.msra.mxu0 %v4815_v14  ;;  %v4865_v22 = vld [vmem:[%s16419_s7 + $0x1490] sm:$0xff]  ;;  %v4898_v14 = vld [vmem:[%s16419_s7 + $0x1598] sm:$0xff] }
 0x54f   :  { %9735 = vmatpush3.msra.mxu1 %v4862_v61  ;;  %7182 = vmatprep.mubr.f32.mxu1 %v13533_v57  ;;  %v4875_v57 = vld [vmem:[%s16419_s7 + $0x14e0] sm:$0xff]  ;;  %v4849_v61 = vld [vmem:[%s16419_s7 + $0x1410] sm:$0xff] }
 0x550   :  { %7113 = vmatmul.mubr.f32.vlgmr.msra.gmra.mxu0 %v5501_v4  ;;  %9736 = vmatprep.subr.mxu1 %v4877_v19  ;;  %v4882_v19 = vld [vmem:[%s16419_s7 + $0x1518] sm:$0xff]  ;;  %v4864_v4 = vld [vmem:[%s16419_s7 + $0x1488] sm:$0xff] }
 0x551   :  { %9769 = vmatprep.subr.mxu0 %v4910_v28  ;;  %9737 = vmatpush3.msra.mxu1 %v4861_v46  ;;  %v4897_v28 = vld [vmem:[%s16419_s7 + $0x1590] sm:$0xff]  ;;  %v4848_v46 = vld [vmem:[%s16419_s7 + $0x1408] sm:$0xff] }
 0x552   :  { %9770 = vmatpush3.msra.mxu0 %v4894_v38  ;;  %7252 = vmatprep.mubr.f32.mxu0 %v5552_v2  ;;  %v4881_v38 = vld [vmem:[%s16419_s7 + $0x1510] sm:$0xff]  ;;  %v4863_v2 = vld [vmem:[%s16419_s7 + $0x1480] sm:$0xff] }
 0x553   :  { %9738 = vmatprep.subr.mxu1 %v4876_v41  ;;  %9771 = vmatprep.subr.mxu0 %v4909_v17  ;;  %v4896_v41 = vld [vmem:[%s16419_s7 + $0x1588] sm:$0xff]  ;;  %v4847_v17 = vld [vmem:[%s16419_s7 + $0x1400] sm:$0xff] }
 0x554   :  { %9739 = vmatpush3.msra.mxu1 %v4860_v42  ;;  %9772 = vmatpush3.msra.mxu0 %v4893_v39  ;;  %v4880_v42 = vld [vmem:[%s16419_s7 + $0x1508] sm:$0xff]  ;;  %v4895_v39 = vld [vmem:[%s16419_s7 + $0x1580] sm:$0xff] }
 0x555   :  { %9740 = vmatprep.subr.mxu1 %v4875_v57  ;;  %9773 = vmatprep.subr.mxu0 %v4908_v29  ;;  %v4942_v57 = vld [vmem:[%s16419_s7 + $0x16f8] sm:$0xff]  ;;  %v4879_v29 = vld [vmem:[%s16419_s7 + $0x1500] sm:$0xff] }
 0x556   :  { %9741 = vmatpush3.msra.mxu1 %v4859_v15  ;;  %9774 = vmatpush3.msra.mxu0 %v4892_v8  ;;  %v4926_v15 = vld [vmem:[%s16419_s7 + $0x1678] sm:$0xff]  ;;  %v4941_v8 = vld [vmem:[%s16419_s7 + $0x16f0] sm:$0xff] }
 0x557   :  { %9742 = vmatprep.subr.mxu1 %v4874_v52  ;;  %9775 = vmatprep.subr.mxu0 %v4907_v25  ;;  %v5550_v52 = vcombine.high %v13515_v62, %v13515_v62  ;;  %v4974_v25 = vld [vmem:[%s16419_s7 + $0x17f8] sm:$0xff] }
 0x558   :  { %9743 = vmatpush3.msra.mxu1 %v4858_v54  ;;  %9776 = vmatpush3.msra.mxu0 %v4891_v58  ;;  %v4925_v54 = vld [vmem:[%s16419_s7 + $0x1670] sm:$0xff]  ;;  %v4958_v58 = vld [vmem:[%s16419_s7 + $0x1778] sm:$0xff] }
 0x559   :  { %9744 = vmatprep.subr.mxu1 %v4873_v35  ;;  %9777 = vmatprep.subr.mxu0 %v4906_v24  ;;  %v4940_v35 = vld [vmem:[%s16419_s7 + $0x16e8] sm:$0xff]  ;;  %v4973_v24 = vld [vmem:[%s16419_s7 + $0x17f0] sm:$0xff] }
 0x55a   :  { %9745 = vmatpush3.msra.mxu1 %v4857_v6  ;;  %9778 = vmatpush3.msra.mxu0 %v4890_v5  ;;  %v4924_v6 = vld [vmem:[%s16419_s7 + $0x1668] sm:$0xff]  ;;  %v4957_v5 = vld [vmem:[%s16419_s7 + $0x1770] sm:$0xff] }
 0x55b   :  { %9746 = vmatprep.subr.mxu1 %v4872_v23  ;;  %9779 = vmatprep.subr.mxu0 %v4905_v63  ;;  %v4972_v23 = vld [vmem:[%s16419_s7 + $0x17e8] sm:$0xff]  ;;  %v4923_v63 = vld [vmem:[%s16419_s7 + $0x1660] sm:$0xff] }
 0x55c   :  { %9747 = vmatpush3.msra.mxu1 %v4856_v49  ;;  %9780 = vmatpush3.msra.mxu0 %v4889_v16  ;;  %v4956_v49 = vld [vmem:[%s16419_s7 + $0x1768] sm:$0xff]  ;;  %v4938_v16 = vld [vmem:[%s16419_s7 + $0x16d8] sm:$0xff] }
 0x55d   :  { %9748 = vmatprep.subr.mxu1 %v4871_v36  ;;  %9781 = vmatprep.subr.mxu0 %v4904_v53  ;;  %v4971_v36 = vld [vmem:[%s16419_s7 + $0x17e0] sm:$0xff]  ;;  %v4922_v53 = vld [vmem:[%s16419_s7 + $0x1658] sm:$0xff] }
 0x55e   :  { %9749 = vmatpush3.msra.mxu1 %v4855_v50  ;;  %9782 = vmatpush3.msra.mxu0 %v4888_v26  ;;  %v4955_v50 = vld [vmem:[%s16419_s7 + $0x1760] sm:$0xff]  ;;  %v4937_v26 = vld [vmem:[%s16419_s7 + $0x16d0] sm:$0xff] }
 0x55f   :  { %9750 = vmatprep.subr.mxu1 %v4870_v48  ;;  %9783 = vmatprep.subr.mxu0 %v4903_v32  ;;  %v4970_v48 = vld [vmem:[%s16419_s7 + $0x17d8] sm:$0xff]  ;;  %v4921_v32 = vld [vmem:[%s16419_s7 + $0x1650] sm:$0xff] }
 0x560   :  { %9751 = vmatpush3.msra.mxu1 %v4854_v43  ;;  %9784 = vmatpush3.msra.mxu0 %v4887_v1  ;;  %v4954_v43 = vld [vmem:[%s16419_s7 + $0x1758] sm:$0xff]  ;;  %v4936_v1 = vld [vmem:[%s16419_s7 + $0x16c8] sm:$0xff] }
 0x561   :  { %9752 = vmatprep.subr.mxu1 %v4869_v21  ;;  %9785 = vmatprep.subr.mxu0 %v4902_v18  ;;  %v4969_v21 = vld [vmem:[%s16419_s7 + $0x17d0] sm:$0xff]  ;;  %v4920_v18 = vld [vmem:[%s16419_s7 + $0x1648] sm:$0xff] }
 0x562   :  { %9753 = vmatpush3.msra.mxu1 %v4853_v11  ;;  %9786 = vmatpush3.msra.mxu0 %v4886_v10  ;;  %v4953_v11 = vld [vmem:[%s16419_s7 + $0x1750] sm:$0xff]  ;;  %v4935_v10 = vld [vmem:[%s16419_s7 + $0x16c0] sm:$0xff] }
 0x563   :  { %9754 = vmatprep.subr.mxu1 %v4868_v7  ;;  %9787 = vmatprep.subr.mxu0 %v4901_v12  ;;  %v4968_v7 = vld [vmem:[%s16419_s7 + $0x17c8] sm:$0xff]  ;;  %v4919_v12 = vld [vmem:[%s16419_s7 + $0x1640] sm:$0xff] }
 0x564   :  { %9755 = vmatpush3.msra.mxu1 %v4852_v51  ;;  %9788 = vmatpush3.msra.mxu0 %v4885_v59  ;;  %v4952_v51 = vld [vmem:[%s16419_s7 + $0x1748] sm:$0xff]  ;;  %v4934_v59 = vld [vmem:[%s16419_s7 + $0x16b8] sm:$0xff] }
 0x565   :  { %9756 = vmatprep.subr.mxu1 %v4867_v0  ;;  %9789 = vmatprep.subr.mxu0 %v4900_v45  ;;  %v4967_v0 = vld [vmem:[%s16419_s7 + $0x17c0] sm:$0xff]  ;;  %v4918_v45 = vld [vmem:[%s16419_s7 + $0x1638] sm:$0xff] }
 0x566   :  { %9757 = vmatpush3.msra.mxu1 %v4851_v20  ;;  %9790 = vmatpush3.msra.mxu0 %v4884_v34  ;;  %v4951_v20 = vld [vmem:[%s16419_s7 + $0x1740] sm:$0xff]  ;;  %v4933_v34 = vld [vmem:[%s16419_s7 + $0x16b0] sm:$0xff] }
 0x567   :  { %9758 = vmatprep.subr.mxu1 %v4866_v44  ;;  %9791 = vmatprep.subr.mxu0 %v4899_v27  ;;  %v4966_v44 = vld [vmem:[%s16419_s7 + $0x17b8] sm:$0xff]  ;;  %v4917_v27 = vld [vmem:[%s16419_s7 + $0x1630] sm:$0xff] }
 0x568   :  { %9759 = vmatpush3.msra.mxu1 %v4850_v55  ;;  %9792 = vmatpush3.msra.mxu0 %v4883_v3  ;;  %v4950_v55 = vld [vmem:[%s16419_s7 + $0x1738] sm:$0xff]  ;;  %v4932_v3 = vld [vmem:[%s16419_s7 + $0x16a8] sm:$0xff] }
 0x569   :  { %9760 = vmatprep.subr.mxu1 %v4865_v22  ;;  %9793 = vmatprep.subr.mxu0 %v4898_v14  ;;  %v4965_v22 = vld [vmem:[%s16419_s7 + $0x17b0] sm:$0xff]  ;;  %v4916_v14 = vld [vmem:[%s16419_s7 + $0x1628] sm:$0xff] }
 0x56a   :  { %9761 = vmatpush3.msra.mxu1 %v4849_v61  ;;  %9794 = vmatpush3.msra.mxu0 %v4882_v19  ;;  %v4949_v61 = vld [vmem:[%s16419_s7 + $0x1730] sm:$0xff]  ;;  %v4931_v19 = vld [vmem:[%s16419_s7 + $0x16a0] sm:$0xff] }
 0x56b   :  { %9762 = vmatprep.subr.mxu1 %v4864_v4  ;;  %9795 = vmatprep.subr.mxu0 %v4897_v28  ;;  %v4964_v4 = vld [vmem:[%s16419_s7 + $0x17a8] sm:$0xff]  ;;  %v4915_v28 = vld [vmem:[%s16419_s7 + $0x1620] sm:$0xff] }
 0x56c   :  { %9763 = vmatpush3.msra.mxu1 %v4848_v46  ;;  %9796 = vmatpush3.msra.mxu0 %v4881_v38  ;;  %v4948_v46 = vld [vmem:[%s16419_s7 + $0x1728] sm:$0xff]  ;;  %v4930_v38 = vld [vmem:[%s16419_s7 + $0x1698] sm:$0xff] }
 0x56d   :  { %9764 = vmatprep.subr.mxu1 %v4863_v2  ;;  %9797 = vmatprep.subr.mxu0 %v4896_v41  ;;  %v4963_v2 = vld [vmem:[%s16419_s7 + $0x17a0] sm:$0xff]  ;;  %v4914_v41 = vld [vmem:[%s16419_s7 + $0x1618] sm:$0xff] }
 0x56e   :  { %9765 = vmatpush3.msra.mxu1 %v4847_v17  ;;  %9798 = vmatpush3.msra.mxu0 %v4880_v42  ;;  %v4947_v17 = vld [vmem:[%s16419_s7 + $0x1720] sm:$0xff]  ;;  %v4929_v42 = vld [vmem:[%s16419_s7 + $0x1690] sm:$0xff] }
 0x56f   :  { %7183 = vmatmul.mubr.f32.vlgmr.msra.gmra.mxu1 %v13515_v62  ;;  %9799 = vmatprep.subr.mxu0 %v4895_v39  ;;  %v5553_v62 = vcombine.high %v13546_v60, %v13546_v60  ;;  %v4962_v39 = vld [vmem:[%s16419_s7 + $0x1798] sm:$0xff] }
 0x570   :  { %9804 = vmatprep.subr.mxu1 %v4942_v57  ;;  %9800 = vmatpush3.msra.mxu0 %v4879_v29  ;;  %v4913_v57 = vld [vmem:[%s16419_s7 + $0x1610] sm:$0xff]  ;;  %v4946_v29 = vld [vmem:[%s16419_s7 + $0x1718] sm:$0xff] }
 0x571   :  { %9805 = vmatpush3.msra.mxu1 %v4926_v15  ;;  %7322 = vmatprep.mubr.f32.mxu1 %v13546_v60  ;;  %v4939_v60 = vld [vmem:[%s16419_s7 + $0x16e0] sm:$0xff]  ;;  %v4928_v15 = vld [vmem:[%s16419_s7 + $0x1688] sm:$0xff] }
 0x572   :  { %7253 = vmatmul.mubr.f32.vlgmr.msra.gmra.mxu0 %v5550_v52  ;;  %9806 = vmatprep.subr.mxu1 %v4941_v8  ;;  %v4961_v8 = vld [vmem:[%s16419_s7 + $0x1790] sm:$0xff]  ;;  %v4912_v52 = vld [vmem:[%s16419_s7 + $0x1608] sm:$0xff] }
 0x573   :  { %9839 = vmatprep.subr.mxu0 %v4974_v25  ;;  %9807 = vmatpush3.msra.mxu1 %v4925_v54  ;;  %v4945_v25 = vld [vmem:[%s16419_s7 + $0x1710] sm:$0xff]  ;;  %v4927_v54 = vld [vmem:[%s16419_s7 + $0x1680] sm:$0xff] }
 0x574   :  { %9840 = vmatpush3.msra.mxu0 %v4958_v58  ;;  %7392 = vmatprep.mubr.f32.mxu0 %v5553_v62  ;;  %v4960_v58 = vld [vmem:[%s16419_s7 + $0x1788] sm:$0xff]  ;;  %v4911_v62 = vld [vmem:[%s16419_s7 + $0x1600] sm:$0xff] }
 0x575   :  { %9808 = vmatprep.subr.mxu1 %v4940_v35  ;;  %9841 = vmatprep.subr.mxu0 %v4973_v24  ;;  %v4944_v35 = vld [vmem:[%s16419_s7 + $0x1708] sm:$0xff]  ;;  %v4959_v24 = vld [vmem:[%s16419_s7 + $0x1780] sm:$0xff] }
 0x576   :  { %9809 = vmatpush3.msra.mxu1 %v4924_v6  ;;  %9842 = vmatpush3.msra.mxu0 %v4957_v5  ;;  %v5006_v6 = vld [vmem:[%s16419_s7 + $0x18f8] sm:$0xff]  ;;  %v4943_v5 = vld [vmem:[%s16419_s7 + $0x1700] sm:$0xff] }
 0x577   :  { %9810 = vmatprep.subr.mxu1 %v4939_v60  ;;  %9843 = vmatprep.subr.mxu0 %v4972_v23  ;;  %v4990_v60 = vld [vmem:[%s16419_s7 + $0x1878] sm:$0xff]  ;;  %v5005_v23 = vld [vmem:[%s16419_s7 + $0x18f0] sm:$0xff] }
 0x578   :  { %9811 = vmatpush3.msra.mxu1 %v4923_v63  ;;  %9844 = vmatpush3.msra.mxu0 %v4956_v49  ;;  %v5551_v63 = vcombine.high %v13524_v33, %v13524_v33  ;;  %v5038_v49 = vld [vmem:[%s16419_s7 + $0x19f8] sm:$0xff] }
 0x579   :  { %9812 = vmatprep.subr.mxu1 %v4938_v16  ;;  %9845 = vmatprep.subr.mxu0 %v4971_v36  ;;  %v4989_v16 = vld [vmem:[%s16419_s7 + $0x1870] sm:$0xff]  ;;  %v5022_v36 = vld [vmem:[%s16419_s7 + $0x1978] sm:$0xff] }
 0x57a   :  { %9813 = vmatpush3.msra.mxu1 %v4922_v53  ;;  %9846 = vmatpush3.msra.mxu0 %v4955_v50  ;;  %v5004_v53 = vld [vmem:[%s16419_s7 + $0x18e8] sm:$0xff]  ;;  %v5037_v50 = vld [vmem:[%s16419_s7 + $0x19f0] sm:$0xff] }
 0x57b   :  { %9814 = vmatprep.subr.mxu1 %v4937_v26  ;;  %9847 = vmatprep.subr.mxu0 %v4970_v48  ;;  %v4988_v26 = vld [vmem:[%s16419_s7 + $0x1868] sm:$0xff]  ;;  %v5021_v48 = vld [vmem:[%s16419_s7 + $0x1970] sm:$0xff] }
 0x57c   :  { %9815 = vmatpush3.msra.mxu1 %v4921_v32  ;;  %9848 = vmatpush3.msra.mxu0 %v4954_v43  ;;  %v5036_v32 = vld [vmem:[%s16419_s7 + $0x19e8] sm:$0xff]  ;;  %v4987_v43 = vld [vmem:[%s16419_s7 + $0x1860] sm:$0xff] }
 0x57d   :  { %9816 = vmatprep.subr.mxu1 %v4936_v1  ;;  %9849 = vmatprep.subr.mxu0 %v4969_v21  ;;  %v5020_v1 = vld [vmem:[%s16419_s7 + $0x1968] sm:$0xff]  ;;  %v5002_v21 = vld [vmem:[%s16419_s7 + $0x18d8] sm:$0xff] }
 0x57e   :  { %9817 = vmatpush3.msra.mxu1 %v4920_v18  ;;  %9850 = vmatpush3.msra.mxu0 %v4953_v11  ;;  %v5035_v18 = vld [vmem:[%s16419_s7 + $0x19e0] sm:$0xff]  ;;  %v4986_v11 = vld [vmem:[%s16419_s7 + $0x1858] sm:$0xff] }
 0x57f   :  { %9818 = vmatprep.subr.mxu1 %v4935_v10  ;;  %9851 = vmatprep.subr.mxu0 %v4968_v7  ;;  %v5019_v10 = vld [vmem:[%s16419_s7 + $0x1960] sm:$0xff]  ;;  %v5001_v7 = vld [vmem:[%s16419_s7 + $0x18d0] sm:$0xff] }
 0x580   :  { %9819 = vmatpush3.msra.mxu1 %v4919_v12  ;;  %9852 = vmatpush3.msra.mxu0 %v4952_v51  ;;  %v5034_v12 = vld [vmem:[%s16419_s7 + $0x19d8] sm:$0xff]  ;;  %v4985_v51 = vld [vmem:[%s16419_s7 + $0x1850] sm:$0xff] }
 0x581   :  { %9820 = vmatprep.subr.mxu1 %v4934_v59  ;;  %9853 = vmatprep.subr.mxu0 %v4967_v0  ;;  %v5018_v59 = vld [vmem:[%s16419_s7 + $0x1958] sm:$0xff]  ;;  %v5000_v0 = vld [vmem:[%s16419_s7 + $0x18c8] sm:$0xff] }
 0x582   :  { %9821 = vmatpush3.msra.mxu1 %v4918_v45  ;;  %9854 = vmatpush3.msra.mxu0 %v4951_v20  ;;  %v5033_v45 = vld [vmem:[%s16419_s7 + $0x19d0] sm:$0xff]  ;;  %v4984_v20 = vld [vmem:[%s16419_s7 + $0x1848] sm:$0xff] }
 0x583   :  { %9822 = vmatprep.subr.mxu1 %v4933_v34  ;;  %9855 = vmatprep.subr.mxu0 %v4966_v44  ;;  %v5017_v34 = vld [vmem:[%s16419_s7 + $0x1950] sm:$0xff]  ;;  %v4999_v44 = vld [vmem:[%s16419_s7 + $0x18c0] sm:$0xff] }
 0x584   :  { %9823 = vmatpush3.msra.mxu1 %v4917_v27  ;;  %9856 = vmatpush3.msra.mxu0 %v4950_v55  ;;  %v5032_v27 = vld [vmem:[%s16419_s7 + $0x19c8] sm:$0xff]  ;;  %v4983_v55 = vld [vmem:[%s16419_s7 + $0x1840] sm:$0xff] }
 0x585   :  { %9824 = vmatprep.subr.mxu1 %v4932_v3  ;;  %9857 = vmatprep.subr.mxu0 %v4965_v22  ;;  %v5016_v3 = vld [vmem:[%s16419_s7 + $0x1948] sm:$0xff]  ;;  %v4998_v22 = vld [vmem:[%s16419_s7 + $0x18b8] sm:$0xff] }
 0x586   :  { %9825 = vmatpush3.msra.mxu1 %v4916_v14  ;;  %9858 = vmatpush3.msra.mxu0 %v4949_v61  ;;  %v5031_v14 = vld [vmem:[%s16419_s7 + $0x19c0] sm:$0xff]  ;;  %v4982_v61 = vld [vmem:[%s16419_s7 + $0x1838] sm:$0xff] }
 0x587   :  { %9826 = vmatprep.subr.mxu1 %v4931_v19  ;;  %9859 = vmatprep.subr.mxu0 %v4964_v4  ;;  %v5015_v19 = vld [vmem:[%s16419_s7 + $0x1940] sm:$0xff]  ;;  %v4997_v4 = vld [vmem:[%s16419_s7 + $0x18b0] sm:$0xff] }
 0x588   :  { %9827 = vmatpush3.msra.mxu1 %v4915_v28  ;;  %9860 = vmatpush3.msra.mxu0 %v4948_v46  ;;  %v5030_v28 = vld [vmem:[%s16419_s7 + $0x19b8] sm:$0xff]  ;;  %v4981_v46 = vld [vmem:[%s16419_s7 + $0x1830] sm:$0xff] }
 0x589   :  { %9828 = vmatprep.subr.mxu1 %v4930_v38  ;;  %9861 = vmatprep.subr.mxu0 %v4963_v2  ;;  %v5014_v38 = vld [vmem:[%s16419_s7 + $0x1938] sm:$0xff]  ;;  %v4996_v2 = vld [vmem:[%s16419_s7 + $0x18a8] sm:$0xff] }
 0x58a   :  { %9829 = vmatpush3.msra.mxu1 %v4914_v41  ;;  %9862 = vmatpush3.msra.mxu0 %v4947_v17  ;;  %v5029_v41 = vld [vmem:[%s16419_s7 + $0x19b0] sm:$0xff]  ;;  %v4980_v17 = vld [vmem:[%s16419_s7 + $0x1828] sm:$0xff] }
 0x58b   :  { %9830 = vmatprep.subr.mxu1 %v4929_v42  ;;  %9863 = vmatprep.subr.mxu0 %v4962_v39  ;;  %v5013_v42 = vld [vmem:[%s16419_s7 + $0x1930] sm:$0xff]  ;;  %v4995_v39 = vld [vmem:[%s16419_s7 + $0x18a0] sm:$0xff] }
 0x58c   :  { %9831 = vmatpush3.msra.mxu1 %v4913_v57  ;;  %9864 = vmatpush3.msra.mxu0 %v4946_v29  ;;  %v5028_v57 = vld [vmem:[%s16419_s7 + $0x19a8] sm:$0xff]  ;;  %v4979_v29 = vld [vmem:[%s16419_s7 + $0x1820] sm:$0xff] }
 0x58d   :  { %9832 = vmatprep.subr.mxu1 %v4928_v15  ;;  %9865 = vmatprep.subr.mxu0 %v4961_v8  ;;  %v5012_v15 = vld [vmem:[%s16419_s7 + $0x1928] sm:$0xff]  ;;  %v4994_v8 = vld [vmem:[%s16419_s7 + $0x1898] sm:$0xff] }
 0x58e   :  { %9833 = vmatpush3.msra.mxu1 %v4912_v52  ;;  %9866 = vmatpush3.msra.mxu0 %v4945_v25  ;;  %v5027_v52 = vld [vmem:[%s16419_s7 + $0x19a0] sm:$0xff]  ;;  %v4978_v25 = vld [vmem:[%s16419_s7 + $0x1818] sm:$0xff] }
 0x58f   :  { %9834 = vmatprep.subr.mxu1 %v4927_v54  ;;  %9867 = vmatprep.subr.mxu0 %v4960_v58  ;;  %v5011_v54 = vld [vmem:[%s16419_s7 + $0x1920] sm:$0xff]  ;;  %v4993_v58 = vld [vmem:[%s16419_s7 + $0x1890] sm:$0xff] }
 0x590   :  { %9835 = vmatpush3.msra.mxu1 %v4911_v62  ;;  %9868 = vmatpush3.msra.mxu0 %v4944_v35  ;;  %v5026_v62 = vld [vmem:[%s16419_s7 + $0x1998] sm:$0xff]  ;;  %v4977_v35 = vld [vmem:[%s16419_s7 + $0x1810] sm:$0xff] }
 0x591   :  { %7323 = vmatmul.mubr.f32.vlgmr.msra.gmra.mxu1 %v13524_v33  ;;  %9869 = vmatprep.subr.mxu0 %v4959_v24  ;;  %v5602_v33 = vcombine.high %v13577_v56, %v13577_v56  ;;  %v5010_v24 = vld [vmem:[%s16419_s7 + $0x1918] sm:$0xff] }
 0x592   :  { %9874 = vmatprep.subr.mxu1 %v5006_v6  ;;  %9870 = vmatpush3.msra.mxu0 %v4943_v5  ;;  %v4992_v6 = vld [vmem:[%s16419_s7 + $0x1888] sm:$0xff]  ;;  %v5025_v5 = vld [vmem:[%s16419_s7 + $0x1990] sm:$0xff] }
 0x593   :  { %9875 = vmatpush3.msra.mxu1 %v4990_v60  ;;  %7462 = vmatprep.mubr.f32.mxu1 %v13577_v56  ;;  %v5003_v56 = vld [vmem:[%s16419_s7 + $0x18e0] sm:$0xff]  ;;  %v4976_v60 = vld [vmem:[%s16419_s7 + $0x1808] sm:$0xff] }
 0x594   :  { %7393 = vmatmul.mubr.f32.vlgmr.msra.gmra.mxu0 %v5551_v63  ;;  %9876 = vmatprep.subr.mxu1 %v5005_v23  ;;  %v5009_v23 = vld [vmem:[%s16419_s7 + $0x1910] sm:$0xff]  ;;  %v4991_v63 = vld [vmem:[%s16419_s7 + $0x1880] sm:$0xff] }
 0x595   :  { %9909 = vmatprep.subr.mxu0 %v5038_v49  ;;  %9877 = vmatpush3.msra.mxu1 %v4989_v16  ;;  %v5024_v49 = vld [vmem:[%s16419_s7 + $0x1988] sm:$0xff]  ;;  %v4975_v16 = vld [vmem:[%s16419_s7 + $0x1800] sm:$0xff] }
 0x596   :  { %9910 = vmatpush3.msra.mxu0 %v5022_v36  ;;  %7532 = vmatprep.mubr.f32.mxu0 %v5602_v33  ;;  %v5008_v36 = vld [vmem:[%s16419_s7 + $0x1908] sm:$0xff]  ;;  %v5023_v33 = vld [vmem:[%s16419_s7 + $0x1980] sm:$0xff] }
 0x597   :  { %9878 = vmatprep.subr.mxu1 %v5004_v53  ;;  %9911 = vmatprep.subr.mxu0 %v5037_v50  ;;  %v5070_v53 = vld [vmem:[%s16419_s7 + $0x1af8] sm:$0xff]  ;;  %v5007_v50 = vld [vmem:[%s16419_s7 + $0x1900] sm:$0xff] }
 0x598   :  { %9879 = vmatpush3.msra.mxu1 %v4988_v26  ;;  %9912 = vmatpush3.msra.mxu0 %v5021_v48  ;;  %v5054_v26 = vld [vmem:[%s16419_s7 + $0x1a78] sm:$0xff]  ;;  %v5069_v48 = vld [vmem:[%s16419_s7 + $0x1af0] sm:$0xff] }
 0x599   :  { %9880 = vmatprep.subr.mxu1 %v5003_v56  ;;  %9913 = vmatprep.subr.mxu0 %v5036_v32  ;;  %v5600_v56 = vcombine.high %v13559_v47, %v13559_v47  ;;  %v5102_v32 = vld [vmem:[%s16419_s7 + $0x1bf8] sm:$0xff] }
 0x59a   :  { %9881 = vmatpush3.msra.mxu1 %v4987_v43  ;;  %9914 = vmatpush3.msra.mxu0 %v5020_v1  ;;  %v5053_v43 = vld [vmem:[%s16419_s7 + $0x1a70] sm:$0xff]  ;;  %v5086_v1 = vld [vmem:[%s16419_s7 + $0x1b78] sm:$0xff] }
 0x59b   :  { %9882 = vmatprep.subr.mxu1 %v5002_v21  ;;  %9915 = vmatprep.subr.mxu0 %v5035_v18  ;;  %v5068_v21 = vld [vmem:[%s16419_s7 + $0x1ae8] sm:$0xff]  ;;  %v5101_v18 = vld [vmem:[%s16419_s7 + $0x1bf0] sm:$0xff] }
 0x59c   :  { %9883 = vmatpush3.msra.mxu1 %v4986_v11  ;;  %9916 = vmatpush3.msra.mxu0 %v5019_v10  ;;  %v5052_v11 = vld [vmem:[%s16419_s7 + $0x1a68] sm:$0xff]  ;;  %v5085_v10 = vld [vmem:[%s16419_s7 + $0x1b70] sm:$0xff] }
 0x59d   :  { %9884 = vmatprep.subr.mxu1 %v5001_v7  ;;  %9917 = vmatprep.subr.mxu0 %v5034_v12  ;;  %v5100_v7 = vld [vmem:[%s16419_s7 + $0x1be8] sm:$0xff]  ;;  %v5051_v12 = vld [vmem:[%s16419_s7 + $0x1a60] sm:$0xff] }
 0x59e   :  { %9885 = vmatpush3.msra.mxu1 %v4985_v51  ;;  %9918 = vmatpush3.msra.mxu0 %v5018_v59  ;;  %v5084_v51 = vld [vmem:[%s16419_s7 + $0x1b68] sm:$0xff]  ;;  %v5066_v59 = vld [vmem:[%s16419_s7 + $0x1ad8] sm:$0xff] }
 0x59f   :  { %9886 = vmatprep.subr.mxu1 %v5000_v0  ;;  %9919 = vmatprep.subr.mxu0 %v5033_v45  ;;  %v5099_v0 = vld [vmem:[%s16419_s7 + $0x1be0] sm:$0xff]  ;;  %v5050_v45 = vld [vmem:[%s16419_s7 + $0x1a58] sm:$0xff] }
 0x5a0   :  { %9887 = vmatpush3.msra.mxu1 %v4984_v20  ;;  %9920 = vmatpush3.msra.mxu0 %v5017_v34  ;;  %v5083_v20 = vld [vmem:[%s16419_s7 + $0x1b60] sm:$0xff]  ;;  %v5065_v34 = vld [vmem:[%s16419_s7 + $0x1ad0] sm:$0xff] }
 0x5a1   :  { %9888 = vmatprep.subr.mxu1 %v4999_v44  ;;  %9921 = vmatprep.subr.mxu0 %v5032_v27  ;;  %v5098_v44 = vld [vmem:[%s16419_s7 + $0x1bd8] sm:$0xff]  ;;  %v5049_v27 = vld [vmem:[%s16419_s7 + $0x1a50] sm:$0xff] }
 0x5a2   :  { %9889 = vmatpush3.msra.mxu1 %v4983_v55  ;;  %9922 = vmatpush3.msra.mxu0 %v5016_v3  ;;  %v5082_v55 = vld [vmem:[%s16419_s7 + $0x1b58] sm:$0xff]  ;;  %v5064_v3 = vld [vmem:[%s16419_s7 + $0x1ac8] sm:$0xff] }
 0x5a3   :  { %9890 = vmatprep.subr.mxu1 %v4998_v22  ;;  %9923 = vmatprep.subr.mxu0 %v5031_v14  ;;  %v5097_v22 = vld [vmem:[%s16419_s7 + $0x1bd0] sm:$0xff]  ;;  %v5048_v14 = vld [vmem:[%s16419_s7 + $0x1a48] sm:$0xff] }
 0x5a4   :  { %9891 = vmatpush3.msra.mxu1 %v4982_v61  ;;  %9924 = vmatpush3.msra.mxu0 %v5015_v19  ;;  %v5081_v61 = vld [vmem:[%s16419_s7 + $0x1b50] sm:$0xff]  ;;  %v5063_v19 = vld [vmem:[%s16419_s7 + $0x1ac0] sm:$0xff] }
 0x5a5   :  { %9892 = vmatprep.subr.mxu1 %v4997_v4  ;;  %9925 = vmatprep.subr.mxu0 %v5030_v28  ;;  %v5096_v4 = vld [vmem:[%s16419_s7 + $0x1bc8] sm:$0xff]  ;;  %v5047_v28 = vld [vmem:[%s16419_s7 + $0x1a40] sm:$0xff] }
 0x5a6   :  { %9893 = vmatpush3.msra.mxu1 %v4981_v46  ;;  %9926 = vmatpush3.msra.mxu0 %v5014_v38  ;;  %v5080_v46 = vld [vmem:[%s16419_s7 + $0x1b48] sm:$0xff]  ;;  %v5062_v38 = vld [vmem:[%s16419_s7 + $0x1ab8] sm:$0xff] }
 0x5a7   :  { %9894 = vmatprep.subr.mxu1 %v4996_v2  ;;  %9927 = vmatprep.subr.mxu0 %v5029_v41  ;;  %v5095_v2 = vld [vmem:[%s16419_s7 + $0x1bc0] sm:$0xff]  ;;  %v5046_v41 = vld [vmem:[%s16419_s7 + $0x1a38] sm:$0xff] }
 0x5a8   :  { %9895 = vmatpush3.msra.mxu1 %v4980_v17  ;;  %9928 = vmatpush3.msra.mxu0 %v5013_v42  ;;  %v5079_v17 = vld [vmem:[%s16419_s7 + $0x1b40] sm:$0xff]  ;;  %v5061_v42 = vld [vmem:[%s16419_s7 + $0x1ab0] sm:$0xff] }
 0x5a9   :  { %9896 = vmatprep.subr.mxu1 %v4995_v39  ;;  %9929 = vmatprep.subr.mxu0 %v5028_v57  ;;  %v5094_v39 = vld [vmem:[%s16419_s7 + $0x1bb8] sm:$0xff]  ;;  %v5045_v57 = vld [vmem:[%s16419_s7 + $0x1a30] sm:$0xff] }
 0x5aa   :  { %9897 = vmatpush3.msra.mxu1 %v4979_v29  ;;  %9930 = vmatpush3.msra.mxu0 %v5012_v15  ;;  %v5078_v29 = vld [vmem:[%s16419_s7 + $0x1b38] sm:$0xff]  ;;  %v5060_v15 = vld [vmem:[%s16419_s7 + $0x1aa8] sm:$0xff] }
 0x5ab   :  { %9898 = vmatprep.subr.mxu1 %v4994_v8  ;;  %9931 = vmatprep.subr.mxu0 %v5027_v52  ;;  %v5093_v8 = vld [vmem:[%s16419_s7 + $0x1bb0] sm:$0xff]  ;;  %v5044_v52 = vld [vmem:[%s16419_s7 + $0x1a28] sm:$0xff] }
 0x5ac   :  { %9899 = vmatpush3.msra.mxu1 %v4978_v25  ;;  %9932 = vmatpush3.msra.mxu0 %v5011_v54  ;;  %v5077_v25 = vld [vmem:[%s16419_s7 + $0x1b30] sm:$0xff]  ;;  %v5059_v54 = vld [vmem:[%s16419_s7 + $0x1aa0] sm:$0xff] }
 0x5ad   :  { %9900 = vmatprep.subr.mxu1 %v4993_v58  ;;  %9933 = vmatprep.subr.mxu0 %v5026_v62  ;;  %v5092_v58 = vld [vmem:[%s16419_s7 + $0x1ba8] sm:$0xff]  ;;  %v5043_v62 = vld [vmem:[%s16419_s7 + $0x1a20] sm:$0xff] }
 0x5ae   :  { %9901 = vmatpush3.msra.mxu1 %v4977_v35  ;;  %9934 = vmatpush3.msra.mxu0 %v5010_v24  ;;  %v5076_v35 = vld [vmem:[%s16419_s7 + $0x1b28] sm:$0xff]  ;;  %v5058_v24 = vld [vmem:[%s16419_s7 + $0x1a98] sm:$0xff] }
 0x5af   :  { %9902 = vmatprep.subr.mxu1 %v4992_v6  ;;  %9935 = vmatprep.subr.mxu0 %v5025_v5  ;;  %v5091_v6 = vld [vmem:[%s16419_s7 + $0x1ba0] sm:$0xff]  ;;  %v5042_v5 = vld [vmem:[%s16419_s7 + $0x1a18] sm:$0xff] }
 0x5b0   :  { %9903 = vmatpush3.msra.mxu1 %v4976_v60  ;;  %9936 = vmatpush3.msra.mxu0 %v5009_v23  ;;  %v5075_v60 = vld [vmem:[%s16419_s7 + $0x1b20] sm:$0xff]  ;;  %v5057_v23 = vld [vmem:[%s16419_s7 + $0x1a90] sm:$0xff] }
 0x5b1   :  { %9904 = vmatprep.subr.mxu1 %v4991_v63  ;;  %9937 = vmatprep.subr.mxu0 %v5024_v49  ;;  %v5090_v63 = vld [vmem:[%s16419_s7 + $0x1b98] sm:$0xff]  ;;  %v5041_v49 = vld [vmem:[%s16419_s7 + $0x1a10] sm:$0xff] }
 0x5b2   :  { %9905 = vmatpush3.msra.mxu1 %v4975_v16  ;;  %9938 = vmatpush3.msra.mxu0 %v5008_v36  ;;  %v5074_v16 = vld [vmem:[%s16419_s7 + $0x1b18] sm:$0xff]  ;;  %v5056_v36 = vld [vmem:[%s16419_s7 + $0x1a88] sm:$0xff] }
 0x5b3   :  { %7463 = vmatmul.mubr.f32.vlgmr.msra.gmra.mxu1 %v13559_v47  ;;  %9939 = vmatprep.subr.mxu0 %v5023_v33  ;;  %v5603_v47 = vcombine.high %v13590_v31, %v13590_v31  ;;  %v5089_v33 = vld [vmem:[%s16419_s7 + $0x1b90] sm:$0xff] }
 0x5b4   :  { %9944 = vmatprep.subr.mxu1 %v5070_v53  ;;  %9940 = vmatpush3.msra.mxu0 %v5007_v50  ;;  %v5040_v53 = vld [vmem:[%s16419_s7 + $0x1a08] sm:$0xff]  ;;  %v5073_v50 = vld [vmem:[%s16419_s7 + $0x1b10] sm:$0xff] }
 0x5b5   :  { %9945 = vmatpush3.msra.mxu1 %v5054_v26  ;;  %7602 = vmatprep.mubr.f32.mxu1 %v13590_v31  ;;  %v5067_v31 = vld [vmem:[%s16419_s7 + $0x1ae0] sm:$0xff] }
 0x5b6   :  { %7533 = vmatmul.mubr.f32.vlgmr.msra.gmra.mxu0 %v5600_v56  ;;  %9946 = vmatprep.subr.mxu1 %v5069_v48  ;;  %v5055_v26 = vld [vmem:[%s16419_s7 + $0x1a80] sm:$0xff]  ;;  %v5088_v48 = vld [vmem:[%s16419_s7 + $0x1b88] sm:$0xff] }
 0x5b7   :  { %9979 = vmatprep.subr.mxu0 %v5102_v32  ;;  %9947 = vmatpush3.msra.mxu1 %v5053_v43  ;;  %v5039_v56 = vld [vmem:[%s16419_s7 + $0x1a00] sm:$0xff]  ;;  %v5072_v32 = vld [vmem:[%s16419_s7 + $0x1b08] sm:$0xff] }
 0x5b8   :  { %9980 = vmatpush3.msra.mxu0 %v5086_v1  ;;  %7672 = vmatprep.mubr.f32.mxu0 %v5603_v47  ;;  %v5087_v43 = vld [vmem:[%s16419_s7 + $0x1b80] sm:$0xff]  ;;  %v5134_v1 = vld [vmem:[%s16419_s7 + $0x1cf8] sm:$0xff] }
 0x5b9   :  { %9948 = vmatprep.subr.mxu1 %v5068_v21  ;;  %9981 = vmatprep.subr.mxu0 %v5101_v18  ;;  %v5071_v47 = vld [vmem:[%s16419_s7 + $0x1b00] sm:$0xff]  ;;  %v5118_v21 = vld [vmem:[%s16419_s7 + $0x1c78] sm:$0xff]  ;;  %v5133_v18 = vld [vmem:[%s16419_s7 + $0x1cf0] sm:$0xff] }
 0x5ba   :  { %9949 = vmatpush3.msra.mxu1 %v5052_v11  ;;  %9982 = vmatpush3.msra.mxu0 %v5085_v10  ;;  %v5601_v11 = vcombine.high %v13568_v13, %v13568_v13  ;;  %v5166_v10 = vld [vmem:[%s16419_s7 + $0x1df8] sm:$0xff] }
 0x5bb   :  { %9950 = vmatprep.subr.mxu1 %v5067_v31  ;;  %9983 = vmatprep.subr.mxu0 %v5100_v7  ;;  %v5117_v31 = vld [vmem:[%s16419_s7 + $0x1c70] sm:$0xff]  ;;  %v5150_v7 = vld [vmem:[%s16419_s7 + $0x1d78] sm:$0xff] }
 0x5bc   :  { %9951 = vmatpush3.msra.mxu1 %v5051_v12  ;;  %9984 = vmatpush3.msra.mxu0 %v5084_v51  ;;  %v5132_v12 = vld [vmem:[%s16419_s7 + $0x1ce8] sm:$0xff]  ;;  %v5165_v51 = vld [vmem:[%s16419_s7 + $0x1df0] sm:$0xff] }
 0x5bd   :  { %9952 = vmatprep.subr.mxu1 %v5066_v59  ;;  %9985 = vmatprep.subr.mxu0 %v5099_v0  ;;  %v5116_v59 = vld [vmem:[%s16419_s7 + $0x1c68] sm:$0xff]  ;;  %v5149_v0 = vld [vmem:[%s16419_s7 + $0x1d70] sm:$0xff] }
 0x5be   :  { %9953 = vmatpush3.msra.mxu1 %v5050_v45  ;;  %9986 = vmatpush3.msra.mxu0 %v5083_v20  ;;  %v5164_v45 = vld [vmem:[%s16419_s7 + $0x1de8] sm:$0xff]  ;;  %v5115_v20 = vld [vmem:[%s16419_s7 + $0x1c60] sm:$0xff] }
 0x5bf   :  { %9954 = vmatprep.subr.mxu1 %v5065_v34  ;;  %9987 = vmatprep.subr.mxu0 %v5098_v44  ;;  %v5148_v34 = vld [vmem:[%s16419_s7 + $0x1d68] sm:$0xff]  ;;  %v5130_v44 = vld [vmem:[%s16419_s7 + $0x1cd8] sm:$0xff] }
 0x5c0   :  { %9955 = vmatpush3.msra.mxu1 %v5049_v27  ;;  %9988 = vmatpush3.msra.mxu0 %v5082_v55  ;;  %v5163_v27 = vld [vmem:[%s16419_s7 + $0x1de0] sm:$0xff]  ;;  %v5114_v55 = vld [vmem:[%s16419_s7 + $0x1c58] sm:$0xff] }
 0x5c1   :  { %9956 = vmatprep.subr.mxu1 %v5064_v3  ;;  %9989 = vmatprep.subr.mxu0 %v5097_v22  ;;  %v5147_v3 = vld [vmem:[%s16419_s7 + $0x1d60] sm:$0xff]  ;;  %v5129_v22 = vld [vmem:[%s16419_s7 + $0x1cd0] sm:$0xff] }
 0x5c2   :  { %9957 = vmatpush3.msra.mxu1 %v5048_v14  ;;  %9990 = vmatpush3.msra.mxu0 %v5081_v61  ;;  %v5162_v14 = vld [vmem:[%s16419_s7 + $0x1dd8] sm:$0xff]  ;;  %v5113_v61 = vld [vmem:[%s16419_s7 + $0x1c50] sm:$0xff] }
 0x5c3   :  { %9958 = vmatprep.subr.mxu1 %v5063_v19  ;;  %9991 = vmatprep.subr.mxu0 %v5096_v4  ;;  %v5146_v19 = vld [vmem:[%s16419_s7 + $0x1d58] sm:$0xff]  ;;  %v5128_v4 = vld [vmem:[%s16419_s7 + $0x1cc8] sm:$0xff] }
 0x5c4   :  { %9959 = vmatpush3.msra.mxu1 %v5047_v28  ;;  %9992 = vmatpush3.msra.mxu0 %v5080_v46  ;;  %v5161_v28 = vld [vmem:[%s16419_s7 + $0x1dd0] sm:$0xff]  ;;  %v5112_v46 = vld [vmem:[%s16419_s7 + $0x1c48] sm:$0xff] }
 0x5c5   :  { %9960 = vmatprep.subr.mxu1 %v5062_v38  ;;  %9993 = vmatprep.subr.mxu0 %v5095_v2  ;;  %v5145_v38 = vld [vmem:[%s16419_s7 + $0x1d50] sm:$0xff]  ;;  %v5127_v2 = vld [vmem:[%s16419_s7 + $0x1cc0] sm:$0xff] }
 0x5c6   :  { %9961 = vmatpush3.msra.mxu1 %v5046_v41  ;;  %9994 = vmatpush3.msra.mxu0 %v5079_v17  ;;  %v5160_v41 = vld [vmem:[%s16419_s7 + $0x1dc8] sm:$0xff]  ;;  %v5111_v17 = vld [vmem:[%s16419_s7 + $0x1c40] sm:$0xff] }
 0x5c7   :  { %9962 = vmatprep.subr.mxu1 %v5061_v42  ;;  %9995 = vmatprep.subr.mxu0 %v5094_v39  ;;  %v5144_v42 = vld [vmem:[%s16419_s7 + $0x1d48] sm:$0xff]  ;;  %v5126_v39 = vld [vmem:[%s16419_s7 + $0x1cb8] sm:$0xff] }
 0x5c8   :  { %9963 = vmatpush3.msra.mxu1 %v5045_v57  ;;  %9996 = vmatpush3.msra.mxu0 %v5078_v29  ;;  %v5159_v57 = vld [vmem:[%s16419_s7 + $0x1dc0] sm:$0xff]  ;;  %v5110_v29 = vld [vmem:[%s16419_s7 + $0x1c38] sm:$0xff] }
 0x5c9   :  { %9964 = vmatprep.subr.mxu1 %v5060_v15  ;;  %9997 = vmatprep.subr.mxu0 %v5093_v8  ;;  %v5143_v15 = vld [vmem:[%s16419_s7 + $0x1d40] sm:$0xff]  ;;  %v5125_v8 = vld [vmem:[%s16419_s7 + $0x1cb0] sm:$0xff] }
 0x5ca   :  { %9965 = vmatpush3.msra.mxu1 %v5044_v52  ;;  %9998 = vmatpush3.msra.mxu0 %v5077_v25  ;;  %v5158_v52 = vld [vmem:[%s16419_s7 + $0x1db8] sm:$0xff]  ;;  %v5109_v25 = vld [vmem:[%s16419_s7 + $0x1c30] sm:$0xff] }
 0x5cb   :  { %9966 = vmatprep.subr.mxu1 %v5059_v54  ;;  %9999 = vmatprep.subr.mxu0 %v5092_v58  ;;  %v5142_v54 = vld [vmem:[%s16419_s7 + $0x1d38] sm:$0xff]  ;;  %v5124_v58 = vld [vmem:[%s16419_s7 + $0x1ca8] sm:$0xff] }
 0x5cc   :  { %9967 = vmatpush3.msra.mxu1 %v5043_v62  ;;  %10000 = vmatpush3.msra.mxu0 %v5076_v35  ;;  %v5157_v62 = vld [vmem:[%s16419_s7 + $0x1db0] sm:$0xff]  ;;  %v5108_v35 = vld [vmem:[%s16419_s7 + $0x1c28] sm:$0xff] }
 0x5cd   :  { %9968 = vmatprep.subr.mxu1 %v5058_v24  ;;  %10001 = vmatprep.subr.mxu0 %v5091_v6  ;;  %v5141_v24 = vld [vmem:[%s16419_s7 + $0x1d30] sm:$0xff]  ;;  %v5123_v6 = vld [vmem:[%s16419_s7 + $0x1ca0] sm:$0xff] }
 0x5ce   :  { %9969 = vmatpush3.msra.mxu1 %v5042_v5  ;;  %10002 = vmatpush3.msra.mxu0 %v5075_v60  ;;  %v5156_v5 = vld [vmem:[%s16419_s7 + $0x1da8] sm:$0xff]  ;;  %v5107_v60 = vld [vmem:[%s16419_s7 + $0x1c20] sm:$0xff] }
 0x5cf   :  { %9970 = vmatprep.subr.mxu1 %v5057_v23  ;;  %10003 = vmatprep.subr.mxu0 %v5090_v63  ;;  %v5140_v23 = vld [vmem:[%s16419_s7 + $0x1d28] sm:$0xff]  ;;  %v5122_v63 = vld [vmem:[%s16419_s7 + $0x1c98] sm:$0xff] }
 0x5d0   :  { %9971 = vmatpush3.msra.mxu1 %v5041_v49  ;;  %10004 = vmatpush3.msra.mxu0 %v5074_v16  ;;  %v5155_v49 = vld [vmem:[%s16419_s7 + $0x1da0] sm:$0xff]  ;;  %v5106_v16 = vld [vmem:[%s16419_s7 + $0x1c18] sm:$0xff] }
 0x5d1   :  { %9972 = vmatprep.subr.mxu1 %v5056_v36  ;;  %10005 = vmatprep.subr.mxu0 %v5089_v33  ;;  %v5139_v36 = vld [vmem:[%s16419_s7 + $0x1d20] sm:$0xff]  ;;  %v5121_v33 = vld [vmem:[%s16419_s7 + $0x1c90] sm:$0xff] }
 0x5d2   :  { %9973 = vmatpush3.msra.mxu1 %v5040_v53  ;;  %10006 = vmatpush3.msra.mxu0 %v5073_v50  ;;  %v5154_v53 = vld [vmem:[%s16419_s7 + $0x1d98] sm:$0xff]  ;;  %v5105_v50 = vld [vmem:[%s16419_s7 + $0x1c10] sm:$0xff] }
 0x5d3   :  { %9974 = vmatprep.subr.mxu1 %v5055_v26  ;;  %10007 = vmatprep.subr.mxu0 %v5088_v48  ;;  %v5138_v26 = vld [vmem:[%s16419_s7 + $0x1d18] sm:$0xff]  ;;  %v5120_v48 = vld [vmem:[%s16419_s7 + $0x1c88] sm:$0xff] }
 0x5d4   :  { %9975 = vmatpush3.msra.mxu1 %v5039_v56  ;;  %10008 = vmatpush3.msra.mxu0 %v5072_v32  ;;  %v5153_v56 = vld [vmem:[%s16419_s7 + $0x1d90] sm:$0xff]  ;;  %v5104_v32 = vld [vmem:[%s16419_s7 + $0x1c08] sm:$0xff] }
 0x5d5   :  { %7603 = vmatmul.mubr.f32.vlgmr.msra.gmra.mxu1 %v13568_v13  ;;  %10009 = vmatprep.subr.mxu0 %v5087_v43  ;;  %v5652_v13 = vcombine.high %v13623_v9, %v13623_v9  ;;  %v5137_v43 = vld [vmem:[%s16419_s7 + $0x1d10] sm:$0xff] }
 0x5d6   :  { %10014 = vmatprep.subr.mxu1 %v5134_v1  ;;  %10010 = vmatpush3.msra.mxu0 %v5071_v47  ;;  %v5119_v1 = vld [vmem:[%s16419_s7 + $0x1c80] sm:$0xff]  ;;  %v5152_v47 = vld [vmem:[%s16419_s7 + $0x1d88] sm:$0xff] }
 0x5d7   :  { %10015 = vmatpush3.msra.mxu1 %v5118_v21  ;;  %7742 = vmatprep.mubr.f32.mxu1 %v13623_v9  ;;  %v5131_v9 = vld [vmem:[%s16419_s7 + $0x1ce0] sm:$0xff] }
 0x5d8   :  { %7673 = vmatmul.mubr.f32.vlgmr.msra.gmra.mxu0 %v5601_v11  ;;  %10016 = vmatprep.subr.mxu1 %v5133_v18  ;;  %v5103_v21 = vld [vmem:[%s16419_s7 + $0x1c00] sm:$0xff]  ;;  %v5136_v18 = vld [vmem:[%s16419_s7 + $0x1d08] sm:$0xff] }
 0x5d9   :  { %10049 = vmatprep.subr.mxu0 %v5166_v10  ;;  %10017 = vmatpush3.msra.mxu1 %v5117_v31  ;;  %v5151_v11 = vld [vmem:[%s16419_s7 + $0x1d80] sm:$0xff]  ;;  %v5198_v10 = vld [vmem:[%s16419_s7 + $0x1ef8] sm:$0xff] }
 0x5da   :  { %10050 = vmatpush3.msra.mxu0 %v5150_v7  ;;  %7812 = vmatprep.mubr.f32.mxu0 %v5652_v13  ;;  %v5135_v31 = vld [vmem:[%s16419_s7 + $0x1d00] sm:$0xff]  ;;  %v5182_v7 = vld [vmem:[%s16419_s7 + $0x1e78] sm:$0xff]  ;;  %v5197_v13 = vld [vmem:[%s16419_s7 + $0x1ef0] sm:$0xff] }
 0x5db   :  { %10018 = vmatprep.subr.mxu1 %v5132_v12  ;;  %10051 = vmatprep.subr.mxu0 %v5165_v51  ;;  %v5650_v12 = vcombine.high %v13603_v40, %v13603_v40  ;;  %v5230_v51 = vld [vmem:[%s16419_s7 + $0x1ff8] sm:$0xff] }
 0x5dc   :  { %10019 = vmatpush3.msra.mxu1 %v5116_v59  ;;  %10052 = vmatpush3.msra.mxu0 %v5149_v0  ;;  %v5181_v59 = vld [vmem:[%s16419_s7 + $0x1e70] sm:$0xff]  ;;  %v5214_v0 = vld [vmem:[%s16419_s7 + $0x1f78] sm:$0xff] }
 0x5dd   :  { %10020 = vmatprep.subr.mxu1 %v5131_v9  ;;  %10053 = vmatprep.subr.mxu0 %v5164_v45  ;;  %v5196_v9 = vld [vmem:[%s16419_s7 + $0x1ee8] sm:$0xff]  ;;  %v5229_v45 = vld [vmem:[%s16419_s7 + $0x1ff0] sm:$0xff] }
 0x5de   :  { %10021 = vmatpush3.msra.mxu1 %v5115_v20  ;;  %10054 = vmatpush3.msra.mxu0 %v5148_v34  ;;  %v5180_v20 = vld [vmem:[%s16419_s7 + $0x1e68] sm:$0xff]  ;;  %v5213_v34 = vld [vmem:[%s16419_s7 + $0x1f70] sm:$0xff] }
 0x5df   :  { %10022 = vmatprep.subr.mxu1 %v5130_v44  ;;  %10055 = vmatprep.subr.mxu0 %v5163_v27  ;;  %v5228_v44 = vld [vmem:[%s16419_s7 + $0x1fe8] sm:$0xff]  ;;  %v5179_v27 = vld [vmem:[%s16419_s7 + $0x1e60] sm:$0xff] }
 0x5e0   :  { %10023 = vmatpush3.msra.mxu1 %v5114_v55  ;;  %10056 = vmatpush3.msra.mxu0 %v5147_v3  ;;  %v5212_v55 = vld [vmem:[%s16419_s7 + $0x1f68] sm:$0xff]  ;;  %v5194_v3 = vld [vmem:[%s16419_s7 + $0x1ed8] sm:$0xff] }
 0x5e1   :  { %10024 = vmatprep.subr.mxu1 %v5129_v22  ;;  %10057 = vmatprep.subr.mxu0 %v5162_v14  ;;  %v5227_v22 = vld [vmem:[%s16419_s7 + $0x1fe0] sm:$0xff]  ;;  %v5178_v14 = vld [vmem:[%s16419_s7 + $0x1e58] sm:$0xff] }
 0x5e2   :  { %10025 = vmatpush3.msra.mxu1 %v5113_v61  ;;  %10058 = vmatpush3.msra.mxu0 %v5146_v19  ;;  %v5211_v61 = vld [vmem:[%s16419_s7 + $0x1f60] sm:$0xff]  ;;  %v5193_v19 = vld [vmem:[%s16419_s7 + $0x1ed0] sm:$0xff] }
 0x5e3   :  { %10026 = vmatprep.subr.mxu1 %v5128_v4  ;;  %10059 = vmatprep.subr.mxu0 %v5161_v28  ;;  %v5226_v4 = vld [vmem:[%s16419_s7 + $0x1fd8] sm:$0xff]  ;;  %v5177_v28 = vld [vmem:[%s16419_s7 + $0x1e50] sm:$0xff] }
 0x5e4   :  { %10027 = vmatpush3.msra.mxu1 %v5112_v46  ;;  %10060 = vmatpush3.msra.mxu0 %v5145_v38  ;;  %v5210_v46 = vld [vmem:[%s16419_s7 + $0x1f58] sm:$0xff]  ;;  %v5192_v38 = vld [vmem:[%s16419_s7 + $0x1ec8] sm:$0xff] }
 0x5e5   :  { %10028 = vmatprep.subr.mxu1 %v5127_v2  ;;  %10061 = vmatprep.subr.mxu0 %v5160_v41  ;;  %v5225_v2 = vld [vmem:[%s16419_s7 + $0x1fd0] sm:$0xff]  ;;  %v5176_v41 = vld [vmem:[%s16419_s7 + $0x1e48] sm:$0xff] }
 0x5e6   :  { %10029 = vmatpush3.msra.mxu1 %v5111_v17  ;;  %10062 = vmatpush3.msra.mxu0 %v5144_v42  ;;  %v5209_v17 = vld [vmem:[%s16419_s7 + $0x1f50] sm:$0xff]  ;;  %v5191_v42 = vld [vmem:[%s16419_s7 + $0x1ec0] sm:$0xff] }
 0x5e7   :  { %10030 = vmatprep.subr.mxu1 %v5126_v39  ;;  %10063 = vmatprep.subr.mxu0 %v5159_v57  ;;  %v5224_v39 = vld [vmem:[%s16419_s7 + $0x1fc8] sm:$0xff]  ;;  %v5175_v57 = vld [vmem:[%s16419_s7 + $0x1e40] sm:$0xff] }
 0x5e8   :  { %10031 = vmatpush3.msra.mxu1 %v5110_v29  ;;  %10064 = vmatpush3.msra.mxu0 %v5143_v15  ;;  %v5208_v29 = vld [vmem:[%s16419_s7 + $0x1f48] sm:$0xff]  ;;  %v5190_v15 = vld [vmem:[%s16419_s7 + $0x1eb8] sm:$0xff] }
 0x5e9   :  { %10032 = vmatprep.subr.mxu1 %v5125_v8  ;;  %10065 = vmatprep.subr.mxu0 %v5158_v52  ;;  %v5223_v8 = vld [vmem:[%s16419_s7 + $0x1fc0] sm:$0xff]  ;;  %v5174_v52 = vld [vmem:[%s16419_s7 + $0x1e38] sm:$0xff] }
 0x5ea   :  { %10033 = vmatpush3.msra.mxu1 %v5109_v25  ;;  %10066 = vmatpush3.msra.mxu0 %v5142_v54  ;;  %v5207_v25 = vld [vmem:[%s16419_s7 + $0x1f40] sm:$0xff]  ;;  %v5189_v54 = vld [vmem:[%s16419_s7 + $0x1eb0] sm:$0xff] }
 0x5eb   :  { %10034 = vmatprep.subr.mxu1 %v5124_v58  ;;  %10067 = vmatprep.subr.mxu0 %v5157_v62  ;;  %v5222_v58 = vld [vmem:[%s16419_s7 + $0x1fb8] sm:$0xff]  ;;  %v5173_v62 = vld [vmem:[%s16419_s7 + $0x1e30] sm:$0xff] }
 0x5ec   :  { %10035 = vmatpush3.msra.mxu1 %v5108_v35  ;;  %10068 = vmatpush3.msra.mxu0 %v5141_v24  ;;  %v5206_v35 = vld [vmem:[%s16419_s7 + $0x1f38] sm:$0xff]  ;;  %v5188_v24 = vld [vmem:[%s16419_s7 + $0x1ea8] sm:$0xff] }
 0x5ed   :  { %10036 = vmatprep.subr.mxu1 %v5123_v6  ;;  %10069 = vmatprep.subr.mxu0 %v5156_v5  ;;  %v5221_v6 = vld [vmem:[%s16419_s7 + $0x1fb0] sm:$0xff]  ;;  %v5172_v5 = vld [vmem:[%s16419_s7 + $0x1e28] sm:$0xff] }
 0x5ee   :  { %10037 = vmatpush3.msra.mxu1 %v5107_v60  ;;  %10070 = vmatpush3.msra.mxu0 %v5140_v23  ;;  %v5205_v60 = vld [vmem:[%s16419_s7 + $0x1f30] sm:$0xff]  ;;  %v5187_v23 = vld [vmem:[%s16419_s7 + $0x1ea0] sm:$0xff] }
 0x5ef   :  { %10038 = vmatprep.subr.mxu1 %v5122_v63  ;;  %10071 = vmatprep.subr.mxu0 %v5155_v49  ;;  %v5220_v63 = vld [vmem:[%s16419_s7 + $0x1fa8] sm:$0xff]  ;;  %v5171_v49 = vld [vmem:[%s16419_s7 + $0x1e20] sm:$0xff] }
 0x5f0   :  { %10039 = vmatpush3.msra.mxu1 %v5106_v16  ;;  %10072 = vmatpush3.msra.mxu0 %v5139_v36  ;;  %v5204_v16 = vld [vmem:[%s16419_s7 + $0x1f28] sm:$0xff]  ;;  %v5186_v36 = vld [vmem:[%s16419_s7 + $0x1e98] sm:$0xff] }
 0x5f1   :  { %10040 = vmatprep.subr.mxu1 %v5121_v33  ;;  %10073 = vmatprep.subr.mxu0 %v5154_v53  ;;  %v5219_v33 = vld [vmem:[%s16419_s7 + $0x1fa0] sm:$0xff]  ;;  %v5170_v53 = vld [vmem:[%s16419_s7 + $0x1e18] sm:$0xff] }
 0x5f2   :  { %10041 = vmatpush3.msra.mxu1 %v5105_v50  ;;  %10074 = vmatpush3.msra.mxu0 %v5138_v26  ;;  %v5203_v50 = vld [vmem:[%s16419_s7 + $0x1f20] sm:$0xff]  ;;  %v5185_v26 = vld [vmem:[%s16419_s7 + $0x1e90] sm:$0xff] }
 0x5f3   :  { %10042 = vmatprep.subr.mxu1 %v5120_v48  ;;  %10075 = vmatprep.subr.mxu0 %v5153_v56  ;;  %v5218_v48 = vld [vmem:[%s16419_s7 + $0x1f98] sm:$0xff]  ;;  %v5169_v56 = vld [vmem:[%s16419_s7 + $0x1e10] sm:$0xff] }
 0x5f4   :  { %10043 = vmatpush3.msra.mxu1 %v5104_v32  ;;  %10076 = vmatpush3.msra.mxu0 %v5137_v43  ;;  %v5202_v32 = vld [vmem:[%s16419_s7 + $0x1f18] sm:$0xff]  ;;  %v5184_v43 = vld [vmem:[%s16419_s7 + $0x1e88] sm:$0xff] }
 0x5f5   :  { %10044 = vmatprep.subr.mxu1 %v5119_v1  ;;  %10077 = vmatprep.subr.mxu0 %v5152_v47  ;;  %v5217_v1 = vld [vmem:[%s16419_s7 + $0x1f90] sm:$0xff]  ;;  %v5168_v47 = vld [vmem:[%s16419_s7 + $0x1e08] sm:$0xff] }
 0x5f6   :  { %10045 = vmatpush3.msra.mxu1 %v5103_v21  ;;  %10078 = vmatpush3.msra.mxu0 %v5136_v18  ;;  %v5201_v21 = vld [vmem:[%s16419_s7 + $0x1f10] sm:$0xff]  ;;  %v5183_v18 = vld [vmem:[%s16419_s7 + $0x1e80] sm:$0xff] }
 0x5f7   :  { %7743 = vmatmul.mubr.f32.vlgmr.msra.gmra.mxu1 %v13603_v40  ;;  %10079 = vmatprep.subr.mxu0 %v5151_v11  ;;  %v5653_v40 = vcombine.high %v13631_v37, %v13631_v37  ;;  %v5216_v11 = vld [vmem:[%s16419_s7 + $0x1f88] sm:$0xff] }
 0x5f8   :  { %10084 = vmatprep.subr.mxu1 %v5198_v10  ;;  %10080 = vmatpush3.msra.mxu0 %v5135_v31  ;;  %v5167_v10 = vld [vmem:[%s16419_s7 + $0x1e00] sm:$0xff]  ;;  %v5200_v31 = vld [vmem:[%s16419_s7 + $0x1f08] sm:$0xff] }
 0x5f9   :  { %10085 = vmatpush3.msra.mxu1 %v5182_v7  ;;  %7882 = vmatprep.mubr.f32.mxu1 %v13631_v37  ;;  %v5195_v37 = vld [vmem:[%s16419_s7 + $0x1ee0] sm:$0xff] }
 0x5fa   :  { %7813 = vmatmul.mubr.f32.vlgmr.msra.gmra.mxu0 %v5650_v12  ;;  %10086 = vmatprep.subr.mxu1 %v5197_v13  ;;  %v5215_v7 = vld [vmem:[%s16419_s7 + $0x1f80] sm:$0xff]  ;;  %v5651_v12 = vcombine.high %v13614_v30, %v13614_v30 }
 0x5fb   :  { %10119 = vmatprep.subr.mxu0 %v5230_v51  ;;  %10087 = vmatpush3.msra.mxu1 %v5181_v59  ;;  %v5199_v13 = vld [vmem:[%s16419_s7 + $0x1f00] sm:$0xff]  ;;  %v9066_v51 = vpop.f32.mrf.mxu1  ;;  %s10352_s7 = smov [#allocation4]  }
 0x5fc   :  { %10120 = vmatpush3.msra.mxu0 %v5214_v0  ;;  %7952 = vmatprep.mubr.f32.mxu0 %v5653_v40  ;;  %v9101_v0 = vpop.f32.mrf.mxu0 }
 0x5fd   :  { %10088 = vmatprep.subr.mxu1 %v5196_v9  ;;  %10121 = vmatprep.subr.mxu0 %v5229_v45  ;;  %v9067_v59 = vpop.f32.mrf.mxu1  ;;  %v7977_v45 = vld [vmem:[%s16420_s8] ss:$0 sm:$0xff]  ;;  %s7966_s8 = sshll.u32 %s10352_s7, 4  ;;  %s7967_s8 = int_to_ptr.vmem [resolvable:$true] %s7966_s8 }
 0x5fe   :  { %10089 = vmatpush3.msra.mxu1 %v5180_v20  ;;  %10122 = vmatpush3.msra.mxu0 %v5213_v34  ;;  %v9068_v9 = vadd.f32 %v9067_v59, %v9066_v51  ;;  %v9102_v20 = vpop.f32.mrf.mxu0  ;;  %s10328_s26 = scalar_lea.vmem %s7967_s8, 32  ;;  %p10333_p1 = scmp.lt.s32.totalorder %s7967_s8, %s7967_s8 }
 0x5ff   :  { %10090 = vmatprep.subr.mxu1 %v5195_v37  ;;  %10123 = vmatprep.subr.mxu0 %v5228_v44  ;;  %v9136_v40 = vpop.f32.mrf.mxu1  ;;  %p10329_p0 = scmp.ne.s32.totalorder %s7967_s8, %s10328_s26  ;;  %p10334_p2 = scmp.lt.s32.totalorder %s10328_s26, %s10328_s26 }
 0x600   :  { %10091 = vmatpush3.msra.mxu1 %v5179_v27  ;;  %10124 = vmatpush3.msra.mxu0 %v5212_v55  ;;  %v9171_v37 = vpop.f32.mrf.mxu0  ;;  %v5785_v44 = vadd.f32 %v9068_v9, %v7977_v45  ;;  %v9103_v27 = vadd.f32 %v9102_v20, %v9101_v0 }
 0x601   :  { %10092 = vmatprep.subr.mxu1 %v5194_v3  ;;  %10125 = vmatprep.subr.mxu0 %v5227_v22  ;;  %v9137_v34 = vpop.f32.mrf.mxu1  ;;  %p10335_p3 = por %p10334_p2, %p10333_p1 }
 0x602   :  { %10093 = vmatpush3.msra.mxu1 %v5178_v14  ;;  %10126 = vmatpush3.msra.mxu0 %v5211_v61  ;;  %v9138_v3 = vadd.f32 %v9137_v34, %v9136_v40  ;;  %v9172_v22 = vpop.f32.mrf.mxu0 }
 0x603   :  { %10094 = vmatprep.subr.mxu1 %v5193_v19  ;;  %10127 = vmatprep.subr.mxu0 %v5226_v4  ;;  %v9206_v55 = vpop.f32.mrf.mxu1  ;;  %v9173_v4 = vadd.f32 %v9172_v22, %v9171_v37  ;;  %p10336_p4 = pnand %p10335_p3, %p10329_p0 }
 0x604   :  { %10095 = vmatpush3.msra.mxu1 %v5177_v28  ;;  %10128 = vmatpush3.msra.mxu0 %v5210_v46  ;;  %v9241_v61 = vpop.f32.mrf.mxu0 }
 0x605   :  { %10096 = vmatprep.subr.mxu1 %v5192_v38  ;;  %10129 = vmatprep.subr.mxu0 %v5225_v2  ;;  %v9207_v14 = vpop.f32.mrf.mxu1 }
 0x606   :  { %10097 = vmatpush3.msra.mxu1 %v5176_v41  ;;  %10130 = vmatpush3.msra.mxu0 %v5209_v17  ;;  %v9208_v46 = vadd.f32 %v9207_v14, %v9206_v55  ;;  %v9242_v38 = vpop.f32.mrf.mxu0 }
 0x607   :  { %10098 = vmatprep.subr.mxu1 %v5191_v42  ;;  %10131 = vmatprep.subr.mxu0 %v5224_v39  ;;  %v9276_v28 = vpop.f32.mrf.mxu1  ;;  %v9243_v39 = vadd.f32 %v9242_v38, %v9241_v61 }
 0x608   :  { %10099 = vmatpush3.msra.mxu1 %v5175_v57  ;;  %10132 = vmatpush3.msra.mxu0 %v5208_v29  ;;  %v9311_v17 = vpop.f32.mrf.mxu0 }
 0x609   :  { %10100 = vmatprep.subr.mxu1 %v5190_v15  ;;  %10133 = vmatprep.subr.mxu0 %v5223_v8  ;;  %v9277_v41 = vpop.f32.mrf.mxu1 }
 0x60a   :  { %10101 = vmatpush3.msra.mxu1 %v5174_v52  ;;  %10134 = vmatpush3.msra.mxu0 %v5207_v25  ;;  %v9278_v29 = vadd.f32 %v9277_v41, %v9276_v28  ;;  %v9312_v15 = vpop.f32.mrf.mxu0 }
 0x60b   :  { %10102 = vmatprep.subr.mxu1 %v5189_v54  ;;  %10135 = vmatprep.subr.mxu0 %v5222_v58  ;;  %v9346_v57 = vpop.f32.mrf.mxu1  ;;  %v9313_v58 = vadd.f32 %v9312_v15, %v9311_v17 }
 0x60c   :  { %10103 = vmatpush3.msra.mxu1 %v5173_v62  ;;  %10136 = vmatpush3.msra.mxu0 %v5206_v35  ;;  %v9381_v25 = vpop.f32.mrf.mxu0 }
 0x60d   :  { %10104 = vmatprep.subr.mxu1 %v5188_v24  ;;  %10137 = vmatprep.subr.mxu0 %v5221_v6  ;;  %v9347_v52 = vpop.f32.mrf.mxu1 }
 0x60e   :  { %10105 = vmatpush3.msra.mxu1 %v5172_v5  ;;  %10138 = vmatpush3.msra.mxu0 %v5205_v60  ;;  %v9348_v35 = vadd.f32 %v9347_v52, %v9346_v57  ;;  %v9382_v24 = vpop.f32.mrf.mxu0 }
 0x60f   :  { %10106 = vmatprep.subr.mxu1 %v5187_v23  ;;  %10139 = vmatprep.subr.mxu0 %v5220_v63  ;;  %v9416_v62 = vpop.f32.mrf.mxu1  ;;  %v9383_v63 = vadd.f32 %v9382_v24, %v9381_v25 }
 0x610   :  { %10107 = vmatpush3.msra.mxu1 %v5171_v49  ;;  %10140 = vmatpush3.msra.mxu0 %v5204_v16  ;;  %v9451_v60 = vpop.f32.mrf.mxu0 }
 0x611   :  { %10108 = vmatprep.subr.mxu1 %v5186_v36  ;;  %10141 = vmatprep.subr.mxu0 %v5219_v33  ;;  %v9417_v5 = vpop.f32.mrf.mxu1 }
 0x612   :  { %10109 = vmatpush3.msra.mxu1 %v5170_v53  ;;  %10142 = vmatpush3.msra.mxu0 %v5203_v50  ;;  %v9418_v16 = vadd.f32 %v9417_v5, %v9416_v62  ;;  %v9452_v36 = vpop.f32.mrf.mxu0 }
 0x613   :  { %10110 = vmatprep.subr.mxu1 %v5185_v26  ;;  %10143 = vmatprep.subr.mxu0 %v5218_v48  ;;  %v9486_v49 = vpop.f32.mrf.mxu1  ;;  %v9453_v48 = vadd.f32 %v9452_v36, %v9451_v60 }
 0x614   :  { %10111 = vmatpush3.msra.mxu1 %v5169_v56  ;;  %10144 = vmatpush3.msra.mxu0 %v5202_v32  ;;  %v9521_v50 = vpop.f32.mrf.mxu0 }
 0x615   :  { %10112 = vmatprep.subr.mxu1 %v5184_v43  ;;  %10145 = vmatprep.subr.mxu0 %v5217_v1  ;;  %v9487_v53 = vpop.f32.mrf.mxu1 }
 0x616   :  { %10113 = vmatpush3.msra.mxu1 %v5168_v47  ;;  %10146 = vmatpush3.msra.mxu0 %v5201_v21  ;;  %v9488_v32 = vadd.f32 %v9487_v53, %v9486_v49  ;;  %v9522_v43 = vpop.f32.mrf.mxu0 }
 0x617   :  { %10114 = vmatprep.subr.mxu1 %v5183_v18  ;;  %10147 = vmatprep.subr.mxu0 %v5216_v11  ;;  %v9556_v56 = vpop.f32.mrf.mxu1  ;;  %v9523_v11 = vadd.f32 %v9522_v43, %v9521_v50 }
 0x618   :  { %10115 = vmatpush3.msra.mxu1 %v5167_v10  ;;  %10148 = vmatpush3.msra.mxu0 %v5200_v31  ;;  %v9591_v21 = vpop.f32.mrf.mxu0 }
 0x619   :  { %7883 = vmatmul.mubr.f32.vlgmr.msra.gmra.mxu1 %v13614_v30  ;;  %10149 = vmatprep.subr.mxu0 %v5215_v7  ;;  %v5855_v30 = vadd.f32 %v9103_v27, %v5785_v44  ;;  %v9557_v47 = vpop.f32.mrf.mxu1 }
 0x61a   :  { %10150 = vmatpush3.msra.mxu0 %v5199_v13  ;;  %v9558_v31 = vadd.f32 %v9557_v47, %v9556_v56  ;;  %v9592_v7 = vpop.f32.mrf.mxu0 }
 0x61b   :  { %7953 = vmatmul.mubr.f32.vlgmr.msra.gmra.mxu0 %v5651_v12  ;;  %v5925_v19 = vadd.f32 %v9138_v3, %v5855_v30  ;;  %v9626_v10 = vpop.f32.mrf.mxu1  ;;  %v9593_v0 = vadd.f32 %v9592_v7, %v9591_v21 }
 0x61c   :  { %v9661_v51 = vpop.f32.mrf.mxu0 }
 0x61d   :  { %v5995_v2 = vadd.f32 %v9173_v4, %v5925_v19  ;;  %v9627_v12 = vpop.f32.mrf.mxu1 }
 0x61e   :  { %v9628_v9 = vadd.f32 %v9627_v12, %v9626_v10  ;;  %v9662_v45 = vpop.f32.mrf.mxu0 }
 0x61f   :  { %v6065_v42 = vadd.f32 %v9208_v46, %v5995_v2  ;;  %v9696_v40 = vpop.f32.mrf.mxu1  ;;  %v9663_v27 = vadd.f32 %v9662_v45, %v9661_v51 }
 0x620   :  { %v9731_v37 = vpop.f32.mrf.mxu0 }
 0x621   :  { %v6135_v8 = vadd.f32 %v9243_v39, %v6065_v42  ;;  %v9697_v34 = vpop.f32.mrf.mxu1 }
 0x622   :  { %v9698_v3 = vadd.f32 %v9697_v34, %v9696_v40  ;;  %v9732_v22 = vpop.f32.mrf.mxu0 }
 0x623   :  { %v6205_v54 = vadd.f32 %v9278_v29, %v6135_v8  ;;  %v9733_v4 = vadd.f32 %v9732_v22, %v9731_v37 }
 0x625   :  { %v6275_v6 = vadd.f32 %v9313_v58, %v6205_v54 }
 0x627   :  { %v6345_v23 = vadd.f32 %v9348_v35, %v6275_v6 }
 0x629   :  { %v6415_v33 = vadd.f32 %v9383_v63, %v6345_v23 }
 0x62b   :  { %v6485_v26 = vadd.f32 %v9418_v16, %v6415_v33 }
 0x62d   :  { %v6555_v1 = vadd.f32 %v9453_v48, %v6485_v26 }
 0x62f   :  { %v6625_v18 = vadd.f32 %v9488_v32, %v6555_v1  ;;  %v9766_v55 = vpop.f32.mrf.mxu1 }
 0x631   :  { %v6695_v13 = vadd.f32 %v9523_v11, %v6625_v18  ;;  %v9767_v14 = vpop.f32.mrf.mxu1 }
 0x632   :  { %v9801_v61 = vpop.f32.mrf.mxu0  ;;  %v9768_v46 = vadd.f32 %v9767_v14, %v9766_v55 }
 0x633   :  { %v6765_v59 = vadd.f32 %v9558_v31, %v6695_v13 }
 0x634   :  { %v9802_v38 = vpop.f32.mrf.mxu0 }
 0x635   :  { %v6835_v20 = vadd.f32 %v9593_v0, %v6765_v59  ;;  %v9803_v39 = vadd.f32 %v9802_v38, %v9801_v61 }
 0x637   :  { %v6905_v44 = vadd.f32 %v9628_v9, %v6835_v20 }
 0x639   :  { %v6975_v30 = vadd.f32 %v9663_v27, %v6905_v44 }
 0x63b   :  { %v7045_v19 = vadd.f32 %v9698_v3, %v6975_v30 }
 0x63d   :  { %v7115_v2 = vadd.f32 %v9733_v4, %v7045_v19 }
 0x63f   :  { %v7185_v42 = vadd.f32 %v9768_v46, %v7115_v2 }
 0x641   :  { %v7255_v8 = vadd.f32 %v9803_v39, %v7185_v42 }
 0x651   :  { %v9836_v28 = vpop.f32.mrf.mxu1 }
 0x653   :  { %v9837_v41 = vpop.f32.mrf.mxu1 }
 0x654   :  { %v9871_v17 = vpop.f32.mrf.mxu0  ;;  %v9838_v29 = vadd.f32 %v9837_v41, %v9836_v28 }
 0x656   :  { %v9872_v15 = vpop.f32.mrf.mxu0  ;;  %v7325_v54 = vadd.f32 %v9838_v29, %v7255_v8 }
 0x657   :  { %v9873_v58 = vadd.f32 %v9872_v15, %v9871_v17 }
 0x659   :  { %v7395_v6 = vadd.f32 %v9873_v58, %v7325_v54 }
 0x673   :  { %v9906_v57 = vpop.f32.mrf.mxu1 }
 0x675   :  { %v9907_v52 = vpop.f32.mrf.mxu1 }
 0x676   :  { %v9941_v25 = vpop.f32.mrf.mxu0  ;;  %v9908_v35 = vadd.f32 %v9907_v52, %v9906_v57 }
 0x678   :  { %v9942_v24 = vpop.f32.mrf.mxu0  ;;  %v7465_v23 = vadd.f32 %v9908_v35, %v7395_v6 }
 0x679   :  { %v9943_v63 = vadd.f32 %v9942_v24, %v9941_v25 }
 0x67b   :  { %v7535_v33 = vadd.f32 %v9943_v63, %v7465_v23 }
 0x695   :  { %v9976_v62 = vpop.f32.mrf.mxu1 }
 0x697   :  { %v9977_v5 = vpop.f32.mrf.mxu1 }
 0x698   :  { %v10011_v60 = vpop.f32.mrf.mxu0  ;;  %v9978_v16 = vadd.f32 %v9977_v5, %v9976_v62 }
 0x69a   :  { %v10012_v36 = vpop.f32.mrf.mxu0  ;;  %v7605_v26 = vadd.f32 %v9978_v16, %v7535_v33 }
 0x69b   :  { %v10013_v48 = vadd.f32 %v10012_v36, %v10011_v60 }
 0x69d   :  { %v7675_v43 = vadd.f32 %v10013_v48, %v7605_v26 }
 0x6b7   :  { %v10046_v49 = vpop.f32.mrf.mxu1 }
 0x6b9   :  { %v10047_v53 = vpop.f32.mrf.mxu1 }
 0x6ba   :  { %v10081_v50 = vpop.f32.mrf.mxu0  ;;  %v10048_v56 = vadd.f32 %v10047_v53, %v10046_v49 }
 0x6bc   :  { %v10082_v32 = vpop.f32.mrf.mxu0  ;;  %v7745_v1 = vadd.f32 %v10048_v56, %v7675_v43 }
 0x6bd   :  { %v10083_v47 = vadd.f32 %v10082_v32, %v10081_v50 }
 0x6bf   :  { %v7815_v10 = vadd.f32 %v10083_v47, %v7745_v1 }
 0x6d9   :  { %v10116_v21 = vpop.f32.mrf.mxu1 }
 0x6db   :  { %v10117_v18 = vpop.f32.mrf.mxu1  ;;  %v10151_v11 = vpop.f32.mrf.mxu0 }
 0x6dc   :  { %v10118_v31 = vadd.f32 %v10117_v18, %v10116_v21 }
 0x6dd   :  { %v10152_v7 = vpop.f32.mrf.mxu0 }
 0x6de   :  { %v7885_v13 = vadd.f32 %v10118_v31, %v7815_v10  ;;  %v10153_v12 = vadd.f32 %v10152_v7, %v10151_v11 }
 0x6e0   :  { %v7955_v51 = vadd.f32 %v10153_v12, %v7885_v13 }
 0x6e2   :  { %7959 = vst.msk [vmem:[#allocation4] sm:$0x3] %vm7958_vm0, %v7955_v51 }
 0x6e3   :  { %10339 = shalt.err (!%p10336_p4)
}
 0x6e4   :  { %7969 = dma.vmem_to_hbm [thread:$0]  %s7967_s8, 32, %s16421_s9, [#allocation5]  }
 0x6e5   :  { %10348 = dma.done.wait [#allocation5], 32  }
 0x6e6   :  { %10349 = vsyncadd [#allocation5], 4294967264 }
 0x6e7   :  { %7973 = vsyncpa [#allocation5], 1 }

</bundles_post_ra>
